<compile_context>
chip_gen: v5e
topology: v5e:2x2
jax: 0.10.0
libtpu: 0.0.40
codegen_flags: <defaults>
</compile_context>

<pallas_src>
import jax
import jax.numpy as jnp
from jax.experimental import pallas as pl
from jax.experimental.pallas import tpu as pltpu


def _compiler_params():
    # Generation-aware scoped-VMEM budget: ~3/4 of physical VMEM, capped at
    # 100 MiB (=> ~96 MiB on v5e/v6e, ~48 MiB on v7x); fallback 64 MiB.
    try:
        phys = pltpu.get_tpu_info().vmem_capacity_bytes
        limit = min(int(phys * 3 // 4), 100 * 1024 * 1024)
    except Exception:
        limit = 64 * 1024 * 1024
    return pltpu.CompilerParams(
        dimension_semantics=("parallel",),
        vmem_limit_bytes=limit,
    )


# ---------------------------------------------------------------------------
# Kernel 1: fused ConvTranspose2d(k=2,s=2) + stride-2 interleave + zero pad
#           + conv1 (3x3, pad=1) over the implicit concat(up, skip)
#           + per-batch-tile BN1 sum / sum-of-squares partials.
# ---------------------------------------------------------------------------
def _up_conv1_kernel(x_ref, skip_ref, wup_ref, bup_ref, w1_ref, b1_ref,
                     y_ref, s_ref, ss_ref, up_pad, sk_pad, acc_ref):
    _, H, W, Cin = x_ref.shape
    _, HH, WW, C = skip_ref.shape
    f32 = jnp.float32
    bf16 = jnp.bfloat16

    # Zero only the 1-pixel halo of both padded scratches (interiors are fully
    # rewritten below).  Done every step: scratch is per-core, so a
    # program_id==0 guard is unsafe under megacore batch sharding.
    zrow = jnp.zeros((1, WW + 2, C), f32)
    zcol = jnp.zeros((HH + 2, 1, C), f32)
    for buf in (up_pad, sk_pad):
        buf[0:1, :, :] = zrow
        buf[HH + 1:HH + 2, :, :] = zrow
        buf[:, 0:1, :] = zcol
        buf[:, WW + 1:WW + 2, :] = zcol

    # --- ConvTranspose2d(k=2, s=2): 4 per-(dy, dx) tap matmuls --------------
    x = x_ref[...].reshape(H * W, Cin)                     # bf16
    bup = bup_ref[...]                                     # (1, C) f32
    u = [jnp.dot(x, wup_ref[d], preferred_element_type=f32).reshape(H, W, C)
         + bup
         for d in range(4)]                                # d = 2*dy + dx

    # Stride-2 x-interleave via exact 0/1 permutation matmuls (MXU, batched
    # over input rows): rows[dy][i, X, :] = u[2*dy + X%2][i, X//2, :].
    xi = jax.lax.broadcasted_iota(jnp.int32, (WW, W), 0)
    wi = jax.lax.broadcasted_iota(jnp.int32, (WW, W), 1)
    p_even = jnp.broadcast_to((xi == 2 * wi).astype(f32), (H, WW, W))
    p_odd = jnp.broadcast_to((xi == 2 * wi + 1).astype(f32), (H, WW, W))
    rows = [jnp.einsum('hxw,hwc->hxc', p_even, u[2 * dy],
                       preferred_element_type=f32)
            + jnp.einsum('hxw,hwc->hxc', p_odd, u[2 * dy + 1],
                         preferred_element_type=f32)
            for dy in range(2)]

    # Stride-2 y-interleave: static row-slab stores into the halo scratch.
    for i in range(H):
        up_pad[1 + 2 * i:2 + 2 * i, 1:WW + 1, :] = rows[0][i:i + 1]
        up_pad[2 + 2 * i:3 + 2 * i, 1:WW + 1, :] = rows[1][i:i + 1]

    # skip goes straight into its own padded scratch; torch.cat([up, skip], 1)
    # is realized implicitly by summing the two per-tap matmuls below.
    sk_pad[1:HH + 1, 1:WW + 1, :] = skip_ref[...].reshape(HH, WW, C).astype(f32)

    # --- conv1: 9 taps x {up, skip} accumulated K=C MXU matmuls -------------
    for t in range(9):
        ky, kx = t // 3, t % 3
        upw = up_pad[ky:ky + HH, kx:kx + WW, :].reshape(HH * WW, C).astype(bf16)
        skw = sk_pad[ky:ky + HH, kx:kx + WW, :].reshape(HH * WW, C).astype(bf16)
        part = (jnp.dot(upw, w1_ref[2 * t], preferred_element_type=f32)
                + jnp.dot(skw, w1_ref[2 * t + 1], preferred_element_type=f32))
        if t == 0:
            acc_ref[...] = part
        else:
            acc_ref[...] += part

    acc = acc_ref[...] + b1_ref[...]
    y_ref[...] = acc.reshape(1, HH, WW, C).astype(y_ref.dtype)
    s_ref[...] = jnp.sum(acc, axis=0, keepdims=True).reshape(1, 1, C)
    ss_ref[...] = jnp.sum(acc * acc, axis=0, keepdims=True).reshape(1, 1, C)


# ---------------------------------------------------------------------------
# Kernel 2: folded BN1 (scale/shift) + ReLU + conv2 (3x3, pad=1) per-tap
#           accumulated matmuls + per-batch-tile BN2 sum / sumsq partials.
# ---------------------------------------------------------------------------
def _conv2_kernel(y1_ref, sc_ref, sh_ref, w2_ref, b2_ref,
                  y_ref, s_ref, ss_ref, hpad, acc_ref):
    _, HH, WW, C = y1_ref.shape
    f32 = jnp.float32
    bf16 = jnp.bfloat16

    zrow = jnp.zeros((1, WW + 2, C), f32)
    zcol = jnp.zeros((HH + 2, 1, C), f32)
    hpad[0:1, :, :] = zrow
    hpad[HH + 1:HH + 2, :, :] = zrow
    hpad[:, 0:1, :] = zcol
    hpad[:, WW + 1:WW + 2, :] = zcol

    h1 = jnp.maximum(
        y1_ref[...].reshape(HH, WW, C).astype(f32) * sc_ref[...] + sh_ref[...],
        0.0)
    hpad[1:HH + 1, 1:WW + 1, :] = h1

    for t in range(9):
        ky, kx = t // 3, t % 3
        win = hpad[ky:ky + HH, kx:kx + WW, :].reshape(HH * WW, C).astype(bf16)
        part = jnp.dot(win, w2_ref[t], preferred_element_type=f32)
        if t == 0:
            acc_ref[...] = part
        else:
            acc_ref[...] += part

    acc = acc_ref[...] + b2_ref[...]
    y_ref[...] = acc.reshape(1, HH, WW, C).astype(y_ref.dtype)
    s_ref[...] = jnp.sum(acc, axis=0, keepdims=True).reshape(1, 1, C)
    ss_ref[...] = jnp.sum(acc * acc, axis=0, keepdims=True).reshape(1, 1, C)


def _bn_fold(s_partial, ss_partial, count, gamma, beta, eps=1e-5):
    """Per-tile partials -> global biased batch stats -> folded (scale, shift)."""
    s = jnp.sum(s_partial, axis=(0, 1))
    ss = jnp.sum(ss_partial, axis=(0, 1))
    mean = s / count
    var = jnp.maximum(ss / count - mean * mean, 0.0)   # guard cancellation
    scale = gamma * jax.lax.rsqrt(var + eps)
    shift = beta - mean * scale
    return (scale.reshape(1, -1).astype(jnp.float32),
            shift.reshape(1, -1).astype(jnp.float32))


@jax.jit
def decoder_block_forward(inputs_nchw, skip_nchw, time_idx, params):
    """inputs: (N, in_c, H, W); skip: (N, out_c, 2H, 2W); time_idx: (N,) int32.
    Returns the decoder_block output in NCHW: (N, out_c, 2H, 2W) f32."""
    N, Cin, H, W = inputs_nchw.shape
    Cout = params["w_up"].shape[1]
    HH, WW = 2 * H, 2 * W
    f32, bf16 = jnp.float32, jnp.bfloat16
    cparams = _compiler_params()

    # NCHW -> NHWC boundary transposes; activations carried as bf16 in HBM.
    x_nhwc = jnp.transpose(inputs_nchw, (0, 2, 3, 1)).astype(bf16)
    skip_nhwc = jnp.transpose(skip_nchw, (0, 2, 3, 1)).astype(bf16)

    # ConvTranspose2d weights as 4 per-(dy, dx) taps: (4, Cin, Cout).
    w_up4 = (jnp.transpose(params["w_up"], (2, 3, 0, 1))
             .reshape(4, Cin, Cout).astype(bf16))
    b_up = params["b_up"].reshape(1, Cout).astype(f32)
    # conv1 taps: (18, Cout, Cout); index 2*t (+0: up half, +1: skip half).
    w1_taps = (jnp.transpose(params["w1"], (2, 3, 1, 0))
               .reshape(9, 2, Cout, Cout)
               .reshape(18, Cout, Cout).astype(bf16))
    b1 = params["b1"].reshape(1, Cout).astype(f32)
    w2_taps = (jnp.transpose(params["w2"], (2, 3, 1, 0))
               .reshape(9, Cout, Cout).astype(bf16))
    b2 = params["b2"].reshape(1, Cout).astype(f32)

    # --- fused up-proj + interleave + pad + conv1 + BN1 partial stats --------
    y1, s1p, ss1p = pl.pallas_call(
        _up_conv1_kernel,
        grid=(N,),
        in_specs=[
            pl.BlockSpec((1, H, W, Cin), lambda n: (n, 0, 0, 0)),
            pl.BlockSpec((1, HH, WW, Cout), lambda n: (n, 0, 0, 0)),
            pl.BlockSpec((4, Cin, Cout), lambda n: (0, 0, 0)),
            pl.BlockSpec((1, Cout), lambda n: (0, 0)),
            pl.BlockSpec((18, Cout, Cout), lambda n: (0, 0, 0)),
            pl.BlockSpec((1, Cout), lambda n: (0, 0)),
        ],
        out_specs=(
            pl.BlockSpec((1, HH, WW, Cout), lambda n: (n, 0, 0, 0)),
            pl.BlockSpec((1, 1, Cout), lambda n: (n, 0, 0)),
            pl.BlockSpec((1, 1, Cout), lambda n: (n, 0, 0)),
        ),
        out_shape=(
            jax.ShapeDtypeStruct((N, HH, WW, Cout), bf16),
            jax.ShapeDtypeStruct((N, 1, Cout), f32),
            jax.ShapeDtypeStruct((N, 1, Cout), f32),
        ),
        scratch_shapes=[
            pltpu.VMEM((HH + 2, WW + 2, Cout), f32),   # padded up image
            pltpu.VMEM((HH + 2, WW + 2, Cout), f32),   # padded skip image
            pltpu.VMEM((HH * WW, Cout), f32),          # conv1 accumulator
        ],
        compiler_params=cparams,
    )(x_nhwc, skip_nhwc, w_up4, b_up, w1_taps, b1)

    count = N * HH * WW
    scale1, shift1 = _bn_fold(s1p, ss1p, count, params["g1"], params["be1"])

    # --- folded BN1 + ReLU + conv2 + BN2 partial stats ------------------------
    y2, s2p, ss2p = pl.pallas_call(
        _conv2_kernel,
        grid=(N,),
        in_specs=[
            pl.BlockSpec((1, HH, WW, Cout), lambda n: (n, 0, 0, 0)),
            pl.BlockSpec((1, Cout), lambda n: (0, 0)),
            pl.BlockSpec((1, Cout), lambda n: (0, 0)),
            pl.BlockSpec((9, Cout, Cout), lambda n: (0, 0, 0)),
            pl.BlockSpec((1, Cout), lambda n: (0, 0)),
        ],
        out_specs=(
            pl.BlockSpec((1, HH, WW, Cout), lambda n: (n, 0, 0, 0)),
            pl.BlockSpec((1, 1, Cout), lambda n: (n, 0, 0)),
            pl.BlockSpec((1, 1, Cout), lambda n: (n, 0, 0)),
        ),
        out_shape=(
            jax.ShapeDtypeStruct((N, HH, WW, Cout), bf16),
            jax.ShapeDtypeStruct((N, 1, Cout), f32),
            jax.ShapeDtypeStruct((N, 1, Cout), f32),
        ),
        scratch_shapes=[
            pltpu.VMEM((HH + 2, WW + 2, Cout), f32),   # padded BN1+ReLU image
            pltpu.VMEM((HH * WW, Cout), f32),          # conv2 accumulator
        ],
        compiler_params=cparams,
    )(y1, scale1, shift1, w2_taps, b2)

    scale2, shift2 = _bn_fold(s2p, ss2p, count, params["g2"], params["be2"])

    # BN2 + ReLU + time-embedding + NHWC->NCHW: one fused XLA elementwise +
    # layout pass over the output (replaces the old kernel-4 + transpose pair).
    # TODO(synk): nn.Embedding lookup stays a tiny XLA gather.
    temb = jnp.take(params["emb"], time_idx, axis=0).astype(f32)    # (N, Cout)
    h2 = jnp.maximum(y2.astype(f32) * scale2 + shift2, 0.0) + temb[:, None, None, :]
    return jnp.transpose(h2, (0, 3, 1, 2))


# ---------------------------------------------------------------------------
# Pure-JAX reference mirroring the PyTorch module (training-mode BatchNorm).
# ---------------------------------------------------------------------------
def _reference_forward(inputs, skip, time_idx, p):
    def conv(x, w, b):
        y = jax.lax.conv_general_dilated(
            x, w, window_strides=(1, 1), padding=((1, 1), (1, 1)),
            dimension_numbers=("NCHW", "OIHW", "NCHW"))
        return y + b.reshape(1, -1, 1, 1)

    def bn(x, g, be):
        mu = jnp.mean(x, axis=(0, 2, 3), keepdims=True)
        var = jnp.mean((x - mu) ** 2, axis=(0, 2, 3), keepdims=True)
        return (x - mu) * jax.lax.rsqrt(var + 1e-5) * g.reshape(1, -1, 1, 1) \
               + be.reshape(1, -1, 1, 1)

    N, Cin, H, W = inputs.shape
    Cout = p["w_up"].shape[1]
    # ConvTranspose2d(k=2, s=2, pad=0): out[n,o,2i+k,2j+l] = sum_c x*W + b
    u = jnp.einsum("nchw,cokl->nohkwl", inputs, p["w_up"])
    u = u.reshape(N, Cout, 2 * H, 2 * W) + p["b_up"].reshape(1, -1, 1, 1)
    x = jnp.concatenate([u, skip], axis=1)
    h = jnp.maximum(bn(conv(x, p["w1"], p["b1"]), p["g1"], p["be1"]), 0.0)
    h = jnp.maximum(bn(conv(h, p["w2"], p["b2"]), p["g2"], p["be2"]), 0.0)
    temb = jnp.take(p["emb"], time_idx, axis=0)[:, :, None, None]
    return h + temb


if __name__ == "__main__":
    key = jax.random.PRNGKey(0)
    ks = jax.random.split(key, 12)
    N, in_c, out_c, H, W = 2, 16, 8, 8, 8   # decoder: 8x8 -> upsampled 16x16

    # Deterministic synthetic parameters (shapes follow the nn.Module __init__).
    params = {
        # ConvTranspose2d weight: (in_c, out_c, 2, 2)
        "w_up": 0.2 * jax.random.normal(ks[0], (in_c, out_c, 2, 2), jnp.float32),
        "b_up": 0.1 * jax.random.normal(ks[1], (out_c,), jnp.float32),
        # conv_block(2*out_c -> out_c)
        "w1": 0.2 * jax.random.normal(ks[2], (out_c, 2 * out_c, 3, 3), jnp.float32),
        "b1": 0.1 * jax.random.normal(ks[3], (out_c,), jnp.float32),
        "g1": 1.0 + 0.1 * jax.random.normal(ks[4], (out_c,), jnp.float32),
        "be1": 0.1 * jax.random.normal(ks[5], (out_c,), jnp.float32),
        "w2": 0.2 * jax.random.normal(ks[6], (out_c, out_c, 3, 3), jnp.float32),
        "b2": 0.1 * jax.random.normal(ks[7], (out_c,), jnp.float32),
        "g2": 1.0 + 0.1 * jax.random.normal(ks[8], (out_c,), jnp.float32),
        "be2": 0.1 * jax.random.normal(ks[9], (out_c,), jnp.float32),
        "emb": 0.5 * jax.random.normal(ks[10], (512, out_c), jnp.float32),
    }
    inputs = jax.random.normal(ks[11], (N, in_c, H, W), jnp.float32)
    skip = jax.random.normal(jax.random.PRNGKey(1),
                             (N, out_c, 2 * H, 2 * W), jnp.float32)
    time_idx = jnp.array([3, 200], dtype=jnp.int32)

    x_out = decoder_block_forward(inputs, skip, time_idx, params)
    x_out = jax.block_until_ready(x_out)

    # Sanity check against the pure-JAX reference (loose tol: bf16 activations
    # and bf16 MXU operands throughout the Pallas pipeline).
    x_ref = _reference_forward(inputs, skip, time_idx, params)
    assert x_out.shape == (N, out_c, 2 * H, 2 * W)
    assert jnp.allclose(x_out, x_ref, atol=1.5e-1, rtol=5e-2), \
        float(jnp.max(jnp.abs(x_out - x_ref)))

    print("KERNEL_OK")
</pallas_src>

<mosaic_0001>
module attributes {stable_mosaic.version = 11 : i64} {
  func.func @_up_conv1_kernel(%arg0: i32, %arg1: memref<1x8x8x16xbf16, #tpu.memory_space<vmem>>, %arg2: memref<1x16x16x8xbf16, #tpu.memory_space<vmem>>, %arg3: memref<4x16x8xbf16, #tpu.memory_space<vmem>>, %arg4: memref<1x8xf32, #tpu.memory_space<vmem>>, %arg5: memref<18x8x8xbf16, #tpu.memory_space<vmem>>, %arg6: memref<1x8xf32, #tpu.memory_space<vmem>>, %arg7: memref<1x16x16x8xbf16, #tpu.memory_space<vmem>>, %arg8: memref<1x1x8xf32, #tpu.memory_space<vmem>>, %arg9: memref<1x1x8xf32, #tpu.memory_space<vmem>>, %arg10: memref<18x18x8xf32, #tpu.memory_space<vmem>>, %arg11: memref<18x18x8xf32, #tpu.memory_space<vmem>>, %arg12: memref<256x8xf32, #tpu.memory_space<vmem>>) attributes {dimension_semantics = [#tpu.dimension_semantics<parallel>], iteration_bounds = array<i64: 2>, scalar_prefetch = 0 : i64, scratch_operands = 3 : i64, tpu.core_type = #tpu.core_type<tc>, window_params = [{transform_indices = @transform_0, window_bounds = array<i64: 1, 8, 8, 16>}, {transform_indices = @transform_1, window_bounds = array<i64: 1, 16, 16, 8>}, {pipeline_mode = #tpu.pipeline_mode<synchronous>, transform_indices = @transform_2, window_bounds = array<i64: 4, 16, 8>}, {pipeline_mode = #tpu.pipeline_mode<synchronous>, transform_indices = @transform_3, window_bounds = array<i64: 1, 8>}, {pipeline_mode = #tpu.pipeline_mode<synchronous>, transform_indices = @transform_4, window_bounds = array<i64: 18, 8, 8>}, {pipeline_mode = #tpu.pipeline_mode<synchronous>, transform_indices = @transform_5, window_bounds = array<i64: 1, 8>}, {transform_indices = @transform_6, window_bounds = array<i64: 1, 16, 16, 8>}, {transform_indices = @transform_7, window_bounds = array<i64: 1, 1, 8>}, {transform_indices = @transform_8, window_bounds = array<i64: 1, 1, 8>}]} {
    %cst = arith.constant 0.000000e+00 : f32
    %0 = vector.broadcast %cst : f32 to vector<1x18x8xf32>
    %cst_0 = arith.constant 0.000000e+00 : f32
    %1 = vector.broadcast %cst_0 : f32 to vector<18x1x8xf32>
    %c0 = arith.constant 0 : index
    %c0_1 = arith.constant 0 : index
    %c0_2 = arith.constant 0 : index
    %2 = vector.load %arg10[%c0, %c0_1, %c0_2] : memref<18x18x8xf32, #tpu.memory_space<vmem>>, vector<1x18x8xf32>
    tpu.vector_store %arg10[%c0, %c0_1, %c0_2], %0 {strides = array<i32>} : memref<18x18x8xf32, #tpu.memory_space<vmem>>, vector<1x18x8xf32>,
    %c17 = arith.constant 17 : index
    %c0_3 = arith.constant 0 : index
    %c0_4 = arith.constant 0 : index
    %3 = vector.load %arg10[%c17, %c0_3, %c0_4] : memref<18x18x8xf32, #tpu.memory_space<vmem>>, vector<1x18x8xf32>
    tpu.vector_store %arg10[%c17, %c0_3, %c0_4], %0 {strides = array<i32>} : memref<18x18x8xf32, #tpu.memory_space<vmem>>, vector<1x18x8xf32>,
    %c0_5 = arith.constant 0 : index
    %c0_6 = arith.constant 0 : index
    %c0_7 = arith.constant 0 : index
    %4 = vector.load %arg10[%c0_5, %c0_6, %c0_7] : memref<18x18x8xf32, #tpu.memory_space<vmem>>, vector<18x1x8xf32>
    tpu.vector_store %arg10[%c0_5, %c0_6, %c0_7], %1 {strides = array<i32>} : memref<18x18x8xf32, #tpu.memory_space<vmem>>, vector<18x1x8xf32>,
    %c0_8 = arith.constant 0 : index
    %c17_9 = arith.constant 17 : index
    %c0_10 = arith.constant 0 : index
    %5 = vector.load %arg10[%c0_8, %c17_9, %c0_10] : memref<18x18x8xf32, #tpu.memory_space<vmem>>, vector<18x1x8xf32>
    tpu.vector_store %arg10[%c0_8, %c17_9, %c0_10], %1 {strides = array<i32>} : memref<18x18x8xf32, #tpu.memory_space<vmem>>, vector<18x1x8xf32>,
    %c0_11 = arith.constant 0 : index
    %c0_12 = arith.constant 0 : index
    %c0_13 = arith.constant 0 : index
    %6 = vector.load %arg11[%c0_11, %c0_12, %c0_13] : memref<18x18x8xf32, #tpu.memory_space<vmem>>, vector<1x18x8xf32>
    tpu.vector_store %arg11[%c0_11, %c0_12, %c0_13], %0 {strides = array<i32>} : memref<18x18x8xf32, #tpu.memory_space<vmem>>, vector<1x18x8xf32>,
    %c17_14 = arith.constant 17 : index
    %c0_15 = arith.constant 0 : index
    %c0_16 = arith.constant 0 : index
    %7 = vector.load %arg11[%c17_14, %c0_15, %c0_16] : memref<18x18x8xf32, #tpu.memory_space<vmem>>, vector<1x18x8xf32>
    tpu.vector_store %arg11[%c17_14, %c0_15, %c0_16], %0 {strides = array<i32>} : memref<18x18x8xf32, #tpu.memory_space<vmem>>, vector<1x18x8xf32>,
    %c0_17 = arith.constant 0 : index
    %c0_18 = arith.constant 0 : index
    %c0_19 = arith.constant 0 : index
    %8 = vector.load %arg11[%c0_17, %c0_18, %c0_19] : memref<18x18x8xf32, #tpu.memory_space<vmem>>, vector<18x1x8xf32>
    tpu.vector_store %arg11[%c0_17, %c0_18, %c0_19], %1 {strides = array<i32>} : memref<18x18x8xf32, #tpu.memory_space<vmem>>, vector<18x1x8xf32>,
    %c0_20 = arith.constant 0 : index
    %c17_21 = arith.constant 17 : index
    %c0_22 = arith.constant 0 : index
    %9 = vector.load %arg11[%c0_20, %c17_21, %c0_22] : memref<18x18x8xf32, #tpu.memory_space<vmem>>, vector<18x1x8xf32>
    tpu.vector_store %arg11[%c0_20, %c17_21, %c0_22], %1 {strides = array<i32>} : memref<18x18x8xf32, #tpu.memory_space<vmem>>, vector<18x1x8xf32>,
    %c0_23 = arith.constant 0 : index
    %c0_24 = arith.constant 0 : index
    %c0_25 = arith.constant 0 : index
    %c0_26 = arith.constant 0 : index
    %10 = vector.load %arg1[%c0_23, %c0_24, %c0_25, %c0_26] : memref<1x8x8x16xbf16, #tpu.memory_space<vmem>>, vector<1x8x8x16xbf16>
    %11 = vector.shape_cast %10 : vector<1x8x8x16xbf16> to vector<64x16xbf16>
    %c0_27 = arith.constant 0 : index
    %c0_28 = arith.constant 0 : index
    %12 = vector.load %arg4[%c0_27, %c0_28] : memref<1x8xf32, #tpu.memory_space<vmem>>, vector<1x8xf32>
    %c0_29 = arith.constant 0 : index
    %c0_30 = arith.constant 0 : index
    %c0_31 = arith.constant 0 : index
    %13 = vector.load %arg3[%c0_29, %c0_30, %c0_31] : memref<4x16x8xbf16, #tpu.memory_space<vmem>>, vector<1x16x8xbf16>
    %14 = vector.shape_cast %13 : vector<1x16x8xbf16> to vector<16x8xbf16>
    %cst_32 = arith.constant dense<0.000000e+00> : vector<64x8xf32>
    %15 = tpu.matmul %11, %14, %cst_32 {dimension_numbers = #tpu.dot_dimension_numbers<[1], [0], [0], [1], [0, 0, 1, 1], [], []>} : vector<64x16xbf16>, vector<16x8xbf16>, vector<64x8xf32> -> vector<64x8xf32>
    %16 = vector.shape_cast %15 : vector<64x8xf32> to vector<8x8x8xf32>
    %17 = vector.shape_cast %12 : vector<1x8xf32> to vector<1x1x8xf32>
    %18 = vector.broadcast %17 : vector<1x1x8xf32> to vector<8x8x8xf32>
    %19 = arith.addf %16, %18 : vector<8x8x8xf32>
    %c1 = arith.constant 1 : index
    %c0_33 = arith.constant 0 : index
    %c0_34 = arith.constant 0 : index
    %20 = vector.load %arg3[%c1, %c0_33, %c0_34] : memref<4x16x8xbf16, #tpu.memory_space<vmem>>, vector<1x16x8xbf16>
    %21 = vector.shape_cast %20 : vector<1x16x8xbf16> to vector<16x8xbf16>
    %cst_35 = arith.constant dense<0.000000e+00> : vector<64x8xf32>
    %22 = tpu.matmul %11, %21, %cst_35 {dimension_numbers = #tpu.dot_dimension_numbers<[1], [0], [0], [1], [0, 0, 1, 1], [], []>} : vector<64x16xbf16>, vector<16x8xbf16>, vector<64x8xf32> -> vector<64x8xf32>
    %23 = vector.shape_cast %22 : vector<64x8xf32> to vector<8x8x8xf32>
    %24 = vector.shape_cast %12 : vector<1x8xf32> to vector<1x1x8xf32>
    %25 = vector.broadcast %24 : vector<1x1x8xf32> to vector<8x8x8xf32>
    %26 = arith.addf %23, %25 : vector<8x8x8xf32>
    %c2 = arith.constant 2 : index
    %c0_36 = arith.constant 0 : index
    %c0_37 = arith.constant 0 : index
    %27 = vector.load %arg3[%c2, %c0_36, %c0_37] : memref<4x16x8xbf16, #tpu.memory_space<vmem>>, vector<1x16x8xbf16>
    %28 = vector.shape_cast %27 : vector<1x16x8xbf16> to vector<16x8xbf16>
    %cst_38 = arith.constant dense<0.000000e+00> : vector<64x8xf32>
    %29 = tpu.matmul %11, %28, %cst_38 {dimension_numbers = #tpu.dot_dimension_numbers<[1], [0], [0], [1], [0, 0, 1, 1], [], []>} : vector<64x16xbf16>, vector<16x8xbf16>, vector<64x8xf32> -> vector<64x8xf32>
    %30 = vector.shape_cast %29 : vector<64x8xf32> to vector<8x8x8xf32>
    %31 = vector.shape_cast %12 : vector<1x8xf32> to vector<1x1x8xf32>
    %32 = vector.broadcast %31 : vector<1x1x8xf32> to vector<8x8x8xf32>
    %33 = arith.addf %30, %32 : vector<8x8x8xf32>
    %c3 = arith.constant 3 : index
    %c0_39 = arith.constant 0 : index
    %c0_40 = arith.constant 0 : index
    %34 = vector.load %arg3[%c3, %c0_39, %c0_40] : memref<4x16x8xbf16, #tpu.memory_space<vmem>>, vector<1x16x8xbf16>
    %35 = vector.shape_cast %34 : vector<1x16x8xbf16> to vector<16x8xbf16>
    %cst_41 = arith.constant dense<0.000000e+00> : vector<64x8xf32>
    %36 = tpu.matmul %11, %35, %cst_41 {dimension_numbers = #tpu.dot_dimension_numbers<[1], [0], [0], [1], [0, 0, 1, 1], [], []>} : vector<64x16xbf16>, vector<16x8xbf16>, vector<64x8xf32> -> vector<64x8xf32>
    %37 = vector.shape_cast %36 : vector<64x8xf32> to vector<8x8x8xf32>
    %38 = vector.shape_cast %12 : vector<1x8xf32> to vector<1x1x8xf32>
    %39 = vector.broadcast %38 : vector<1x1x8xf32> to vector<8x8x8xf32>
    %40 = arith.addf %37, %39 : vector<8x8x8xf32>
    %41 = tpu.iota {dimensions = array<i32: 0>} : vector<16x8xi32>
    %42 = tpu.iota {dimensions = array<i32: 1>} : vector<16x8xi32>
    %c2_i32 = arith.constant 2 : i32
    %43 = vector.broadcast %c2_i32 : i32 to vector<16x8xi32>
    %44 = arith.muli %43, %42 : vector<16x8xi32>
    %45 = arith.cmpi eq, %41, %44 : vector<16x8xi32>
    %46 = arith.extui %45 : vector<16x8xi1> to vector<16x8xi32>
    %47 = arith.sitofp %46 : vector<16x8xi32> to vector<16x8xf32>
    %48 = vector.shape_cast %47 : vector<16x8xf32> to vector<1x16x8xf32>
    %49 = vector.broadcast %48 : vector<1x16x8xf32> to vector<8x16x8xf32>
    %c2_i32_42 = arith.constant 2 : i32
    %50 = vector.broadcast %c2_i32_42 : i32 to vector<16x8xi32>
    %51 = arith.muli %50, %42 : vector<16x8xi32>
    %c1_i32 = arith.constant 1 : i32
    %52 = vector.broadcast %c1_i32 : i32 to vector<16x8xi32>
    %53 = arith.addi %51, %52 : vector<16x8xi32>
    %54 = arith.cmpi eq, %41, %53 : vector<16x8xi32>
    %55 = arith.extui %54 : vector<16x8xi1> to vector<16x8xi32>
    %56 = arith.sitofp %55 : vector<16x8xi32> to vector<16x8xf32>
    %57 = vector.shape_cast %56 : vector<16x8xf32> to vector<1x16x8xf32>
    %58 = vector.broadcast %57 : vector<1x16x8xf32> to vector<8x16x8xf32>
    "tpu.trace_start"() <{level = 10 : i32, message = "hxw,hwc->hxc"}> : () -> ()
    %cst_43 = arith.constant dense<0.000000e+00> : vector<8x16x8xf32>
    %59 = tpu.matmul %49, %19, %cst_43 {dimension_numbers = #tpu.dot_dimension_numbers<[2], [1], [1], [2], [0, 0, 0, 1, 1, 2], [0], [0]>} : vector<8x16x8xf32>, vector<8x8x8xf32>, vector<8x16x8xf32> -> vector<8x16x8xf32>
    %cst_44 = arith.constant dense<0.000000e+00> : vector<8x16x8xf32>
    %60 = tpu.matmul %58, %26, %cst_44 {dimension_numbers = #tpu.dot_dimension_numbers<[2], [1], [1], [2], [0, 0, 0, 1, 1, 2], [0], [0]>} : vector<8x16x8xf32>, vector<8x8x8xf32>, vector<8x16x8xf32> -> vector<8x16x8xf32>
    "tpu.trace_stop"() : () -> ()
    %61 = arith.addf %59, %60 : vector<8x16x8xf32>
    "tpu.trace_start"() <{level = 10 : i32, message = "hxw,hwc->hxc"}> : () -> ()
    %cst_45 = arith.constant dense<0.000000e+00> : vector<8x16x8xf32>
    %62 = tpu.matmul %49, %33, %cst_45 {dimension_numbers = #tpu.dot_dimension_numbers<[2], [1], [1], [2], [0, 0, 0, 1, 1, 2], [0], [0]>} : vector<8x16x8xf32>, vector<8x8x8xf32>, vector<8x16x8xf32> -> vector<8x16x8xf32>
    %cst_46 = arith.constant dense<0.000000e+00> : vector<8x16x8xf32>
    %63 = tpu.matmul %58, %40, %cst_46 {dimension_numbers = #tpu.dot_dimension_numbers<[2], [1], [1], [2], [0, 0, 0, 1, 1, 2], [0], [0]>} : vector<8x16x8xf32>, vector<8x8x8xf32>, vector<8x16x8xf32> -> vector<8x16x8xf32>
    "tpu.trace_stop"() : () -> ()
    %64 = arith.addf %62, %63 : vector<8x16x8xf32>
    %65 = vector.extract_strided_slice %61 {offsets = [0, 0, 0], sizes = [1, 16, 8], strides = [1, 1, 1]} : vector<8x16x8xf32> to vector<1x16x8xf32>
    %c1_47 = arith.constant 1 : index
    %c1_48 = arith.constant 1 : index
    %c0_49 = arith.constant 0 : index
    %66 = vector.load %arg10[%c1_47, %c1_48, %c0_49] : memref<18x18x8xf32, #tpu.memory_space<vmem>>, vector<1x16x8xf32>
    tpu.vector_store %arg10[%c1_47, %c1_48, %c0_49], %65 {strides = array<i32>} : memref<18x18x8xf32, #tpu.memory_space<vmem>>, vector<1x16x8xf32>,
    %67 = vector.extract_strided_slice %64 {offsets = [0, 0, 0], sizes = [1, 16, 8], strides = [1, 1, 1]} : vector<8x16x8xf32> to vector<1x16x8xf32>
    %c2_50 = arith.constant 2 : index
    %c1_51 = arith.constant 1 : index
    %c0_52 = arith.constant 0 : index
    %68 = vector.load %arg10[%c2_50, %c1_51, %c0_52] : memref<18x18x8xf32, #tpu.memory_space<vmem>>, vector<1x16x8xf32>
    tpu.vector_store %arg10[%c2_50, %c1_51, %c0_52], %67 {strides = array<i32>} : memref<18x18x8xf32, #tpu.memory_space<vmem>>, vector<1x16x8xf32>,
    %69 = vector.extract_strided_slice %61 {offsets = [1, 0, 0], sizes = [1, 16, 8], strides = [1, 1, 1]} : vector<8x16x8xf32> to vector<1x16x8xf32>
    %c3_53 = arith.constant 3 : index
    %c1_54 = arith.constant 1 : index
    %c0_55 = arith.constant 0 : index
    %70 = vector.load %arg10[%c3_53, %c1_54, %c0_55] : memref<18x18x8xf32, #tpu.memory_space<vmem>>, vector<1x16x8xf32>
    tpu.vector_store %arg10[%c3_53, %c1_54, %c0_55], %69 {strides = array<i32>} : memref<18x18x8xf32, #tpu.memory_space<vmem>>, vector<1x16x8xf32>,
    %71 = vector.extract_strided_slice %64 {offsets = [1, 0, 0], sizes = [1, 16, 8], strides = [1, 1, 1]} : vector<8x16x8xf32> to vector<1x16x8xf32>
    %c4 = arith.constant 4 : index
    %c1_56 = arith.constant 1 : index
    %c0_57 = arith.constant 0 : index
    %72 = vector.load %arg10[%c4, %c1_56, %c0_57] : memref<18x18x8xf32, #tpu.memory_space<vmem>>, vector<1x16x8xf32>
    tpu.vector_store %arg10[%c4, %c1_56, %c0_57], %71 {strides = array<i32>} : memref<18x18x8xf32, #tpu.memory_space<vmem>>, vector<1x16x8xf32>,
    %73 = vector.extract_strided_slice %61 {offsets = [2, 0, 0], sizes = [1, 16, 8], strides = [1, 1, 1]} : vector<8x16x8xf32> to vector<1x16x8xf32>
    %c5 = arith.constant 5 : index
    %c1_58 = arith.constant 1 : index
    %c0_59 = arith.constant 0 : index
    %74 = vector.load %arg10[%c5, %c1_58, %c0_59] : memref<18x18x8xf32, #tpu.memory_space<vmem>>, vector<1x16x8xf32>
    tpu.vector_store %arg10[%c5, %c1_58, %c0_59], %73 {strides = array<i32>} : memref<18x18x8xf32, #tpu.memory_space<vmem>>, vector<1x16x8xf32>,
    %75 = vector.extract_strided_slice %64 {offsets = [2, 0, 0], sizes = [1, 16, 8], strides = [1, 1, 1]} : vector<8x16x8xf32> to vector<1x16x8xf32>
    %c6 = arith.constant 6 : index
    %c1_60 = arith.constant 1 : index
    %c0_61 = arith.constant 0 : index
    %76 = vector.load %arg10[%c6, %c1_60, %c0_61] : memref<18x18x8xf32, #tpu.memory_space<vmem>>, vector<1x16x8xf32>
    tpu.vector_store %arg10[%c6, %c1_60, %c0_61], %75 {strides = array<i32>} : memref<18x18x8xf32, #tpu.memory_space<vmem>>, vector<1x16x8xf32>,
    %77 = vector.extract_strided_slice %61 {offsets = [3, 0, 0], sizes = [1, 16, 8], strides = [1, 1, 1]} : vector<8x16x8xf32> to vector<1x16x8xf32>
    %c7 = arith.constant 7 : index
    %c1_62 = arith.constant 1 : index
    %c0_63 = arith.constant 0 : index
    %78 = vector.load %arg10[%c7, %c1_62, %c0_63] : memref<18x18x8xf32, #tpu.memory_space<vmem>>, vector<1x16x8xf32>
    tpu.vector_store %arg10[%c7, %c1_62, %c0_63], %77 {strides = array<i32>} : memref<18x18x8xf32, #tpu.memory_space<vmem>>, vector<1x16x8xf32>,
    %79 = vector.extract_strided_slice %64 {offsets = [3, 0, 0], sizes = [1, 16, 8], strides = [1, 1, 1]} : vector<8x16x8xf32> to vector<1x16x8xf32>
    %c8 = arith.constant 8 : index
    %c1_64 = arith.constant 1 : index
    %c0_65 = arith.constant 0 : index
    %80 = vector.load %arg10[%c8, %c1_64, %c0_65] : memref<18x18x8xf32, #tpu.memory_space<vmem>>, vector<1x16x8xf32>
    tpu.vector_store %arg10[%c8, %c1_64, %c0_65], %79 {strides = array<i32>} : memref<18x18x8xf32, #tpu.memory_space<vmem>>, vector<1x16x8xf32>,
    %81 = vector.extract_strided_slice %61 {offsets = [4, 0, 0], sizes = [1, 16, 8], strides = [1, 1, 1]} : vector<8x16x8xf32> to vector<1x16x8xf32>
    %c9 = arith.constant 9 : index
    %c1_66 = arith.constant 1 : index
    %c0_67 = arith.constant 0 : index
    %82 = vector.load %arg10[%c9, %c1_66, %c0_67] : memref<18x18x8xf32, #tpu.memory_space<vmem>>, vector<1x16x8xf32>
    tpu.vector_store %arg10[%c9, %c1_66, %c0_67], %81 {strides = array<i32>} : memref<18x18x8xf32, #tpu.memory_space<vmem>>, vector<1x16x8xf32>,
    %83 = vector.extract_strided_slice %64 {offsets = [4, 0, 0], sizes = [1, 16, 8], strides = [1, 1, 1]} : vector<8x16x8xf32> to vector<1x16x8xf32>
    %c10 = arith.constant 10 : index
    %c1_68 = arith.constant 1 : index
    %c0_69 = arith.constant 0 : index
    %84 = vector.load %arg10[%c10, %c1_68, %c0_69] : memref<18x18x8xf32, #tpu.memory_space<vmem>>, vector<1x16x8xf32>
    tpu.vector_store %arg10[%c10, %c1_68, %c0_69], %83 {strides = array<i32>} : memref<18x18x8xf32, #tpu.memory_space<vmem>>, vector<1x16x8xf32>,
    %85 = vector.extract_strided_slice %61 {offsets = [5, 0, 0], sizes = [1, 16, 8], strides = [1, 1, 1]} : vector<8x16x8xf32> to vector<1x16x8xf32>
    %c11 = arith.constant 11 : index
    %c1_70 = arith.constant 1 : index
    %c0_71 = arith.constant 0 : index
    %86 = vector.load %arg10[%c11, %c1_70, %c0_71] : memref<18x18x8xf32, #tpu.memory_space<vmem>>, vector<1x16x8xf32>
    tpu.vector_store %arg10[%c11, %c1_70, %c0_71], %85 {strides = array<i32>} : memref<18x18x8xf32, #tpu.memory_space<vmem>>, vector<1x16x8xf32>,
    %87 = vector.extract_strided_slice %64 {offsets = [5, 0, 0], sizes = [1, 16, 8], strides = [1, 1, 1]} : vector<8x16x8xf32> to vector<1x16x8xf32>
    %c12 = arith.constant 12 : index
    %c1_72 = arith.constant 1 : index
    %c0_73 = arith.constant 0 : index
    %88 = vector.load %arg10[%c12, %c1_72, %c0_73] : memref<18x18x8xf32, #tpu.memory_space<vmem>>, vector<1x16x8xf32>
    tpu.vector_store %arg10[%c12, %c1_72, %c0_73], %87 {strides = array<i32>} : memref<18x18x8xf32, #tpu.memory_space<vmem>>, vector<1x16x8xf32>,
    %89 = vector.extract_strided_slice %61 {offsets = [6, 0, 0], sizes = [1, 16, 8], strides = [1, 1, 1]} : vector<8x16x8xf32> to vector<1x16x8xf32>
    %c13 = arith.constant 13 : index
    %c1_74 = arith.constant 1 : index
    %c0_75 = arith.constant 0 : index
    %90 = vector.load %arg10[%c13, %c1_74, %c0_75] : memref<18x18x8xf32, #tpu.memory_space<vmem>>, vector<1x16x8xf32>
    tpu.vector_store %arg10[%c13, %c1_74, %c0_75], %89 {strides = array<i32>} : memref<18x18x8xf32, #tpu.memory_space<vmem>>, vector<1x16x8xf32>,
    %91 = vector.extract_strided_slice %64 {offsets = [6, 0, 0], sizes = [1, 16, 8], strides = [1, 1, 1]} : vector<8x16x8xf32> to vector<1x16x8xf32>
    %c14 = arith.constant 14 : index
    %c1_76 = arith.constant 1 : index
    %c0_77 = arith.constant 0 : index
    %92 = vector.load %arg10[%c14, %c1_76, %c0_77] : memref<18x18x8xf32, #tpu.memory_space<vmem>>, vector<1x16x8xf32>
    tpu.vector_store %arg10[%c14, %c1_76, %c0_77], %91 {strides = array<i32>} : memref<18x18x8xf32, #tpu.memory_space<vmem>>, vector<1x16x8xf32>,
    %93 = vector.extract_strided_slice %61 {offsets = [7, 0, 0], sizes = [1, 16, 8], strides = [1, 1, 1]} : vector<8x16x8xf32> to vector<1x16x8xf32>
    %c15 = arith.constant 15 : index
    %c1_78 = arith.constant 1 : index
    %c0_79 = arith.constant 0 : index
    %94 = vector.load %arg10[%c15, %c1_78, %c0_79] : memref<18x18x8xf32, #tpu.memory_space<vmem>>, vector<1x16x8xf32>
    tpu.vector_store %arg10[%c15, %c1_78, %c0_79], %93 {strides = array<i32>} : memref<18x18x8xf32, #tpu.memory_space<vmem>>, vector<1x16x8xf32>,
    %95 = vector.extract_strided_slice %64 {offsets = [7, 0, 0], sizes = [1, 16, 8], strides = [1, 1, 1]} : vector<8x16x8xf32> to vector<1x16x8xf32>
    %c16 = arith.constant 16 : index
    %c1_80 = arith.constant 1 : index
    %c0_81 = arith.constant 0 : index
    %96 = vector.load %arg10[%c16, %c1_80, %c0_81] : memref<18x18x8xf32, #tpu.memory_space<vmem>>, vector<1x16x8xf32>
    tpu.vector_store %arg10[%c16, %c1_80, %c0_81], %95 {strides = array<i32>} : memref<18x18x8xf32, #tpu.memory_space<vmem>>, vector<1x16x8xf32>,
    %c0_82 = arith.constant 0 : index
    %c0_83 = arith.constant 0 : index
    %c0_84 = arith.constant 0 : index
    %c0_85 = arith.constant 0 : index
    %97 = vector.load %arg2[%c0_82, %c0_83, %c0_84, %c0_85] : memref<1x16x16x8xbf16, #tpu.memory_space<vmem>>, vector<1x16x16x8xbf16>
    %98 = vector.shape_cast %97 : vector<1x16x16x8xbf16> to vector<16x16x8xbf16>
    %99 = arith.extf %98 : vector<16x16x8xbf16> to vector<16x16x8xf32>
    %c1_86 = arith.constant 1 : index
    %c1_87 = arith.constant 1 : index
    %c0_88 = arith.constant 0 : index
    %100 = vector.load %arg11[%c1_86, %c1_87, %c0_88] : memref<18x18x8xf32, #tpu.memory_space<vmem>>, vector<16x16x8xf32>
    tpu.vector_store %arg11[%c1_86, %c1_87, %c0_88], %99 {strides = array<i32>} : memref<18x18x8xf32, #tpu.memory_space<vmem>>, vector<16x16x8xf32>,
    %c0_89 = arith.constant 0 : index
    %c0_90 = arith.constant 0 : index
    %c0_91 = arith.constant 0 : index
    %101 = vector.load %arg10[%c0_89, %c0_90, %c0_91] : memref<18x18x8xf32, #tpu.memory_space<vmem>>, vector<16x16x8xf32>
    %102 = vector.shape_cast %101 : vector<16x16x8xf32> to vector<256x8xf32>
    %103 = arith.truncf %102 : vector<256x8xf32> to vector<256x8xbf16>
    %c0_92 = arith.constant 0 : index
    %c0_93 = arith.constant 0 : index
    %c0_94 = arith.constant 0 : index
    %104 = vector.load %arg11[%c0_92, %c0_93, %c0_94] : memref<18x18x8xf32, #tpu.memory_space<vmem>>, vector<16x16x8xf32>
    %105 = vector.shape_cast %104 : vector<16x16x8xf32> to vector<256x8xf32>
    %106 = arith.truncf %105 : vector<256x8xf32> to vector<256x8xbf16>
    %c0_95 = arith.constant 0 : index
    %c0_96 = arith.constant 0 : index
    %c0_97 = arith.constant 0 : index
    %107 = vector.load %arg5[%c0_95, %c0_96, %c0_97] : memref<18x8x8xbf16, #tpu.memory_space<vmem>>, vector<1x8x8xbf16>
    %108 = vector.shape_cast %107 : vector<1x8x8xbf16> to vector<8x8xbf16>
    %cst_98 = arith.constant dense<0.000000e+00> : vector<256x8xf32>
    %109 = tpu.matmul %103, %108, %cst_98 {dimension_numbers = #tpu.dot_dimension_numbers<[1], [0], [0], [1], [0, 0, 1, 1], [], []>} : vector<256x8xbf16>, vector<8x8xbf16>, vector<256x8xf32> -> vector<256x8xf32>
    %c1_99 = arith.constant 1 : index
    %c0_100 = arith.constant 0 : index
    %c0_101 = arith.constant 0 : index
    %110 = vector.load %arg5[%c1_99, %c0_100, %c0_101] : memref<18x8x8xbf16, #tpu.memory_space<vmem>>, vector<1x8x8xbf16>
    %111 = vector.shape_cast %110 : vector<1x8x8xbf16> to vector<8x8xbf16>
    %cst_102 = arith.constant dense<0.000000e+00> : vector<256x8xf32>
    %112 = tpu.matmul %106, %111, %cst_102 {dimension_numbers = #tpu.dot_dimension_numbers<[1], [0], [0], [1], [0, 0, 1, 1], [], []>} : vector<256x8xbf16>, vector<8x8xbf16>, vector<256x8xf32> -> vector<256x8xf32>
    %113 = arith.addf %109, %112 : vector<256x8xf32>
    %c0_103 = arith.constant 0 : index
    %c0_104 = arith.constant 0 : index
    %114 = vector.load %arg12[%c0_103, %c0_104] : memref<256x8xf32, #tpu.memory_space<vmem>>, vector<256x8xf32>
    tpu.vector_store %arg12[%c0_103, %c0_104], %113 {strides = array<i32>} : memref<256x8xf32, #tpu.memory_space<vmem>>, vector<256x8xf32>,
    %c0_105 = arith.constant 0 : index
    %c1_106 = arith.constant 1 : index
    %c0_107 = arith.constant 0 : index
    %115 = vector.load %arg10[%c0_105, %c1_106, %c0_107] : memref<18x18x8xf32, #tpu.memory_space<vmem>>, vector<16x16x8xf32>
    %116 = vector.shape_cast %115 : vector<16x16x8xf32> to vector<256x8xf32>
    %117 = arith.truncf %116 : vector<256x8xf32> to vector<256x8xbf16>
    %c0_108 = arith.constant 0 : index
    %c1_109 = arith.constant 1 : index
    %c0_110 = arith.constant 0 : index
    %118 = vector.load %arg11[%c0_108, %c1_109, %c0_110] : memref<18x18x8xf32, #tpu.memory_space<vmem>>, vector<16x16x8xf32>
    %119 = vector.shape_cast %118 : vector<16x16x8xf32> to vector<256x8xf32>
    %120 = arith.truncf %119 : vector<256x8xf32> to vector<256x8xbf16>
    %c2_111 = arith.constant 2 : index
    %c0_112 = arith.constant 0 : index
    %c0_113 = arith.constant 0 : index
    %121 = vector.load %arg5[%c2_111, %c0_112, %c0_113] : memref<18x8x8xbf16, #tpu.memory_space<vmem>>, vector<1x8x8xbf16>
    %122 = vector.shape_cast %121 : vector<1x8x8xbf16> to vector<8x8xbf16>
    %cst_114 = arith.constant dense<0.000000e+00> : vector<256x8xf32>
    %123 = tpu.matmul %117, %122, %cst_114 {dimension_numbers = #tpu.dot_dimension_numbers<[1], [0], [0], [1], [0, 0, 1, 1], [], []>} : vector<256x8xbf16>, vector<8x8xbf16>, vector<256x8xf32> -> vector<256x8xf32>
    %c3_115 = arith.constant 3 : index
    %c0_116 = arith.constant 0 : index
    %c0_117 = arith.constant 0 : index
    %124 = vector.load %arg5[%c3_115, %c0_116, %c0_117] : memref<18x8x8xbf16, #tpu.memory_space<vmem>>, vector<1x8x8xbf16>
    %125 = vector.shape_cast %124 : vector<1x8x8xbf16> to vector<8x8xbf16>
    %cst_118 = arith.constant dense<0.000000e+00> : vector<256x8xf32>
    %126 = tpu.matmul %120, %125, %cst_118 {dimension_numbers = #tpu.dot_dimension_numbers<[1], [0], [0], [1], [0, 0, 1, 1], [], []>} : vector<256x8xbf16>, vector<8x8xbf16>, vector<256x8xf32> -> vector<256x8xf32>
    %127 = arith.addf %123, %126 : vector<256x8xf32>
    %c0_119 = arith.constant 0 : index
    %c0_120 = arith.constant 0 : index
    %128 = vector.load %arg12[%c0_119, %c0_120] : memref<256x8xf32, #tpu.memory_space<vmem>>, vector<256x8xf32>
    %129 = arith.addf %128, %127 : vector<256x8xf32>
    %c0_121 = arith.constant 0 : index
    %c0_122 = arith.constant 0 : index
    %130 = vector.load %arg12[%c0_121, %c0_122] : memref<256x8xf32, #tpu.memory_space<vmem>>, vector<256x8xf32>
    tpu.vector_store %arg12[%c0_121, %c0_122], %129 {strides = array<i32>} : memref<256x8xf32, #tpu.memory_space<vmem>>, vector<256x8xf32>,
    %c0_123 = arith.constant 0 : index
    %c2_124 = arith.constant 2 : index
    %c0_125 = arith.constant 0 : index
    %131 = vector.load %arg10[%c0_123, %c2_124, %c0_125] : memref<18x18x8xf32, #tpu.memory_space<vmem>>, vector<16x16x8xf32>
    %132 = vector.shape_cast %131 : vector<16x16x8xf32> to vector<256x8xf32>
    %133 = arith.truncf %132 : vector<256x8xf32> to vector<256x8xbf16>
    %c0_126 = arith.constant 0 : index
    %c2_127 = arith.constant 2 : index
    %c0_128 = arith.constant 0 : index
    %134 = vector.load %arg11[%c0_126, %c2_127, %c0_128] : memref<18x18x8xf32, #tpu.memory_space<vmem>>, vector<16x16x8xf32>
    %135 = vector.shape_cast %134 : vector<16x16x8xf32> to vector<256x8xf32>
    %136 = arith.truncf %135 : vector<256x8xf32> to vector<256x8xbf16>
    %c4_129 = arith.constant 4 : index
    %c0_130 = arith.constant 0 : index
    %c0_131 = arith.constant 0 : index
    %137 = vector.load %arg5[%c4_129, %c0_130, %c0_131] : memref<18x8x8xbf16, #tpu.memory_space<vmem>>, vector<1x8x8xbf16>
    %138 = vector.shape_cast %137 : vector<1x8x8xbf16> to vector<8x8xbf16>
    %cst_132 = arith.constant dense<0.000000e+00> : vector<256x8xf32>
    %139 = tpu.matmul %133, %138, %cst_132 {dimension_numbers = #tpu.dot_dimension_numbers<[1], [0], [0], [1], [0, 0, 1, 1], [], []>} : vector<256x8xbf16>, vector<8x8xbf16>, vector<256x8xf32> -> vector<256x8xf32>
    %c5_133 = arith.constant 5 : index
    %c0_134 = arith.constant 0 : index
    %c0_135 = arith.constant 0 : index
    %140 = vector.load %arg5[%c5_133, %c0_134, %c0_135] : memref<18x8x8xbf16, #tpu.memory_space<vmem>>, vector<1x8x8xbf16>
    %141 = vector.shape_cast %140 : vector<1x8x8xbf16> to vector<8x8xbf16>
    %cst_136 = arith.constant dense<0.000000e+00> : vector<256x8xf32>
    %142 = tpu.matmul %136, %141, %cst_136 {dimension_numbers = #tpu.dot_dimension_numbers<[1], [0], [0], [1], [0, 0, 1, 1], [], []>} : vector<256x8xbf16>, vector<8x8xbf16>, vector<256x8xf32> -> vector<256x8xf32>
    %143 = arith.addf %139, %142 : vector<256x8xf32>
    %c0_137 = arith.constant 0 : index
    %c0_138 = arith.constant 0 : index
    %144 = vector.load %arg12[%c0_137, %c0_138] : memref<256x8xf32, #tpu.memory_space<vmem>>, vector<256x8xf32>
    %145 = arith.addf %144, %143 : vector<256x8xf32>
    %c0_139 = arith.constant 0 : index
    %c0_140 = arith.constant 0 : index
    %146 = vector.load %arg12[%c0_139, %c0_140] : memref<256x8xf32, #tpu.memory_space<vmem>>, vector<256x8xf32>
    tpu.vector_store %arg12[%c0_139, %c0_140], %145 {strides = array<i32>} : memref<256x8xf32, #tpu.memory_space<vmem>>, vector<256x8xf32>,
    %c1_141 = arith.constant 1 : index
    %c0_142 = arith.constant 0 : index
    %c0_143 = arith.constant 0 : index
    %147 = vector.load %arg10[%c1_141, %c0_142, %c0_143] : memref<18x18x8xf32, #tpu.memory_space<vmem>>, vector<16x16x8xf32>
    %148 = vector.shape_cast %147 : vector<16x16x8xf32> to vector<256x8xf32>
    %149 = arith.truncf %148 : vector<256x8xf32> to vector<256x8xbf16>
    %c1_144 = arith.constant 1 : index
    %c0_145 = arith.constant 0 : index
    %c0_146 = arith.constant 0 : index
    %150 = vector.load %arg11[%c1_144, %c0_145, %c0_146] : memref<18x18x8xf32, #tpu.memory_space<vmem>>, vector<16x16x8xf32>
    %151 = vector.shape_cast %150 : vector<16x16x8xf32> to vector<256x8xf32>
    %152 = arith.truncf %151 : vector<256x8xf32> to vector<256x8xbf16>
    %c6_147 = arith.constant 6 : index
    %c0_148 = arith.constant 0 : index
    %c0_149 = arith.constant 0 : index
    %153 = vector.load %arg5[%c6_147, %c0_148, %c0_149] : memref<18x8x8xbf16, #tpu.memory_space<vmem>>, vector<1x8x8xbf16>
    %154 = vector.shape_cast %153 : vector<1x8x8xbf16> to vector<8x8xbf16>
    %cst_150 = arith.constant dense<0.000000e+00> : vector<256x8xf32>
    %155 = tpu.matmul %149, %154, %cst_150 {dimension_numbers = #tpu.dot_dimension_numbers<[1], [0], [0], [1], [0, 0, 1, 1], [], []>} : vector<256x8xbf16>, vector<8x8xbf16>, vector<256x8xf32> -> vector<256x8xf32>
    %c7_151 = arith.constant 7 : index
    %c0_152 = arith.constant 0 : index
    %c0_153 = arith.constant 0 : index
    %156 = vector.load %arg5[%c7_151, %c0_152, %c0_153] : memref<18x8x8xbf16, #tpu.memory_space<vmem>>, vector<1x8x8xbf16>
    %157 = vector.shape_cast %156 : vector<1x8x8xbf16> to vector<8x8xbf16>
    %cst_154 = arith.constant dense<0.000000e+00> : vector<256x8xf32>
    %158 = tpu.matmul %152, %157, %cst_154 {dimension_numbers = #tpu.dot_dimension_numbers<[1], [0], [0], [1], [0, 0, 1, 1], [], []>} : vector<256x8xbf16>, vector<8x8xbf16>, vector<256x8xf32> -> vector<256x8xf32>
    %159 = arith.addf %155, %158 : vector<256x8xf32>
    %c0_155 = arith.constant 0 : index
    %c0_156 = arith.constant 0 : index
    %160 = vector.load %arg12[%c0_155, %c0_156] : memref<256x8xf32, #tpu.memory_space<vmem>>, vector<256x8xf32>
    %161 = arith.addf %160, %159 : vector<256x8xf32>
    %c0_157 = arith.constant 0 : index
    %c0_158 = arith.constant 0 : index
    %162 = vector.load %arg12[%c0_157, %c0_158] : memref<256x8xf32, #tpu.memory_space<vmem>>, vector<256x8xf32>
    tpu.vector_store %arg12[%c0_157, %c0_158], %161 {strides = array<i32>} : memref<256x8xf32, #tpu.memory_space<vmem>>, vector<256x8xf32>,
    %c1_159 = arith.constant 1 : index
    %c1_160 = arith.constant 1 : index
    %c0_161 = arith.constant 0 : index
    %163 = vector.load %arg10[%c1_159, %c1_160, %c0_161] : memref<18x18x8xf32, #tpu.memory_space<vmem>>, vector<16x16x8xf32>
    %164 = vector.shape_cast %163 : vector<16x16x8xf32> to vector<256x8xf32>
    %165 = arith.truncf %164 : vector<256x8xf32> to vector<256x8xbf16>
    %c1_162 = arith.constant 1 : index
    %c1_163 = arith.constant 1 : index
    %c0_164 = arith.constant 0 : index
    %166 = vector.load %arg11[%c1_162, %c1_163, %c0_164] : memref<18x18x8xf32, #tpu.memory_space<vmem>>, vector<16x16x8xf32>
    %167 = vector.shape_cast %166 : vector<16x16x8xf32> to vector<256x8xf32>
    %168 = arith.truncf %167 : vector<256x8xf32> to vector<256x8xbf16>
    %c8_165 = arith.constant 8 : index
    %c0_166 = arith.constant 0 : index
    %c0_167 = arith.constant 0 : index
    %169 = vector.load %arg5[%c8_165, %c0_166, %c0_167] : memref<18x8x8xbf16, #tpu.memory_space<vmem>>, vector<1x8x8xbf16>
    %170 = vector.shape_cast %169 : vector<1x8x8xbf16> to vector<8x8xbf16>
    %cst_168 = arith.constant dense<0.000000e+00> : vector<256x8xf32>
    %171 = tpu.matmul %165, %170, %cst_168 {dimension_numbers = #tpu.dot_dimension_numbers<[1], [0], [0], [1], [0, 0, 1, 1], [], []>} : vector<256x8xbf16>, vector<8x8xbf16>, vector<256x8xf32> -> vector<256x8xf32>
    %c9_169 = arith.constant 9 : index
    %c0_170 = arith.constant 0 : index
    %c0_171 = arith.constant 0 : index
    %172 = vector.load %arg5[%c9_169, %c0_170, %c0_171] : memref<18x8x8xbf16, #tpu.memory_space<vmem>>, vector<1x8x8xbf16>
    %173 = vector.shape_cast %172 : vector<1x8x8xbf16> to vector<8x8xbf16>
    %cst_172 = arith.constant dense<0.000000e+00> : vector<256x8xf32>
    %174 = tpu.matmul %168, %173, %cst_172 {dimension_numbers = #tpu.dot_dimension_numbers<[1], [0], [0], [1], [0, 0, 1, 1], [], []>} : vector<256x8xbf16>, vector<8x8xbf16>, vector<256x8xf32> -> vector<256x8xf32>
    %175 = arith.addf %171, %174 : vector<256x8xf32>
    %c0_173 = arith.constant 0 : index
    %c0_174 = arith.constant 0 : index
    %176 = vector.load %arg12[%c0_173, %c0_174] : memref<256x8xf32, #tpu.memory_space<vmem>>, vector<256x8xf32>
    %177 = arith.addf %176, %175 : vector<256x8xf32>
    %c0_175 = arith.constant 0 : index
    %c0_176 = arith.constant 0 : index
    %178 = vector.load %arg12[%c0_175, %c0_176] : memref<256x8xf32, #tpu.memory_space<vmem>>, vector<256x8xf32>
    tpu.vector_store %arg12[%c0_175, %c0_176], %177 {strides = array<i32>} : memref<256x8xf32, #tpu.memory_space<vmem>>, vector<256x8xf32>,
    %c1_177 = arith.constant 1 : index
    %c2_178 = arith.constant 2 : index
    %c0_179 = arith.constant 0 : index
    %179 = vector.load %arg10[%c1_177, %c2_178, %c0_179] : memref<18x18x8xf32, #tpu.memory_space<vmem>>, vector<16x16x8xf32>
    %180 = vector.shape_cast %179 : vector<16x16x8xf32> to vector<256x8xf32>
    %181 = arith.truncf %180 : vector<256x8xf32> to vector<256x8xbf16>
    %c1_180 = arith.constant 1 : index
    %c2_181 = arith.constant 2 : index
    %c0_182 = arith.constant 0 : index
    %182 = vector.load %arg11[%c1_180, %c2_181, %c0_182] : memref<18x18x8xf32, #tpu.memory_space<vmem>>, vector<16x16x8xf32>
    %183 = vector.shape_cast %182 : vector<16x16x8xf32> to vector<256x8xf32>
    %184 = arith.truncf %183 : vector<256x8xf32> to vector<256x8xbf16>
    %c10_183 = arith.constant 10 : index
    %c0_184 = arith.constant 0 : index
    %c0_185 = arith.constant 0 : index
    %185 = vector.load %arg5[%c10_183, %c0_184, %c0_185] : memref<18x8x8xbf16, #tpu.memory_space<vmem>>, vector<1x8x8xbf16>
    %186 = vector.shape_cast %185 : vector<1x8x8xbf16> to vector<8x8xbf16>
    %cst_186 = arith.constant dense<0.000000e+00> : vector<256x8xf32>
    %187 = tpu.matmul %181, %186, %cst_186 {dimension_numbers = #tpu.dot_dimension_numbers<[1], [0], [0], [1], [0, 0, 1, 1], [], []>} : vector<256x8xbf16>, vector<8x8xbf16>, vector<256x8xf32> -> vector<256x8xf32>
    %c11_187 = arith.constant 11 : index
    %c0_188 = arith.constant 0 : index
    %c0_189 = arith.constant 0 : index
    %188 = vector.load %arg5[%c11_187, %c0_188, %c0_189] : memref<18x8x8xbf16, #tpu.memory_space<vmem>>, vector<1x8x8xbf16>
    %189 = vector.shape_cast %188 : vector<1x8x8xbf16> to vector<8x8xbf16>
    %cst_190 = arith.constant dense<0.000000e+00> : vector<256x8xf32>
    %190 = tpu.matmul %184, %189, %cst_190 {dimension_numbers = #tpu.dot_dimension_numbers<[1], [0], [0], [1], [0, 0, 1, 1], [], []>} : vector<256x8xbf16>, vector<8x8xbf16>, vector<256x8xf32> -> vector<256x8xf32>
    %191 = arith.addf %187, %190 : vector<256x8xf32>
    %c0_191 = arith.constant 0 : index
    %c0_192 = arith.constant 0 : index
    %192 = vector.load %arg12[%c0_191, %c0_192] : memref<256x8xf32, #tpu.memory_space<vmem>>, vector<256x8xf32>
    %193 = arith.addf %192, %191 : vector<256x8xf32>
    %c0_193 = arith.constant 0 : index
    %c0_194 = arith.constant 0 : index
    %194 = vector.load %arg12[%c0_193, %c0_194] : memref<256x8xf32, #tpu.memory_space<vmem>>, vector<256x8xf32>
    tpu.vector_store %arg12[%c0_193, %c0_194], %193 {strides = array<i32>} : memref<256x8xf32, #tpu.memory_space<vmem>>, vector<256x8xf32>,
    %c2_195 = arith.constant 2 : index
    %c0_196 = arith.constant 0 : index
    %c0_197 = arith.constant 0 : index
    %195 = vector.load %arg10[%c2_195, %c0_196, %c0_197] : memref<18x18x8xf32, #tpu.memory_space<vmem>>, vector<16x16x8xf32>
    %196 = vector.shape_cast %195 : vector<16x16x8xf32> to vector<256x8xf32>
    %197 = arith.truncf %196 : vector<256x8xf32> to vector<256x8xbf16>
    %c2_198 = arith.constant 2 : index
    %c0_199 = arith.constant 0 : index
    %c0_200 = arith.constant 0 : index
    %198 = vector.load %arg11[%c2_198, %c0_199, %c0_200] : memref<18x18x8xf32, #tpu.memory_space<vmem>>, vector<16x16x8xf32>
    %199 = vector.shape_cast %198 : vector<16x16x8xf32> to vector<256x8xf32>
    %200 = arith.truncf %199 : vector<256x8xf32> to vector<256x8xbf16>
    %c12_201 = arith.constant 12 : index
    %c0_202 = arith.constant 0 : index
    %c0_203 = arith.constant 0 : index
    %201 = vector.load %arg5[%c12_201, %c0_202, %c0_203] : memref<18x8x8xbf16, #tpu.memory_space<vmem>>, vector<1x8x8xbf16>
    %202 = vector.shape_cast %201 : vector<1x8x8xbf16> to vector<8x8xbf16>
    %cst_204 = arith.constant dense<0.000000e+00> : vector<256x8xf32>
    %203 = tpu.matmul %197, %202, %cst_204 {dimension_numbers = #tpu.dot_dimension_numbers<[1], [0], [0], [1], [0, 0, 1, 1], [], []>} : vector<256x8xbf16>, vector<8x8xbf16>, vector<256x8xf32> -> vector<256x8xf32>
    %c13_205 = arith.constant 13 : index
    %c0_206 = arith.constant 0 : index
    %c0_207 = arith.constant 0 : index
    %204 = vector.load %arg5[%c13_205, %c0_206, %c0_207] : memref<18x8x8xbf16, #tpu.memory_space<vmem>>, vector<1x8x8xbf16>
    %205 = vector.shape_cast %204 : vector<1x8x8xbf16> to vector<8x8xbf16>
    %cst_208 = arith.constant dense<0.000000e+00> : vector<256x8xf32>
    %206 = tpu.matmul %200, %205, %cst_208 {dimension_numbers = #tpu.dot_dimension_numbers<[1], [0], [0], [1], [0, 0, 1, 1], [], []>} : vector<256x8xbf16>, vector<8x8xbf16>, vector<256x8xf32> -> vector<256x8xf32>
    %207 = arith.addf %203, %206 : vector<256x8xf32>
    %c0_209 = arith.constant 0 : index
    %c0_210 = arith.constant 0 : index
    %208 = vector.load %arg12[%c0_209, %c0_210] : memref<256x8xf32, #tpu.memory_space<vmem>>, vector<256x8xf32>
    %209 = arith.addf %208, %207 : vector<256x8xf32>
    %c0_211 = arith.constant 0 : index
    %c0_212 = arith.constant 0 : index
    %210 = vector.load %arg12[%c0_211, %c0_212] : memref<256x8xf32, #tpu.memory_space<vmem>>, vector<256x8xf32>
    tpu.vector_store %arg12[%c0_211, %c0_212], %209 {strides = array<i32>} : memref<256x8xf32, #tpu.memory_space<vmem>>, vector<256x8xf32>,
    %c2_213 = arith.constant 2 : index
    %c1_214 = arith.constant 1 : index
    %c0_215 = arith.constant 0 : index
    %211 = vector.load %arg10[%c2_213, %c1_214, %c0_215] : memref<18x18x8xf32, #tpu.memory_space<vmem>>, vector<16x16x8xf32>
    %212 = vector.shape_cast %211 : vector<16x16x8xf32> to vector<256x8xf32>
    %213 = arith.truncf %212 : vector<256x8xf32> to vector<256x8xbf16>
    %c2_216 = arith.constant 2 : index
    %c1_217 = arith.constant 1 : index
    %c0_218 = arith.constant 0 : index
    %214 = vector.load %arg11[%c2_216, %c1_217, %c0_218] : memref<18x18x8xf32, #tpu.memory_space<vmem>>, vector<16x16x8xf32>
    %215 = vector.shape_cast %214 : vector<16x16x8xf32> to vector<256x8xf32>
    %216 = arith.truncf %215 : vector<256x8xf32> to vector<256x8xbf16>
    %c14_219 = arith.constant 14 : index
    %c0_220 = arith.constant 0 : index
    %c0_221 = arith.constant 0 : index
    %217 = vector.load %arg5[%c14_219, %c0_220, %c0_221] : memref<18x8x8xbf16, #tpu.memory_space<vmem>>, vector<1x8x8xbf16>
    %218 = vector.shape_cast %217 : vector<1x8x8xbf16> to vector<8x8xbf16>
    %cst_222 = arith.constant dense<0.000000e+00> : vector<256x8xf32>
    %219 = tpu.matmul %213, %218, %cst_222 {dimension_numbers = #tpu.dot_dimension_numbers<[1], [0], [0], [1], [0, 0, 1, 1], [], []>} : vector<256x8xbf16>, vector<8x8xbf16>, vector<256x8xf32> -> vector<256x8xf32>
    %c15_223 = arith.constant 15 : index
    %c0_224 = arith.constant 0 : index
    %c0_225 = arith.constant 0 : index
    %220 = vector.load %arg5[%c15_223, %c0_224, %c0_225] : memref<18x8x8xbf16, #tpu.memory_space<vmem>>, vector<1x8x8xbf16>
    %221 = vector.shape_cast %220 : vector<1x8x8xbf16> to vector<8x8xbf16>
    %cst_226 = arith.constant dense<0.000000e+00> : vector<256x8xf32>
    %222 = tpu.matmul %216, %221, %cst_226 {dimension_numbers = #tpu.dot_dimension_numbers<[1], [0], [0], [1], [0, 0, 1, 1], [], []>} : vector<256x8xbf16>, vector<8x8xbf16>, vector<256x8xf32> -> vector<256x8xf32>
    %223 = arith.addf %219, %222 : vector<256x8xf32>
    %c0_227 = arith.constant 0 : index
    %c0_228 = arith.constant 0 : index
    %224 = vector.load %arg12[%c0_227, %c0_228] : memref<256x8xf32, #tpu.memory_space<vmem>>, vector<256x8xf32>
    %225 = arith.addf %224, %223 : vector<256x8xf32>
    %c0_229 = arith.constant 0 : index
    %c0_230 = arith.constant 0 : index
    %226 = vector.load %arg12[%c0_229, %c0_230] : memref<256x8xf32, #tpu.memory_space<vmem>>, vector<256x8xf32>
    tpu.vector_store %arg12[%c0_229, %c0_230], %225 {strides = array<i32>} : memref<256x8xf32, #tpu.memory_space<vmem>>, vector<256x8xf32>,
    %c2_231 = arith.constant 2 : index
    %c2_232 = arith.constant 2 : index
    %c0_233 = arith.constant 0 : index
    %227 = vector.load %arg10[%c2_231, %c2_232, %c0_233] : memref<18x18x8xf32, #tpu.memory_space<vmem>>, vector<16x16x8xf32>
    %228 = vector.shape_cast %227 : vector<16x16x8xf32> to vector<256x8xf32>
    %229 = arith.truncf %228 : vector<256x8xf32> to vector<256x8xbf16>
    %c2_234 = arith.constant 2 : index
    %c2_235 = arith.constant 2 : index
    %c0_236 = arith.constant 0 : index
    %230 = vector.load %arg11[%c2_234, %c2_235, %c0_236] : memref<18x18x8xf32, #tpu.memory_space<vmem>>, vector<16x16x8xf32>
    %231 = vector.shape_cast %230 : vector<16x16x8xf32> to vector<256x8xf32>
    %232 = arith.truncf %231 : vector<256x8xf32> to vector<256x8xbf16>
    %c16_237 = arith.constant 16 : index
    %c0_238 = arith.constant 0 : index
    %c0_239 = arith.constant 0 : index
    %233 = vector.load %arg5[%c16_237, %c0_238, %c0_239] : memref<18x8x8xbf16, #tpu.memory_space<vmem>>, vector<1x8x8xbf16>
    %234 = vector.shape_cast %233 : vector<1x8x8xbf16> to vector<8x8xbf16>
    %cst_240 = arith.constant dense<0.000000e+00> : vector<256x8xf32>
    %235 = tpu.matmul %229, %234, %cst_240 {dimension_numbers = #tpu.dot_dimension_numbers<[1], [0], [0], [1], [0, 0, 1, 1], [], []>} : vector<256x8xbf16>, vector<8x8xbf16>, vector<256x8xf32> -> vector<256x8xf32>
    %c17_241 = arith.constant 17 : index
    %c0_242 = arith.constant 0 : index
    %c0_243 = arith.constant 0 : index
    %236 = vector.load %arg5[%c17_241, %c0_242, %c0_243] : memref<18x8x8xbf16, #tpu.memory_space<vmem>>, vector<1x8x8xbf16>
    %237 = vector.shape_cast %236 : vector<1x8x8xbf16> to vector<8x8xbf16>
    %cst_244 = arith.constant dense<0.000000e+00> : vector<256x8xf32>
    %238 = tpu.matmul %232, %237, %cst_244 {dimension_numbers = #tpu.dot_dimension_numbers<[1], [0], [0], [1], [0, 0, 1, 1], [], []>} : vector<256x8xbf16>, vector<8x8xbf16>, vector<256x8xf32> -> vector<256x8xf32>
    %239 = arith.addf %235, %238 : vector<256x8xf32>
    %c0_245 = arith.constant 0 : index
    %c0_246 = arith.constant 0 : index
    %240 = vector.load %arg12[%c0_245, %c0_246] : memref<256x8xf32, #tpu.memory_space<vmem>>, vector<256x8xf32>
    %241 = arith.addf %240, %239 : vector<256x8xf32>
    %c0_247 = arith.constant 0 : index
    %c0_248 = arith.constant 0 : index
    %242 = vector.load %arg12[%c0_247, %c0_248] : memref<256x8xf32, #tpu.memory_space<vmem>>, vector<256x8xf32>
    tpu.vector_store %arg12[%c0_247, %c0_248], %241 {strides = array<i32>} : memref<256x8xf32, #tpu.memory_space<vmem>>, vector<256x8xf32>,
    %c0_249 = arith.constant 0 : index
    %c0_250 = arith.constant 0 : index
    %243 = vector.load %arg12[%c0_249, %c0_250] : memref<256x8xf32, #tpu.memory_space<vmem>>, vector<256x8xf32>
    %c0_251 = arith.constant 0 : index
    %c0_252 = arith.constant 0 : index
    %244 = vector.load %arg6[%c0_251, %c0_252] : memref<1x8xf32, #tpu.memory_space<vmem>>, vector<1x8xf32>
    %245 = vector.broadcast %244 : vector<1x8xf32> to vector<256x8xf32>
    %246 = arith.addf %243, %245 : vector<256x8xf32>
    %247 = vector.shape_cast %246 : vector<256x8xf32> to vector<1x16x16x8xf32>
    %248 = arith.truncf %247 : vector<1x16x16x8xf32> to vector<1x16x16x8xbf16>
    %c0_253 = arith.constant 0 : index
    %c0_254 = arith.constant 0 : index
    %c0_255 = arith.constant 0 : index
    %c0_256 = arith.constant 0 : index
    %249 = vector.load %arg7[%c0_253, %c0_254, %c0_255, %c0_256] : memref<1x16x16x8xbf16, #tpu.memory_space<vmem>>, vector<1x16x16x8xbf16>
    tpu.vector_store %arg7[%c0_253, %c0_254, %c0_255, %c0_256], %248 {strides = array<i32>} : memref<1x16x16x8xbf16, #tpu.memory_space<vmem>>, vector<1x16x16x8xbf16>,
    %cst_257 = arith.constant dense<0.000000e+00> : vector<8xf32>
    %250 = vector.multi_reduction <add>, %246, %cst_257 [0] : vector<256x8xf32> to vector<8xf32>
    %251 = vector.shape_cast %250 : vector<8xf32> to vector<1x8xf32>
    %252 = vector.shape_cast %251 : vector<1x8xf32> to vector<1x1x8xf32>
    %c0_258 = arith.constant 0 : index
    %c0_259 = arith.constant 0 : index
    %c0_260 = arith.constant 0 : index
    %253 = vector.load %arg8[%c0_258, %c0_259, %c0_260] : memref<1x1x8xf32, #tpu.memory_space<vmem>>, vector<1x1x8xf32>
    tpu.vector_store %arg8[%c0_258, %c0_259, %c0_260], %252 {strides = array<i32>} : memref<1x1x8xf32, #tpu.memory_space<vmem>>, vector<1x1x8xf32>,
    %254 = arith.mulf %246, %246 : vector<256x8xf32>
    %cst_261 = arith.constant dense<0.000000e+00> : vector<8xf32>
    %255 = vector.multi_reduction <add>, %254, %cst_261 [0] : vector<256x8xf32> to vector<8xf32>
    %256 = vector.shape_cast %255 : vector<8xf32> to vector<1x8xf32>
    %257 = vector.shape_cast %256 : vector<1x8xf32> to vector<1x1x8xf32>
    %c0_262 = arith.constant 0 : index
    %c0_263 = arith.constant 0 : index
    %c0_264 = arith.constant 0 : index
    %258 = vector.load %arg9[%c0_262, %c0_263, %c0_264] : memref<1x1x8xf32, #tpu.memory_space<vmem>>, vector<1x1x8xf32>
    tpu.vector_store %arg9[%c0_262, %c0_263, %c0_264], %257 {strides = array<i32>} : memref<1x1x8xf32, #tpu.memory_space<vmem>>, vector<1x1x8xf32>,
    return
  }
  func.func @transform_0(%arg0: i32) -> (i32, i32, i32, i32) {
    %c0_i32 = arith.constant 0 : i32
    %c0_i32_0 = arith.constant 0 : i32
    %c0_i32_1 = arith.constant 0 : i32
    %c0_i32_2 = arith.constant 0 : i32
    return %arg0, %c0_i32, %c0_i32_0, %c0_i32_1 : i32, i32, i32, i32
  }
  func.func @transform_1(%arg0: i32) -> (i32, i32, i32, i32) {
    %c0_i32 = arith.constant 0 : i32
    %c0_i32_0 = arith.constant 0 : i32
    %c0_i32_1 = arith.constant 0 : i32
    %c0_i32_2 = arith.constant 0 : i32
    return %arg0, %c0_i32, %c0_i32_0, %c0_i32_1 : i32, i32, i32, i32
  }
  func.func @transform_2(%arg0: i32) -> (i32, i32, i32) {
    %c0_i32 = arith.constant 0 : i32
    %c0_i32_0 = arith.constant 0 : i32
    %c0_i32_1 = arith.constant 0 : i32
    %c0_i32_2 = arith.constant 0 : i32
    return %c0_i32, %c0_i32_0, %c0_i32_1 : i32, i32, i32
  }
  func.func @transform_3(%arg0: i32) -> (i32, i32) {
    %c0_i32 = arith.constant 0 : i32
    %c0_i32_0 = arith.constant 0 : i32
    %c0_i32_1 = arith.constant 0 : i32
    return %c0_i32, %c0_i32_0 : i32, i32
  }
  func.func @transform_4(%arg0: i32) -> (i32, i32, i32) {
    %c0_i32 = arith.constant 0 : i32
    %c0_i32_0 = arith.constant 0 : i32
    %c0_i32_1 = arith.constant 0 : i32
    %c0_i32_2 = arith.constant 0 : i32
    return %c0_i32, %c0_i32_0, %c0_i32_1 : i32, i32, i32
  }
  func.func @transform_5(%arg0: i32) -> (i32, i32) {
    %c0_i32 = arith.constant 0 : i32
    %c0_i32_0 = arith.constant 0 : i32
    %c0_i32_1 = arith.constant 0 : i32
    return %c0_i32, %c0_i32_0 : i32, i32
  }
  func.func @transform_6(%arg0: i32) -> (i32, i32, i32, i32) {
    %c0_i32 = arith.constant 0 : i32
    %c0_i32_0 = arith.constant 0 : i32
    %c0_i32_1 = arith.constant 0 : i32
    %c0_i32_2 = arith.constant 0 : i32
    return %arg0, %c0_i32, %c0_i32_0, %c0_i32_1 : i32, i32, i32, i32
  }
  func.func @transform_7(%arg0: i32) -> (i32, i32, i32) {
    %c0_i32 = arith.constant 0 : i32
    %c0_i32_0 = arith.constant 0 : i32
    %c0_i32_1 = arith.constant 0 : i32
    return %arg0, %c0_i32, %c0_i32_0 : i32, i32, i32
  }
  func.func @transform_8(%arg0: i32) -> (i32, i32, i32) {
    %c0_i32 = arith.constant 0 : i32
    %c0_i32_0 = arith.constant 0 : i32
    %c0_i32_1 = arith.constant 0 : i32
    return %arg0, %c0_i32, %c0_i32_0 : i32, i32, i32
  }
}

module attributes {stable_mosaic.version = 11 : i64} {
  func.func @_conv2_kernel(%arg0: i32, %arg1: memref<1x16x16x8xbf16, #tpu.memory_space<vmem>>, %arg2: memref<1x8xf32, #tpu.memory_space<vmem>>, %arg3: memref<1x8xf32, #tpu.memory_space<vmem>>, %arg4: memref<9x8x8xbf16, #tpu.memory_space<vmem>>, %arg5: memref<1x8xf32, #tpu.memory_space<vmem>>, %arg6: memref<1x16x16x8xbf16, #tpu.memory_space<vmem>>, %arg7: memref<1x1x8xf32, #tpu.memory_space<vmem>>, %arg8: memref<1x1x8xf32, #tpu.memory_space<vmem>>, %arg9: memref<18x18x8xf32, #tpu.memory_space<vmem>>, %arg10: memref<256x8xf32, #tpu.memory_space<vmem>>) attributes {dimension_semantics = [#tpu.dimension_semantics<parallel>], iteration_bounds = array<i64: 2>, scalar_prefetch = 0 : i64, scratch_operands = 2 : i64, tpu.core_type = #tpu.core_type<tc>, window_params = [{transform_indices = @transform_0, window_bounds = array<i64: 1, 16, 16, 8>}, {pipeline_mode = #tpu.pipeline_mode<synchronous>, transform_indices = @transform_1, window_bounds = array<i64: 1, 8>}, {pipeline_mode = #tpu.pipeline_mode<synchronous>, transform_indices = @transform_2, window_bounds = array<i64: 1, 8>}, {pipeline_mode = #tpu.pipeline_mode<synchronous>, transform_indices = @transform_3, window_bounds = array<i64: 9, 8, 8>}, {pipeline_mode = #tpu.pipeline_mode<synchronous>, transform_indices = @transform_4, window_bounds = array<i64: 1, 8>}, {transform_indices = @transform_5, window_bounds = array<i64: 1, 16, 16, 8>}, {transform_indices = @transform_6, window_bounds = array<i64: 1, 1, 8>}, {transform_indices = @transform_7, window_bounds = array<i64: 1, 1, 8>}]} {
    %cst = arith.constant 0.000000e+00 : f32
    %0 = vector.broadcast %cst : f32 to vector<1x18x8xf32>
    %cst_0 = arith.constant 0.000000e+00 : f32
    %1 = vector.broadcast %cst_0 : f32 to vector<18x1x8xf32>
    %c0 = arith.constant 0 : index
    %c0_1 = arith.constant 0 : index
    %c0_2 = arith.constant 0 : index
    %2 = vector.load %arg9[%c0, %c0_1, %c0_2] : memref<18x18x8xf32, #tpu.memory_space<vmem>>, vector<1x18x8xf32>
    tpu.vector_store %arg9[%c0, %c0_1, %c0_2], %0 {strides = array<i32>} : memref<18x18x8xf32, #tpu.memory_space<vmem>>, vector<1x18x8xf32>,
    %c17 = arith.constant 17 : index
    %c0_3 = arith.constant 0 : index
    %c0_4 = arith.constant 0 : index
    %3 = vector.load %arg9[%c17, %c0_3, %c0_4] : memref<18x18x8xf32, #tpu.memory_space<vmem>>, vector<1x18x8xf32>
    tpu.vector_store %arg9[%c17, %c0_3, %c0_4], %0 {strides = array<i32>} : memref<18x18x8xf32, #tpu.memory_space<vmem>>, vector<1x18x8xf32>,
    %c0_5 = arith.constant 0 : index
    %c0_6 = arith.constant 0 : index
    %c0_7 = arith.constant 0 : index
    %4 = vector.load %arg9[%c0_5, %c0_6, %c0_7] : memref<18x18x8xf32, #tpu.memory_space<vmem>>, vector<18x1x8xf32>
    tpu.vector_store %arg9[%c0_5, %c0_6, %c0_7], %1 {strides = array<i32>} : memref<18x18x8xf32, #tpu.memory_space<vmem>>, vector<18x1x8xf32>,
    %c0_8 = arith.constant 0 : index
    %c17_9 = arith.constant 17 : index
    %c0_10 = arith.constant 0 : index
    %5 = vector.load %arg9[%c0_8, %c17_9, %c0_10] : memref<18x18x8xf32, #tpu.memory_space<vmem>>, vector<18x1x8xf32>
    tpu.vector_store %arg9[%c0_8, %c17_9, %c0_10], %1 {strides = array<i32>} : memref<18x18x8xf32, #tpu.memory_space<vmem>>, vector<18x1x8xf32>,
    %c0_11 = arith.constant 0 : index
    %c0_12 = arith.constant 0 : index
    %c0_13 = arith.constant 0 : index
    %c0_14 = arith.constant 0 : index
    %6 = vector.load %arg1[%c0_11, %c0_12, %c0_13, %c0_14] : memref<1x16x16x8xbf16, #tpu.memory_space<vmem>>, vector<1x16x16x8xbf16>
    %7 = vector.shape_cast %6 : vector<1x16x16x8xbf16> to vector<16x16x8xbf16>
    %8 = arith.extf %7 : vector<16x16x8xbf16> to vector<16x16x8xf32>
    %c0_15 = arith.constant 0 : index
    %c0_16 = arith.constant 0 : index
    %9 = vector.load %arg2[%c0_15, %c0_16] : memref<1x8xf32, #tpu.memory_space<vmem>>, vector<1x8xf32>
    %10 = vector.shape_cast %9 : vector<1x8xf32> to vector<1x1x8xf32>
    %11 = vector.broadcast %10 : vector<1x1x8xf32> to vector<16x16x8xf32>
    %12 = arith.mulf %8, %11 : vector<16x16x8xf32>
    %c0_17 = arith.constant 0 : index
    %c0_18 = arith.constant 0 : index
    %13 = vector.load %arg3[%c0_17, %c0_18] : memref<1x8xf32, #tpu.memory_space<vmem>>, vector<1x8xf32>
    %14 = vector.shape_cast %13 : vector<1x8xf32> to vector<1x1x8xf32>
    %15 = vector.broadcast %14 : vector<1x1x8xf32> to vector<16x16x8xf32>
    %16 = arith.addf %12, %15 : vector<16x16x8xf32>
    %cst_19 = arith.constant 0.000000e+00 : f32
    %17 = vector.broadcast %cst_19 : f32 to vector<16x16x8xf32>
    %18 = arith.maximumf %16, %17 : vector<16x16x8xf32>
    %c1 = arith.constant 1 : index
    %c1_20 = arith.constant 1 : index
    %c0_21 = arith.constant 0 : index
    %19 = vector.load %arg9[%c1, %c1_20, %c0_21] : memref<18x18x8xf32, #tpu.memory_space<vmem>>, vector<16x16x8xf32>
    tpu.vector_store %arg9[%c1, %c1_20, %c0_21], %18 {strides = array<i32>} : memref<18x18x8xf32, #tpu.memory_space<vmem>>, vector<16x16x8xf32>,
    %c0_22 = arith.constant 0 : index
    %c0_23 = arith.constant 0 : index
    %c0_24 = arith.constant 0 : index
    %20 = vector.load %arg9[%c0_22, %c0_23, %c0_24] : memref<18x18x8xf32, #tpu.memory_space<vmem>>, vector<16x16x8xf32>
    %21 = vector.shape_cast %20 : vector<16x16x8xf32> to vector<256x8xf32>
    %22 = arith.truncf %21 : vector<256x8xf32> to vector<256x8xbf16>
    %c0_25 = arith.constant 0 : index
    %c0_26 = arith.constant 0 : index
    %c0_27 = arith.constant 0 : index
    %23 = vector.load %arg4[%c0_25, %c0_26, %c0_27] : memref<9x8x8xbf16, #tpu.memory_space<vmem>>, vector<1x8x8xbf16>
    %24 = vector.shape_cast %23 : vector<1x8x8xbf16> to vector<8x8xbf16>
    %cst_28 = arith.constant dense<0.000000e+00> : vector<256x8xf32>
    %25 = tpu.matmul %22, %24, %cst_28 {dimension_numbers = #tpu.dot_dimension_numbers<[1], [0], [0], [1], [0, 0, 1, 1], [], []>} : vector<256x8xbf16>, vector<8x8xbf16>, vector<256x8xf32> -> vector<256x8xf32>
    %c0_29 = arith.constant 0 : index
    %c0_30 = arith.constant 0 : index
    %26 = vector.load %arg10[%c0_29, %c0_30] : memref<256x8xf32, #tpu.memory_space<vmem>>, vector<256x8xf32>
    tpu.vector_store %arg10[%c0_29, %c0_30], %25 {strides = array<i32>} : memref<256x8xf32, #tpu.memory_space<vmem>>, vector<256x8xf32>,
    %c0_31 = arith.constant 0 : index
    %c1_32 = arith.constant 1 : index
    %c0_33 = arith.constant 0 : index
    %27 = vector.load %arg9[%c0_31, %c1_32, %c0_33] : memref<18x18x8xf32, #tpu.memory_space<vmem>>, vector<16x16x8xf32>
    %28 = vector.shape_cast %27 : vector<16x16x8xf32> to vector<256x8xf32>
    %29 = arith.truncf %28 : vector<256x8xf32> to vector<256x8xbf16>
    %c1_34 = arith.constant 1 : index
    %c0_35 = arith.constant 0 : index
    %c0_36 = arith.constant 0 : index
    %30 = vector.load %arg4[%c1_34, %c0_35, %c0_36] : memref<9x8x8xbf16, #tpu.memory_space<vmem>>, vector<1x8x8xbf16>
    %31 = vector.shape_cast %30 : vector<1x8x8xbf16> to vector<8x8xbf16>
    %cst_37 = arith.constant dense<0.000000e+00> : vector<256x8xf32>
    %32 = tpu.matmul %29, %31, %cst_37 {dimension_numbers = #tpu.dot_dimension_numbers<[1], [0], [0], [1], [0, 0, 1, 1], [], []>} : vector<256x8xbf16>, vector<8x8xbf16>, vector<256x8xf32> -> vector<256x8xf32>
    %c0_38 = arith.constant 0 : index
    %c0_39 = arith.constant 0 : index
    %33 = vector.load %arg10[%c0_38, %c0_39] : memref<256x8xf32, #tpu.memory_space<vmem>>, vector<256x8xf32>
    %34 = arith.addf %33, %32 : vector<256x8xf32>
    %c0_40 = arith.constant 0 : index
    %c0_41 = arith.constant 0 : index
    %35 = vector.load %arg10[%c0_40, %c0_41] : memref<256x8xf32, #tpu.memory_space<vmem>>, vector<256x8xf32>
    tpu.vector_store %arg10[%c0_40, %c0_41], %34 {strides = array<i32>} : memref<256x8xf32, #tpu.memory_space<vmem>>, vector<256x8xf32>,
    %c0_42 = arith.constant 0 : index
    %c2 = arith.constant 2 : index
    %c0_43 = arith.constant 0 : index
    %36 = vector.load %arg9[%c0_42, %c2, %c0_43] : memref<18x18x8xf32, #tpu.memory_space<vmem>>, vector<16x16x8xf32>
    %37 = vector.shape_cast %36 : vector<16x16x8xf32> to vector<256x8xf32>
    %38 = arith.truncf %37 : vector<256x8xf32> to vector<256x8xbf16>
    %c2_44 = arith.constant 2 : index
    %c0_45 = arith.constant 0 : index
    %c0_46 = arith.constant 0 : index
    %39 = vector.load %arg4[%c2_44, %c0_45, %c0_46] : memref<9x8x8xbf16, #tpu.memory_space<vmem>>, vector<1x8x8xbf16>
    %40 = vector.shape_cast %39 : vector<1x8x8xbf16> to vector<8x8xbf16>
    %cst_47 = arith.constant dense<0.000000e+00> : vector<256x8xf32>
    %41 = tpu.matmul %38, %40, %cst_47 {dimension_numbers = #tpu.dot_dimension_numbers<[1], [0], [0], [1], [0, 0, 1, 1], [], []>} : vector<256x8xbf16>, vector<8x8xbf16>, vector<256x8xf32> -> vector<256x8xf32>
    %c0_48 = arith.constant 0 : index
    %c0_49 = arith.constant 0 : index
    %42 = vector.load %arg10[%c0_48, %c0_49] : memref<256x8xf32, #tpu.memory_space<vmem>>, vector<256x8xf32>
    %43 = arith.addf %42, %41 : vector<256x8xf32>
    %c0_50 = arith.constant 0 : index
    %c0_51 = arith.constant 0 : index
    %44 = vector.load %arg10[%c0_50, %c0_51] : memref<256x8xf32, #tpu.memory_space<vmem>>, vector<256x8xf32>
    tpu.vector_store %arg10[%c0_50, %c0_51], %43 {strides = array<i32>} : memref<256x8xf32, #tpu.memory_space<vmem>>, vector<256x8xf32>,
    %c1_52 = arith.constant 1 : index
    %c0_53 = arith.constant 0 : index
    %c0_54 = arith.constant 0 : index
    %45 = vector.load %arg9[%c1_52, %c0_53, %c0_54] : memref<18x18x8xf32, #tpu.memory_space<vmem>>, vector<16x16x8xf32>
    %46 = vector.shape_cast %45 : vector<16x16x8xf32> to vector<256x8xf32>
    %47 = arith.truncf %46 : vector<256x8xf32> to vector<256x8xbf16>
    %c3 = arith.constant 3 : index
    %c0_55 = arith.constant 0 : index
    %c0_56 = arith.constant 0 : index
    %48 = vector.load %arg4[%c3, %c0_55, %c0_56] : memref<9x8x8xbf16, #tpu.memory_space<vmem>>, vector<1x8x8xbf16>
    %49 = vector.shape_cast %48 : vector<1x8x8xbf16> to vector<8x8xbf16>
    %cst_57 = arith.constant dense<0.000000e+00> : vector<256x8xf32>
    %50 = tpu.matmul %47, %49, %cst_57 {dimension_numbers = #tpu.dot_dimension_numbers<[1], [0], [0], [1], [0, 0, 1, 1], [], []>} : vector<256x8xbf16>, vector<8x8xbf16>, vector<256x8xf32> -> vector<256x8xf32>
    %c0_58 = arith.constant 0 : index
    %c0_59 = arith.constant 0 : index
    %51 = vector.load %arg10[%c0_58, %c0_59] : memref<256x8xf32, #tpu.memory_space<vmem>>, vector<256x8xf32>
    %52 = arith.addf %51, %50 : vector<256x8xf32>
    %c0_60 = arith.constant 0 : index
    %c0_61 = arith.constant 0 : index
    %53 = vector.load %arg10[%c0_60, %c0_61] : memref<256x8xf32, #tpu.memory_space<vmem>>, vector<256x8xf32>
    tpu.vector_store %arg10[%c0_60, %c0_61], %52 {strides = array<i32>} : memref<256x8xf32, #tpu.memory_space<vmem>>, vector<256x8xf32>,
    %c1_62 = arith.constant 1 : index
    %c1_63 = arith.constant 1 : index
    %c0_64 = arith.constant 0 : index
    %54 = vector.load %arg9[%c1_62, %c1_63, %c0_64] : memref<18x18x8xf32, #tpu.memory_space<vmem>>, vector<16x16x8xf32>
    %55 = vector.shape_cast %54 : vector<16x16x8xf32> to vector<256x8xf32>
    %56 = arith.truncf %55 : vector<256x8xf32> to vector<256x8xbf16>
    %c4 = arith.constant 4 : index
    %c0_65 = arith.constant 0 : index
    %c0_66 = arith.constant 0 : index
    %57 = vector.load %arg4[%c4, %c0_65, %c0_66] : memref<9x8x8xbf16, #tpu.memory_space<vmem>>, vector<1x8x8xbf16>
    %58 = vector.shape_cast %57 : vector<1x8x8xbf16> to vector<8x8xbf16>
    %cst_67 = arith.constant dense<0.000000e+00> : vector<256x8xf32>
    %59 = tpu.matmul %56, %58, %cst_67 {dimension_numbers = #tpu.dot_dimension_numbers<[1], [0], [0], [1], [0, 0, 1, 1], [], []>} : vector<256x8xbf16>, vector<8x8xbf16>, vector<256x8xf32> -> vector<256x8xf32>
    %c0_68 = arith.constant 0 : index
    %c0_69 = arith.constant 0 : index
    %60 = vector.load %arg10[%c0_68, %c0_69] : memref<256x8xf32, #tpu.memory_space<vmem>>, vector<256x8xf32>
    %61 = arith.addf %60, %59 : vector<256x8xf32>
    %c0_70 = arith.constant 0 : index
    %c0_71 = arith.constant 0 : index
    %62 = vector.load %arg10[%c0_70, %c0_71] : memref<256x8xf32, #tpu.memory_space<vmem>>, vector<256x8xf32>
    tpu.vector_store %arg10[%c0_70, %c0_71], %61 {strides = array<i32>} : memref<256x8xf32, #tpu.memory_space<vmem>>, vector<256x8xf32>,
    %c1_72 = arith.constant 1 : index
    %c2_73 = arith.constant 2 : index
    %c0_74 = arith.constant 0 : index
    %63 = vector.load %arg9[%c1_72, %c2_73, %c0_74] : memref<18x18x8xf32, #tpu.memory_space<vmem>>, vector<16x16x8xf32>
    %64 = vector.shape_cast %63 : vector<16x16x8xf32> to vector<256x8xf32>
    %65 = arith.truncf %64 : vector<256x8xf32> to vector<256x8xbf16>
    %c5 = arith.constant 5 : index
    %c0_75 = arith.constant 0 : index
    %c0_76 = arith.constant 0 : index
    %66 = vector.load %arg4[%c5, %c0_75, %c0_76] : memref<9x8x8xbf16, #tpu.memory_space<vmem>>, vector<1x8x8xbf16>
    %67 = vector.shape_cast %66 : vector<1x8x8xbf16> to vector<8x8xbf16>
    %cst_77 = arith.constant dense<0.000000e+00> : vector<256x8xf32>
    %68 = tpu.matmul %65, %67, %cst_77 {dimension_numbers = #tpu.dot_dimension_numbers<[1], [0], [0], [1], [0, 0, 1, 1], [], []>} : vector<256x8xbf16>, vector<8x8xbf16>, vector<256x8xf32> -> vector<256x8xf32>
    %c0_78 = arith.constant 0 : index
    %c0_79 = arith.constant 0 : index
    %69 = vector.load %arg10[%c0_78, %c0_79] : memref<256x8xf32, #tpu.memory_space<vmem>>, vector<256x8xf32>
    %70 = arith.addf %69, %68 : vector<256x8xf32>
    %c0_80 = arith.constant 0 : index
    %c0_81 = arith.constant 0 : index
    %71 = vector.load %arg10[%c0_80, %c0_81] : memref<256x8xf32, #tpu.memory_space<vmem>>, vector<256x8xf32>
    tpu.vector_store %arg10[%c0_80, %c0_81], %70 {strides = array<i32>} : memref<256x8xf32, #tpu.memory_space<vmem>>, vector<256x8xf32>,
    %c2_82 = arith.constant 2 : index
    %c0_83 = arith.constant 0 : index
    %c0_84 = arith.constant 0 : index
    %72 = vector.load %arg9[%c2_82, %c0_83, %c0_84] : memref<18x18x8xf32, #tpu.memory_space<vmem>>, vector<16x16x8xf32>
    %73 = vector.shape_cast %72 : vector<16x16x8xf32> to vector<256x8xf32>
    %74 = arith.truncf %73 : vector<256x8xf32> to vector<256x8xbf16>
    %c6 = arith.constant 6 : index
    %c0_85 = arith.constant 0 : index
    %c0_86 = arith.constant 0 : index
    %75 = vector.load %arg4[%c6, %c0_85, %c0_86] : memref<9x8x8xbf16, #tpu.memory_space<vmem>>, vector<1x8x8xbf16>
    %76 = vector.shape_cast %75 : vector<1x8x8xbf16> to vector<8x8xbf16>
    %cst_87 = arith.constant dense<0.000000e+00> : vector<256x8xf32>
    %77 = tpu.matmul %74, %76, %cst_87 {dimension_numbers = #tpu.dot_dimension_numbers<[1], [0], [0], [1], [0, 0, 1, 1], [], []>} : vector<256x8xbf16>, vector<8x8xbf16>, vector<256x8xf32> -> vector<256x8xf32>
    %c0_88 = arith.constant 0 : index
    %c0_89 = arith.constant 0 : index
    %78 = vector.load %arg10[%c0_88, %c0_89] : memref<256x8xf32, #tpu.memory_space<vmem>>, vector<256x8xf32>
    %79 = arith.addf %78, %77 : vector<256x8xf32>
    %c0_90 = arith.constant 0 : index
    %c0_91 = arith.constant 0 : index
    %80 = vector.load %arg10[%c0_90, %c0_91] : memref<256x8xf32, #tpu.memory_space<vmem>>, vector<256x8xf32>
    tpu.vector_store %arg10[%c0_90, %c0_91], %79 {strides = array<i32>} : memref<256x8xf32, #tpu.memory_space<vmem>>, vector<256x8xf32>,
    %c2_92 = arith.constant 2 : index
    %c1_93 = arith.constant 1 : index
    %c0_94 = arith.constant 0 : index
    %81 = vector.load %arg9[%c2_92, %c1_93, %c0_94] : memref<18x18x8xf32, #tpu.memory_space<vmem>>, vector<16x16x8xf32>
    %82 = vector.shape_cast %81 : vector<16x16x8xf32> to vector<256x8xf32>
    %83 = arith.truncf %82 : vector<256x8xf32> to vector<256x8xbf16>
    %c7 = arith.constant 7 : index
    %c0_95 = arith.constant 0 : index
    %c0_96 = arith.constant 0 : index
    %84 = vector.load %arg4[%c7, %c0_95, %c0_96] : memref<9x8x8xbf16, #tpu.memory_space<vmem>>, vector<1x8x8xbf16>
    %85 = vector.shape_cast %84 : vector<1x8x8xbf16> to vector<8x8xbf16>
    %cst_97 = arith.constant dense<0.000000e+00> : vector<256x8xf32>
    %86 = tpu.matmul %83, %85, %cst_97 {dimension_numbers = #tpu.dot_dimension_numbers<[1], [0], [0], [1], [0, 0, 1, 1], [], []>} : vector<256x8xbf16>, vector<8x8xbf16>, vector<256x8xf32> -> vector<256x8xf32>
    %c0_98 = arith.constant 0 : index
    %c0_99 = arith.constant 0 : index
    %87 = vector.load %arg10[%c0_98, %c0_99] : memref<256x8xf32, #tpu.memory_space<vmem>>, vector<256x8xf32>
    %88 = arith.addf %87, %86 : vector<256x8xf32>
    %c0_100 = arith.constant 0 : index
    %c0_101 = arith.constant 0 : index
    %89 = vector.load %arg10[%c0_100, %c0_101] : memref<256x8xf32, #tpu.memory_space<vmem>>, vector<256x8xf32>
    tpu.vector_store %arg10[%c0_100, %c0_101], %88 {strides = array<i32>} : memref<256x8xf32, #tpu.memory_space<vmem>>, vector<256x8xf32>,
    %c2_102 = arith.constant 2 : index
    %c2_103 = arith.constant 2 : index
    %c0_104 = arith.constant 0 : index
    %90 = vector.load %arg9[%c2_102, %c2_103, %c0_104] : memref<18x18x8xf32, #tpu.memory_space<vmem>>, vector<16x16x8xf32>
    %91 = vector.shape_cast %90 : vector<16x16x8xf32> to vector<256x8xf32>
    %92 = arith.truncf %91 : vector<256x8xf32> to vector<256x8xbf16>
    %c8 = arith.constant 8 : index
    %c0_105 = arith.constant 0 : index
    %c0_106 = arith.constant 0 : index
    %93 = vector.load %arg4[%c8, %c0_105, %c0_106] : memref<9x8x8xbf16, #tpu.memory_space<vmem>>, vector<1x8x8xbf16>
    %94 = vector.shape_cast %93 : vector<1x8x8xbf16> to vector<8x8xbf16>
    %cst_107 = arith.constant dense<0.000000e+00> : vector<256x8xf32>
    %95 = tpu.matmul %92, %94, %cst_107 {dimension_numbers = #tpu.dot_dimension_numbers<[1], [0], [0], [1], [0, 0, 1, 1], [], []>} : vector<256x8xbf16>, vector<8x8xbf16>, vector<256x8xf32> -> vector<256x8xf32>
    %c0_108 = arith.constant 0 : index
    %c0_109 = arith.constant 0 : index
    %96 = vector.load %arg10[%c0_108, %c0_109] : memref<256x8xf32, #tpu.memory_space<vmem>>, vector<256x8xf32>
    %97 = arith.addf %96, %95 : vector<256x8xf32>
    %c0_110 = arith.constant 0 : index
    %c0_111 = arith.constant 0 : index
    %98 = vector.load %arg10[%c0_110, %c0_111] : memref<256x8xf32, #tpu.memory_space<vmem>>, vector<256x8xf32>
    tpu.vector_store %arg10[%c0_110, %c0_111], %97 {strides = array<i32>} : memref<256x8xf32, #tpu.memory_space<vmem>>, vector<256x8xf32>,
    %c0_112 = arith.constant 0 : index
    %c0_113 = arith.constant 0 : index
    %99 = vector.load %arg10[%c0_112, %c0_113] : memref<256x8xf32, #tpu.memory_space<vmem>>, vector<256x8xf32>
    %c0_114 = arith.constant 0 : index
    %c0_115 = arith.constant 0 : index
    %100 = vector.load %arg5[%c0_114, %c0_115] : memref<1x8xf32, #tpu.memory_space<vmem>>, vector<1x8xf32>
    %101 = vector.broadcast %100 : vector<1x8xf32> to vector<256x8xf32>
    %102 = arith.addf %99, %101 : vector<256x8xf32>
    %103 = vector.shape_cast %102 : vector<256x8xf32> to vector<1x16x16x8xf32>
    %104 = arith.truncf %103 : vector<1x16x16x8xf32> to vector<1x16x16x8xbf16>
    %c0_116 = arith.constant 0 : index
    %c0_117 = arith.constant 0 : index
    %c0_118 = arith.constant 0 : index
    %c0_119 = arith.constant 0 : index
    %105 = vector.load %arg6[%c0_116, %c0_117, %c0_118, %c0_119] : memref<1x16x16x8xbf16, #tpu.memory_space<vmem>>, vector<1x16x16x8xbf16>
    tpu.vector_store %arg6[%c0_116, %c0_117, %c0_118, %c0_119], %104 {strides = array<i32>} : memref<1x16x16x8xbf16, #tpu.memory_space<vmem>>, vector<1x16x16x8xbf16>,
    %cst_120 = arith.constant dense<0.000000e+00> : vector<8xf32>
    %106 = vector.multi_reduction <add>, %102, %cst_120 [0] : vector<256x8xf32> to vector<8xf32>
    %107 = vector.shape_cast %106 : vector<8xf32> to vector<1x8xf32>
    %108 = vector.shape_cast %107 : vector<1x8xf32> to vector<1x1x8xf32>
    %c0_121 = arith.constant 0 : index
    %c0_122 = arith.constant 0 : index
    %c0_123 = arith.constant 0 : index
    %109 = vector.load %arg7[%c0_121, %c0_122, %c0_123] : memref<1x1x8xf32, #tpu.memory_space<vmem>>, vector<1x1x8xf32>
    tpu.vector_store %arg7[%c0_121, %c0_122, %c0_123], %108 {strides = array<i32>} : memref<1x1x8xf32, #tpu.memory_space<vmem>>, vector<1x1x8xf32>,
    %110 = arith.mulf %102, %102 : vector<256x8xf32>
    %cst_124 = arith.constant dense<0.000000e+00> : vector<8xf32>
    %111 = vector.multi_reduction <add>, %110, %cst_124 [0] : vector<256x8xf32> to vector<8xf32>
    %112 = vector.shape_cast %111 : vector<8xf32> to vector<1x8xf32>
    %113 = vector.shape_cast %112 : vector<1x8xf32> to vector<1x1x8xf32>
    %c0_125 = arith.constant 0 : index
    %c0_126 = arith.constant 0 : index
    %c0_127 = arith.constant 0 : index
    %114 = vector.load %arg8[%c0_125, %c0_126, %c0_127] : memref<1x1x8xf32, #tpu.memory_space<vmem>>, vector<1x1x8xf32>
    tpu.vector_store %arg8[%c0_125, %c0_126, %c0_127], %113 {strides = array<i32>} : memref<1x1x8xf32, #tpu.memory_space<vmem>>, vector<1x1x8xf32>,
    return
  }
  func.func @transform_0(%arg0: i32) -> (i32, i32, i32, i32) {
    %c0_i32 = arith.constant 0 : i32
    %c0_i32_0 = arith.constant 0 : i32
    %c0_i32_1 = arith.constant 0 : i32
    %c0_i32_2 = arith.constant 0 : i32
    return %arg0, %c0_i32, %c0_i32_0, %c0_i32_1 : i32, i32, i32, i32
  }
  func.func @transform_1(%arg0: i32) -> (i32, i32) {
    %c0_i32 = arith.constant 0 : i32
    %c0_i32_0 = arith.constant 0 : i32
    %c0_i32_1 = arith.constant 0 : i32
    return %c0_i32, %c0_i32_0 : i32, i32
  }
  func.func @transform_2(%arg0: i32) -> (i32, i32) {
    %c0_i32 = arith.constant 0 : i32
    %c0_i32_0 = arith.constant 0 : i32
    %c0_i32_1 = arith.constant 0 : i32
    return %c0_i32, %c0_i32_0 : i32, i32
  }
  func.func @transform_3(%arg0: i32) -> (i32, i32, i32) {
    %c0_i32 = arith.constant 0 : i32
    %c0_i32_0 = arith.constant 0 : i32
    %c0_i32_1 = arith.constant 0 : i32
    %c0_i32_2 = arith.constant 0 : i32
    return %c0_i32, %c0_i32_0, %c0_i32_1 : i32, i32, i32
  }
  func.func @transform_4(%arg0: i32) -> (i32, i32) {
    %c0_i32 = arith.constant 0 : i32
    %c0_i32_0 = arith.constant 0 : i32
    %c0_i32_1 = arith.constant 0 : i32
    return %c0_i32, %c0_i32_0 : i32, i32
  }
  func.func @transform_5(%arg0: i32) -> (i32, i32, i32, i32) {
    %c0_i32 = arith.constant 0 : i32
    %c0_i32_0 = arith.constant 0 : i32
    %c0_i32_1 = arith.constant 0 : i32
    %c0_i32_2 = arith.constant 0 : i32
    return %arg0, %c0_i32, %c0_i32_0, %c0_i32_1 : i32, i32, i32, i32
  }
  func.func @transform_6(%arg0: i32) -> (i32, i32, i32) {
    %c0_i32 = arith.constant 0 : i32
    %c0_i32_0 = arith.constant 0 : i32
    %c0_i32_1 = arith.constant 0 : i32
    return %arg0, %c0_i32, %c0_i32_0 : i32, i32, i32
  }
  func.func @transform_7(%arg0: i32) -> (i32, i32, i32) {
    %c0_i32 = arith.constant 0 : i32
    %c0_i32_0 = arith.constant 0 : i32
    %c0_i32_1 = arith.constant 0 : i32
    return %arg0, %c0_i32, %c0_i32_0 : i32, i32, i32
  }
}

</mosaic_0001>

<bundles_post_ra>
// kernel: decoder_block_forward.3
= control target key start
LH: loop header
LB: loop body
LE: loop exit
PB: predicated region body
PF: predicated region fallthrough
CT: control target
= control target key end

     0   :  { %s3776_s24 = smov 0   ;;  %s4905_s0 = inlined_call_operand.vmem [shape: bf16[2,16,16,8], index: 0, kind: input, shape index: {}]   ;;  %s4906_s1 = inlined_call_operand.vmem [shape: f32[1,8], index: 1, kind: input, shape index: {}]   ;;  %s4907_s2 = inlined_call_operand.vmem [shape: f32[1,8], index: 2, kind: input, shape index: {}]   ;;  %s4908_s3 = inlined_call_operand.vmem [shape: bf16[9,8,8], index: 3, kind: input, shape index: {}]   ;;  %s4909_s4 = inlined_call_operand.vmem [shape: f32[1,8], index: 4, kind: input, shape index: {}]   ;;  %s4910_s5 = inlined_call_operand.vmem [shape: bf16[2,16,16,8], index: 5, kind: output, shape index: {0}]   ;;  %s4911_s6 = inlined_call_operand.vmem [shape: f32[2,1,8], index: 6, kind: output, shape index: {1}]   ;;  %s4912_s7 = inlined_call_operand.vmem [shape: f32[2,1,8], index: 7, kind: output, shape index: {2}]  }
   0x1 LB: > { %s3465_s25 = sadd.s32 4294967295, %s3733_s24   ;;  %p3469_p0 = scmp.ge.s32.totalorder %s3733_s24, 1  ;;  %s3733_s24 = sphi %s3776_s24, %s18_s24  }
   0x2   : > { %p242_p1 = scmp.lt.s32.totalorder %s3733_s24, 3 }
   0x4   : > { %p243_p2 = pnand %p3469_p0, %p242_p1 }
   0x5   : > { %p280_p3 = scmp.lt.s32.totalorder (!%p243_p2), %s3465_s25, 1 }
   0x6   : > { %246 = sbr.rel (%p243_p2) target bundleno = 813 (0x32d), region = 40 }
   0xb   : > { %v592_v0 = vld [vmem:[%s4908_s3] sm:$0xf]  ;;  %vm641_vm0 = vcmask 1043456   ;;  %vm306_vm1 = vcmask 57344   ;;  %s4914_s25 = smov (!%p280_p3, %s3465_s25), 1  ;;  %vm297_vm2 = vcmask 64512  }
   0xc   : > { %v643_v1 = vsel %vm641_vm0, %v592_v0, 0  ;;  %v3735_v2 = vmov 0.0   ;;  %s3628_s28 = sshll.u32 %s4914_s25, 7  ;;  %v3807_v3 = vld [vmem:[%s4906_s1] ss:$0 sm:$0xff]  ;;  %vm300_vm3 = vcmask 58368   ;;  %s292_s21 = scalar_lea.vmem %s4911_s6, %s4914_s25 }
   0xd   : > { %3709 = vmatpush.bf16.msra.mxu1 %v643_v1  ;;  %3710 = vmatpush.bf16.msra.mxu2 %v643_v1  ;;  %311 = vst.msk [vmem:[#allocation2 + $0x60] sm:$0x1] %vm306_vm1, %v3735_v2  ;;  %s3802_s8 = scalar_lea.vmem %s4905_s0, %s3628_s28  ;;  %v3817_v7 = vld [vmem:[%s4907_s2] ss:$0 sm:$0xff]  ;;  %v3490_v14 = vld [vmem:[%s4908_s3 + $0x4] sm:$0xf]  ;;  %s4483_s17 = scalar_lea.vmem %s4910_s5, %s3628_s28 }
   0xe   : > { %298 = vst.msk [vmem:[#allocation2] sm:$0xff] %vm297_vm2, %v3735_v2  ;;  %3711 = vmatpush.bf16.msra.mxu3 %v643_v1  ;;  %652 = vmatpush.bf16.msra.mxu0 %v643_v1  ;;  %v3696_v4 = vld [vmem:[%s3802_s8 + $0x18] sm:$0xff]   ;;  %v3507_v15 = vld [vmem:[%s4908_s3 + $0x8] sm:$0xf]  ;;  %v865_v16 = vsel %vm641_vm0, %v3490_v14, 0  ;;  %v3697_v28 = vld [vmem:[%s3802_s8 + $0x20] sm:$0xff]   ;;  %s295_s26 = scalar_lea.vmem %s4912_s7, %s4914_s25 }
   0xf   : > { %299 = vst.msk [vmem:[#allocation2 + $0x8] sm:$0xff] %vm297_vm2, %v3735_v2  ;;  %v3644_v5 = vunpack.c.l.bf16 %v3696_v4  ;;  %v3645_v6 = vunpack.c.h.bf16 %v3696_v4  ;;  %v1151_v17 = vsel %vm641_vm0, %v3507_v15, 0  ;;  %v3700_v18 = vld [vmem:[%s3802_s8 + $0x38] sm:$0xff]   ;;  %v3524_v22 = vld [vmem:[%s4908_s3 + $0xc] sm:$0xf]  ;;  %v3701_v29 = vld [vmem:[%s3802_s8 + $0x40] sm:$0xff]   ;;  %v3648_v33 = vunpack.c.l.bf16 %v3697_v28 }
  0x10   : > { %303 = vst.msk [vmem:[#allocation2 + $0x198] sm:$0xff] %vm297_vm2, %v3735_v2  ;;  %v3704_v21 = vld [vmem:[%s3802_s8 + $0x58] sm:$0xff]   ;;  %v3660_v24 = vunpack.c.l.bf16 %v3700_v18  ;;  %v1437_v25 = vsel %vm641_vm0, %v3524_v22, 0  ;;  %v3661_v26 = vunpack.c.h.bf16 %v3700_v18  ;;  %v3649_v35 = vunpack.c.h.bf16 %v3697_v28  ;;  %v3705_v37 = vld [vmem:[%s3802_s8 + $0x60] sm:$0xff]   ;;  %v3698_v39 = vld [vmem:[%s3802_s8 + $0x28] sm:$0xff]  }
  0x11   : > { %304 = vst.msk [vmem:[#allocation2 + $0x1a0] sm:$0xff] %vm297_vm2, %v3735_v2  ;;  %v417_v8 = vmul.f32 %v3807_v3, %v3644_v5  ;;  %v418_v9 = vmul.f32 %v3807_v3, %v3645_v6  ;;  %874 = vmatpush.bf16.msrb.mxu1 %v865_v16  ;;  %1160 = vmatpush.bf16.msrb.mxu2 %v1151_v17  ;;  %v3676_v27 = vunpack.c.l.bf16 %v3704_v21  ;;  %v3677_v32 = vunpack.c.h.bf16 %v3704_v21  ;;  %v3702_v44 = vld [vmem:[%s3802_s8 + $0x48] sm:$0xff]   ;;  %v3631_v62 = vld [vmem:[%s3802_s8] sm:$0xff]   ;;  %v3541_v0 = vld [vmem:[%s4908_s3 + $0x10] sm:$0xf] }
  0x12   : > { %308 = vst.msk [vmem:[#allocation2 + $0x18] sm:$0x1] %vm306_vm1, %v3735_v2  ;;  %1446 = vmatpush.bf16.msrb.mxu3 %v1437_v25  ;;  %v425_v30 = vmul.f32 %v3807_v3, %v3660_v24  ;;  %v426_v31 = vmul.f32 %v3807_v3, %v3661_v26  ;;  %v3664_v36 = vunpack.c.l.bf16 %v3701_v29  ;;  %v419_v42 = vmul.f32 %v3807_v3, %v3648_v33  ;;  %v3706_v6 = vld [vmem:[%s3802_s8 + $0x68] sm:$0xff]  }
  0x13   : > { %309 = vst.msk [vmem:[#allocation2 + $0x30] sm:$0x1] %vm306_vm1, %v3735_v2  ;;  %v453_v10 = vadd.f32 %v3817_v7, %v417_v8  ;;  %v454_v11 = vadd.f32 %v3817_v7, %v418_v9  ;;  %v433_v34 = vmul.f32 %v3807_v3, %v3676_v27  ;;  %v434_v41 = vmul.f32 %v3807_v3, %v3677_v32 }
  0x14   : > { %310 = vst.msk [vmem:[#allocation2 + $0x48] sm:$0x1] %vm306_vm1, %v3735_v2  ;;  %v461_v38 = vadd.f32 %v3817_v7, %v425_v30  ;;  %v462_v40 = vadd.f32 %v3817_v7, %v426_v31  ;;  %v3665_v43 = vunpack.c.h.bf16 %v3701_v29  ;;  %v420_v46 = vmul.f32 %v3807_v3, %v3649_v35 }
  0x15   : > { %312 = vst.msk [vmem:[#allocation2 + $0x78] sm:$0x1] %vm306_vm1, %v3735_v2  ;;  %v485_v12 = vmax.f32 %v453_v10, 0.0  ;;  %v486_v13 = vmax.f32 %v454_v11, 0.0  ;;  %v469_v45 = vadd.f32 %v3817_v7, %v433_v34  ;;  %v427_v47 = vmul.f32 %v3807_v3, %v3664_v36 }
  0x16   : > { %313 = vst.msk [vmem:[#allocation2 + $0x90] sm:$0x1] %vm306_vm1, %v3735_v2  ;;  %v3680_v48 = vunpack.c.l.bf16 %v3705_v37  ;;  %v3681_v49 = vunpack.c.h.bf16 %v3705_v37  ;;  %v3652_v50 = vunpack.c.l.bf16 %v3698_v39  ;;  %v3653_v51 = vunpack.c.h.bf16 %v3698_v39  ;;  %v545_v33 = vld [vmem:[#allocation2 + $0x8] sm:$0xff] }
  0x17   : > { %314 = vst.msk [vmem:[#allocation2 + $0xa8] sm:$0x1] %vm306_vm1, %v3735_v2  ;;  %v493_v52 = vmax.f32 %v461_v38, 0.0  ;;  %v3668_v53 = vunpack.c.l.bf16 %v3702_v44  ;;  %v494_v54 = vmax.f32 %v462_v40, 0.0  ;;  %v470_v55 = vadd.f32 %v3817_v7, %v434_v41 }
  0x18   : > { %315 = vst.msk [vmem:[#allocation2 + $0xc0] sm:$0x1] %vm306_vm1, %v3735_v2  ;;  %v455_v56 = vadd.f32 %v3817_v7, %v419_v42  ;;  %v428_v57 = vmul.f32 %v3807_v3, %v3665_v43  ;;  %v501_v58 = vmax.f32 %v469_v45, 0.0  ;;  %v456_v59 = vadd.f32 %v3817_v7, %v420_v46  ;;  %v3699_v42 = vld [vmem:[%s3802_s8 + $0x30] sm:$0xff]  }
  0x19   : > { %316 = vst.msk [vmem:[#allocation2 + $0xd8] sm:$0x1] %vm306_vm1, %v3735_v2  ;;  %v463_v60 = vadd.f32 %v3817_v7, %v427_v47  ;;  %v435_v61 = vmul.f32 %v3807_v3, %v3680_v48  ;;  %v436_v63 = vmul.f32 %v3807_v3, %v3681_v49  ;;  %v421_v1 = vmul.f32 %v3807_v3, %v3652_v50  ;;  %v3703_v43 = vld [vmem:[%s3802_s8 + $0x50] sm:$0xff]  }
  0x1a   : > { %518 = vst.msk [vmem:[#allocation2 + $0x61] sm:$0xff] %vm297_vm2, %v485_v12  ;;  %v422_v4 = vmul.f32 %v3807_v3, %v3653_v51  ;;  %v3669_v5 = vunpack.c.h.bf16 %v3702_v44  ;;  %v1723_v8 = vsel %vm641_vm0, %v3541_v0, 0  ;;  %v429_v9 = vmul.f32 %v3807_v3, %v3668_v53 }
  0x1b   : > { %519 = vst.msk [vmem:[#allocation2 + $0x69] sm:$0xff] %vm297_vm2, %v486_v13  ;;  %v3632_v10 = vunpack.c.l.bf16 %v3631_v62  ;;  %v3633_v11 = vunpack.c.h.bf16 %v3631_v62  ;;  %v502_v12 = vmax.f32 %v470_v55, 0.0  ;;  %v487_v13 = vmax.f32 %v455_v56, 0.0  ;;  %1732 = vmatpush.bf16.msrb.mxu0 %v1723_v8  ;;  %v3694_v8 = vld [vmem:[%s3802_s8 + $0x8] sm:$0xff]  }
  0x1c   : > { %317 = vst.msk [vmem:[#allocation2 + $0xf0] sm:$0x1] %vm306_vm1, %v3735_v2  ;;  %v464_v14 = vadd.f32 %v3817_v7, %v428_v57  ;;  %v488_v15 = vmax.f32 %v456_v59, 0.0  ;;  %v471_v16 = vadd.f32 %v3817_v7, %v435_v61  ;;  %v3684_v17 = vunpack.c.l.bf16 %v3706_v6 }
  0x1d   : > { %318 = vst.msk [vmem:[#allocation2 + $0x108] sm:$0x1] %vm306_vm1, %v3735_v2  ;;  %v3685_v18 = vunpack.c.h.bf16 %v3706_v6  ;;  %v457_v21 = vadd.f32 %v3817_v7, %v421_v1  ;;  %v430_v22 = vmul.f32 %v3807_v3, %v3669_v5  ;;  %v458_v24 = vadd.f32 %v3817_v7, %v422_v4 }
  0x1e   : > { %319 = vst.msk [vmem:[#allocation2 + $0x120] sm:$0x1] %vm306_vm1, %v3735_v2  ;;  %v465_v25 = vadd.f32 %v3817_v7, %v429_v9  ;;  %v411_v26 = vmul.f32 %v3807_v3, %v3632_v10  ;;  %v412_v27 = vmul.f32 %v3807_v3, %v3633_v11  ;;  %v496_v28 = vmax.f32 %v464_v14, 0.0  ;;  %v3707_v9 = vld [vmem:[%s3802_s8 + $0x70] sm:$0xff]  }
  0x1f   : > { %320 = vst.msk [vmem:[#allocation2 + $0x138] sm:$0x1] %vm306_vm1, %v3735_v2  ;;  %v503_v29 = vmax.f32 %v471_v16, 0.0  ;;  %v437_v30 = vmul.f32 %v3807_v3, %v3684_v17  ;;  %v438_v31 = vmul.f32 %v3807_v3, %v3685_v18  ;;  %v489_v35 = vmax.f32 %v457_v21, 0.0 }
  0x20   : > { %321 = vst.msk [vmem:[#allocation2 + $0x150] sm:$0x1] %vm306_vm1, %v3735_v2  ;;  %v466_v36 = vadd.f32 %v3817_v7, %v430_v22  ;;  %v490_v38 = vmax.f32 %v458_v24, 0.0  ;;  %v497_v39 = vmax.f32 %v465_v25, 0.0  ;;  %v447_v40 = vadd.f32 %v3817_v7, %v411_v26 }
  0x21   : > { %v552_v19 = vld [vmem:[#allocation2 + $0x60] sm:$0xff]  ;;  %322 = vst.msk [vmem:[#allocation2 + $0x168] sm:$0x1] %vm306_vm1, %v3735_v2  ;;  %v448_v41 = vadd.f32 %v3817_v7, %v412_v27  ;;  %v3656_v46 = vunpack.c.l.bf16 %v3699_v42  ;;  %v3657_v47 = vunpack.c.h.bf16 %v3699_v42  ;;  %v3672_v48 = vunpack.c.l.bf16 %v3703_v43 }
  0x22   : > { %v553_v20 = vld [vmem:[#allocation2 + $0x68] sm:$0xff]  ;;  %323 = vst.msk [vmem:[#allocation2 + $0x180] sm:$0x1] %vm306_vm1, %v3735_v2  ;;  %v473_v50 = vadd.f32 %v3817_v7, %v437_v30  ;;  %v474_v51 = vadd.f32 %v3817_v7, %v438_v31  ;;  %v479_v59 = vmax.f32 %v447_v40, 0.0  ;;  %v3636_v14 = vunpack.c.l.bf16 %v3694_v8 }
  0x23   : > { %v3868_v23 = vpack.c.bf16 %v553_v20, %v552_v19  ;;  %326 = vst.msk [vmem:[#allocation2 + $0x29] sm:$0x1] %vm306_vm1, %v3735_v2  ;;  %v495_v19 = vmax.f32 %v463_v60, 0.0  ;;  %v472_v20 = vadd.f32 %v3817_v7, %v436_v63  ;;  %v423_v55 = vmul.f32 %v3807_v3, %v3656_v46 }
  0x24   : > { %327 = vst.msk [vmem:[#allocation2 + $0x41] sm:$0x1] %vm306_vm1, %v3735_v2  ;;  %v424_v56 = vmul.f32 %v3807_v3, %v3657_v47  ;;  %v431_v57 = vmul.f32 %v3807_v3, %v3672_v48  ;;  %v480_v63 = vmax.f32 %v448_v41, 0.0  ;;  %v505_v5 = vmax.f32 %v473_v50, 0.0  ;;  %v3695_v47 = vld [vmem:[%s3802_s8 + $0x10] sm:$0xff]  }
  0x25   : > { %3478 = vmatmul.msk.bf16.vlgmr.msra.gmra.mxu1 %vm297_vm2, %v3868_v23  ;;  %328 = vst.msk [vmem:[#allocation2 + $0x59] sm:$0x1] %vm306_vm1, %v3735_v2  ;;  %v504_v34 = vmax.f32 %v472_v20, 0.0  ;;  %v459_v0 = vadd.f32 %v3817_v7, %v423_v55  ;;  %v506_v11 = vmax.f32 %v474_v51, 0.0  ;;  %v3688_v16 = vunpack.c.l.bf16 %v3707_v9 }
  0x26   : > { %329 = vst.msk [vmem:[#allocation2 + $0x71] sm:$0x1] %vm306_vm1, %v3735_v2  ;;  %v460_v1 = vadd.f32 %v3817_v7, %v424_v56  ;;  %v467_v6 = vadd.f32 %v3817_v7, %v431_v57  ;;  %v3689_v18 = vunpack.c.h.bf16 %v3707_v9  ;;  %v413_v20 = vmul.f32 %v3807_v3, %v3636_v14 }
  0x27   : > { %330 = vst.msk [vmem:[#allocation2 + $0x89] sm:$0x1] %vm306_vm1, %v3735_v2  ;;  %v439_v22 = vmul.f32 %v3807_v3, %v3688_v16  ;;  %v3640_v48 = vunpack.c.l.bf16 %v3695_v47  ;;  %vm3155_vm4 = vcmask 60416  }
  0x28   : > { %331 = vst.msk [vmem:[#allocation2 + $0xa1] sm:$0x1] %vm306_vm1, %v3735_v2  ;;  %v492_v17 = vmax.f32 %v460_v1, 0.0  ;;  %v440_v25 = vmul.f32 %v3807_v3, %v3689_v18  ;;  %v3575_v1 = vld [vmem:[%s4908_s3 + $0x18] sm:$0xf] }
  0x29   : > { %332 = vst.msk [vmem:[#allocation2 + $0xb9] sm:$0x1] %vm306_vm1, %v3735_v2  ;;  %v475_v30 = vadd.f32 %v3817_v7, %v439_v22  ;;  %v415_v50 = vmul.f32 %v3807_v3, %v3640_v48 }
  0x2a   : > { %333 = vst.msk [vmem:[#allocation2 + $0xd1] sm:$0x1] %vm306_vm1, %v3735_v2  ;;  %v476_v31 = vadd.f32 %v3817_v7, %v440_v25 }
  0x2b   : > { %334 = vst.msk [vmem:[#allocation2 + $0xe9] sm:$0x1] %vm306_vm1, %v3735_v2 }
  0x2c   : > { %335 = vst.msk [vmem:[#allocation2 + $0x101] sm:$0x1] %vm306_vm1, %v3735_v2 }
  0x2d   : > { %336 = vst.msk [vmem:[#allocation2 + $0x119] sm:$0x1] %vm306_vm1, %v3735_v2 }
  0x2e   : > { %337 = vst.msk [vmem:[#allocation2 + $0x131] sm:$0x1] %vm306_vm1, %v3735_v2 }
  0x2f   : > { %338 = vst.msk [vmem:[#allocation2 + $0x149] sm:$0x1] %vm306_vm1, %v3735_v2 }
  0x30   : > { %339 = vst.msk [vmem:[#allocation2 + $0x161] sm:$0x1] %vm306_vm1, %v3735_v2 }
  0x31   : > { %340 = vst.msk [vmem:[#allocation2 + $0x179] sm:$0x1] %vm306_vm1, %v3735_v2 }
  0x32   : > { %341 = vst.msk [vmem:[#allocation2 + $0x191] sm:$0x1] %vm306_vm1, %v3735_v2 }
  0x33   : > { %526 = vst.msk [vmem:[#allocation2 + $0xc1] sm:$0xff] %vm297_vm2, %v493_v52  ;;  %v3673_v52 = vunpack.c.h.bf16 %v3703_v43 }
  0x34   : > { %527 = vst.msk [vmem:[#allocation2 + $0xc9] sm:$0xff] %vm297_vm2, %v494_v54  ;;  %v498_v54 = vmax.f32 %v466_v36, 0.0 }
  0x35   : > { %307 = vst.msk [vmem:[#allocation2] sm:$0x1] %vm306_vm1, %v3735_v2  ;;  %v432_v60 = vmul.f32 %v3807_v3, %v3673_v52  ;;  %v451_v52 = vadd.f32 %v3817_v7, %v415_v50 }
  0x36   : > { %324 = vst.msk [vmem:[#allocation2 + $0x198] sm:$0x1] %vm306_vm1, %v3735_v2 }
  0x37   : > { %534 = vst.msk [vmem:[#allocation2 + $0x121] sm:$0xff] %vm297_vm2, %v501_v58 }
  0x38   : > { %535 = vst.msk [vmem:[#allocation2 + $0x129] sm:$0xff] %vm297_vm2, %v502_v12  ;;  %v468_v12 = vadd.f32 %v3817_v7, %v432_v60 }
  0x39   : > { %520 = vst.msk [vmem:[#allocation2 + $0x79] sm:$0xff] %vm297_vm2, %v487_v13  ;;  %v491_v13 = vmax.f32 %v459_v0, 0.0  ;;  %v3558_v0 = vld [vmem:[%s4908_s3 + $0x14] sm:$0xf] }
  0x3a   : > { %v560_v32 = vld [vmem:[#allocation2 + $0xc0] sm:$0xff]  ;;  %521 = vst.msk [vmem:[#allocation2 + $0x81] sm:$0xff] %vm297_vm2, %v488_v15  ;;  %v3637_v15 = vunpack.c.h.bf16 %v3694_v8  ;;  %v500_v24 = vmax.f32 %v468_v12, 0.0  ;;  %v3592_v8 = vld [vmem:[%s4908_s3 + $0x1c] sm:$0xf] }
  0x3b   : > { %v561_v37 = vld [vmem:[#allocation2 + $0xc8] sm:$0xff]  ;;  %528 = vst.msk [vmem:[#allocation2 + $0xd9] sm:$0xff] %vm297_vm2, %v495_v19  ;;  %v499_v19 = vmax.f32 %v467_v6, 0.0  ;;  %v2582_v9 = vsel %vm641_vm0, %v3592_v8, 0 }
  0x3c   : > { %v3963_v44 = vpack.c.bf16 %v561_v37, %v560_v32  ;;  %529 = vst.msk [vmem:[#allocation2 + $0xe1] sm:$0xff] %vm297_vm2, %v496_v28  ;;  %v544_v45 = vld [vmem:[#allocation2] sm:$0xff]  ;;  %v414_v21 = vmul.f32 %v3807_v3, %v3637_v15  ;;  %v449_v28 = vadd.f32 %v3817_v7, %v413_v20  ;;  %v508_v37 = vmax.f32 %v476_v31, 0.0 }
  0x3d   : > { %v576_v49 = vpack.c.bf16 %v545_v33, %v544_v45  ;;  %536 = vst.msk [vmem:[#allocation2 + $0x139] sm:$0xff] %vm297_vm2, %v503_v29 }
  0x3e   : > { %3482 = vmatmul.msk.bf16.vlgmr.msra.gmra.mxu2 %vm297_vm2, %v3963_v44  ;;  %v568_v53 = vld [vmem:[#allocation2 + $0x120] sm:$0xff]  ;;  %537 = vst.msk [vmem:[#allocation2 + $0x141] sm:$0xff] %vm297_vm2, %v504_v34  ;;  %v450_v29 = vadd.f32 %v3817_v7, %v414_v21  ;;  %v481_v32 = vmax.f32 %v449_v28, 0.0  ;;  %v507_v34 = vmax.f32 %v475_v30, 0.0 }
  0x3f   : > { %v569_v58 = vld [vmem:[#allocation2 + $0x128] sm:$0xff]  ;;  %3474 = vmatmul.msk.bf16.vlgmr.msra.gmra.mxu0 %vm297_vm2, %v576_v49  ;;  %522 = vst.msk [vmem:[#allocation2 + $0x91] sm:$0xff] %vm297_vm2, %v489_v35  ;;  %v3641_v49 = vunpack.c.h.bf16 %v3695_v47 }
  0x40   : > { %v588_v61 = vpack.c.bf16 %v569_v58, %v568_v53  ;;  %v554_v62 = vld [vmem:[#allocation2 + $0x78] sm:$0xff]  ;;  %523 = vst.msk [vmem:[#allocation2 + $0x99] sm:$0xff] %vm297_vm2, %v490_v38  ;;  %v482_v33 = vmax.f32 %v450_v29, 0.0  ;;  %v483_v58 = vmax.f32 %v451_v52, 0.0  ;;  %v775_v52 = vld [vmem:[#allocation2 + $0x69] sm:$0xff] }
  0x41   : > { %v555_v4 = vld [vmem:[#allocation2 + $0x80] sm:$0xff]  ;;  %530 = vst.msk [vmem:[#allocation2 + $0xf1] sm:$0xff] %vm297_vm2, %v497_v39  ;;  %v416_v51 = vmul.f32 %v3807_v3, %v3641_v49 }
  0x42   : > { %3486 = vmatmul.msk.bf16.vlgmr.msra.gmra.mxu3 %vm297_vm2, %v588_v61  ;;  %v3986_v10 = vpack.c.bf16 %v555_v4, %v554_v62  ;;  %531 = vst.msk [vmem:[#allocation2 + $0xf9] sm:$0xff] %vm297_vm2, %v498_v54  ;;  %v562_v26 = vld [vmem:[#allocation2 + $0xd8] sm:$0xff]  ;;  %v2009_v4 = vsel %vm641_vm0, %v3558_v0, 0  ;;  %v1063_v0 = vld [vmem:[#allocation2 + $0x82] sm:$0xff] }
  0x43   : > { %512 = vst.msk [vmem:[#allocation2 + $0x19] sm:$0xff] %vm297_vm2, %v479_v59  ;;  %v563_v27 = vld [vmem:[#allocation2 + $0xe0] sm:$0xff]  ;;  %v452_v53 = vadd.f32 %v3817_v7, %v416_v51  ;;  %2018 = vmatpush.bf16.msra.mxu1 %v2009_v4  ;;  %2591 = vmatpush.bf16.msra.mxu3 %v2582_v9 }
  0x44   : > { %3479 = vmatmul.msk.bf16.gmra.mxu1 %vm297_vm2, %v3986_v10  ;;  %513 = vst.msk [vmem:[#allocation2 + $0x21] sm:$0xff] %vm297_vm2, %v480_v63  ;;  %v4007_v35 = vpack.c.bf16 %v563_v27, %v562_v26  ;;  %v570_v38 = vld [vmem:[#allocation2 + $0x138] sm:$0xff]  ;;  %v1052_v26 = vld [vmem:[#allocation2 + $0x2] sm:$0xff] }
  0x45   : > { %538 = vst.msk [vmem:[#allocation2 + $0x151] sm:$0xff] %vm297_vm2, %v505_v5  ;;  %v571_v39 = vld [vmem:[#allocation2 + $0x140] sm:$0xff]  ;;  %v484_v59 = vmax.f32 %v452_v53, 0.0  ;;  %v2296_v5 = vsel %vm641_vm0, %v3575_v1, 0 }
  0x46   : > { %539 = vst.msk [vmem:[#allocation2 + $0x159] sm:$0xff] %vm297_vm2, %v506_v11  ;;  %v556_v42 = vld [vmem:[#allocation2 + $0x90] sm:$0xff]  ;;  %v589_v45 = vpack.c.bf16 %v571_v39, %v570_v38  ;;  %2305 = vmatpush.bf16.msra.mxu2 %v2296_v5  ;;  %v774_v51 = vld [vmem:[#allocation2 + $0x61] sm:$0xff] }
  0x47   : > { %524 = vst.msk [vmem:[#allocation2 + $0xa9] sm:$0xff] %vm297_vm2, %v491_v13  ;;  %v557_v43 = vld [vmem:[#allocation2 + $0x98] sm:$0xff] }
  0x48   : > { %525 = vst.msk [vmem:[#allocation2 + $0xb1] sm:$0xff] %vm297_vm2, %v492_v17  ;;  %v4020_v46 = vpack.c.bf16 %v557_v43, %v556_v42  ;;  %v564_v54 = vld [vmem:[#allocation2 + $0xf0] sm:$0xff]  ;;  %v779_v9 = vld [vmem:[#allocation2 + $0x99] sm:$0xff] }
  0x49   : > { %532 = vst.msk [vmem:[#allocation2 + $0x109] sm:$0xff] %vm297_vm2, %v499_v19  ;;  %v565_v55 = vld [vmem:[#allocation2 + $0xf8] sm:$0xff]  ;;  %v766_v19 = vld [vmem:[#allocation2 + $0x1] sm:$0xff] }
  0x4a   : > { %v546_v36 = vld [vmem:[#allocation2 + $0x18] sm:$0xff]  ;;  %533 = vst.msk [vmem:[#allocation2 + $0x111] sm:$0xff] %vm297_vm2, %v500_v24  ;;  %v4036_v60 = vpack.c.bf16 %v565_v55, %v564_v54  ;;  %v3609_v24 = vld [vmem:[%s4908_s3 + $0x20] sm:$0xf]  ;;  %v802_v54 = vpack.c.bf16 %v775_v52, %v774_v51  ;;  %v1069_v51 = vld [vmem:[#allocation2 + $0xca] sm:$0xff] }
  0x4b   : > { %v547_v40 = vld [vmem:[#allocation2 + $0x20] sm:$0xff]  ;;  %514 = vst.msk [vmem:[#allocation2 + $0x31] sm:$0xff] %vm297_vm2, %v481_v32  ;;  %v2868_v25 = vsel %vm641_vm0, %v3609_v24, 0  ;;  %v778_v8 = vld [vmem:[#allocation2 + $0x91] sm:$0xff] }
  0x4c   : > { %v4011_v41 = vpack.c.bf16 %v547_v40, %v546_v36  ;;  %515 = vst.msk [vmem:[#allocation2 + $0x39] sm:$0xff] %vm297_vm2, %v482_v33  ;;  %v572_v3 = vld [vmem:[#allocation2 + $0x150] sm:$0xff]  ;;  %2877 = vmatpush.bf16.msra.mxu0 %v2868_v25  ;;  %v768_v29 = vld [vmem:[#allocation2 + $0x19] sm:$0xff]  ;;  %v769_v30 = vld [vmem:[#allocation2 + $0x21] sm:$0xff] }
  0x4d   : > { %540 = vst.msk [vmem:[#allocation2 + $0x169] sm:$0xff] %vm297_vm2, %v507_v34  ;;  %v573_v61 = vld [vmem:[#allocation2 + $0x158] sm:$0xff]  ;;  %v799_v31 = vpack.c.bf16 %v769_v30, %v768_v29  ;;  %v1055_v33 = vld [vmem:[#allocation2 + $0x22] sm:$0xff] }
  0x4e   : > { %3483 = vmatmul.msk.bf16.gmra.mxu2 %vm297_vm2, %v4007_v35  ;;  %541 = vst.msk [vmem:[#allocation2 + $0x171] sm:$0xff] %vm297_vm2, %v508_v37  ;;  %v590_v7 = vpack.c.bf16 %v573_v61, %v572_v3  ;;  %v1054_v32 = vld [vmem:[#allocation2 + $0x1a] sm:$0xff]  ;;  %v1060_v55 = vld [vmem:[#allocation2 + $0x62] sm:$0xff] }
  0x4f   : > { %3475 = vmatmul.msk.bf16.gmra.mxu0 %vm297_vm2, %v4011_v41  ;;  %301 = vst.msk [vmem:[#allocation2 + $0x10] sm:$0x3] %vm300_vm3, %v3735_v2  ;;  %v559_v63 = vld [vmem:[#allocation2 + $0xb0] sm:$0xff]  ;;  %v1085_v34 = vpack.c.bf16 %v1055_v33, %v1054_v32 }
  0x50   : > { %305 = vst.msk [vmem:[#allocation2 + $0x1a8] sm:$0x3] %vm300_vm3, %v3735_v2  ;;  %v566_v11 = vld [vmem:[#allocation2 + $0x108] sm:$0xff]  ;;  %v781_v25 = vld [vmem:[#allocation2 + $0xb1] sm:$0xff] }
  0x51   : > { %325 = vst.msk [vmem:[#allocation2 + $0x11] sm:$0x1] %vm306_vm1, %v3735_v2  ;;  %v567_v12 = vld [vmem:[#allocation2 + $0x110] sm:$0xff] }
  0x52   : > { %3487 = vmatmul.msk.bf16.gmra.mxu3 %vm297_vm2, %v589_v45  ;;  %342 = vst.msk [vmem:[#allocation2 + $0x1a9] sm:$0x1] %vm306_vm1, %v3735_v2  ;;  %v548_v56 = vld [vmem:[#allocation2 + $0x30] sm:$0xff]  ;;  %v558_v2 = vld [vmem:[#allocation2 + $0xa8] sm:$0xff]  ;;  %v4060_v15 = vpack.c.bf16 %v567_v12, %v566_v11  ;;  %v804_v12 = vpack.c.bf16 %v779_v9, %v778_v8 }
  0x53   : > { %v549_v57 = vld [vmem:[#allocation2 + $0x38] sm:$0xff]  ;;  %516 = vst.msk [vmem:[#allocation2 + $0x49] sm:$0xff] %vm297_vm2, %v483_v58  ;;  %v4051_v6 = vpack.c.bf16 %v559_v63, %v558_v2  ;;  %v780_v24 = vld [vmem:[#allocation2 + $0xa9] sm:$0xff] }
  0x54   : > { %3480 = vmatmul.msk.bf16.gmra.mxu1 %vm297_vm2, %v4020_v46  ;;  %v578_v62 = vpack.c.bf16 %v549_v57, %v548_v56  ;;  %517 = vst.msk [vmem:[#allocation2 + $0x51] sm:$0xff] %vm297_vm2, %v484_v59  ;;  %v574_v16 = vld [vmem:[#allocation2 + $0x168] sm:$0xff]  ;;  %v770_v36 = vld [vmem:[#allocation2 + $0x31] sm:$0xff]  ;;  %v771_v37 = vld [vmem:[#allocation2 + $0x39] sm:$0xff] }
  0x55   : > { %v575_v17 = vld [vmem:[#allocation2 + $0x170] sm:$0xff]  ;;  %v800_v38 = vpack.c.bf16 %v771_v37, %v770_v36  ;;  %v1057_v40 = vld [vmem:[#allocation2 + $0x3a] sm:$0xff]  ;;  %v1071_v8 = vld [vmem:[#allocation2 + $0xe2] sm:$0xff] }
  0x56   : > { %v767_v20 = vld [vmem:[#allocation2 + $0x9] sm:$0xff]  ;;  %v591_v21 = vpack.c.bf16 %v575_v17, %v574_v16  ;;  %v1056_v39 = vld [vmem:[#allocation2 + $0x32] sm:$0xff]  ;;  %v777_v59 = vld [vmem:[#allocation2 + $0x81] sm:$0xff] }
  0x57   : > { %v798_v22 = vpack.c.bf16 %v767_v20, %v766_v19  ;;  %v1086_v42 = vpack.c.bf16 %v1057_v40, %v1056_v39  ;;  %v1061_v56 = vld [vmem:[#allocation2 + $0x6a] sm:$0xff]  ;;  %v776_v58 = vld [vmem:[#allocation2 + $0x79] sm:$0xff] }
  0x58   : > { %v1053_v27 = vld [vmem:[#allocation2 + $0xa] sm:$0xff]  ;;  %v1088_v57 = vpack.c.bf16 %v1061_v56, %v1060_v55  ;;  %v803_v61 = vpack.c.bf16 %v777_v59, %v776_v58  ;;  %v1065_v19 = vld [vmem:[#allocation2 + $0x9a] sm:$0xff]  ;;  %v1067_v33 = vld [vmem:[#allocation2 + $0xb2] sm:$0xff] }
  0x59   : > { %v1084_v28 = vpack.c.bf16 %v1053_v27, %v1052_v26  ;;  %v805_v27 = vpack.c.bf16 %v781_v25, %v780_v24  ;;  %v1066_v32 = vld [vmem:[#allocation2 + $0xaa] sm:$0xff]  ;;  %v784_v56 = vld [vmem:[#allocation2 + $0xd9] sm:$0xff] }
  0x5a   : > { %v550_v13 = vld [vmem:[#allocation2 + $0x48] sm:$0xff]  ;;  %v1091_v37 = vpack.c.bf16 %v1067_v33, %v1066_v32 }
  0x5b   : > { %v551_v14 = vld [vmem:[#allocation2 + $0x50] sm:$0xff] }
  0x5c   : > { %v579_v18 = vpack.c.bf16 %v551_v14, %v550_v13  ;;  %v773_v43 = vld [vmem:[#allocation2 + $0x51] sm:$0xff]  ;;  %v783_v39 = vld [vmem:[#allocation2 + $0xc9] sm:$0xff] }
  0x5d   : > { %v1058_v48 = vld [vmem:[#allocation2 + $0x4a] sm:$0xff]  ;;  %v1059_v49 = vld [vmem:[#allocation2 + $0x52] sm:$0xff] }
  0x5e   : > { %3484 = vmatmul.msk.bf16.gmra.mxu2 %vm297_vm2, %v4036_v60  ;;  %v1087_v50 = vpack.c.bf16 %v1059_v49, %v1058_v48 }
  0x5f   : > { %3476 = vmatmul.msk.bf16.gmra.mxu0 %vm297_vm2, %v578_v62 }
  0x62   : > { %3488 = vmatmul.msk.bf16.gmra.mxu3 %vm297_vm2, %v590_v7  ;;  %v1062_v7 = vld [vmem:[#allocation2 + $0x7a] sm:$0xff] }
  0x63   : > { %v1089_v5 = vpack.c.bf16 %v1063_v0, %v1062_v7 }
  0x64   : > { %3481 = vmatmul.msk.bf16.gmra.mxu1 %vm297_vm2, %v4051_v6 }
  0x6e   : > { %3485 = vmatmul.msk.bf16.gmra.mxu2 %vm297_vm2, %v4060_v15 }
  0x6f   : > { %3477 = vmatmul.msk.bf16.gmra.mxu0 %vm297_vm2, %v579_v18 }
  0x72   : > { %3489 = vmatmul.msk.bf16.gmra.mxu3 %vm297_vm2, %v591_v21 }
  0x74   : > { %3491 = vmatmul.msk.bf16.vlgmr.msrb.gmra.mxu1 %vm297_vm2, %v798_v22 }
  0x7e   : > { %3508 = vmatmul.msk.bf16.vlgmr.msrb.gmra.mxu2 %vm297_vm2, %v1084_v28 }
  0x7f   : > { %3542 = vmatmul.msk.bf16.vlgmr.msrb.gmra.mxu0 %vm297_vm2, %v799_v31 }
  0x82   : > { %3525 = vmatmul.msk.bf16.vlgmr.msrb.gmra.mxu3 %vm297_vm2, %v4011_v41  ;;  %v772_v41 = vld [vmem:[#allocation2 + $0x49] sm:$0xff] }
  0x83   : > { %v801_v45 = vpack.c.bf16 %v773_v43, %v772_v41 }
  0x84   : > { %3492 = vmatmul.msk.bf16.gmra.mxu1 %vm297_vm2, %v799_v31 }
  0x8e   : > { %3509 = vmatmul.msk.bf16.gmra.mxu2 %vm297_vm2, %v1085_v34 }
  0x8f   : > { %3543 = vmatmul.msk.bf16.gmra.mxu0 %vm297_vm2, %v800_v38 }
  0x92   : > { %3526 = vmatmul.msk.bf16.gmra.mxu3 %vm297_vm2, %v578_v62 }
  0x94   : > { %3493 = vmatmul.msk.bf16.gmra.mxu1 %vm297_vm2, %v800_v38  ;;  %v782_v38 = vld [vmem:[#allocation2 + $0xc1] sm:$0xff] }
  0x9e   : > { %3510 = vmatmul.msk.bf16.gmra.mxu2 %vm297_vm2, %v1086_v42  ;;  %v806_v42 = vpack.c.bf16 %v783_v39, %v782_v38 }
  0x9f   : > { %3544 = vmatmul.msk.bf16.gmra.mxu0 %vm297_vm2, %v801_v45 }
  0xa2   : > { %3527 = vmatmul.msk.bf16.gmra.mxu3 %vm297_vm2, %v579_v18  ;;  %v674_v47 = vpop.f32.mrf.mxu1  ;;  %v1064_v18 = vld [vmem:[#allocation2 + $0x92] sm:$0xff] }
  0xa3   : > { %742 = vst.msk [vmem:[#allocation3 + $0x40] sm:$0xff] %vm297_vm2, %v674_v47  ;;  %v1090_v22 = vpack.c.bf16 %v1065_v19, %v1064_v18 }
  0xa4   : > { %3494 = vmatmul.msk.bf16.gmra.mxu1 %vm297_vm2, %v801_v45 }
  0xaa   : > { %v676_v53 = vpop.f32.mrf.mxu1 }
  0xab   : > { %743 = vst.msk [vmem:[#allocation3 + $0x48] sm:$0xff] %vm297_vm2, %v676_v53 }
  0xae   : > { %3511 = vmatmul.msk.bf16.gmra.mxu2 %vm297_vm2, %v1087_v50  ;;  %v1068_v50 = vld [vmem:[#allocation2 + $0xc2] sm:$0xff] }
  0xaf   : > { %3545 = vmatmul.msk.bf16.gmra.mxu0 %vm297_vm2, %v802_v54  ;;  %v1092_v55 = vpack.c.bf16 %v1069_v51, %v1068_v50 }
  0xb2   : > { %3528 = vmatmul.msk.bf16.gmra.mxu3 %vm297_vm2, %v3868_v23 }
  0xb4   : > { %3495 = vmatmul.msk.bf16.gmra.mxu1 %vm297_vm2, %v802_v54 }
  0xbc   : > { %v654_v3 = vpop.f32.mrf.mxu0 }
  0xbd   : > { %734 = vst.msk [vmem:[#allocation3] sm:$0xff] %vm297_vm2, %v654_v3 }
  0xbe   : > { %3512 = vmatmul.msk.bf16.gmra.mxu2 %vm297_vm2, %v1088_v57  ;;  %v785_v57 = vld [vmem:[#allocation2 + $0xe1] sm:$0xff] }
  0xbf   : > { %3546 = vmatmul.msk.bf16.gmra.mxu0 %vm297_vm2, %v803_v61  ;;  %v807_v3 = vpack.c.bf16 %v785_v57, %v784_v56 }
  0xc1   : > { %v694_v62 = vpop.f32.mrf.mxu2  ;;  %v679_v2 = vpop.f32.mrf.mxu1 }
  0xc2   : > { %750 = vst.msk [vmem:[#allocation3 + $0x80] sm:$0xff] %vm297_vm2, %v694_v62  ;;  %3529 = vmatmul.msk.bf16.gmra.mxu3 %vm297_vm2, %v3986_v10 }
  0xc3   : > { %744 = vst.msk [vmem:[#allocation3 + $0x50] sm:$0xff] %vm297_vm2, %v679_v2 }
  0xc4   : > { %3496 = vmatmul.msk.bf16.gmra.mxu1 %vm297_vm2, %v803_v61  ;;  %v656_v23 = vpop.f32.mrf.mxu0  ;;  %v956_v45 = vld [vmem:[#allocation3] sm:$0xff] }
  0xc5   : > { %v714_v63 = vpop.f32.mrf.mxu3  ;;  %735 = vst.msk [vmem:[#allocation3 + $0x8] sm:$0xff] %vm297_vm2, %v656_v23 }
  0xc6   : > { %758 = vst.msk [vmem:[#allocation3 + $0xc0] sm:$0xff] %vm297_vm2, %v714_v63 }
  0xc9   : > { %v696_v1 = vpop.f32.mrf.mxu2  ;;  %v681_v4 = vpop.f32.mrf.mxu1 }
  0xca   : > { %751 = vst.msk [vmem:[#allocation3 + $0x88] sm:$0xff] %vm297_vm2, %v696_v1 }
  0xcb   : > { %745 = vst.msk [vmem:[#allocation3 + $0x58] sm:$0xff] %vm297_vm2, %v681_v4 }
  0xcc   : > { %v659_v10 = vpop.f32.mrf.mxu0  ;;  %v957_v54 = vld [vmem:[#allocation3 + $0x8] sm:$0xff] }
  0xcd   : > { %v716_v11 = vpop.f32.mrf.mxu3  ;;  %736 = vst.msk [vmem:[#allocation3 + $0x10] sm:$0xff] %vm297_vm2, %v659_v10 }
  0xce   : > { %3513 = vmatmul.msk.bf16.gmra.mxu2 %vm297_vm2, %v1089_v5  ;;  %759 = vst.msk [vmem:[#allocation3 + $0xc8] sm:$0xff] %vm297_vm2, %v716_v11  ;;  %v1070_v5 = vld [vmem:[#allocation2 + $0xda] sm:$0xff] }
  0xcf   : > { %3547 = vmatmul.msk.bf16.gmra.mxu0 %vm297_vm2, %v804_v12 }
  0xd1   : > { %v699_v13 = vpop.f32.mrf.mxu2  ;;  %v684_v14 = vpop.f32.mrf.mxu1 }
  0xd2   : > { %752 = vst.msk [vmem:[#allocation3 + $0x90] sm:$0xff] %vm297_vm2, %v699_v13  ;;  %3530 = vmatmul.msk.bf16.gmra.mxu3 %vm297_vm2, %v4020_v46  ;;  %v1093_v13 = vpack.c.bf16 %v1071_v8, %v1070_v5 }
  0xd3   : > { %746 = vst.msk [vmem:[#allocation3 + $0x60] sm:$0xff] %vm297_vm2, %v684_v14 }
  0xd4   : > { %3497 = vmatmul.msk.bf16.gmra.mxu1 %vm297_vm2, %v804_v12  ;;  %v661_v16 = vpop.f32.mrf.mxu0  ;;  %v958_v23 = vld [vmem:[#allocation3 + $0x10] sm:$0xff] }
  0xd5   : > { %v719_v17 = vpop.f32.mrf.mxu3  ;;  %737 = vst.msk [vmem:[#allocation3 + $0x18] sm:$0xff] %vm297_vm2, %v661_v16  ;;  %v786_v16 = vld [vmem:[#allocation2 + $0xf1] sm:$0xff] }
  0xd6   : > { %760 = vst.msk [vmem:[#allocation3 + $0xd0] sm:$0xff] %vm297_vm2, %v719_v17 }
  0xd9   : > { %v701_v20 = vpop.f32.mrf.mxu2  ;;  %v686_v21 = vpop.f32.mrf.mxu1 }
  0xda   : > { %753 = vst.msk [vmem:[#allocation3 + $0x98] sm:$0xff] %vm297_vm2, %v701_v20 }
  0xdb   : > { %747 = vst.msk [vmem:[#allocation3 + $0x68] sm:$0xff] %vm297_vm2, %v686_v21 }
  0xdc   : > { %v664_v46 = vpop.f32.mrf.mxu0  ;;  %v959_v11 = vld [vmem:[#allocation3 + $0x18] sm:$0xff] }
  0xdd   : > { %v721_v26 = vpop.f32.mrf.mxu3  ;;  %738 = vst.msk [vmem:[#allocation3 + $0x20] sm:$0xff] %vm297_vm2, %v664_v46 }
  0xde   : > { %3514 = vmatmul.msk.bf16.gmra.mxu2 %vm297_vm2, %v1090_v22  ;;  %761 = vst.msk [vmem:[#allocation3 + $0xd8] sm:$0xff] %vm297_vm2, %v721_v26 }
  0xdf   : > { %3548 = vmatmul.msk.bf16.gmra.mxu0 %vm297_vm2, %v805_v27 }
  0xe1   : > { %v704_v28 = vpop.f32.mrf.mxu2  ;;  %v689_v29 = vpop.f32.mrf.mxu1 }
  0xe2   : > { %754 = vst.msk [vmem:[#allocation3 + $0xa0] sm:$0xff] %vm297_vm2, %v704_v28  ;;  %3531 = vmatmul.msk.bf16.gmra.mxu3 %vm297_vm2, %v4051_v6 }
  0xe3   : > { %748 = vst.msk [vmem:[#allocation3 + $0x70] sm:$0xff] %vm297_vm2, %v689_v29 }
  0xe4   : > { %3498 = vmatmul.msk.bf16.gmra.mxu1 %vm297_vm2, %v805_v27  ;;  %v666_v30 = vpop.f32.mrf.mxu0  ;;  %v960_v46 = vld [vmem:[#allocation3 + $0x20] sm:$0xff] }
  0xe5   : > { %v724_v31 = vpop.f32.mrf.mxu3  ;;  %739 = vst.msk [vmem:[#allocation3 + $0x28] sm:$0xff] %vm297_vm2, %v666_v30 }
  0xe6   : > { %762 = vst.msk [vmem:[#allocation3 + $0xe0] sm:$0xff] %vm297_vm2, %v724_v31 }
  0xe9   : > { %v706_v34 = vpop.f32.mrf.mxu2  ;;  %v691_v36 = vpop.f32.mrf.mxu1 }
  0xea   : > { %755 = vst.msk [vmem:[#allocation3 + $0xa8] sm:$0xff] %vm297_vm2, %v706_v34 }
  0xeb   : > { %749 = vst.msk [vmem:[#allocation3 + $0x78] sm:$0xff] %vm297_vm2, %v691_v36  ;;  %v1072_v36 = vld [vmem:[#allocation2 + $0xf2] sm:$0xff] }
  0xec   : > { %v669_v6 = vpop.f32.mrf.mxu0  ;;  %v961_v39 = vld [vmem:[#allocation3 + $0x28] sm:$0xff] }
  0xed   : > { %v726_v40 = vpop.f32.mrf.mxu3  ;;  %740 = vst.msk [vmem:[#allocation3 + $0x30] sm:$0xff] %vm297_vm2, %v669_v6 }
  0xee   : > { %3515 = vmatmul.msk.bf16.gmra.mxu2 %vm297_vm2, %v1091_v37  ;;  %763 = vst.msk [vmem:[#allocation3 + $0xe8] sm:$0xff] %vm297_vm2, %v726_v40  ;;  %v1073_v37 = vld [vmem:[#allocation2 + $0xfa] sm:$0xff] }
  0xef   : > { %3549 = vmatmul.msk.bf16.gmra.mxu0 %vm297_vm2, %v806_v42  ;;  %v1094_v40 = vpack.c.bf16 %v1073_v37, %v1072_v36  ;;  %v1077_v36 = vld [vmem:[#allocation2 + $0x12a] sm:$0xff] }
  0xf1   : > { %v709_v41 = vpop.f32.mrf.mxu2  ;;  %v876_v43 = vpop.f32.mrf.mxu1 }
  0xf2   : > { %756 = vst.msk [vmem:[#allocation3 + $0xb0] sm:$0xff] %vm297_vm2, %v709_v41  ;;  %3532 = vmatmul.msk.bf16.gmra.mxu3 %vm297_vm2, %v3963_v44  ;;  %v988_v47 = vadd.f32 %v956_v45, %v876_v43  ;;  %v788_v41 = vld [vmem:[#allocation2 + $0x109] sm:$0xff]  ;;  %v789_v43 = vld [vmem:[#allocation2 + $0x111] sm:$0xff] }
  0xf3   : > { %v809_v51 = vpack.c.bf16 %v789_v43, %v788_v41  ;;  %v793_v41 = vld [vmem:[#allocation2 + $0x141] sm:$0xff] }
  0xf4   : > { %1020 = vst.msk [vmem:[#allocation3] sm:$0xff] %vm297_vm2, %v988_v47  ;;  %3499 = vmatmul.msk.bf16.gmra.mxu1 %vm297_vm2, %v806_v42  ;;  %v671_v48 = vpop.f32.mrf.mxu0 }
  0xf5   : > { %v729_v49 = vpop.f32.mrf.mxu3  ;;  %741 = vst.msk [vmem:[#allocation3 + $0x38] sm:$0xff] %vm297_vm2, %v671_v48 }
  0xf6   : > { %764 = vst.msk [vmem:[#allocation3 + $0xf0] sm:$0xff] %vm297_vm2, %v729_v49 }
  0xf9   : > { %v711_v52 = vpop.f32.mrf.mxu2  ;;  %v878_v53 = vpop.f32.mrf.mxu1 }
  0xfa   : > { %757 = vst.msk [vmem:[#allocation3 + $0xb8] sm:$0xff] %vm297_vm2, %v711_v52  ;;  %v989_v44 = vadd.f32 %v957_v54, %v878_v53 }
  0xfb   : > { %v1242_v61 = vld [vmem:[#allocation3] sm:$0xff] }
  0xfc   : > { %1021 = vst.msk [vmem:[#allocation3 + $0x8] sm:$0xff] %vm297_vm2, %v989_v44  ;;  %v1734_v58 = vpop.f32.mrf.mxu0  ;;  %v962_v44 = vld [vmem:[#allocation3 + $0x30] sm:$0xff] }
  0xfd   : > { %v731_v59 = vpop.f32.mrf.mxu3 }
  0xfe   : > { %3516 = vmatmul.msk.bf16.gmra.mxu2 %vm297_vm2, %v1092_v55  ;;  %765 = vst.msk [vmem:[#allocation3 + $0xf8] sm:$0xff] %vm297_vm2, %v731_v59 }
  0xff   : > { %3550 = vmatmul.msk.bf16.gmra.mxu0 %vm297_vm2, %v807_v3 }
 0x101   : > { %v1162_v62 = vpop.f32.mrf.mxu2  ;;  %v881_v2 = vpop.f32.mrf.mxu1 }
 0x102   : > { %v1274_v63 = vadd.f32 %v1242_v61, %v1162_v62  ;;  %3533 = vmatmul.msk.bf16.gmra.mxu3 %vm297_vm2, %v4007_v35  ;;  %v990_v7 = vadd.f32 %v958_v23, %v881_v2  ;;  %v787_v35 = vld [vmem:[#allocation2 + $0xf9] sm:$0xff] }
 0x103   : > { %v1243_v4 = vld [vmem:[#allocation3 + $0x8] sm:$0xff]  ;;  %v808_v21 = vpack.c.bf16 %v787_v35, %v786_v16 }
 0x104   : > { %1306 = vst.msk [vmem:[#allocation3] sm:$0xff] %vm297_vm2, %v1274_v63  ;;  %3500 = vmatmul.msk.bf16.gmra.mxu1 %vm297_vm2, %v807_v3  ;;  %v1736_v0 = vpop.f32.mrf.mxu0  ;;  %v1074_v63 = vld [vmem:[#allocation2 + $0x10a] sm:$0xff] }
 0x105   : > { %v1448_v1 = vpop.f32.mrf.mxu3  ;;  %1022 = vst.msk [vmem:[#allocation3 + $0x10] sm:$0xff] %vm297_vm2, %v990_v7 }
 0x109   : > { %v1164_v9 = vpop.f32.mrf.mxu2  ;;  %v883_v10 = vpop.f32.mrf.mxu1 }
 0x10a   : > { %v1275_v12 = vadd.f32 %v1243_v4, %v1164_v9  ;;  %v991_v14 = vadd.f32 %v959_v11, %v883_v10  ;;  %v790_v9 = vld [vmem:[#allocation2 + $0x121] sm:$0xff]  ;;  %v791_v10 = vld [vmem:[#allocation2 + $0x129] sm:$0xff] }
 0x10b   : > { %v1528_v17 = vld [vmem:[#allocation3] sm:$0xff] }
 0x10c   : > { %v1560_v18 = vadd.f32 %v1528_v17, %v1448_v1  ;;  %1307 = vst.msk [vmem:[#allocation3 + $0x8] sm:$0xff] %vm297_vm2, %v1275_v12  ;;  %v4151_v19 = vpop.f32.mrf.mxu0  ;;  %v1244_v22 = vld [vmem:[#allocation3 + $0x10] sm:$0xff]  ;;  %v963_v1 = vld [vmem:[#allocation3 + $0x38] sm:$0xff] }
 0x10d   : > { %v1450_v20 = vpop.f32.mrf.mxu3  ;;  %1023 = vst.msk [vmem:[#allocation3 + $0x18] sm:$0xff] %vm297_vm2, %v991_v14  ;;  %v1360_v12 = vld [vmem:[#allocation2 + $0x120] sm:$0xff] }
 0x10e   : > { %1592 = vst.msk [vmem:[#allocation3] sm:$0xff] %vm297_vm2, %v1560_v18  ;;  %3517 = vmatmul.msk.bf16.gmra.mxu2 %vm297_vm2, %v1093_v13  ;;  %v1361_v13 = vld [vmem:[#allocation2 + $0x128] sm:$0xff]  ;;  %v810_v18 = vpack.c.bf16 %v791_v10, %v790_v9 }
 0x10f   : > { %3551 = vmatmul.msk.bf16.gmra.mxu0 %vm297_vm2, %v808_v21 }
 0x111   : > { %v1167_v24 = vpop.f32.mrf.mxu2  ;;  %v886_v25 = vpop.f32.mrf.mxu1 }
 0x112   : > { %v1276_v26 = vadd.f32 %v1244_v22, %v1167_v24  ;;  %3534 = vmatmul.msk.bf16.gmra.mxu3 %vm297_vm2, %v4036_v60  ;;  %v992_v27 = vadd.f32 %v960_v46, %v886_v25  ;;  %v964_v25 = vld [vmem:[#allocation3 + $0x40] sm:$0xff] }
 0x113   : > { %v1529_v28 = vld [vmem:[#allocation3 + $0x8] sm:$0xff] }
 0x114   : > { %v1561_v29 = vadd.f32 %v1529_v28, %v1450_v20  ;;  %1308 = vst.msk [vmem:[#allocation3 + $0x10] sm:$0xff] %vm297_vm2, %v1276_v26  ;;  %3501 = vmatmul.msk.bf16.gmra.mxu1 %vm297_vm2, %v808_v21  ;;  %v4161_v30 = vpop.f32.mrf.mxu0  ;;  %v1245_v34 = vld [vmem:[#allocation3 + $0x18] sm:$0xff]  ;;  %v1381_v20 = vpack.c.bf16 %v1361_v13, %v1360_v12 }
 0x115   : > { %v1814_v31 = vld [vmem:[#allocation3] sm:$0xff]  ;;  %v1453_v32 = vpop.f32.mrf.mxu3  ;;  %1024 = vst.msk [vmem:[#allocation3 + $0x20] sm:$0xff] %vm297_vm2, %v992_v27  ;;  %v1079_v12 = vld [vmem:[#allocation2 + $0x142] sm:$0xff] }
 0x116   : > { %1593 = vst.msk [vmem:[#allocation3 + $0x8] sm:$0xff] %vm297_vm2, %v1561_v29  ;;  %v1846_v33 = vadd.f32 %v1814_v31, %v1734_v58 }
 0x118   : > { %1878 = vst.msk [vmem:[#allocation3] sm:$0xff] %vm297_vm2, %v1846_v33 }
 0x119   : > { %v1169_v60 = vpop.f32.mrf.mxu2  ;;  %v888_v38 = vpop.f32.mrf.mxu1 }
 0x11a   : > { %v1277_v6 = vadd.f32 %v1245_v34, %v1169_v60  ;;  %v993_v42 = vadd.f32 %v961_v39, %v888_v38  ;;  %v1076_v34 = vld [vmem:[#allocation2 + $0x122] sm:$0xff]  ;;  %v965_v38 = vld [vmem:[#allocation3 + $0x48] sm:$0xff] }
 0x11b   : > { %v1530_v45 = vld [vmem:[#allocation3 + $0x10] sm:$0xff] }
 0x11c   : > { %v1562_v47 = vadd.f32 %v1530_v45, %v1453_v32  ;;  %1309 = vst.msk [vmem:[#allocation3 + $0x18] sm:$0xff] %vm297_vm2, %v1277_v6  ;;  %v4167_v48 = vpop.f32.mrf.mxu0  ;;  %v1246_v53 = vld [vmem:[#allocation3 + $0x20] sm:$0xff]  ;;  %v1096_v6 = vpack.c.bf16 %v1077_v36, %v1076_v34  ;;  %v1362_v45 = vld [vmem:[#allocation2 + $0x138] sm:$0xff] }
 0x11d   : > { %v1815_v49 = vld [vmem:[#allocation3 + $0x8] sm:$0xff]  ;;  %v1455_v50 = vpop.f32.mrf.mxu3  ;;  %1025 = vst.msk [vmem:[#allocation3 + $0x28] sm:$0xff] %vm297_vm2, %v993_v42 }
 0x11e   : > { %1594 = vst.msk [vmem:[#allocation3 + $0x10] sm:$0xff] %vm297_vm2, %v1562_v47  ;;  %v1847_v52 = vadd.f32 %v1815_v49, %v1736_v0  ;;  %3518 = vmatmul.msk.bf16.gmra.mxu2 %vm297_vm2, %v1094_v40  ;;  %v792_v42 = vld [vmem:[#allocation2 + $0x139] sm:$0xff] }
 0x11f   : > { %3552 = vmatmul.msk.bf16.gmra.mxu0 %vm297_vm2, %v809_v51  ;;  %v1363_v47 = vld [vmem:[#allocation2 + $0x140] sm:$0xff] }
 0x120   : > { %1879 = vst.msk [vmem:[#allocation3 + $0x8] sm:$0xff] %vm297_vm2, %v1847_v52  ;;  %v811_v52 = vpack.c.bf16 %v793_v41, %v792_v42 }
 0x121   : > { %v1172_v54 = vpop.f32.mrf.mxu2  ;;  %v891_v55 = vpop.f32.mrf.mxu1 }
 0x122   : > { %v1278_v56 = vadd.f32 %v1246_v53, %v1172_v54  ;;  %3535 = vmatmul.msk.bf16.gmra.mxu3 %vm297_vm2, %v4060_v15  ;;  %v994_v57 = vadd.f32 %v962_v44, %v891_v55  ;;  %v1075_v15 = vld [vmem:[#allocation2 + $0x112] sm:$0xff]  ;;  %v1382_v54 = vpack.c.bf16 %v1363_v47, %v1362_v45 }
 0x123   : > { %v1531_v58 = vld [vmem:[#allocation3 + $0x18] sm:$0xff]  ;;  %v1095_v5 = vpack.c.bf16 %v1075_v15, %v1074_v63  ;;  %v3724_v15 = vld [vmem:[%s4906_s1] ss:$0 sm:$0xff] }
 0x124   : > { %v1563_v59 = vadd.f32 %v1531_v58, %v1455_v50  ;;  %1310 = vst.msk [vmem:[#allocation3 + $0x20] sm:$0xff] %vm297_vm2, %v1278_v56  ;;  %3502 = vmatmul.msk.bf16.gmra.mxu1 %vm297_vm2, %v809_v51  ;;  %v4178_v3 = vpop.f32.mrf.mxu0  ;;  %v1247_v23 = vld [vmem:[#allocation3 + $0x28] sm:$0xff] }
 0x125   : > { %v1816_v61 = vld [vmem:[#allocation3 + $0x10] sm:$0xff]  ;;  %v1458_v62 = vpop.f32.mrf.mxu3  ;;  %1026 = vst.msk [vmem:[#allocation3 + $0x30] sm:$0xff] %vm297_vm2, %v994_v57  ;;  %v3708_v58 = vld [vmem:[%s3802_s8 + $0x78] sm:$0xff]  }
 0x126   : > { %1595 = vst.msk [vmem:[#allocation3 + $0x18] sm:$0xff] %vm297_vm2, %v1563_v59  ;;  %v1848_v2 = vadd.f32 %v1816_v61, %v4151_v19  ;;  %v966_v57 = vld [vmem:[#allocation3 + $0x50] sm:$0xff] }
 0x128   : > { %1880 = vst.msk [vmem:[#allocation3 + $0x10] sm:$0xff] %vm297_vm2, %v1848_v2 }
 0x129   : > { %v1174_v7 = vpop.f32.mrf.mxu2  ;;  %v893_v0 = vpop.f32.mrf.mxu1 }
 0x12a   : > { %v1279_v4 = vadd.f32 %v1247_v23, %v1174_v7  ;;  %v995_v8 = vadd.f32 %v963_v1, %v893_v0  ;;  %v3693_v23 = vunpack.c.h.bf16 %v3708_v58 }
 0x12b   : > { %v1532_v11 = vld [vmem:[#allocation3 + $0x20] sm:$0xff] }
 0x12c   : > { %v1564_v14 = vadd.f32 %v1532_v11, %v1458_v62  ;;  %1311 = vst.msk [vmem:[#allocation3 + $0x28] sm:$0xff] %vm297_vm2, %v1279_v4  ;;  %v4185_v16 = vpop.f32.mrf.mxu0  ;;  %v1248_v21 = vld [vmem:[#allocation3 + $0x30] sm:$0xff]  ;;  %v3692_v62 = vunpack.c.l.bf16 %v3708_v58  ;;  %v442_v4 = vmul.f32 %v3724_v15, %v3693_v23 }
 0x12d   : > { %v1817_v35 = vld [vmem:[#allocation3 + $0x18] sm:$0xff]  ;;  %v1460_v17 = vpop.f32.mrf.mxu3  ;;  %1027 = vst.msk [vmem:[#allocation3 + $0x38] sm:$0xff] %vm297_vm2, %v995_v8  ;;  %v3725_v8 = vld [vmem:[%s4907_s2] ss:$0 sm:$0xff] }
 0x12e   : > { %1596 = vst.msk [vmem:[#allocation3 + $0x20] sm:$0xff] %vm297_vm2, %v1564_v14  ;;  %v1849_v19 = vadd.f32 %v1817_v35, %v4161_v30  ;;  %3519 = vmatmul.msk.bf16.gmra.mxu2 %vm297_vm2, %v1095_v5  ;;  %v441_v7 = vmul.f32 %v3724_v15, %v3692_v62  ;;  %v1078_v11 = vld [vmem:[#allocation2 + $0x13a] sm:$0xff]  ;;  %v478_v13 = vadd.f32 %v3725_v8, %v442_v4 }
 0x12f   : > { %3553 = vmatmul.msk.bf16.gmra.mxu0 %vm297_vm2, %v810_v18 }
 0x130   : > { %1881 = vst.msk [vmem:[#allocation3 + $0x18] sm:$0xff] %vm297_vm2, %v1849_v19  ;;  %v477_v9 = vadd.f32 %v3725_v8, %v441_v7  ;;  %v510_v19 = vmax.f32 %v478_v13, 0.0 }
 0x131   : > { %v1177_v22 = vpop.f32.mrf.mxu2  ;;  %v896_v24 = vpop.f32.mrf.mxu1 }
 0x132   : > { %v1280_v46 = vadd.f32 %v1248_v21, %v1177_v22  ;;  %3536 = vmatmul.msk.bf16.gmra.mxu3 %vm297_vm2, %v1381_v20  ;;  %v996_v26 = vadd.f32 %v964_v25, %v896_v24  ;;  %v509_v14 = vmax.f32 %v477_v9, 0.0  ;;  %v1097_v21 = vpack.c.bf16 %v1079_v12, %v1078_v11  ;;  %v795_v24 = vld [vmem:[#allocation2 + $0x159] sm:$0xff]  ;;  %543 = vst.msk [vmem:[#allocation2 + $0x189] sm:$0xff] %vm297_vm2, %v510_v19 }
 0x133   : > { %v1533_v27 = vld [vmem:[#allocation3 + $0x28] sm:$0xff] }
 0x134   : > { %v1565_v28 = vadd.f32 %v1533_v27, %v1460_v17  ;;  %1312 = vst.msk [vmem:[#allocation3 + $0x30] sm:$0xff] %vm297_vm2, %v1280_v46  ;;  %3503 = vmatmul.msk.bf16.gmra.mxu1 %vm297_vm2, %v810_v18  ;;  %v4196_v29 = vpop.f32.mrf.mxu0  ;;  %v1249_v33 = vld [vmem:[#allocation3 + $0x38] sm:$0xff]  ;;  %v1364_v46 = vld [vmem:[#allocation2 + $0x150] sm:$0xff] }
 0x135   : > { %v1818_v30 = vld [vmem:[#allocation3 + $0x20] sm:$0xff]  ;;  %v1463_v31 = vpop.f32.mrf.mxu3  ;;  %1028 = vst.msk [vmem:[#allocation3 + $0x40] sm:$0xff] %vm297_vm2, %v996_v26  ;;  %v967_v18 = vld [vmem:[#allocation3 + $0x58] sm:$0xff]  ;;  %v1365_v26 = vld [vmem:[#allocation2 + $0x158] sm:$0xff] }
 0x136   : > { %1597 = vst.msk [vmem:[#allocation3 + $0x28] sm:$0xff] %vm297_vm2, %v1565_v28  ;;  %v1850_v32 = vadd.f32 %v1818_v30, %v4167_v48  ;;  %v1383_v34 = vpack.c.bf16 %v1365_v26, %v1364_v46 }
 0x137   : > { %542 = vst.msk [vmem:[#allocation2 + $0x181] sm:$0xff] %vm297_vm2, %v509_v14 }
 0x138   : > { %1882 = vst.msk [vmem:[#allocation3 + $0x20] sm:$0xff] %vm297_vm2, %v1850_v32 }
 0x139   : > { %v1179_v37 = vpop.f32.mrf.mxu2  ;;  %v898_v60 = vpop.f32.mrf.mxu1 }
 0x13a   : > { %v1281_v39 = vadd.f32 %v1249_v33, %v1179_v37  ;;  %v997_v40 = vadd.f32 %v965_v38, %v898_v60  ;;  %v968_v38 = vld [vmem:[#allocation3 + $0x60] sm:$0xff] }
 0x13b   : > { %v1534_v43 = vld [vmem:[#allocation3 + $0x30] sm:$0xff] }
 0x13c   : > { %v1566_v49 = vadd.f32 %v1534_v43, %v1463_v31  ;;  %1313 = vst.msk [vmem:[#allocation3 + $0x38] sm:$0xff] %vm297_vm2, %v1281_v39  ;;  %v4203_v48 = vpop.f32.mrf.mxu0  ;;  %v1250_v55 = vld [vmem:[#allocation3 + $0x40] sm:$0xff] }
 0x13d   : > { %v1819_v50 = vld [vmem:[#allocation3 + $0x28] sm:$0xff]  ;;  %v1465_v51 = vpop.f32.mrf.mxu3  ;;  %1029 = vst.msk [vmem:[#allocation3 + $0x48] sm:$0xff] %vm297_vm2, %v997_v40 }
 0x13e   : > { %1598 = vst.msk [vmem:[#allocation3 + $0x30] sm:$0xff] %vm297_vm2, %v1566_v49  ;;  %v1851_v53 = vadd.f32 %v1819_v50, %v4178_v3  ;;  %3520 = vmatmul.msk.bf16.gmra.mxu2 %vm297_vm2, %v1096_v6  ;;  %v1080_v49 = vld [vmem:[#allocation2 + $0x152] sm:$0xff]  ;;  %v1081_v50 = vld [vmem:[#allocation2 + $0x15a] sm:$0xff] }
 0x13f   : > { %3554 = vmatmul.msk.bf16.gmra.mxu0 %vm297_vm2, %v811_v52  ;;  %v1654_v19 = vld [vmem:[#allocation2 + $0x181] sm:$0xff] }
 0x140   : > { %1883 = vst.msk [vmem:[#allocation3 + $0x28] sm:$0xff] %vm297_vm2, %v1851_v53  ;;  %v969_v53 = vld [vmem:[#allocation3 + $0x68] sm:$0xff] }
 0x141   : > { %v1182_v44 = vpop.f32.mrf.mxu2  ;;  %v901_v56 = vpop.f32.mrf.mxu1 }
 0x142   : > { %v1282_v59 = vadd.f32 %v1250_v55, %v1182_v44  ;;  %3537 = vmatmul.msk.bf16.gmra.mxu3 %vm297_vm2, %v1382_v54  ;;  %v998_v61 = vadd.f32 %v966_v57, %v901_v56  ;;  %v1098_v55 = vpack.c.bf16 %v1081_v50, %v1080_v49  ;;  %v796_v56 = vld [vmem:[#allocation2 + $0x169] sm:$0xff]  ;;  %v797_v57 = vld [vmem:[#allocation2 + $0x171] sm:$0xff] }
 0x143   : > { %v1535_v2 = vld [vmem:[#allocation3 + $0x38] sm:$0xff] }
 0x144   : > { %v1567_v3 = vadd.f32 %v1535_v2, %v1465_v51  ;;  %1314 = vst.msk [vmem:[#allocation3 + $0x40] sm:$0xff] %vm297_vm2, %v1282_v59  ;;  %3504 = vmatmul.msk.bf16.gmra.mxu1 %vm297_vm2, %v811_v52  ;;  %v4215_v63 = vpop.f32.mrf.mxu0  ;;  %v1251_v10 = vld [vmem:[#allocation3 + $0x48] sm:$0xff]  ;;  %v1366_v59 = vld [vmem:[#allocation2 + $0x168] sm:$0xff] }
 0x145   : > { %v1820_v0 = vld [vmem:[#allocation3 + $0x30] sm:$0xff]  ;;  %v1468_v1 = vpop.f32.mrf.mxu3  ;;  %1030 = vst.msk [vmem:[#allocation3 + $0x50] sm:$0xff] %vm297_vm2, %v998_v61  ;;  %v1367_v61 = vld [vmem:[#allocation2 + $0x170] sm:$0xff] }
 0x146   : > { %1599 = vst.msk [vmem:[#allocation3 + $0x38] sm:$0xff] %vm297_vm2, %v1567_v3  ;;  %v1852_v5 = vadd.f32 %v1820_v0, %v4185_v16  ;;  %v794_v16 = vld [vmem:[#allocation2 + $0x151] sm:$0xff]  ;;  %v813_v3 = vpack.c.bf16 %v797_v57, %v796_v56  ;;  %v1384_v7 = vpack.c.bf16 %v1367_v61, %v1366_v59 }
 0x147   : > { %v812_v32 = vpack.c.bf16 %v795_v24, %v794_v16  ;;  %v971_v16 = vld [vmem:[#allocation3 + $0x78] sm:$0xff]  ;;  %v973_v57 = vld [vmem:[#allocation3 + $0x88] sm:$0xff] }
 0x148   : > { %1884 = vst.msk [vmem:[#allocation3 + $0x30] sm:$0xff] %vm297_vm2, %v1852_v5  ;;  %v970_v5 = vld [vmem:[#allocation3 + $0x70] sm:$0xff] }
 0x149   : > { %v1184_v35 = vpop.f32.mrf.mxu2  ;;  %v903_v17 = vpop.f32.mrf.mxu1 }
 0x14a   : > { %v1283_v20 = vadd.f32 %v1251_v10, %v1184_v35  ;;  %v999_v22 = vadd.f32 %v967_v18, %v903_v17  ;;  %v1082_v17 = vld [vmem:[#allocation2 + $0x16a] sm:$0xff]  ;;  %v1083_v18 = vld [vmem:[#allocation2 + $0x172] sm:$0xff] }
 0x14b   : > { %v1536_v25 = vld [vmem:[#allocation3 + $0x40] sm:$0xff] }
 0x14c   : > { %v1568_v27 = vadd.f32 %v1536_v25, %v1468_v1  ;;  %1315 = vst.msk [vmem:[#allocation3 + $0x48] sm:$0xff] %vm297_vm2, %v1283_v20  ;;  %v4230_v28 = vpop.f32.mrf.mxu0  ;;  %v1252_v36 = vld [vmem:[#allocation3 + $0x50] sm:$0xff]  ;;  %v1655_v20 = vld [vmem:[#allocation2 + $0x189] sm:$0xff]  ;;  %v1099_v25 = vpack.c.bf16 %v1083_v18, %v1082_v17 }
 0x14d   : > { %v1821_v30 = vld [vmem:[#allocation3 + $0x38] sm:$0xff]  ;;  %v1470_v31 = vpop.f32.mrf.mxu3  ;;  %1031 = vst.msk [vmem:[#allocation3 + $0x58] sm:$0xff] %vm297_vm2, %v999_v22 }
 0x14e   : > { %1600 = vst.msk [vmem:[#allocation3 + $0x40] sm:$0xff] %vm297_vm2, %v1568_v27  ;;  %v1853_v33 = vadd.f32 %v1821_v30, %v4196_v29  ;;  %3521 = vmatmul.msk.bf16.gmra.mxu2 %vm297_vm2, %v1097_v21  ;;  %v1368_v27 = vld [vmem:[#allocation2 + $0x180] sm:$0xff]  ;;  %v1369_v30 = vld [vmem:[#allocation2 + $0x188] sm:$0xff] }
 0x14f   : > { %3555 = vmatmul.msk.bf16.gmra.mxu0 %vm297_vm2, %v812_v32 }
 0x150   : > { %1885 = vst.msk [vmem:[#allocation3 + $0x38] sm:$0xff] %vm297_vm2, %v1853_v33 }
 0x151   : > { %v1187_v37 = vpop.f32.mrf.mxu2  ;;  %v906_v60 = vpop.f32.mrf.mxu1 }
 0x152   : > { %v1284_v39 = vadd.f32 %v1252_v36, %v1187_v37  ;;  %3538 = vmatmul.msk.bf16.gmra.mxu3 %vm297_vm2, %v1383_v34  ;;  %v1000_v6 = vadd.f32 %v968_v38, %v906_v60  ;;  %v1910_v36 = vld [vmem:[#allocation2 + $0x1a] sm:$0xff]  ;;  %v1911_v37 = vld [vmem:[#allocation2 + $0x22] sm:$0xff]  ;;  %v1385_v38 = vpack.c.bf16 %v1369_v30, %v1368_v27 }
 0x153   : > { %v1537_v40 = vld [vmem:[#allocation3 + $0x48] sm:$0xff] }
 0x154   : > { %v1569_v42 = vadd.f32 %v1537_v40, %v1470_v31  ;;  %1316 = vst.msk [vmem:[#allocation3 + $0x50] sm:$0xff] %vm297_vm2, %v1284_v39  ;;  %3505 = vmatmul.msk.bf16.gmra.mxu1 %vm297_vm2, %v812_v32  ;;  %v4241_v29 = vpop.f32.mrf.mxu0  ;;  %v1253_v47 = vld [vmem:[#allocation3 + $0x58] sm:$0xff]  ;;  %v1671_v31 = vpack.c.bf16 %v1655_v20, %v1654_v19 }
 0x155   : > { %v1822_v41 = vld [vmem:[#allocation3 + $0x40] sm:$0xff]  ;;  %v1473_v43 = vpop.f32.mrf.mxu3  ;;  %1032 = vst.msk [vmem:[#allocation3 + $0x60] sm:$0xff] %vm297_vm2, %v1000_v6  ;;  %v1942_v6 = vpack.c.bf16 %v1911_v37, %v1910_v36 }
 0x156   : > { %1601 = vst.msk [vmem:[#allocation3 + $0x48] sm:$0xff] %vm297_vm2, %v1569_v42  ;;  %v1854_v45 = vadd.f32 %v1822_v41, %v4203_v48  ;;  %v972_v41 = vld [vmem:[#allocation3 + $0x80] sm:$0xff] }
 0x157   : > { %v2486_v36 = vld [vmem:[#allocation2 + $0x51] sm:$0xff] }
 0x158   : > { %1886 = vst.msk [vmem:[#allocation3 + $0x40] sm:$0xff] %vm297_vm2, %v1854_v45 }
 0x159   : > { %v1189_v51 = vpop.f32.mrf.mxu2  ;;  %v908_v52 = vpop.f32.mrf.mxu1 }
 0x15a   : > { %v1285_v54 = vadd.f32 %v1253_v47, %v1189_v51  ;;  %v1001_v44 = vadd.f32 %v969_v53, %v908_v52 }
 0x15b   : > { %v1538_v58 = vld [vmem:[#allocation3 + $0x50] sm:$0xff] }
 0x15c   : > { %v1570_v62 = vadd.f32 %v1538_v58, %v1473_v43  ;;  %1317 = vst.msk [vmem:[#allocation3 + $0x58] sm:$0xff] %vm297_vm2, %v1285_v54  ;;  %v4248_v48 = vpop.f32.mrf.mxu0  ;;  %v1254_v0 = vld [vmem:[#allocation3 + $0x60] sm:$0xff] }
 0x15d   : > { %v1823_v2 = vld [vmem:[#allocation3 + $0x48] sm:$0xff]  ;;  %v1475_v23 = vpop.f32.mrf.mxu3  ;;  %1033 = vst.msk [vmem:[#allocation3 + $0x68] sm:$0xff] %vm297_vm2, %v1001_v44  ;;  %v2197_v54 = vld [vmem:[#allocation2 + $0x30] sm:$0xff] }
 0x15e   : > { %1602 = vst.msk [vmem:[#allocation3 + $0x50] sm:$0xff] %vm297_vm2, %v1570_v62  ;;  %v1855_v15 = vadd.f32 %v1823_v2, %v4215_v63  ;;  %3522 = vmatmul.msk.bf16.gmra.mxu2 %vm297_vm2, %v1098_v55  ;;  %v2198_v55 = vld [vmem:[#allocation2 + $0x38] sm:$0xff] }
 0x15f   : > { %3556 = vmatmul.msk.bf16.gmra.mxu0 %vm297_vm2, %v813_v3  ;;  %v2229_v59 = vpack.c.bf16 %v2198_v55, %v2197_v54  ;;  %v1912_v62 = vld [vmem:[#allocation2 + $0x32] sm:$0xff]  ;;  %v1913_v2 = vld [vmem:[#allocation2 + $0x3a] sm:$0xff] }
 0x160   : > { %1887 = vst.msk [vmem:[#allocation3 + $0x48] sm:$0xff] %vm297_vm2, %v1855_v15  ;;  %v2484_v15 = vld [vmem:[#allocation2 + $0x39] sm:$0xff] }
 0x161   : > { %v1192_v1 = vpop.f32.mrf.mxu2  ;;  %v911_v4 = vpop.f32.mrf.mxu1 }
 0x162   : > { %v1286_v8 = vadd.f32 %v1254_v0, %v1192_v1  ;;  %3539 = vmatmul.msk.bf16.gmra.mxu3 %vm297_vm2, %v1384_v7  ;;  %v1002_v9 = vadd.f32 %v970_v5, %v911_v4  ;;  %v1943_v4 = vpack.c.bf16 %v1913_v2, %v1912_v62 }
 0x163   : > { %v1539_v10 = vld [vmem:[#allocation3 + $0x58] sm:$0xff] }
 0x164   : > { %v1571_v11 = vadd.f32 %v1539_v10, %v1475_v23  ;;  %1318 = vst.msk [vmem:[#allocation3 + $0x60] sm:$0xff] %vm297_vm2, %v1286_v8  ;;  %3506 = vmatmul.msk.bf16.gmra.mxu1 %vm297_vm2, %v813_v3  ;;  %v4259_v63 = vpop.f32.mrf.mxu0  ;;  %v1255_v35 = vld [vmem:[#allocation3 + $0x68] sm:$0xff] }
 0x165   : > { %v1824_v12 = vld [vmem:[#allocation3 + $0x50] sm:$0xff]  ;;  %v1478_v13 = vpop.f32.mrf.mxu3  ;;  %1034 = vst.msk [vmem:[#allocation3 + $0x70] sm:$0xff] %vm297_vm2, %v1002_v9  ;;  %v2483_v3 = vld [vmem:[#allocation2 + $0x31] sm:$0xff] }
 0x166   : > { %1603 = vst.msk [vmem:[#allocation3 + $0x58] sm:$0xff] %vm297_vm2, %v1571_v11  ;;  %v1856_v14 = vadd.f32 %v1824_v12, %v4230_v28  ;;  %v2515_v8 = vpack.c.bf16 %v2484_v15, %v2483_v3  ;;  %v974_v12 = vld [vmem:[#allocation3 + $0x90] sm:$0xff]  ;;  %v1917_v3 = vld [vmem:[#allocation2 + $0x6a] sm:$0xff] }
 0x168   : > { %1888 = vst.msk [vmem:[#allocation3 + $0x50] sm:$0xff] %vm297_vm2, %v1856_v14 }
 0x169   : > { %v1194_v21 = vpop.f32.mrf.mxu2  ;;  %v913_v22 = vpop.f32.mrf.mxu1 }
 0x16a   : > { %v1287_v24 = vadd.f32 %v1255_v35, %v1194_v21  ;;  %v1003_v46 = vadd.f32 %v971_v16, %v913_v22  ;;  %v2199_v22 = vld [vmem:[#allocation2 + $0x48] sm:$0xff]  ;;  %v2200_v16 = vld [vmem:[#allocation2 + $0x50] sm:$0xff] }
 0x16b   : > { %v1540_v26 = vld [vmem:[#allocation3 + $0x60] sm:$0xff]  ;;  %v2230_v27 = vpack.c.bf16 %v2200_v16, %v2199_v22 }
 0x16c   : > { %v1572_v32 = vadd.f32 %v1540_v26, %v1478_v13  ;;  %1319 = vst.msk [vmem:[#allocation3 + $0x68] sm:$0xff] %vm297_vm2, %v1287_v24  ;;  %v4266_v28 = vpop.f32.mrf.mxu0  ;;  %v1256_v39 = vld [vmem:[#allocation3 + $0x70] sm:$0xff] }
 0x16d   : > { %v1825_v33 = vld [vmem:[#allocation3 + $0x58] sm:$0xff]  ;;  %v1480_v34 = vpop.f32.mrf.mxu3  ;;  %1035 = vst.msk [vmem:[#allocation3 + $0x78] sm:$0xff] %vm297_vm2, %v1003_v46 }
 0x16e   : > { %1604 = vst.msk [vmem:[#allocation3 + $0x60] sm:$0xff] %vm297_vm2, %v1572_v32  ;;  %v1857_v60 = vadd.f32 %v1825_v33, %v4241_v29  ;;  %3523 = vmatmul.msk.bf16.gmra.mxu2 %vm297_vm2, %v1099_v25  ;;  %v975_v46 = vld [vmem:[#allocation3 + $0x98] sm:$0xff]  ;;  %v1915_v32 = vld [vmem:[#allocation2 + $0x52] sm:$0xff] }
 0x16f   : > { %3557 = vmatmul.msk.bf16.gmra.mxu0 %vm297_vm2, %v1671_v31  ;;  %v1914_v31 = vld [vmem:[#allocation2 + $0x4a] sm:$0xff] }
 0x170   : > { %1889 = vst.msk [vmem:[#allocation3 + $0x58] sm:$0xff] %vm297_vm2, %v1857_v60 }
 0x171   : > { %v1197_v40 = vpop.f32.mrf.mxu2  ;;  %v916_v42 = vpop.f32.mrf.mxu1 }
 0x172   : > { %v1288_v43 = vadd.f32 %v1256_v39, %v1197_v40  ;;  %3540 = vmatmul.msk.bf16.gmra.mxu3 %vm297_vm2, %v1385_v38  ;;  %v1004_v45 = vadd.f32 %v972_v41, %v916_v42  ;;  %v1944_v39 = vpack.c.bf16 %v1915_v32, %v1914_v31 }
 0x173   : > { %v1541_v47 = vld [vmem:[#allocation3 + $0x68] sm:$0xff] }
 0x174   : > { %v1573_v49 = vadd.f32 %v1541_v47, %v1480_v34  ;;  %1320 = vst.msk [vmem:[#allocation3 + $0x70] sm:$0xff] %vm297_vm2, %v1288_v43  ;;  %3559 = vmatmul.msk.bf16.vlgmr.msra.gmra.mxu1 %vm297_vm2, %v1942_v6  ;;  %v4277_v29 = vpop.f32.mrf.mxu0  ;;  %v1257_v53 = vld [vmem:[#allocation3 + $0x78] sm:$0xff] }
 0x175   : > { %v1826_v50 = vld [vmem:[#allocation3 + $0x60] sm:$0xff]  ;;  %v1483_v51 = vpop.f32.mrf.mxu3  ;;  %1036 = vst.msk [vmem:[#allocation3 + $0x80] sm:$0xff] %vm297_vm2, %v1004_v45 }
 0x176   : > { %1605 = vst.msk [vmem:[#allocation3 + $0x68] sm:$0xff] %vm297_vm2, %v1573_v49  ;;  %v1858_v52 = vadd.f32 %v1826_v50, %v4248_v48  ;;  %v2485_v34 = vld [vmem:[#allocation2 + $0x49] sm:$0xff] }
 0x177   : > { %v2516_v40 = vpack.c.bf16 %v2486_v36, %v2485_v34  ;;  %v976_v45 = vld [vmem:[#allocation3 + $0xa0] sm:$0xff]  ;;  %v1919_v34 = vld [vmem:[#allocation2 + $0x82] sm:$0xff] }
 0x178   : > { %1890 = vst.msk [vmem:[#allocation3 + $0x60] sm:$0xff] %vm297_vm2, %v1858_v52 }
 0x179   : > { %v1199_v44 = vpop.f32.mrf.mxu2  ;;  %v918_v56 = vpop.f32.mrf.mxu1 }
 0x17a   : > { %v1289_v58 = vadd.f32 %v1257_v53, %v1199_v44  ;;  %v1005_v61 = vadd.f32 %v973_v57, %v918_v56  ;;  %v2201_v44 = vld [vmem:[#allocation2 + $0x60] sm:$0xff]  ;;  %v2202_v56 = vld [vmem:[#allocation2 + $0x68] sm:$0xff] }
 0x17b   : > { %v1542_v23 = vld [vmem:[#allocation3 + $0x70] sm:$0xff]  ;;  %v2231_v62 = vpack.c.bf16 %v2202_v56, %v2201_v44 }
 0x17c   : > { %v1574_v7 = vadd.f32 %v1542_v23, %v1483_v51  ;;  %1321 = vst.msk [vmem:[#allocation3 + $0x78] sm:$0xff] %vm297_vm2, %v1289_v58  ;;  %v4284_v48 = vpop.f32.mrf.mxu0  ;;  %v1258_v9 = vld [vmem:[#allocation3 + $0x80] sm:$0xff]  ;;  %v1916_v23 = vld [vmem:[#allocation2 + $0x62] sm:$0xff] }
 0x17d   : > { %v1827_v0 = vld [vmem:[#allocation3 + $0x68] sm:$0xff]  ;;  %v1485_v1 = vpop.f32.mrf.mxu3  ;;  %1037 = vst.msk [vmem:[#allocation3 + $0x88] sm:$0xff] %vm297_vm2, %v1005_v61 }
 0x17e   : > { %1606 = vst.msk [vmem:[#allocation3 + $0x70] sm:$0xff] %vm297_vm2, %v1574_v7  ;;  %v1859_v5 = vadd.f32 %v1827_v0, %v4259_v63  ;;  %3576 = vmatmul.msk.bf16.vlgmr.msra.gmra.mxu2 %vm297_vm2, %v2229_v59  ;;  %v977_v59 = vld [vmem:[#allocation3 + $0xa8] sm:$0xff]  ;;  %v2487_v7 = vld [vmem:[#allocation2 + $0x61] sm:$0xff]  ;;  %v2488_v0 = vld [vmem:[#allocation2 + $0x69] sm:$0xff] }
 0x17f   : > { %3610 = vmatmul.msk.bf16.vlgmr.msra.gmra.mxu0 %vm297_vm2, %v1943_v4 }
 0x180   : > { %1891 = vst.msk [vmem:[#allocation3 + $0x68] sm:$0xff] %vm297_vm2, %v1859_v5 }
 0x181   : > { %v1202_v10 = vpop.f32.mrf.mxu2  ;;  %v921_v11 = vpop.f32.mrf.mxu1 }
 0x182   : > { %v1290_v13 = vadd.f32 %v1258_v9, %v1202_v10  ;;  %3593 = vmatmul.msk.bf16.vlgmr.msra.gmra.mxu3 %vm297_vm2, %v2515_v8  ;;  %v1006_v14 = vadd.f32 %v974_v12, %v921_v11  ;;  %v1945_v8 = vpack.c.bf16 %v1917_v3, %v1916_v23  ;;  %v2517_v10 = vpack.c.bf16 %v2488_v0, %v2487_v7  ;;  %v1921_v7 = vld [vmem:[#allocation2 + $0x9a] sm:$0xff] }
 0x183   : > { %v1543_v35 = vld [vmem:[#allocation3 + $0x78] sm:$0xff] }
 0x184   : > { %v1575_v17 = vadd.f32 %v1543_v35, %v1485_v1  ;;  %1322 = vst.msk [vmem:[#allocation3 + $0x80] sm:$0xff] %vm297_vm2, %v1290_v13  ;;  %3560 = vmatmul.msk.bf16.gmra.mxu1 %vm297_vm2, %v1943_v4  ;;  %v4295_v63 = vpop.f32.mrf.mxu0  ;;  %v1259_v21 = vld [vmem:[#allocation3 + $0x88] sm:$0xff] }
 0x185   : > { %v1828_v18 = vld [vmem:[#allocation3 + $0x70] sm:$0xff]  ;;  %v1488_v19 = vpop.f32.mrf.mxu3  ;;  %1038 = vst.msk [vmem:[#allocation3 + $0x90] sm:$0xff] %vm297_vm2, %v1006_v14 }
 0x186   : > { %1607 = vst.msk [vmem:[#allocation3 + $0x78] sm:$0xff] %vm297_vm2, %v1575_v17  ;;  %v1860_v20 = vadd.f32 %v1828_v18, %v4266_v28  ;;  %v978_v14 = vld [vmem:[#allocation3 + $0xb0] sm:$0xff] }
 0x188   : > { %1892 = vst.msk [vmem:[#allocation3 + $0x70] sm:$0xff] %vm297_vm2, %v1860_v20 }
 0x189   : > { %v1204_v24 = vpop.f32.mrf.mxu2  ;;  %v923_v25 = vpop.f32.mrf.mxu1 }
 0x18a   : > { %v1291_v26 = vadd.f32 %v1259_v21, %v1204_v24  ;;  %v1007_v30 = vadd.f32 %v975_v46, %v923_v25  ;;  %v2203_v24 = vld [vmem:[#allocation2 + $0x78] sm:$0xff]  ;;  %v2204_v25 = vld [vmem:[#allocation2 + $0x80] sm:$0xff] }
 0x18b   : > { %v1544_v33 = vld [vmem:[#allocation3 + $0x80] sm:$0xff]  ;;  %v2232_v31 = vpack.c.bf16 %v2204_v25, %v2203_v24 }
 0x18c   : > { %v1576_v37 = vadd.f32 %v1544_v33, %v1488_v19  ;;  %1323 = vst.msk [vmem:[#allocation3 + $0x88] sm:$0xff] %vm297_vm2, %v1291_v26  ;;  %v4302_v28 = vpop.f32.mrf.mxu0  ;;  %v1260_v42 = vld [vmem:[#allocation3 + $0x90] sm:$0xff] }
 0x18d   : > { %v1829_v60 = vld [vmem:[#allocation3 + $0x78] sm:$0xff]  ;;  %v1490_v38 = vpop.f32.mrf.mxu3  ;;  %1039 = vst.msk [vmem:[#allocation3 + $0x98] sm:$0xff] %vm297_vm2, %v1007_v30  ;;  %v1918_v33 = vld [vmem:[#allocation2 + $0x7a] sm:$0xff] }
 0x18e   : > { %1608 = vst.msk [vmem:[#allocation3 + $0x80] sm:$0xff] %vm297_vm2, %v1576_v37  ;;  %v1861_v6 = vadd.f32 %v1829_v60, %v4277_v29  ;;  %3577 = vmatmul.msk.bf16.gmra.mxu2 %vm297_vm2, %v2230_v27  ;;  %v979_v27 = vld [vmem:[#allocation3 + $0xb8] sm:$0xff]  ;;  %v2489_v37 = vld [vmem:[#allocation2 + $0x79] sm:$0xff] }
 0x18f   : > { %3611 = vmatmul.msk.bf16.gmra.mxu0 %vm297_vm2, %v1944_v39  ;;  %v2490_v60 = vld [vmem:[#allocation2 + $0x81] sm:$0xff] }
 0x190   : > { %1893 = vst.msk [vmem:[#allocation3 + $0x78] sm:$0xff] %vm297_vm2, %v1861_v6 }
 0x191   : > { %v1207_v41 = vpop.f32.mrf.mxu2  ;;  %v926_v43 = vpop.f32.mrf.mxu1 }
 0x192   : > { %v1292_v47 = vadd.f32 %v1260_v42, %v1207_v41  ;;  %3594 = vmatmul.msk.bf16.gmra.mxu3 %vm297_vm2, %v2516_v40  ;;  %v1008_v49 = vadd.f32 %v976_v45, %v926_v43  ;;  %v1946_v40 = vpack.c.bf16 %v1919_v34, %v1918_v33  ;;  %v2518_v41 = vpack.c.bf16 %v2490_v60, %v2489_v37  ;;  %v1923_v37 = vld [vmem:[#allocation2 + $0xb2] sm:$0xff] }
 0x193   : > { %v1545_v50 = vld [vmem:[#allocation3 + $0x88] sm:$0xff] }
 0x194   : > { %v1577_v51 = vadd.f32 %v1545_v50, %v1490_v38  ;;  %1324 = vst.msk [vmem:[#allocation3 + $0x90] sm:$0xff] %vm297_vm2, %v1292_v47  ;;  %3561 = vmatmul.msk.bf16.gmra.mxu1 %vm297_vm2, %v1944_v39  ;;  %v4313_v29 = vpop.f32.mrf.mxu0  ;;  %v1261_v55 = vld [vmem:[#allocation3 + $0x98] sm:$0xff] }
 0x195   : > { %v1830_v52 = vld [vmem:[#allocation3 + $0x80] sm:$0xff]  ;;  %v1493_v53 = vpop.f32.mrf.mxu3  ;;  %1040 = vst.msk [vmem:[#allocation3 + $0xa0] sm:$0xff] %vm297_vm2, %v1008_v49 }
 0x196   : > { %1609 = vst.msk [vmem:[#allocation3 + $0x88] sm:$0xff] %vm297_vm2, %v1577_v51  ;;  %v1862_v54 = vadd.f32 %v1830_v52, %v4284_v48  ;;  %v980_v49 = vld [vmem:[#allocation3 + $0xc0] sm:$0xff] }
 0x198   : > { %1894 = vst.msk [vmem:[#allocation3 + $0x80] sm:$0xff] %vm297_vm2, %v1862_v54 }
 0x199   : > { %v1209_v57 = vpop.f32.mrf.mxu2  ;;  %v928_v58 = vpop.f32.mrf.mxu1 }
 0x19a   : > { %v1293_v61 = vadd.f32 %v1261_v55, %v1209_v57  ;;  %v1009_v2 = vadd.f32 %v977_v59, %v928_v58  ;;  %v2205_v57 = vld [vmem:[#allocation2 + $0x90] sm:$0xff]  ;;  %v2206_v58 = vld [vmem:[#allocation2 + $0x98] sm:$0xff] }
 0x19b   : > { %v1546_v15 = vld [vmem:[#allocation3 + $0x90] sm:$0xff]  ;;  %v2233_v23 = vpack.c.bf16 %v2206_v58, %v2205_v57 }
 0x19c   : > { %v1578_v1 = vadd.f32 %v1546_v15, %v1493_v53  ;;  %1325 = vst.msk [vmem:[#allocation3 + $0x98] sm:$0xff] %vm297_vm2, %v1293_v61  ;;  %v4320_v48 = vpop.f32.mrf.mxu0  ;;  %v1262_v11 = vld [vmem:[#allocation3 + $0xa0] sm:$0xff] }
 0x19d   : > { %v1831_v4 = vld [vmem:[#allocation3 + $0x88] sm:$0xff]  ;;  %v1495_v5 = vpop.f32.mrf.mxu3  ;;  %1041 = vst.msk [vmem:[#allocation3 + $0xa8] sm:$0xff] %vm297_vm2, %v1009_v2 }
 0x19e   : > { %1610 = vst.msk [vmem:[#allocation3 + $0x90] sm:$0xff] %vm297_vm2, %v1578_v1  ;;  %v1863_v9 = vadd.f32 %v1831_v4, %v4295_v63  ;;  %3578 = vmatmul.msk.bf16.gmra.mxu2 %vm297_vm2, %v2231_v62  ;;  %v981_v62 = vld [vmem:[#allocation3 + $0xc8] sm:$0xff] }
 0x19f   : > { %3612 = vmatmul.msk.bf16.gmra.mxu0 %vm297_vm2, %v1945_v8  ;;  %v1920_v15 = vld [vmem:[#allocation2 + $0x92] sm:$0xff] }
 0x1a0   : > { %1895 = vst.msk [vmem:[#allocation3 + $0x88] sm:$0xff] %vm297_vm2, %v1863_v9  ;;  %v2491_v1 = vld [vmem:[#allocation2 + $0x91] sm:$0xff]  ;;  %v2492_v4 = vld [vmem:[#allocation2 + $0x99] sm:$0xff] }
 0x1a1   : > { %v1212_v12 = vpop.f32.mrf.mxu2  ;;  %v931_v13 = vpop.f32.mrf.mxu1 }
 0x1a2   : > { %v1294_v35 = vadd.f32 %v1262_v11, %v1212_v12  ;;  %3595 = vmatmul.msk.bf16.gmra.mxu3 %vm297_vm2, %v2517_v10  ;;  %v1010_v17 = vadd.f32 %v978_v14, %v931_v13  ;;  %v1947_v10 = vpack.c.bf16 %v1921_v7, %v1920_v15  ;;  %v2519_v12 = vpack.c.bf16 %v2492_v4, %v2491_v1  ;;  %v1925_v1 = vld [vmem:[#allocation2 + $0xca] sm:$0xff] }
 0x1a3   : > { %v1547_v18 = vld [vmem:[#allocation3 + $0x98] sm:$0xff] }
 0x1a4   : > { %v1579_v19 = vadd.f32 %v1547_v18, %v1495_v5  ;;  %1326 = vst.msk [vmem:[#allocation3 + $0xa0] sm:$0xff] %vm297_vm2, %v1294_v35  ;;  %3562 = vmatmul.msk.bf16.gmra.mxu1 %vm297_vm2, %v1945_v8  ;;  %v4331_v63 = vpop.f32.mrf.mxu0  ;;  %v1263_v16 = vld [vmem:[#allocation3 + $0xa8] sm:$0xff] }
 0x1a5   : > { %v1832_v20 = vld [vmem:[#allocation3 + $0x90] sm:$0xff]  ;;  %v1498_v21 = vpop.f32.mrf.mxu3  ;;  %1042 = vst.msk [vmem:[#allocation3 + $0xb0] sm:$0xff] %vm297_vm2, %v1010_v17 }
 0x1a6   : > { %1611 = vst.msk [vmem:[#allocation3 + $0x98] sm:$0xff] %vm297_vm2, %v1579_v19  ;;  %v1864_v22 = vadd.f32 %v1832_v20, %v4302_v28  ;;  %v982_v17 = vld [vmem:[#allocation3 + $0xd0] sm:$0xff] }
 0x1a8   : > { %1896 = vst.msk [vmem:[#allocation3 + $0x90] sm:$0xff] %vm297_vm2, %v1864_v22 }
 0x1a9   : > { %v1214_v46 = vpop.f32.mrf.mxu2  ;;  %v933_v26 = vpop.f32.mrf.mxu1 }
 0x1aa   : > { %v1295_v30 = vadd.f32 %v1263_v16, %v1214_v46  ;;  %v1011_v32 = vadd.f32 %v979_v27, %v933_v26  ;;  %v2207_v46 = vld [vmem:[#allocation2 + $0xa8] sm:$0xff]  ;;  %v2208_v26 = vld [vmem:[#allocation2 + $0xb0] sm:$0xff] }
 0x1ab   : > { %v1548_v36 = vld [vmem:[#allocation3 + $0xa0] sm:$0xff]  ;;  %v2234_v33 = vpack.c.bf16 %v2208_v26, %v2207_v46 }
 0x1ac   : > { %v1580_v38 = vadd.f32 %v1548_v36, %v1498_v21  ;;  %1327 = vst.msk [vmem:[#allocation3 + $0xa8] sm:$0xff] %vm297_vm2, %v1295_v30  ;;  %v4338_v28 = vpop.f32.mrf.mxu0  ;;  %v1264_v43 = vld [vmem:[#allocation3 + $0xb0] sm:$0xff]  ;;  %v1922_v36 = vld [vmem:[#allocation2 + $0xaa] sm:$0xff] }
 0x1ad   : > { %v1833_v39 = vld [vmem:[#allocation3 + $0x98] sm:$0xff]  ;;  %v1500_v6 = vpop.f32.mrf.mxu3  ;;  %1043 = vst.msk [vmem:[#allocation3 + $0xb8] sm:$0xff] %vm297_vm2, %v1011_v32 }
 0x1ae   : > { %1612 = vst.msk [vmem:[#allocation3 + $0xa0] sm:$0xff] %vm297_vm2, %v1580_v38  ;;  %v1865_v42 = vadd.f32 %v1833_v39, %v4313_v29  ;;  %3579 = vmatmul.msk.bf16.gmra.mxu2 %vm297_vm2, %v2232_v31  ;;  %v983_v31 = vld [vmem:[#allocation3 + $0xd8] sm:$0xff]  ;;  %v2494_v39 = vld [vmem:[#allocation2 + $0xb1] sm:$0xff] }
 0x1af   : > { %3613 = vmatmul.msk.bf16.gmra.mxu0 %vm297_vm2, %v1946_v40  ;;  %v2493_v38 = vld [vmem:[#allocation2 + $0xa9] sm:$0xff] }
 0x1b0   : > { %1897 = vst.msk [vmem:[#allocation3 + $0x98] sm:$0xff] %vm297_vm2, %v1865_v42 }
 0x1b1   : > { %v1217_v45 = vpop.f32.mrf.mxu2  ;;  %v936_v47 = vpop.f32.mrf.mxu1 }
 0x1b2   : > { %v1296_v50 = vadd.f32 %v1264_v43, %v1217_v45  ;;  %3596 = vmatmul.msk.bf16.gmra.mxu3 %vm297_vm2, %v2518_v41  ;;  %v1012_v51 = vadd.f32 %v980_v49, %v936_v47  ;;  %v1948_v41 = vpack.c.bf16 %v1923_v37, %v1922_v36  ;;  %v2520_v45 = vpack.c.bf16 %v2494_v39, %v2493_v38  ;;  %v1927_v38 = vld [vmem:[#allocation2 + $0xe2] sm:$0xff] }
 0x1b3   : > { %v1549_v52 = vld [vmem:[#allocation3 + $0xa8] sm:$0xff] }
 0x1b4   : > { %v1581_v53 = vadd.f32 %v1549_v52, %v1500_v6  ;;  %1328 = vst.msk [vmem:[#allocation3 + $0xb0] sm:$0xff] %vm297_vm2, %v1296_v50  ;;  %3563 = vmatmul.msk.bf16.gmra.mxu1 %vm297_vm2, %v1946_v40  ;;  %v4349_v29 = vpop.f32.mrf.mxu0  ;;  %v1265_v56 = vld [vmem:[#allocation3 + $0xb8] sm:$0xff] }
 0x1b5   : > { %v1834_v54 = vld [vmem:[#allocation3 + $0xa0] sm:$0xff]  ;;  %v1503_v55 = vpop.f32.mrf.mxu3  ;;  %1044 = vst.msk [vmem:[#allocation3 + $0xc0] sm:$0xff] %vm297_vm2, %v1012_v51 }
 0x1b6   : > { %1613 = vst.msk [vmem:[#allocation3 + $0xa8] sm:$0xff] %vm297_vm2, %v1581_v53  ;;  %v1866_v44 = vadd.f32 %v1834_v54, %v4320_v48  ;;  %v984_v51 = vld [vmem:[#allocation3 + $0xe0] sm:$0xff] }
 0x1b8   : > { %1898 = vst.msk [vmem:[#allocation3 + $0xa0] sm:$0xff] %vm297_vm2, %v1866_v44 }
 0x1b9   : > { %v1219_v59 = vpop.f32.mrf.mxu2  ;;  %v938_v61 = vpop.f32.mrf.mxu1 }
 0x1ba   : > { %v1297_v2 = vadd.f32 %v1265_v56, %v1219_v59  ;;  %v1013_v3 = vadd.f32 %v981_v62, %v938_v61  ;;  %v2209_v59 = vld [vmem:[#allocation2 + $0xc0] sm:$0xff]  ;;  %v2210_v61 = vld [vmem:[#allocation2 + $0xc8] sm:$0xff] }
 0x1bb   : > { %v1550_v0 = vld [vmem:[#allocation3 + $0xb0] sm:$0xff]  ;;  %v2235_v15 = vpack.c.bf16 %v2210_v61, %v2209_v59 }
 0x1bc   : > { %v1582_v5 = vadd.f32 %v1550_v0, %v1503_v55  ;;  %1329 = vst.msk [vmem:[#allocation3 + $0xb8] sm:$0xff] %vm297_vm2, %v1297_v2  ;;  %v4356_v48 = vpop.f32.mrf.mxu0  ;;  %v1266_v13 = vld [vmem:[#allocation3 + $0xc0] sm:$0xff]  ;;  %v1924_v0 = vld [vmem:[#allocation2 + $0xc2] sm:$0xff] }
 0x1bd   : > { %v1835_v8 = vld [vmem:[#allocation3 + $0xa8] sm:$0xff]  ;;  %v1505_v9 = vpop.f32.mrf.mxu3  ;;  %1045 = vst.msk [vmem:[#allocation3 + $0xc8] sm:$0xff] %vm297_vm2, %v1013_v3 }
 0x1be   : > { %1614 = vst.msk [vmem:[#allocation3 + $0xb0] sm:$0xff] %vm297_vm2, %v1582_v5  ;;  %v1867_v11 = vadd.f32 %v1835_v8, %v4331_v63  ;;  %3580 = vmatmul.msk.bf16.gmra.mxu2 %vm297_vm2, %v2233_v23  ;;  %v985_v23 = vld [vmem:[#allocation3 + $0xe8] sm:$0xff]  ;;  %v2495_v5 = vld [vmem:[#allocation2 + $0xc1] sm:$0xff]  ;;  %v2496_v8 = vld [vmem:[#allocation2 + $0xc9] sm:$0xff] }
 0x1bf   : > { %3614 = vmatmul.msk.bf16.gmra.mxu0 %vm297_vm2, %v1947_v10 }
 0x1c0   : > { %1899 = vst.msk [vmem:[#allocation3 + $0xa8] sm:$0xff] %vm297_vm2, %v1867_v11 }
 0x1c1   : > { %v1222_v14 = vpop.f32.mrf.mxu2  ;;  %v941_v35 = vpop.f32.mrf.mxu1 }
 0x1c2   : > { %v1298_v18 = vadd.f32 %v1266_v13, %v1222_v14  ;;  %3597 = vmatmul.msk.bf16.gmra.mxu3 %vm297_vm2, %v2519_v12  ;;  %v1014_v19 = vadd.f32 %v982_v17, %v941_v35  ;;  %v1949_v12 = vpack.c.bf16 %v1925_v1, %v1924_v0  ;;  %v2521_v14 = vpack.c.bf16 %v2496_v8, %v2495_v5  ;;  %v1929_v5 = vld [vmem:[#allocation2 + $0xfa] sm:$0xff] }
 0x1c3   : > { %v1551_v20 = vld [vmem:[#allocation3 + $0xb8] sm:$0xff] }
 0x1c4   : > { %v1583_v21 = vadd.f32 %v1551_v20, %v1505_v9  ;;  %1330 = vst.msk [vmem:[#allocation3 + $0xc0] sm:$0xff] %vm297_vm2, %v1298_v18  ;;  %3564 = vmatmul.msk.bf16.gmra.mxu1 %vm297_vm2, %v1947_v10  ;;  %v4367_v63 = vpop.f32.mrf.mxu0  ;;  %v1267_v25 = vld [vmem:[#allocation3 + $0xc8] sm:$0xff] }
 0x1c5   : > { %v1836_v22 = vld [vmem:[#allocation3 + $0xb0] sm:$0xff]  ;;  %v1508_v16 = vpop.f32.mrf.mxu3  ;;  %1046 = vst.msk [vmem:[#allocation3 + $0xd0] sm:$0xff] %vm297_vm2, %v1014_v19 }
 0x1c6   : > { %1615 = vst.msk [vmem:[#allocation3 + $0xb8] sm:$0xff] %vm297_vm2, %v1583_v21  ;;  %v1868_v24 = vadd.f32 %v1836_v22, %v4338_v28  ;;  %v986_v19 = vld [vmem:[#allocation3 + $0xf0] sm:$0xff] }
 0x1c8   : > { %1900 = vst.msk [vmem:[#allocation3 + $0xb0] sm:$0xff] %vm297_vm2, %v1868_v24 }
 0x1c9   : > { %v1224_v27 = vpop.f32.mrf.mxu2  ;;  %v943_v30 = vpop.f32.mrf.mxu1 }
 0x1ca   : > { %v1299_v32 = vadd.f32 %v1267_v25, %v1224_v27  ;;  %v1015_v34 = vadd.f32 %v983_v31, %v943_v30  ;;  %v2211_v27 = vld [vmem:[#allocation2 + $0xd8] sm:$0xff]  ;;  %v2212_v30 = vld [vmem:[#allocation2 + $0xe0] sm:$0xff] }
 0x1cb   : > { %v1552_v60 = vld [vmem:[#allocation3 + $0xc0] sm:$0xff]  ;;  %v2236_v36 = vpack.c.bf16 %v2212_v30, %v2211_v27 }
 0x1cc   : > { %v1584_v6 = vadd.f32 %v1552_v60, %v1508_v16  ;;  %1331 = vst.msk [vmem:[#allocation3 + $0xc8] sm:$0xff] %vm297_vm2, %v1299_v32  ;;  %v4374_v28 = vpop.f32.mrf.mxu0  ;;  %v1268_v47 = vld [vmem:[#allocation3 + $0xd0] sm:$0xff] }
 0x1cd   : > { %v1837_v40 = vld [vmem:[#allocation3 + $0xb8] sm:$0xff]  ;;  %v1510_v42 = vpop.f32.mrf.mxu3  ;;  %1047 = vst.msk [vmem:[#allocation3 + $0xd8] sm:$0xff] %vm297_vm2, %v1015_v34  ;;  %v1926_v60 = vld [vmem:[#allocation2 + $0xda] sm:$0xff] }
 0x1ce   : > { %1616 = vst.msk [vmem:[#allocation3 + $0xc0] sm:$0xff] %vm297_vm2, %v1584_v6  ;;  %v1869_v43 = vadd.f32 %v1837_v40, %v4349_v29  ;;  %3581 = vmatmul.msk.bf16.gmra.mxu2 %vm297_vm2, %v2234_v33  ;;  %v987_v33 = vld [vmem:[#allocation3 + $0xf8] sm:$0xff]  ;;  %v2497_v6 = vld [vmem:[#allocation2 + $0xd9] sm:$0xff] }
 0x1cf   : > { %3615 = vmatmul.msk.bf16.gmra.mxu0 %vm297_vm2, %v1948_v41  ;;  %v2498_v40 = vld [vmem:[#allocation2 + $0xe1] sm:$0xff] }
 0x1d0   : > { %1901 = vst.msk [vmem:[#allocation3 + $0xb8] sm:$0xff] %vm297_vm2, %v1869_v43 }
 0x1d1   : > { %v1227_v49 = vpop.f32.mrf.mxu2  ;;  %v946_v50 = vpop.f32.mrf.mxu1 }
 0x1d2   : > { %v1300_v52 = vadd.f32 %v1268_v47, %v1227_v49  ;;  %3598 = vmatmul.msk.bf16.gmra.mxu3 %vm297_vm2, %v2520_v45  ;;  %v1016_v53 = vadd.f32 %v984_v51, %v946_v50  ;;  %v1950_v45 = vpack.c.bf16 %v1927_v38, %v1926_v60  ;;  %v2522_v49 = vpack.c.bf16 %v2498_v40, %v2497_v6  ;;  %v1931_v6 = vld [vmem:[#allocation2 + $0x112] sm:$0xff] }
 0x1d3   : > { %v1553_v54 = vld [vmem:[#allocation3 + $0xc8] sm:$0xff] }
 0x1d4   : > { %v1585_v55 = vadd.f32 %v1553_v54, %v1510_v42  ;;  %1332 = vst.msk [vmem:[#allocation3 + $0xd0] sm:$0xff] %vm297_vm2, %v1300_v52  ;;  %3565 = vmatmul.msk.bf16.gmra.mxu1 %vm297_vm2, %v1948_v41  ;;  %v4385_v29 = vpop.f32.mrf.mxu0  ;;  %v1269_v58 = vld [vmem:[#allocation3 + $0xd8] sm:$0xff] }
 0x1d5   : > { %v1838_v44 = vld [vmem:[#allocation3 + $0xc0] sm:$0xff]  ;;  %v1513_v56 = vpop.f32.mrf.mxu3  ;;  %1048 = vst.msk [vmem:[#allocation3 + $0xe0] sm:$0xff] %vm297_vm2, %v1016_v53 }
 0x1d6   : > { %1617 = vst.msk [vmem:[#allocation3 + $0xc8] sm:$0xff] %vm297_vm2, %v1585_v55  ;;  %v1870_v57 = vadd.f32 %v1838_v44, %v4356_v48  ;;  %v2100_v53 = vld [vmem:[#allocation3] sm:$0xff] }
 0x1d8   : > { %1902 = vst.msk [vmem:[#allocation3 + $0xc0] sm:$0xff] %vm297_vm2, %v1870_v57 }
 0x1d9   : > { %v1229_v62 = vpop.f32.mrf.mxu2  ;;  %v948_v2 = vpop.f32.mrf.mxu1 }
 0x1da   : > { %v1301_v3 = vadd.f32 %v1269_v58, %v1229_v62  ;;  %v1017_v7 = vadd.f32 %v985_v23, %v948_v2  ;;  %v2213_v62 = vld [vmem:[#allocation2 + $0xf0] sm:$0xff]  ;;  %v2214_v2 = vld [vmem:[#allocation2 + $0xf8] sm:$0xff] }
 0x1db   : > { %v1554_v4 = vld [vmem:[#allocation3 + $0xd0] sm:$0xff]  ;;  %v2237_v0 = vpack.c.bf16 %v2214_v2, %v2213_v62 }
 0x1dc   : > { %v1586_v9 = vadd.f32 %v1554_v4, %v1513_v56  ;;  %1333 = vst.msk [vmem:[#allocation3 + $0xd8] sm:$0xff] %vm297_vm2, %v1301_v3  ;;  %v4392_v48 = vpop.f32.mrf.mxu0  ;;  %v1270_v35 = vld [vmem:[#allocation3 + $0xe0] sm:$0xff] }
 0x1dd   : > { %v1839_v10 = vld [vmem:[#allocation3 + $0xc8] sm:$0xff]  ;;  %v1515_v11 = vpop.f32.mrf.mxu3  ;;  %1049 = vst.msk [vmem:[#allocation3 + $0xe8] sm:$0xff] %vm297_vm2, %v1017_v7 }
 0x1de   : > { %1618 = vst.msk [vmem:[#allocation3 + $0xd0] sm:$0xff] %vm297_vm2, %v1586_v9  ;;  %v1871_v13 = vadd.f32 %v1839_v10, %v4367_v63  ;;  %3582 = vmatmul.msk.bf16.gmra.mxu2 %vm297_vm2, %v2235_v15  ;;  %v2101_v15 = vld [vmem:[#allocation3 + $0x8] sm:$0xff] }
 0x1df   : > { %3616 = vmatmul.msk.bf16.gmra.mxu0 %vm297_vm2, %v1949_v12  ;;  %v1928_v4 = vld [vmem:[#allocation2 + $0xf2] sm:$0xff] }
 0x1e0   : > { %1903 = vst.msk [vmem:[#allocation3 + $0xc8] sm:$0xff] %vm297_vm2, %v1871_v13  ;;  %v2499_v9 = vld [vmem:[#allocation2 + $0xf1] sm:$0xff]  ;;  %v2500_v10 = vld [vmem:[#allocation2 + $0xf9] sm:$0xff] }
 0x1e1   : > { %v1232_v17 = vpop.f32.mrf.mxu2  ;;  %v951_v18 = vpop.f32.mrf.mxu1 }
 0x1e2   : > { %v1302_v20 = vadd.f32 %v1270_v35, %v1232_v17  ;;  %3599 = vmatmul.msk.bf16.gmra.mxu3 %vm297_vm2, %v2521_v14  ;;  %v1018_v21 = vadd.f32 %v986_v19, %v951_v18  ;;  %v1951_v14 = vpack.c.bf16 %v1929_v5, %v1928_v4  ;;  %v2523_v17 = vpack.c.bf16 %v2500_v10, %v2499_v9  ;;  %v1933_v9 = vld [vmem:[#allocation2 + $0x12a] sm:$0xff] }
 0x1e3   : > { %v1555_v22 = vld [vmem:[#allocation3 + $0xd8] sm:$0xff] }
 0x1e4   : > { %v1587_v16 = vadd.f32 %v1555_v22, %v1515_v11  ;;  %1334 = vst.msk [vmem:[#allocation3 + $0xe0] sm:$0xff] %vm297_vm2, %v1302_v20  ;;  %3566 = vmatmul.msk.bf16.gmra.mxu1 %vm297_vm2, %v1949_v12  ;;  %v4403_v63 = vpop.f32.mrf.mxu0  ;;  %v1271_v26 = vld [vmem:[#allocation3 + $0xe8] sm:$0xff] }
 0x1e5   : > { %v1840_v24 = vld [vmem:[#allocation3 + $0xd0] sm:$0xff]  ;;  %v1518_v25 = vpop.f32.mrf.mxu3  ;;  %1050 = vst.msk [vmem:[#allocation3 + $0xf0] sm:$0xff] %vm297_vm2, %v1018_v21 }
 0x1e6   : > { %1619 = vst.msk [vmem:[#allocation3 + $0xd8] sm:$0xff] %vm297_vm2, %v1587_v16  ;;  %v1872_v46 = vadd.f32 %v1840_v24, %v4374_v28  ;;  %v2102_v21 = vld [vmem:[#allocation3 + $0x10] sm:$0xff] }
 0x1e8   : > { %1904 = vst.msk [vmem:[#allocation3 + $0xd0] sm:$0xff] %vm297_vm2, %v1872_v46 }
 0x1e9   : > { %v1234_v31 = vpop.f32.mrf.mxu2  ;;  %v953_v32 = vpop.f32.mrf.mxu1 }
 0x1ea   : > { %v1303_v34 = vadd.f32 %v1271_v26, %v1234_v31  ;;  %v1019_v37 = vadd.f32 %v987_v33, %v953_v32  ;;  %v2215_v31 = vld [vmem:[#allocation2 + $0x108] sm:$0xff]  ;;  %v2216_v32 = vld [vmem:[#allocation2 + $0x110] sm:$0xff] }
 0x1eb   : > { %v1556_v39 = vld [vmem:[#allocation3 + $0xe0] sm:$0xff]  ;;  %v2238_v60 = vpack.c.bf16 %v2216_v32, %v2215_v31 }
 0x1ec   : > { %v1588_v42 = vadd.f32 %v1556_v39, %v1518_v25  ;;  %1335 = vst.msk [vmem:[#allocation3 + $0xe8] sm:$0xff] %vm297_vm2, %v1303_v34  ;;  %v4410_v28 = vpop.f32.mrf.mxu0  ;;  %v1272_v50 = vld [vmem:[#allocation3 + $0xf0] sm:$0xff]  ;;  %v1930_v39 = vld [vmem:[#allocation2 + $0x10a] sm:$0xff] }
 0x1ed   : > { %v1841_v41 = vld [vmem:[#allocation3 + $0xd8] sm:$0xff]  ;;  %v1520_v43 = vpop.f32.mrf.mxu3  ;;  %1051 = vst.msk [vmem:[#allocation3 + $0xf8] sm:$0xff] %vm297_vm2, %v1019_v37 }
 0x1ee   : > { %1620 = vst.msk [vmem:[#allocation3 + $0xe0] sm:$0xff] %vm297_vm2, %v1588_v42  ;;  %v1873_v47 = vadd.f32 %v1841_v41, %v4385_v29  ;;  %3583 = vmatmul.msk.bf16.gmra.mxu2 %vm297_vm2, %v2236_v36  ;;  %v2103_v36 = vld [vmem:[#allocation3 + $0x18] sm:$0xff]  ;;  %v2502_v41 = vld [vmem:[#allocation2 + $0x111] sm:$0xff] }
 0x1ef   : > { %3617 = vmatmul.msk.bf16.gmra.mxu0 %vm297_vm2, %v1950_v45  ;;  %v2501_v42 = vld [vmem:[#allocation2 + $0x109] sm:$0xff] }
 0x1f0   : > { %1905 = vst.msk [vmem:[#allocation3 + $0xd8] sm:$0xff] %vm297_vm2, %v1873_v47 }
 0x1f1   : > { %v1237_v51 = vpop.f32.mrf.mxu2  ;;  %v2020_v52 = vpop.f32.mrf.mxu1 }
 0x1f2   : > { %v1304_v54 = vadd.f32 %v1272_v50, %v1237_v51  ;;  %3600 = vmatmul.msk.bf16.gmra.mxu3 %vm297_vm2, %v2522_v49  ;;  %v2132_v55 = vadd.f32 %v2100_v53, %v2020_v52  ;;  %v1952_v49 = vpack.c.bf16 %v1931_v6, %v1930_v39  ;;  %v2524_v51 = vpack.c.bf16 %v2502_v41, %v2501_v42 }
 0x1f3   : > { %v1557_v44 = vld [vmem:[#allocation3 + $0xe8] sm:$0xff] }
 0x1f4   : > { %v1589_v56 = vadd.f32 %v1557_v44, %v1520_v43  ;;  %1336 = vst.msk [vmem:[#allocation3 + $0xf0] sm:$0xff] %vm297_vm2, %v1304_v54  ;;  %3567 = vmatmul.msk.bf16.gmra.mxu1 %vm297_vm2, %v1950_v45  ;;  %v4421_v29 = vpop.f32.mrf.mxu0  ;;  %v1273_v61 = vld [vmem:[#allocation3 + $0xf8] sm:$0xff] }
 0x1f5   : > { %v1842_v57 = vld [vmem:[#allocation3 + $0xe0] sm:$0xff]  ;;  %v1523_v58 = vpop.f32.mrf.mxu3  ;;  %2164 = vst.msk [vmem:[#allocation3] sm:$0xff] %vm297_vm2, %v2132_v55 }
 0x1f6   : > { %1621 = vst.msk [vmem:[#allocation3 + $0xe8] sm:$0xff] %vm297_vm2, %v1589_v56  ;;  %v1874_v59 = vadd.f32 %v1842_v57, %v4392_v48  ;;  %v2104_v55 = vld [vmem:[#allocation3 + $0x20] sm:$0xff] }
 0x1f8   : > { %1906 = vst.msk [vmem:[#allocation3 + $0xe0] sm:$0xff] %vm297_vm2, %v1874_v59 }
 0x1f9   : > { %v1239_v23 = vpop.f32.mrf.mxu2  ;;  %v2022_v3 = vpop.f32.mrf.mxu1 }
 0x1fa   : > { %v1305_v7 = vadd.f32 %v1273_v61, %v1239_v23  ;;  %v2133_v1 = vadd.f32 %v2101_v15, %v2022_v3  ;;  %v2217_v23 = vld [vmem:[#allocation2 + $0x120] sm:$0xff]  ;;  %v2218_v3 = vld [vmem:[#allocation2 + $0x128] sm:$0xff] }
 0x1fb   : > { %v1558_v8 = vld [vmem:[#allocation3 + $0xf0] sm:$0xff]  ;;  %v2239_v4 = vpack.c.bf16 %v2218_v3, %v2217_v23 }
 0x1fc   : > { %v1590_v11 = vadd.f32 %v1558_v8, %v1523_v58  ;;  %1337 = vst.msk [vmem:[#allocation3 + $0xf8] sm:$0xff] %vm297_vm2, %v1305_v7  ;;  %v4428_v48 = vpop.f32.mrf.mxu0  ;;  %v2387_v18 = vld [vmem:[#allocation3] sm:$0xff]  ;;  %v1932_v8 = vld [vmem:[#allocation2 + $0x122] sm:$0xff] }
 0x1fd   : > { %v1843_v12 = vld [vmem:[#allocation3 + $0xe8] sm:$0xff]  ;;  %v1525_v13 = vpop.f32.mrf.mxu3  ;;  %2165 = vst.msk [vmem:[#allocation3 + $0x8] sm:$0xff] %vm297_vm2, %v2133_v1 }
 0x1fe   : > { %1622 = vst.msk [vmem:[#allocation3 + $0xf0] sm:$0xff] %vm297_vm2, %v1590_v11  ;;  %v1875_v35 = vadd.f32 %v1843_v12, %v4403_v63  ;;  %3584 = vmatmul.msk.bf16.gmra.mxu2 %vm297_vm2, %v2237_v0  ;;  %v2105_v0 = vld [vmem:[#allocation3 + $0x28] sm:$0xff]  ;;  %v2503_v11 = vld [vmem:[#allocation2 + $0x121] sm:$0xff]  ;;  %v2504_v12 = vld [vmem:[#allocation2 + $0x129] sm:$0xff] }
 0x1ff   : > { %3618 = vmatmul.msk.bf16.gmra.mxu0 %vm297_vm2, %v1951_v14 }
 0x200   : > { %1907 = vst.msk [vmem:[#allocation3 + $0xe8] sm:$0xff] %vm297_vm2, %v1875_v35 }
 0x201   : > { %v2307_v19 = vpop.f32.mrf.mxu2  ;;  %v2025_v20 = vpop.f32.mrf.mxu1 }
 0x202   : > { %v2419_v22 = vadd.f32 %v2387_v18, %v2307_v19  ;;  %3601 = vmatmul.msk.bf16.gmra.mxu3 %vm297_vm2, %v2523_v17  ;;  %v2134_v16 = vadd.f32 %v2102_v21, %v2025_v20  ;;  %v1953_v18 = vpack.c.bf16 %v1933_v9, %v1932_v8  ;;  %v2525_v20 = vpack.c.bf16 %v2504_v12, %v2503_v11 }
 0x203   : > { %v1559_v24 = vld [vmem:[#allocation3 + $0xf8] sm:$0xff] }
 0x204   : > { %v1591_v25 = vadd.f32 %v1559_v24, %v1525_v13  ;;  %2451 = vst.msk [vmem:[#allocation3] sm:$0xff] %vm297_vm2, %v2419_v22  ;;  %3568 = vmatmul.msk.bf16.gmra.mxu1 %vm297_vm2, %v1951_v14  ;;  %v4439_v63 = vpop.f32.mrf.mxu0  ;;  %v2388_v30 = vld [vmem:[#allocation3 + $0x8] sm:$0xff] }
 0x205   : > { %v1844_v46 = vld [vmem:[#allocation3 + $0xf0] sm:$0xff]  ;;  %v2593_v26 = vpop.f32.mrf.mxu3  ;;  %2166 = vst.msk [vmem:[#allocation3 + $0x10] sm:$0xff] %vm297_vm2, %v2134_v16 }
 0x206   : > { %1623 = vst.msk [vmem:[#allocation3 + $0xf8] sm:$0xff] %vm297_vm2, %v1591_v25  ;;  %v1876_v27 = vadd.f32 %v1844_v46, %v4410_v28 }
 0x208   : > { %1908 = vst.msk [vmem:[#allocation3 + $0xf0] sm:$0xff] %vm297_vm2, %v1876_v27 }
 0x209   : > { %v2309_v33 = vpop.f32.mrf.mxu2  ;;  %v2027_v34 = vpop.f32.mrf.mxu1 }
 0x20a   : > { %v2420_v37 = vadd.f32 %v2388_v30, %v2309_v33  ;;  %v2135_v38 = vadd.f32 %v2103_v36, %v2027_v34 }
 0x20b   : > { %v2673_v40 = vld [vmem:[#allocation3] sm:$0xff] }
 0x20c   : > { %v2705_v43 = vadd.f32 %v2673_v40, %v2593_v26  ;;  %2452 = vst.msk [vmem:[#allocation3 + $0x8] sm:$0xff] %vm297_vm2, %v2420_v37  ;;  %v4446_v28 = vpop.f32.mrf.mxu0  ;;  %v2389_v52 = vld [vmem:[#allocation3 + $0x10] sm:$0xff]  ;;  %v2219_v37 = vld [vmem:[#allocation2 + $0x138] sm:$0xff] }
 0x20d   : > { %v1845_v45 = vld [vmem:[#allocation3 + $0xf8] sm:$0xff]  ;;  %v2595_v47 = vpop.f32.mrf.mxu3  ;;  %2167 = vst.msk [vmem:[#allocation3 + $0x18] sm:$0xff] %vm297_vm2, %v2135_v38  ;;  %v2106_v26 = vld [vmem:[#allocation3 + $0x30] sm:$0xff] }
 0x20e   : > { %2737 = vst.msk [vmem:[#allocation3] sm:$0xff] %vm297_vm2, %v2705_v43  ;;  %v1877_v50 = vadd.f32 %v1845_v45, %v4421_v29  ;;  %3585 = vmatmul.msk.bf16.gmra.mxu2 %vm297_vm2, %v2238_v60  ;;  %v2220_v60 = vld [vmem:[#allocation2 + $0x140] sm:$0xff] }
 0x20f   : > { %3619 = vmatmul.msk.bf16.gmra.mxu0 %vm297_vm2, %v1952_v49  ;;  %v2240_v43 = vpack.c.bf16 %v2220_v60, %v2219_v37 }
 0x210   : > { %1909 = vst.msk [vmem:[#allocation3 + $0xf8] sm:$0xff] %vm297_vm2, %v1877_v50 }
 0x211   : > { %v2312_v53 = vpop.f32.mrf.mxu2  ;;  %v2030_v54 = vpop.f32.mrf.mxu1 }
 0x212   : > { %v2421_v44 = vadd.f32 %v2389_v52, %v2312_v53  ;;  %3602 = vmatmul.msk.bf16.gmra.mxu3 %vm297_vm2, %v2524_v51  ;;  %v2136_v56 = vadd.f32 %v2104_v55, %v2030_v54  ;;  %v2107_v51 = vld [vmem:[#allocation3 + $0x38] sm:$0xff]  ;;  %v1934_v52 = vld [vmem:[#allocation2 + $0x13a] sm:$0xff] }
 0x213   : > { %v2674_v57 = vld [vmem:[#allocation3 + $0x8] sm:$0xff]  ;;  %v1935_v53 = vld [vmem:[#allocation2 + $0x142] sm:$0xff] }
 0x214   : > { %v2706_v58 = vadd.f32 %v2674_v57, %v2595_v47  ;;  %2453 = vst.msk [vmem:[#allocation3 + $0x10] sm:$0xff] %vm297_vm2, %v2421_v44  ;;  %3569 = vmatmul.msk.bf16.gmra.mxu1 %vm297_vm2, %v1952_v49  ;;  %v4457_v29 = vpop.f32.mrf.mxu0  ;;  %v2390_v2 = vld [vmem:[#allocation3 + $0x18] sm:$0xff]  ;;  %v2505_v44 = vld [vmem:[#allocation2 + $0x139] sm:$0xff] }
 0x215   : > { %v2959_v59 = vld [vmem:[#allocation3] sm:$0xff]  ;;  %v2598_v61 = vpop.f32.mrf.mxu3  ;;  %2168 = vst.msk [vmem:[#allocation3 + $0x20] sm:$0xff] %vm297_vm2, %v2136_v56  ;;  %v2506_v56 = vld [vmem:[#allocation2 + $0x141] sm:$0xff] }
 0x216   : > { %2738 = vst.msk [vmem:[#allocation3 + $0x8] sm:$0xff] %vm297_vm2, %v2706_v58  ;;  %v2991_v62 = vadd.f32 %v2959_v59, %v4428_v48  ;;  %v4466_v48 = vld [vmem:[%s4909_s4] ss:$0 sm:$0xff] }
 0x218   : > { %3023 = vst.msk [vmem:[#allocation3] sm:$0xff] %vm297_vm2, %v2991_v62 }
 0x219   : > { %v2314_v15 = vpop.f32.mrf.mxu2  ;;  %v2032_v7 = vpop.f32.mrf.mxu1 }
 0x21a   : > { %v2422_v1 = vadd.f32 %v2390_v2, %v2314_v15  ;;  %v2137_v5 = vadd.f32 %v2105_v0, %v2032_v7  ;;  %v1954_v15 = vpack.c.bf16 %v1935_v53, %v1934_v52  ;;  %v2526_v0 = vpack.c.bf16 %v2506_v56, %v2505_v44 }
 0x21b   : > { %v2675_v10 = vld [vmem:[#allocation3 + $0x10] sm:$0xff] }
 0x21c   : > { %v2707_v13 = vadd.f32 %v2675_v10, %v2598_v61  ;;  %2454 = vst.msk [vmem:[#allocation3 + $0x18] sm:$0xff] %vm297_vm2, %v2422_v1  ;;  %v4469_v14 = vpop.f32.mrf.mxu0  ;;  %v2391_v22 = vld [vmem:[#allocation3 + $0x20] sm:$0xff] }
 0x21d   : > { %v2960_v35 = vld [vmem:[#allocation3 + $0x8] sm:$0xff]  ;;  %v2600_v17 = vpop.f32.mrf.mxu3  ;;  %2169 = vst.msk [vmem:[#allocation3 + $0x28] sm:$0xff] %vm297_vm2, %v2137_v5 }
 0x21e   : > { %2739 = vst.msk [vmem:[#allocation3 + $0x10] sm:$0xff] %vm297_vm2, %v2707_v13  ;;  %v2992_v19 = vadd.f32 %v2960_v35, %v4439_v63  ;;  %3586 = vmatmul.msk.bf16.gmra.mxu2 %vm297_vm2, %v2239_v4  ;;  %v2108_v13 = vld [vmem:[#allocation3 + $0x40] sm:$0xff] }
 0x21f   : > { %v3055_v21 = vld [vmem:[#allocation3] sm:$0xff]  ;;  %3620 = vmatmul.msk.bf16.gmra.mxu0 %vm297_vm2, %v1953_v18 }
 0x220   : > { %v3091_v16 = vadd.f32 %v4466_v48, %v3055_v21  ;;  %3024 = vst.msk [vmem:[#allocation3 + $0x8] sm:$0xff] %vm297_vm2, %v2992_v19 }
 0x221   : > { %v2317_v24 = vpop.f32.mrf.mxu2  ;;  %v2035_v25 = vpop.f32.mrf.mxu1 }
 0x222   : > { %v3123_v63 = vpack.c.bf16 %v3091_v16, %v3091_v16  ;;  %v2423_v46 = vadd.f32 %v2391_v22, %v2317_v24  ;;  %3603 = vmatmul.msk.bf16.gmra.mxu3 %vm297_vm2, %v2525_v20  ;;  %v2138_v30 = vadd.f32 %v2106_v26, %v2035_v25  ;;  %v3258_v6 = vmul.f32 %v3091_v16, %v3091_v16  ;;  %v2221_v25 = vld [vmem:[#allocation2 + $0x150] sm:$0xff] }
 0x223   : > { %v2676_v27 = vld [vmem:[#allocation3 + $0x18] sm:$0xff]  ;;  %v3188_v42 = vsel %vm297_vm2, %v3091_v16, 0.0 }
 0x224   : > { %3156 = vst.msk [vmem:[%s4483_s17] sm:$0xf] %vm3155_vm4, %v3123_v63  ;;  %v2708_v31 = vadd.f32 %v2676_v27, %v2600_v17  ;;  %3570 = vmatmul.msk.bf16.gmra.mxu1 %vm297_vm2, %v1953_v18  ;;  %v4489_v32 = vpop.f32.mrf.mxu0  ;;  %v2392_v39 = vld [vmem:[#allocation3 + $0x28] sm:$0xff]  ;;  %v3290_v57 = vsel %vm297_vm2, %v3258_v6, 0.0 }
 0x225   : > { %2455 = vst.msk [vmem:[#allocation3 + $0x20] sm:$0xff] %vm297_vm2, %v2423_v46  ;;  %v2961_v33 = vld [vmem:[#allocation3 + $0x10] sm:$0xff]  ;;  %v2603_v34 = vpop.f32.mrf.mxu3  ;;  %v2222_v63 = vld [vmem:[#allocation2 + $0x158] sm:$0xff] }
 0x226   : > { %2740 = vst.msk [vmem:[#allocation3 + $0x18] sm:$0xff] %vm297_vm2, %v2708_v31  ;;  %v2993_v36 = vadd.f32 %v2961_v33, %v4446_v28  ;;  %v2241_v33 = vpack.c.bf16 %v2222_v63, %v2221_v25  ;;  %v1936_v6 = vld [vmem:[#allocation2 + $0x152] sm:$0xff] }
 0x227   : > { %v3056_v38 = vld [vmem:[#allocation3 + $0x8] sm:$0xff]  ;;  %2170 = vst.msk [vmem:[#allocation3 + $0x30] sm:$0xff] %vm297_vm2, %v2138_v30 }
 0x228   : > { %v3092_v40 = vadd.f32 %v4466_v48, %v3056_v38  ;;  %3025 = vst.msk [vmem:[#allocation3 + $0x10] sm:$0xff] %vm297_vm2, %v2993_v36  ;;  %v1939_v25 = vld [vmem:[#allocation2 + $0x172] sm:$0xff] }
 0x229   : > { %v2319_v41 = vpop.f32.mrf.mxu2  ;;  %v2037_v45 = vpop.f32.mrf.mxu1 }
 0x22a   : > { %v3124_v47 = vpack.c.bf16 %v3092_v40, %v3092_v40  ;;  %v3189_v28 = vsel %vm297_vm2, %v3092_v40, 0.0  ;;  %v3259_v49 = vmul.f32 %v3092_v40, %v3092_v40  ;;  %v2424_v50 = vadd.f32 %v2392_v39, %v2319_v41  ;;  %v2109_v39 = vld [vmem:[#allocation3 + $0x48] sm:$0xff] }
 0x22b   : > { %v3190_v54 = vadd.f32 %v3189_v28, %v3188_v42  ;;  %v2139_v55 = vadd.f32 %v2107_v51, %v2037_v45  ;;  %v1937_v40 = vld [vmem:[#allocation2 + $0x15a] sm:$0xff] }
 0x22c   : > { %3157 = vst.msk [vmem:[%s4483_s17 + $0x4] sm:$0xf] %vm3155_vm4, %v3124_v47  ;;  %v3291_v58 = vsel %vm297_vm2, %v3259_v49, 0.0  ;;  %v2677_v59 = vld [vmem:[#allocation3 + $0x20] sm:$0xff]  ;;  %v4503_v61 = vpop.f32.mrf.mxu0  ;;  %v1955_v52 = vpack.c.bf16 %v1937_v40, %v1936_v6 }
 0x22d   : > { %v3292_v62 = vadd.f32 %v3291_v58, %v3290_v57  ;;  %v2709_v2 = vadd.f32 %v2677_v59, %v2603_v34  ;;  %2456 = vst.msk [vmem:[#allocation3 + $0x28] sm:$0xff] %vm297_vm2, %v2424_v50  ;;  %v2962_v23 = vld [vmem:[#allocation3 + $0x18] sm:$0xff]  ;;  %v2605_v3 = vpop.f32.mrf.mxu3 }
 0x22e   : > { %v2994_v7 = vadd.f32 %v2962_v23, %v4457_v29  ;;  %3587 = vmatmul.msk.bf16.gmra.mxu2 %vm297_vm2, %v2240_v43  ;;  %2171 = vst.msk [vmem:[#allocation3 + $0x38] sm:$0xff] %vm297_vm2, %v2139_v55  ;;  %v2393_v4 = vld [vmem:[#allocation3 + $0x30] sm:$0xff] }
 0x22f   : > { %v3057_v1 = vld [vmem:[#allocation3 + $0x10] sm:$0xff]  ;;  %2741 = vst.msk [vmem:[#allocation3 + $0x20] sm:$0xff] %vm297_vm2, %v2709_v2  ;;  %3621 = vmatmul.msk.bf16.gmra.mxu0 %vm297_vm2, %v1954_v15 }
 0x230   : > { %v3093_v5 = vadd.f32 %v4466_v48, %v3057_v1  ;;  %3026 = vst.msk [vmem:[#allocation3 + $0x18] sm:$0xff] %vm297_vm2, %v2994_v7  ;;  %v2508_v43 = vld [vmem:[#allocation2 + $0x159] sm:$0xff] }
 0x231   : > { %v2322_v8 = vpop.f32.mrf.mxu2  ;;  %v2040_v9 = vpop.f32.mrf.mxu1 }
 0x232   : > { %v3125_v10 = vpack.c.bf16 %v3093_v5, %v3093_v5  ;;  %v3191_v29 = vsel %vm297_vm2, %v3093_v5, 0.0  ;;  %v3260_v11 = vmul.f32 %v3093_v5, %v3093_v5  ;;  %v2425_v12 = vadd.f32 %v2393_v4, %v2322_v8  ;;  %3604 = vmatmul.msk.bf16.gmra.mxu3 %vm297_vm2, %v2526_v0 }
 0x233   : > { %v3192_v35 = vadd.f32 %v3191_v29, %v3190_v54  ;;  %v2140_v17 = vadd.f32 %v2108_v13, %v2040_v9  ;;  %v2224_v13 = vld [vmem:[#allocation2 + $0x170] sm:$0xff] }
 0x234   : > { %3158 = vst.msk [vmem:[%s4483_s17 + $0x8] sm:$0xf] %vm3155_vm4, %v3125_v10  ;;  %v3293_v18 = vsel %vm297_vm2, %v3260_v11, 0.0  ;;  %v2678_v19 = vld [vmem:[#allocation3 + $0x28] sm:$0xff]  ;;  %3571 = vmatmul.msk.bf16.gmra.mxu1 %vm297_vm2, %v1954_v15  ;;  %v4519_v20 = vpop.f32.mrf.mxu0 }
 0x235   : > { %v3294_v21 = vadd.f32 %v3293_v18, %v3292_v62  ;;  %v2710_v22 = vadd.f32 %v2678_v19, %v2605_v3  ;;  %2457 = vst.msk [vmem:[#allocation3 + $0x30] sm:$0xff] %vm297_vm2, %v2425_v12  ;;  %v2608_v16 = vpop.f32.mrf.mxu3  ;;  %v2394_v27 = vld [vmem:[#allocation3 + $0x38] sm:$0xff]  ;;  %v2110_v62 = vld [vmem:[#allocation3 + $0x50] sm:$0xff] }
 0x236   : > { %v2963_v24 = vld [vmem:[#allocation3 + $0x20] sm:$0xff]  ;;  %2172 = vst.msk [vmem:[#allocation3 + $0x40] sm:$0xff] %vm297_vm2, %v2140_v17  ;;  %v2223_v12 = vld [vmem:[#allocation2 + $0x168] sm:$0xff] }
 0x237   : > { %v3058_v46 = vld [vmem:[#allocation3 + $0x18] sm:$0xff]  ;;  %2742 = vst.msk [vmem:[#allocation3 + $0x28] sm:$0xff] %vm297_vm2, %v2710_v22  ;;  %v2995_v26 = vadd.f32 %v2963_v24, %v4469_v14  ;;  %v2507_v14 = vld [vmem:[#allocation2 + $0x151] sm:$0xff]  ;;  %v2242_v22 = vpack.c.bf16 %v2224_v13, %v2223_v12 }
 0x238   : > { %v3094_v30 = vadd.f32 %v4466_v48, %v3058_v46  ;;  %v2527_v54 = vpack.c.bf16 %v2508_v43, %v2507_v14  ;;  %v1938_v24 = vld [vmem:[#allocation2 + $0x16a] sm:$0xff] }
 0x239   : > { %3027 = vst.msk [vmem:[#allocation3 + $0x20] sm:$0xff] %vm297_vm2, %v2995_v26  ;;  %v2324_v31 = vpop.f32.mrf.mxu2  ;;  %v2042_v34 = vpop.f32.mrf.mxu1 }
 0x23a   : > { %v3126_v36 = vpack.c.bf16 %v3094_v30, %v3094_v30  ;;  %v3193_v37 = vsel %vm297_vm2, %v3094_v30, 0.0  ;;  %v3261_v60 = vmul.f32 %v3094_v30, %v3094_v30  ;;  %v2426_v38 = vadd.f32 %v2394_v27, %v2324_v31  ;;  %v2509_v30 = vld [vmem:[#allocation2 + $0x169] sm:$0xff]  ;;  %v2510_v31 = vld [vmem:[#allocation2 + $0x171] sm:$0xff] }
 0x23b   : > { %v3194_v42 = vadd.f32 %v3193_v37, %v3192_v35  ;;  %v2141_v41 = vadd.f32 %v2109_v39, %v2042_v34  ;;  %v2528_v40 = vpack.c.bf16 %v2510_v31, %v2509_v30 }
 0x23c   : > { %3159 = vst.msk [vmem:[%s4483_s17 + $0xc] sm:$0xf] %vm3155_vm4, %v3126_v36  ;;  %v3295_v45 = vsel %vm297_vm2, %v3261_v60, 0.0  ;;  %v2679_v47 = vld [vmem:[#allocation3 + $0x30] sm:$0xff]  ;;  %v4531_v28 = vpop.f32.mrf.mxu0 }
 0x23d   : > { %v3296_v49 = vadd.f32 %v3295_v45, %v3294_v21  ;;  %v2711_v50 = vadd.f32 %v2679_v47, %v2608_v16  ;;  %2458 = vst.msk [vmem:[#allocation3 + $0x38] sm:$0xff] %vm297_vm2, %v2426_v38  ;;  %v2610_v51 = vpop.f32.mrf.mxu3  ;;  %v2395_v44 = vld [vmem:[#allocation3 + $0x40] sm:$0xff]  ;;  %v2111_v16 = vld [vmem:[#allocation3 + $0x58] sm:$0xff]  ;;  %v1956_v38 = vpack.c.bf16 %v1939_v25, %v1938_v24 }
 0x23e   : > { %v2964_v53 = vld [vmem:[#allocation3 + $0x28] sm:$0xff]  ;;  %3588 = vmatmul.msk.bf16.gmra.mxu2 %vm297_vm2, %v2241_v33  ;;  %2173 = vst.msk [vmem:[#allocation3 + $0x48] sm:$0xff] %vm297_vm2, %v2141_v41 }
 0x23f   : > { %2743 = vst.msk [vmem:[#allocation3 + $0x30] sm:$0xff] %vm297_vm2, %v2711_v50  ;;  %v2996_v55 = vadd.f32 %v2964_v53, %v4489_v32  ;;  %3622 = vmatmul.msk.bf16.gmra.mxu0 %vm297_vm2, %v1955_v52  ;;  %v2112_v50 = vld [vmem:[#allocation3 + $0x60] sm:$0xff] }
 0x240   : > { %v3059_v56 = vld [vmem:[#allocation3 + $0x20] sm:$0xff] }
 0x241   : > { %v3095_v57 = vadd.f32 %v4466_v48, %v3059_v56  ;;  %3028 = vst.msk [vmem:[#allocation3 + $0x28] sm:$0xff] %vm297_vm2, %v2996_v55  ;;  %v2327_v58 = vpop.f32.mrf.mxu2  ;;  %v2045_v59 = vpop.f32.mrf.mxu1 }
 0x242   : > { %v2427_v2 = vadd.f32 %v2395_v44, %v2327_v58  ;;  %3605 = vmatmul.msk.bf16.gmra.mxu3 %vm297_vm2, %v2527_v54  ;;  %v2142_v23 = vadd.f32 %v2110_v62, %v2045_v59 }
 0x243   : > { %v3127_v3 = vpack.c.bf16 %v3095_v57, %v3095_v57  ;;  %v3195_v15 = vsel %vm297_vm2, %v3095_v57, 0.0  ;;  %v3262_v32 = vmul.f32 %v3095_v57, %v3095_v57 }
 0x244   : > { %v3196_v7 = vadd.f32 %v3195_v15, %v3194_v42  ;;  %v2680_v0 = vld [vmem:[#allocation3 + $0x38] sm:$0xff]  ;;  %2459 = vst.msk [vmem:[#allocation3 + $0x40] sm:$0xff] %vm297_vm2, %v2427_v2  ;;  %3572 = vmatmul.msk.bf16.gmra.mxu1 %vm297_vm2, %v1955_v52  ;;  %v4545_v1 = vpop.f32.mrf.mxu0 }
 0x245   : > { %3160 = vst.msk [vmem:[%s4483_s17 + $0x10] sm:$0xf] %vm3155_vm4, %v3127_v3  ;;  %v3297_v4 = vsel %vm297_vm2, %v3262_v32, 0.0  ;;  %v2712_v5 = vadd.f32 %v2680_v0, %v2610_v51  ;;  %v2613_v8 = vpop.f32.mrf.mxu3  ;;  %v2396_v11 = vld [vmem:[#allocation3 + $0x48] sm:$0xff]  ;;  %v2225_v3 = vld [vmem:[#allocation2 + $0x180] sm:$0xff]  ;;  %v2226_v15 = vld [vmem:[#allocation2 + $0x188] sm:$0xff] }
 0x246   : > { %v3298_v9 = vadd.f32 %v3297_v4, %v3296_v49  ;;  %v2965_v10 = vld [vmem:[#allocation3 + $0x30] sm:$0xff]  ;;  %2174 = vst.msk [vmem:[#allocation3 + $0x50] sm:$0xff] %vm297_vm2, %v2142_v23 }
 0x247   : > { %2744 = vst.msk [vmem:[#allocation3 + $0x38] sm:$0xff] %vm297_vm2, %v2712_v5  ;;  %v2997_v29 = vadd.f32 %v2965_v10, %v4503_v61  ;;  %v1940_v10 = vld [vmem:[#allocation2 + $0x182] sm:$0xff] }
 0x248   : > { %v3060_v35 = vld [vmem:[#allocation3 + $0x28] sm:$0xff] }
 0x249   : > { %v3096_v17 = vadd.f32 %v4466_v48, %v3060_v35  ;;  %3029 = vst.msk [vmem:[#allocation3 + $0x30] sm:$0xff] %vm297_vm2, %v2997_v29  ;;  %v2329_v18 = vpop.f32.mrf.mxu2  ;;  %v2047_v19 = vpop.f32.mrf.mxu1  ;;  %v1941_v29 = vld [vmem:[#allocation2 + $0x18a] sm:$0xff] }
 0x24a   : > { %v2428_v21 = vadd.f32 %v2396_v11, %v2329_v18  ;;  %v2143_v27 = vadd.f32 %v2111_v16, %v2047_v19  ;;  %v2512_v18 = vld [vmem:[#allocation2 + $0x189] sm:$0xff] }
 0x24b   : > { %v3128_v63 = vpack.c.bf16 %v3096_v17, %v3096_v17  ;;  %v3197_v46 = vsel %vm297_vm2, %v3096_v17, 0.0  ;;  %v3263_v61 = vmul.f32 %v3096_v17, %v3096_v17  ;;  %v2681_v26 = vld [vmem:[#allocation3 + $0x40] sm:$0xff]  ;;  %v2511_v17 = vld [vmem:[#allocation2 + $0x181] sm:$0xff] }
 0x24c   : > { %v3198_v33 = vadd.f32 %v3197_v46, %v3196_v7  ;;  %v2713_v34 = vadd.f32 %v2681_v26, %v2613_v8  ;;  %2460 = vst.msk [vmem:[#allocation3 + $0x48] sm:$0xff] %vm297_vm2, %v2428_v21  ;;  %v4557_v36 = vpop.f32.mrf.mxu0  ;;  %v2243_v8 = vpack.c.bf16 %v2226_v15, %v2225_v3  ;;  %v2529_v26 = vpack.c.bf16 %v2512_v18, %v2511_v17  ;;  %v2115_v3 = vld [vmem:[#allocation3 + $0x78] sm:$0xff] }
 0x24d   : > { %3161 = vst.msk [vmem:[%s4483_s17 + $0x14] sm:$0xf] %vm3155_vm4, %v3128_v63  ;;  %v3299_v37 = vsel %vm297_vm2, %v3263_v61, 0.0  ;;  %v2615_v60 = vpop.f32.mrf.mxu3  ;;  %v2397_v41 = vld [vmem:[#allocation3 + $0x50] sm:$0xff]  ;;  %v1957_v63 = vpack.c.bf16 %v1941_v29, %v1940_v10 }
 0x24e   : > { %v3300_v39 = vadd.f32 %v3299_v37, %v3298_v9  ;;  %2745 = vst.msk [vmem:[#allocation3 + $0x40] sm:$0xff] %vm297_vm2, %v2713_v34  ;;  %v2966_v6 = vld [vmem:[#allocation3 + $0x38] sm:$0xff]  ;;  %3589 = vmatmul.msk.bf16.gmra.mxu2 %vm297_vm2, %v2242_v22  ;;  %v2113_v9 = vld [vmem:[#allocation3 + $0x68] sm:$0xff] }
 0x24f   : > { %v2998_v42 = vadd.f32 %v2966_v6, %v4519_v20  ;;  %2175 = vst.msk [vmem:[#allocation3 + $0x58] sm:$0xff] %vm297_vm2, %v2143_v27  ;;  %3623 = vmatmul.msk.bf16.gmra.mxu0 %vm297_vm2, %v1956_v38 }
 0x250   : > { %v3061_v14 = vld [vmem:[#allocation3 + $0x30] sm:$0xff] }
 0x251   : > { %v3097_v43 = vadd.f32 %v4466_v48, %v3061_v14  ;;  %3030 = vst.msk [vmem:[#allocation3 + $0x38] sm:$0xff] %vm297_vm2, %v2998_v42  ;;  %v2332_v45 = vpop.f32.mrf.mxu2  ;;  %v2050_v47 = vpop.f32.mrf.mxu1 }
 0x252   : > { %v2429_v49 = vadd.f32 %v2397_v41, %v2332_v45  ;;  %3606 = vmatmul.msk.bf16.gmra.mxu3 %vm297_vm2, %v2528_v40  ;;  %v2144_v54 = vadd.f32 %v2112_v50, %v2050_v47 }
 0x253   : > { %v3129_v51 = vpack.c.bf16 %v3097_v43, %v3097_v43  ;;  %v3199_v20 = vsel %vm297_vm2, %v3097_v43, 0.0  ;;  %v3264_v52 = vmul.f32 %v3097_v43, %v3097_v43  ;;  %v2682_v53 = vld [vmem:[#allocation3 + $0x48] sm:$0xff] }
 0x254   : > { %v3200_v55 = vadd.f32 %v3199_v20, %v3198_v33  ;;  %v2714_v44 = vadd.f32 %v2682_v53, %v2615_v60  ;;  %2461 = vst.msk [vmem:[#allocation3 + $0x50] sm:$0xff] %vm297_vm2, %v2429_v49  ;;  %3573 = vmatmul.msk.bf16.gmra.mxu1 %vm297_vm2, %v1956_v38  ;;  %v4573_v56 = vpop.f32.mrf.mxu0  ;;  %v2228_v20 = vld [vmem:[#allocation2 + $0x1a0] sm:$0xff] }
 0x255   : > { %3162 = vst.msk [vmem:[%s4483_s17 + $0x18] sm:$0xf] %vm3155_vm4, %v3129_v51  ;;  %v3301_v57 = vsel %vm297_vm2, %v3264_v52, 0.0  ;;  %v2967_v58 = vld [vmem:[#allocation3 + $0x40] sm:$0xff]  ;;  %v2618_v59 = vpop.f32.mrf.mxu3  ;;  %v2227_v51 = vld [vmem:[#allocation2 + $0x198] sm:$0xff] }
 0x256   : > { %v3302_v62 = vadd.f32 %v3301_v57, %v3300_v39  ;;  %2746 = vst.msk [vmem:[#allocation3 + $0x48] sm:$0xff] %vm297_vm2, %v2714_v44  ;;  %v2999_v2 = vadd.f32 %v2967_v58, %v4531_v28  ;;  %v2398_v23 = vld [vmem:[#allocation3 + $0x58] sm:$0xff]  ;;  %v2114_v39 = vld [vmem:[#allocation3 + $0x70] sm:$0xff]  ;;  %v2244_v58 = vpack.c.bf16 %v2228_v20, %v2227_v51 }
 0x257   : > { %2176 = vst.msk [vmem:[#allocation3 + $0x60] sm:$0xff] %vm297_vm2, %v2144_v54  ;;  %v2800_v44 = vld [vmem:[#allocation2 + $0x1a2] sm:$0xff] }
 0x258   : > { %v3062_v32 = vld [vmem:[#allocation3 + $0x38] sm:$0xff]  ;;  %3031 = vst.msk [vmem:[#allocation3 + $0x40] sm:$0xff] %vm297_vm2, %v2999_v2 }
 0x259   : > { %v3098_v7 = vadd.f32 %v4466_v48, %v3062_v32  ;;  %v2334_v0 = vpop.f32.mrf.mxu2  ;;  %v2052_v4 = vpop.f32.mrf.mxu1 }
 0x25a   : > { %v2430_v5 = vadd.f32 %v2398_v23, %v2334_v0  ;;  %v2145_v35 = vadd.f32 %v2113_v9, %v2052_v4  ;;  %v2514_v0 = vld [vmem:[#allocation2 + $0x1a1] sm:$0xff] }
 0x25b   : > { %v3130_v11 = vpack.c.bf16 %v3098_v7, %v3098_v7  ;;  %v3201_v28 = vsel %vm297_vm2, %v3098_v7, 0.0  ;;  %v3265_v12 = vmul.f32 %v3098_v7, %v3098_v7  ;;  %v2683_v13 = vld [vmem:[#allocation3 + $0x50] sm:$0xff] }
 0x25c   : > { %v3202_v19 = vadd.f32 %v3201_v28, %v3200_v55  ;;  %v2715_v21 = vadd.f32 %v2683_v13, %v2618_v59  ;;  %2462 = vst.msk [vmem:[#allocation3 + $0x58] sm:$0xff] %vm297_vm2, %v2430_v5  ;;  %v4585_v22 = vpop.f32.mrf.mxu0  ;;  %v2799_v55 = vld [vmem:[#allocation2 + $0x19a] sm:$0xff] }
 0x25d   : > { %3163 = vst.msk [vmem:[%s4483_s17 + $0x1c] sm:$0xf] %vm3155_vm4, %v3130_v11  ;;  %v3303_v16 = vsel %vm297_vm2, %v3265_v12, 0.0  ;;  %v2968_v24 = vld [vmem:[#allocation3 + $0x48] sm:$0xff]  ;;  %v2620_v25 = vpop.f32.mrf.mxu3  ;;  %v2816_v4 = vpack.c.bf16 %v2800_v44, %v2799_v55 }
 0x25e   : > { %v3304_v46 = vadd.f32 %v3303_v16, %v3302_v62  ;;  %2747 = vst.msk [vmem:[#allocation3 + $0x50] sm:$0xff] %vm297_vm2, %v2715_v21  ;;  %v3000_v61 = vadd.f32 %v2968_v24, %v4545_v1  ;;  %3590 = vmatmul.msk.bf16.gmra.mxu2 %vm297_vm2, %v2243_v8  ;;  %v2399_v30 = vld [vmem:[#allocation3 + $0x60] sm:$0xff]  ;;  %v2513_v7 = vld [vmem:[#allocation2 + $0x199] sm:$0xff] }
 0x25f   : > { %v3063_v27 = vld [vmem:[#allocation3 + $0x40] sm:$0xff]  ;;  %2177 = vst.msk [vmem:[#allocation3 + $0x68] sm:$0xff] %vm297_vm2, %v2145_v35  ;;  %3624 = vmatmul.msk.bf16.gmra.mxu0 %vm297_vm2, %v1957_v63  ;;  %v2530_v13 = vpack.c.bf16 %v2514_v0, %v2513_v7 }
 0x260   : > { %v3099_v31 = vadd.f32 %v4466_v48, %v3063_v27  ;;  %3032 = vst.msk [vmem:[#allocation3 + $0x48] sm:$0xff] %vm297_vm2, %v3000_v61 }
 0x261   : > { %v2337_v33 = vpop.f32.mrf.mxu2  ;;  %v2055_v34 = vpop.f32.mrf.mxu1 }
 0x262   : > { %v3131_v37 = vpack.c.bf16 %v3099_v31, %v3099_v31  ;;  %v3203_v60 = vsel %vm297_vm2, %v3099_v31, 0.0  ;;  %v3266_v1 = vmul.f32 %v3099_v31, %v3099_v31  ;;  %v2431_v38 = vadd.f32 %v2399_v30, %v2337_v33  ;;  %3607 = vmatmul.msk.bf16.gmra.mxu3 %vm297_vm2, %v2529_v26 }
 0x263   : > { %v3204_v6 = vadd.f32 %v3203_v60, %v3202_v19  ;;  %v2684_v40 = vld [vmem:[#allocation3 + $0x58] sm:$0xff]  ;;  %v2146_v42 = vadd.f32 %v2114_v39, %v2055_v34 }
 0x264   : > { %3164 = vst.msk [vmem:[%s4483_s17 + $0x20] sm:$0xf] %vm3155_vm4, %v3131_v37  ;;  %v3305_v41 = vsel %vm297_vm2, %v3266_v1, 0.0  ;;  %v2716_v14 = vadd.f32 %v2684_v40, %v2620_v25  ;;  %3574 = vmatmul.msk.bf16.gmra.mxu1 %vm297_vm2, %v1957_v63  ;;  %v4603_v43 = vpop.f32.mrf.mxu0  ;;  %v2116_v63 = vld [vmem:[#allocation3 + $0x80] sm:$0xff] }
 0x265   : > { %v3306_v45 = vadd.f32 %v3305_v41, %v3304_v46  ;;  %2463 = vst.msk [vmem:[#allocation3 + $0x60] sm:$0xff] %vm297_vm2, %v2431_v38  ;;  %v2969_v47 = vld [vmem:[#allocation3 + $0x50] sm:$0xff]  ;;  %v2623_v49 = vpop.f32.mrf.mxu3 }
 0x266   : > { %2748 = vst.msk [vmem:[#allocation3 + $0x58] sm:$0xff] %vm297_vm2, %v2716_v14  ;;  %v3001_v50 = vadd.f32 %v2969_v47, %v4557_v36  ;;  %v2400_v53 = vld [vmem:[#allocation3 + $0x68] sm:$0xff] }
 0x267   : > { %v3064_v52 = vld [vmem:[#allocation3 + $0x48] sm:$0xff]  ;;  %2178 = vst.msk [vmem:[#allocation3 + $0x70] sm:$0xff] %vm297_vm2, %v2146_v42 }
 0x268   : > { %v3100_v54 = vadd.f32 %v4466_v48, %v3064_v52  ;;  %3033 = vst.msk [vmem:[#allocation3 + $0x50] sm:$0xff] %vm297_vm2, %v3001_v50  ;;  %v2117_v47 = vld [vmem:[#allocation3 + $0x88] sm:$0xff] }
 0x269   : > { %v2339_v57 = vpop.f32.mrf.mxu2  ;;  %v2057_v59 = vpop.f32.mrf.mxu1 }
 0x26a   : > { %v3132_v62 = vpack.c.bf16 %v3100_v54, %v3100_v54  ;;  %v3205_v2 = vsel %vm297_vm2, %v3100_v54, 0.0  ;;  %v3267_v36 = vmul.f32 %v3100_v54, %v3100_v54  ;;  %v2432_v23 = vadd.f32 %v2400_v53, %v2339_v57 }
 0x26b   : > { %v3206_v15 = vadd.f32 %v3205_v2, %v3204_v6  ;;  %v2147_v32 = vadd.f32 %v2115_v3, %v2057_v59 }
 0x26c   : > { %3165 = vst.msk [vmem:[%s4483_s17 + $0x24] sm:$0xf] %vm3155_vm4, %v3132_v62  ;;  %v3307_v5 = vsel %vm297_vm2, %v3267_v36, 0.0  ;;  %v2685_v8 = vld [vmem:[#allocation3 + $0x60] sm:$0xff]  ;;  %v4615_v9 = vpop.f32.mrf.mxu0  ;;  %v2118_v36 = vld [vmem:[#allocation3 + $0x90] sm:$0xff] }
 0x26d   : > { %v3308_v10 = vadd.f32 %v3307_v5, %v3306_v45  ;;  %v2717_v29 = vadd.f32 %v2685_v8, %v2623_v49  ;;  %2464 = vst.msk [vmem:[#allocation3 + $0x68] sm:$0xff] %vm297_vm2, %v2432_v23  ;;  %v2970_v11 = vld [vmem:[#allocation3 + $0x58] sm:$0xff]  ;;  %v2625_v28 = vpop.f32.mrf.mxu3 }
 0x26e   : > { %v3002_v12 = vadd.f32 %v2970_v11, %v4573_v56  ;;  %3591 = vmatmul.msk.bf16.gmra.mxu2 %vm297_vm2, %v2244_v58  ;;  %2179 = vst.msk [vmem:[#allocation3 + $0x78] sm:$0xff] %vm297_vm2, %v2147_v32  ;;  %v2401_v17 = vld [vmem:[#allocation3 + $0x70] sm:$0xff] }
 0x26f   : > { %v3065_v35 = vld [vmem:[#allocation3 + $0x50] sm:$0xff]  ;;  %2749 = vst.msk [vmem:[#allocation3 + $0x60] sm:$0xff] %vm297_vm2, %v2717_v29  ;;  %3625 = vmatmul.msk.bf16.gmra.mxu0 %vm297_vm2, %v2816_v4 }
 0x270   : > { %v3101_v18 = vadd.f32 %v4466_v48, %v3065_v35  ;;  %3034 = vst.msk [vmem:[#allocation3 + $0x58] sm:$0xff] %vm297_vm2, %v3002_v12 }
 0x271   : > { %v2342_v19 = vpop.f32.mrf.mxu2  ;;  %v2060_v21 = vpop.f32.mrf.mxu1 }
 0x272   : > { %v3133_v16 = vpack.c.bf16 %v3101_v18, %v3101_v18  ;;  %v3207_v56 = vsel %vm297_vm2, %v3101_v18, 0.0  ;;  %v3268_v24 = vmul.f32 %v3101_v18, %v3101_v18  ;;  %v2433_v25 = vadd.f32 %v2401_v17, %v2342_v19  ;;  %3608 = vmatmul.msk.bf16.gmra.mxu3 %vm297_vm2, %v2530_v13 }
 0x273   : > { %v3208_v46 = vadd.f32 %v3207_v56, %v3206_v15  ;;  %v2148_v61 = vadd.f32 %v2116_v63, %v2060_v21  ;;  %v2119_v21 = vld [vmem:[#allocation3 + $0x98] sm:$0xff] }
 0x274   : > { %3166 = vst.msk [vmem:[%s4483_s17 + $0x28] sm:$0xf] %vm3155_vm4, %v3133_v16  ;;  %v3309_v26 = vsel %vm297_vm2, %v3268_v24, 0.0  ;;  %v2686_v27 = vld [vmem:[#allocation3 + $0x68] sm:$0xff]  ;;  %v4630_v30 = vpop.f32.mrf.mxu0 }
 0x275   : > { %v3310_v31 = vadd.f32 %v3309_v26, %v3308_v10  ;;  %v2718_v33 = vadd.f32 %v2686_v27, %v2625_v28  ;;  %2465 = vst.msk [vmem:[#allocation3 + $0x70] sm:$0xff] %vm297_vm2, %v2433_v25  ;;  %v2628_v34 = vpop.f32.mrf.mxu3  ;;  %v2402_v38 = vld [vmem:[#allocation3 + $0x78] sm:$0xff] }
 0x276   : > { %v2971_v37 = vld [vmem:[#allocation3 + $0x60] sm:$0xff]  ;;  %2180 = vst.msk [vmem:[#allocation3 + $0x80] sm:$0xff] %vm297_vm2, %v2148_v61 }
 0x277   : > { %v3066_v60 = vld [vmem:[#allocation3 + $0x58] sm:$0xff]  ;;  %2750 = vst.msk [vmem:[#allocation3 + $0x68] sm:$0xff] %vm297_vm2, %v2718_v33  ;;  %v3003_v1 = vadd.f32 %v2971_v37, %v4585_v22 }
 0x278   : > { %v3102_v39 = vadd.f32 %v4466_v48, %v3066_v60 }
 0x279   : > { %3035 = vst.msk [vmem:[#allocation3 + $0x60] sm:$0xff] %vm297_vm2, %v3003_v1  ;;  %v2344_v6 = vpop.f32.mrf.mxu2  ;;  %v2062_v40 = vpop.f32.mrf.mxu1 }
 0x27a   : > { %v3134_v42 = vpack.c.bf16 %v3102_v39, %v3102_v39  ;;  %v3209_v41 = vsel %vm297_vm2, %v3102_v39, 0.0  ;;  %v3269_v14 = vmul.f32 %v3102_v39, %v3102_v39  ;;  %v2434_v45 = vadd.f32 %v2402_v38, %v2344_v6 }
 0x27b   : > { %v3210_v49 = vadd.f32 %v3209_v41, %v3208_v46  ;;  %v2149_v50 = vadd.f32 %v2117_v47, %v2062_v40  ;;  %v2120_v40 = vld [vmem:[#allocation3 + $0xa0] sm:$0xff] }
 0x27c   : > { %3167 = vst.msk [vmem:[%s4483_s17 + $0x2c] sm:$0xf] %vm3155_vm4, %v3134_v42  ;;  %v3311_v51 = vsel %vm297_vm2, %v3269_v14, 0.0  ;;  %v2687_v22 = vld [vmem:[#allocation3 + $0x70] sm:$0xff]  ;;  %v4642_v20 = vpop.f32.mrf.mxu0 }
 0x27d   : > { %v3312_v52 = vadd.f32 %v3311_v51, %v3310_v31  ;;  %v2719_v53 = vadd.f32 %v2687_v22, %v2628_v34  ;;  %2466 = vst.msk [vmem:[#allocation3 + $0x78] sm:$0xff] %vm297_vm2, %v2434_v45  ;;  %v2630_v54 = vpop.f32.mrf.mxu3  ;;  %v2403_v57 = vld [vmem:[#allocation3 + $0x80] sm:$0xff] }
 0x27e   : > { %v2972_v55 = vld [vmem:[#allocation3 + $0x68] sm:$0xff]  ;;  %2181 = vst.msk [vmem:[#allocation3 + $0x88] sm:$0xff] %vm297_vm2, %v2149_v50 }
 0x27f   : > { %2751 = vst.msk [vmem:[#allocation3 + $0x70] sm:$0xff] %vm297_vm2, %v2719_v53  ;;  %v3004_v44 = vadd.f32 %v2972_v55, %v4603_v43 }
 0x280   : > { %v3067_v58 = vld [vmem:[#allocation3 + $0x60] sm:$0xff] }
 0x281   : > { %v3103_v59 = vadd.f32 %v4466_v48, %v3067_v58  ;;  %3036 = vst.msk [vmem:[#allocation3 + $0x68] sm:$0xff] %vm297_vm2, %v3004_v44  ;;  %v2347_v62 = vpop.f32.mrf.mxu2  ;;  %v2065_v2 = vpop.f32.mrf.mxu1 }
 0x282   : > { %v2435_v23 = vadd.f32 %v2403_v57, %v2347_v62  ;;  %v2150_v3 = vadd.f32 %v2118_v36, %v2065_v2  ;;  %v2121_v2 = vld [vmem:[#allocation3 + $0xa8] sm:$0xff] }
 0x283   : > { %v3135_v15 = vpack.c.bf16 %v3103_v59, %v3103_v59  ;;  %v3211_v32 = vsel %vm297_vm2, %v3103_v59, 0.0  ;;  %v3270_v7 = vmul.f32 %v3103_v59, %v3103_v59 }
 0x284   : > { %v3212_v0 = vadd.f32 %v3211_v32, %v3210_v49  ;;  %v2688_v4 = vld [vmem:[#allocation3 + $0x78] sm:$0xff]  ;;  %2467 = vst.msk [vmem:[#allocation3 + $0x80] sm:$0xff] %vm297_vm2, %v2435_v23  ;;  %v4652_v43 = vpop.f32.mrf.mxu0 }
 0x285   : > { %3168 = vst.msk [vmem:[%s4483_s17 + $0x30] sm:$0xf] %vm3155_vm4, %v3135_v15  ;;  %v3313_v5 = vsel %vm297_vm2, %v3270_v7, 0.0  ;;  %v2720_v8 = vadd.f32 %v2688_v4, %v2630_v54  ;;  %v2633_v10 = vpop.f32.mrf.mxu3  ;;  %v2404_v12 = vld [vmem:[#allocation3 + $0x88] sm:$0xff] }
 0x286   : > { %v3314_v29 = vadd.f32 %v3313_v5, %v3312_v52  ;;  %v2973_v11 = vld [vmem:[#allocation3 + $0x70] sm:$0xff]  ;;  %2182 = vst.msk [vmem:[#allocation3 + $0x90] sm:$0xff] %vm297_vm2, %v2150_v3 }
 0x287   : > { %2752 = vst.msk [vmem:[#allocation3 + $0x78] sm:$0xff] %vm297_vm2, %v2720_v8  ;;  %v3005_v28 = vadd.f32 %v2973_v11, %v4615_v9 }
 0x288   : > { %v3068_v13 = vld [vmem:[#allocation3 + $0x68] sm:$0xff] }
 0x289   : > { %v3104_v35 = vadd.f32 %v4466_v48, %v3068_v13  ;;  %3037 = vst.msk [vmem:[#allocation3 + $0x70] sm:$0xff] %vm297_vm2, %v3005_v28  ;;  %v2349_v17 = vpop.f32.mrf.mxu2  ;;  %v2067_v18 = vpop.f32.mrf.mxu1 }
 0x28a   : > { %v2436_v19 = vadd.f32 %v2404_v12, %v2349_v17  ;;  %v2151_v63 = vadd.f32 %v2119_v21, %v2067_v18 }
 0x28b   : > { %v3136_v16 = vpack.c.bf16 %v3104_v35, %v3104_v35  ;;  %v3213_v56 = vsel %vm297_vm2, %v3104_v35, 0.0  ;;  %v3271_v24 = vmul.f32 %v3104_v35, %v3104_v35  ;;  %v2689_v25 = vld [vmem:[#allocation3 + $0x80] sm:$0xff] }
 0x28c   : > { %v3214_v46 = vadd.f32 %v3213_v56, %v3212_v0  ;;  %v2721_v61 = vadd.f32 %v2689_v25, %v2633_v10  ;;  %2468 = vst.msk [vmem:[#allocation3 + $0x88] sm:$0xff] %vm297_vm2, %v2436_v19  ;;  %v4664_v9 = vpop.f32.mrf.mxu0 }
 0x28d   : > { %3169 = vst.msk [vmem:[%s4483_s17 + $0x34] sm:$0xf] %vm3155_vm4, %v3136_v16  ;;  %v3315_v26 = vsel %vm297_vm2, %v3271_v24, 0.0  ;;  %v2635_v27 = vpop.f32.mrf.mxu3  ;;  %v2405_v37 = vld [vmem:[#allocation3 + $0x90] sm:$0xff] }
 0x28e   : > { %v3316_v31 = vadd.f32 %v3315_v26, %v3314_v29  ;;  %2753 = vst.msk [vmem:[#allocation3 + $0x80] sm:$0xff] %vm297_vm2, %v2721_v61  ;;  %v2974_v33 = vld [vmem:[#allocation3 + $0x78] sm:$0xff]  ;;  %v2122_v16 = vld [vmem:[#allocation3 + $0xb0] sm:$0xff] }
 0x28f   : > { %v3006_v34 = vadd.f32 %v2974_v33, %v4630_v30  ;;  %2183 = vst.msk [vmem:[#allocation3 + $0x98] sm:$0xff] %vm297_vm2, %v2151_v63 }
 0x290   : > { %v3069_v60 = vld [vmem:[#allocation3 + $0x70] sm:$0xff] }
 0x291   : > { %v3105_v1 = vadd.f32 %v4466_v48, %v3069_v60  ;;  %3038 = vst.msk [vmem:[#allocation3 + $0x78] sm:$0xff] %vm297_vm2, %v3006_v34  ;;  %v2352_v38 = vpop.f32.mrf.mxu2  ;;  %v2070_v39 = vpop.f32.mrf.mxu1 }
 0x292   : > { %v2437_v6 = vadd.f32 %v2405_v37, %v2352_v38  ;;  %v2152_v47 = vadd.f32 %v2120_v40, %v2070_v39  ;;  %v2123_v40 = vld [vmem:[#allocation3 + $0xb8] sm:$0xff] }
 0x293   : > { %v3137_v42 = vpack.c.bf16 %v3105_v1, %v3105_v1  ;;  %v3215_v41 = vsel %vm297_vm2, %v3105_v1, 0.0  ;;  %v3272_v14 = vmul.f32 %v3105_v1, %v3105_v1  ;;  %v2690_v45 = vld [vmem:[#allocation3 + $0x88] sm:$0xff] }
 0x294   : > { %v3216_v30 = vadd.f32 %v3215_v41, %v3214_v46  ;;  %v2722_v49 = vadd.f32 %v2690_v45, %v2635_v27  ;;  %2469 = vst.msk [vmem:[#allocation3 + $0x90] sm:$0xff] %vm297_vm2, %v2437_v6  ;;  %v4681_v54 = vpop.f32.mrf.mxu0 }
 0x295   : > { %3170 = vst.msk [vmem:[%s4483_s17 + $0x38] sm:$0xf] %vm3155_vm4, %v3137_v42  ;;  %v3317_v50 = vsel %vm297_vm2, %v3272_v14, 0.0  ;;  %v2975_v51 = vld [vmem:[#allocation3 + $0x80] sm:$0xff]  ;;  %v2638_v22 = vpop.f32.mrf.mxu3 }
 0x296   : > { %v3318_v52 = vadd.f32 %v3317_v50, %v3316_v31  ;;  %2754 = vst.msk [vmem:[#allocation3 + $0x88] sm:$0xff] %vm297_vm2, %v2722_v49  ;;  %v3007_v53 = vadd.f32 %v2975_v51, %v4642_v20  ;;  %v2406_v55 = vld [vmem:[#allocation3 + $0x98] sm:$0xff] }
 0x297   : > { %2184 = vst.msk [vmem:[#allocation3 + $0xa0] sm:$0xff] %vm297_vm2, %v2152_v47 }
 0x298   : > { %v3070_v44 = vld [vmem:[#allocation3 + $0x78] sm:$0xff]  ;;  %3039 = vst.msk [vmem:[#allocation3 + $0x80] sm:$0xff] %vm297_vm2, %v3007_v53 }
 0x299   : > { %v3106_v57 = vadd.f32 %v4466_v48, %v3070_v44  ;;  %v2354_v58 = vpop.f32.mrf.mxu2  ;;  %v2072_v59 = vpop.f32.mrf.mxu1 }
 0x29a   : > { %v2438_v62 = vadd.f32 %v2406_v55, %v2354_v58  ;;  %v2153_v15 = vadd.f32 %v2121_v2, %v2072_v59 }
 0x29b   : > { %v3138_v36 = vpack.c.bf16 %v3106_v57, %v3106_v57  ;;  %v3217_v23 = vsel %vm297_vm2, %v3106_v57, 0.0  ;;  %v3273_v3 = vmul.f32 %v3106_v57, %v3106_v57  ;;  %v2691_v20 = vld [vmem:[#allocation3 + $0x90] sm:$0xff] }
 0x29c   : > { %v3218_v32 = vadd.f32 %v3217_v23, %v3216_v30  ;;  %v2723_v7 = vadd.f32 %v2691_v20, %v2638_v22  ;;  %2470 = vst.msk [vmem:[#allocation3 + $0x98] sm:$0xff] %vm297_vm2, %v2438_v62  ;;  %v4696_v12 = vpop.f32.mrf.mxu0  ;;  %v2124_v62 = vld [vmem:[#allocation3 + $0xc0] sm:$0xff] }
 0x29d   : > { %3171 = vst.msk [vmem:[%s4483_s17 + $0x3c] sm:$0xf] %vm3155_vm4, %v3138_v36  ;;  %v3319_v0 = vsel %vm297_vm2, %v3273_v3, 0.0  ;;  %v2976_v4 = vld [vmem:[#allocation3 + $0x88] sm:$0xff]  ;;  %v2640_v5 = vpop.f32.mrf.mxu3 }
 0x29e   : > { %v3320_v8 = vadd.f32 %v3319_v0, %v3318_v52  ;;  %2755 = vst.msk [vmem:[#allocation3 + $0x90] sm:$0xff] %vm297_vm2, %v2723_v7  ;;  %v3008_v10 = vadd.f32 %v2976_v4, %v4652_v43  ;;  %v2407_v11 = vld [vmem:[#allocation3 + $0xa0] sm:$0xff]  ;;  %v4721_v52 = vld [vmem:[%s4909_s4] ss:$0 sm:$0xff] }
 0x29f   : > { %v3071_v29 = vld [vmem:[#allocation3 + $0x80] sm:$0xff]  ;;  %2185 = vst.msk [vmem:[#allocation3 + $0xa8] sm:$0xff] %vm297_vm2, %v2153_v15 }
 0x2a0   : > { %v3107_v28 = vadd.f32 %v4466_v48, %v3071_v29  ;;  %3040 = vst.msk [vmem:[#allocation3 + $0x88] sm:$0xff] %vm297_vm2, %v3008_v10 }
 0x2a1   : > { %v2357_v13 = vpop.f32.mrf.mxu2  ;;  %v2075_v35 = vpop.f32.mrf.mxu1 }
 0x2a2   : > { %v3139_v17 = vpack.c.bf16 %v3107_v28, %v3107_v28  ;;  %v3219_v18 = vsel %vm297_vm2, %v3107_v28, 0.0  ;;  %v3274_v19 = vmul.f32 %v3107_v28, %v3107_v28  ;;  %v2439_v21 = vadd.f32 %v2407_v11, %v2357_v13 }
 0x2a3   : > { %v3220_v43 = vadd.f32 %v3219_v18, %v3218_v32  ;;  %v2692_v56 = vld [vmem:[#allocation3 + $0x98] sm:$0xff]  ;;  %v2154_v24 = vadd.f32 %v2122_v16, %v2075_v35  ;;  %v2125_v18 = vld [vmem:[#allocation3 + $0xc8] sm:$0xff] }
 0x2a4   : > { %3172 = vst.msk [vmem:[%s4483_s17 + $0x40] sm:$0xf] %vm3155_vm4, %v3139_v17  ;;  %v3321_v25 = vsel %vm297_vm2, %v3274_v19, 0.0  ;;  %v2724_v63 = vadd.f32 %v2692_v56, %v2640_v5  ;;  %v4709_v42 = vpop.f32.mrf.mxu0 }
 0x2a5   : > { %v3322_v46 = vadd.f32 %v3321_v25, %v3320_v8  ;;  %2471 = vst.msk [vmem:[#allocation3 + $0xa0] sm:$0xff] %vm297_vm2, %v2439_v21  ;;  %v2977_v61 = vld [vmem:[#allocation3 + $0x90] sm:$0xff]  ;;  %v2643_v26 = vpop.f32.mrf.mxu3 }
 0x2a6   : > { %2756 = vst.msk [vmem:[#allocation3 + $0x98] sm:$0xff] %vm297_vm2, %v2724_v63  ;;  %v3009_v27 = vadd.f32 %v2977_v61, %v4664_v9  ;;  %v2408_v33 = vld [vmem:[#allocation3 + $0xa8] sm:$0xff] }
 0x2a7   : > { %v3072_v31 = vld [vmem:[#allocation3 + $0x88] sm:$0xff]  ;;  %2186 = vst.msk [vmem:[#allocation3 + $0xb0] sm:$0xff] %vm297_vm2, %v2154_v24 }
 0x2a8   : > { %v3108_v34 = vadd.f32 %v4466_v48, %v3072_v31  ;;  %3041 = vst.msk [vmem:[#allocation3 + $0x90] sm:$0xff] %vm297_vm2, %v3009_v27 }
 0x2a9   : > { %v2359_v37 = vpop.f32.mrf.mxu2  ;;  %v2077_v60 = vpop.f32.mrf.mxu1 }
 0x2aa   : > { %v3140_v1 = vpack.c.bf16 %v3108_v34, %v3108_v34  ;;  %v3221_v38 = vsel %vm297_vm2, %v3108_v34, 0.0  ;;  %v3275_v39 = vmul.f32 %v3108_v34, %v3108_v34  ;;  %v2440_v6 = vadd.f32 %v2408_v33, %v2359_v37  ;;  %v2126_v34 = vld [vmem:[#allocation3 + $0xd0] sm:$0xff] }
 0x2ab   : > { %v3222_v9 = vadd.f32 %v3221_v38, %v3220_v43  ;;  %v2155_v41 = vadd.f32 %v2123_v40, %v2077_v60 }
 0x2ac   : > { %3173 = vst.msk [vmem:[%s4483_s17 + $0x44] sm:$0xf] %vm3155_vm4, %v3140_v1  ;;  %v3323_v14 = vsel %vm297_vm2, %v3275_v39, 0.0  ;;  %v2693_v45 = vld [vmem:[#allocation3 + $0xa0] sm:$0xff]  ;;  %v2934_v20 = vpop.f32.mrf.mxu0 }
 0x2ad   : > { %v3324_v48 = vadd.f32 %v3323_v14, %v3322_v46  ;;  %v2725_v47 = vadd.f32 %v2693_v45, %v2643_v26  ;;  %2472 = vst.msk [vmem:[#allocation3 + $0xa8] sm:$0xff] %vm297_vm2, %v2440_v6  ;;  %v2978_v30 = vld [vmem:[#allocation3 + $0x98] sm:$0xff]  ;;  %v2645_v49 = vpop.f32.mrf.mxu3 }
 0x2ae   : > { %v3010_v50 = vadd.f32 %v2978_v30, %v4681_v54  ;;  %2187 = vst.msk [vmem:[#allocation3 + $0xb8] sm:$0xff] %vm297_vm2, %v2155_v41  ;;  %v2409_v22 = vld [vmem:[#allocation3 + $0xb0] sm:$0xff] }
 0x2af   : > { %v3073_v51 = vld [vmem:[#allocation3 + $0x90] sm:$0xff]  ;;  %2757 = vst.msk [vmem:[#allocation3 + $0xa0] sm:$0xff] %vm297_vm2, %v2725_v47 }
 0x2b0   : > { %v3109_v53 = vadd.f32 %v4721_v52, %v3073_v51  ;;  %3042 = vst.msk [vmem:[#allocation3 + $0x98] sm:$0xff] %vm297_vm2, %v3010_v50 }
 0x2b1   : > { %v2362_v55 = vpop.f32.mrf.mxu2  ;;  %v2080_v44 = vpop.f32.mrf.mxu1 }
 0x2b2   : > { %v3141_v57 = vpack.c.bf16 %v3109_v53, %v3109_v53  ;;  %v3223_v54 = vsel %vm297_vm2, %v3109_v53, 0.0  ;;  %v3276_v58 = vmul.f32 %v3109_v53, %v3109_v53  ;;  %v2441_v59 = vadd.f32 %v2409_v22, %v2362_v55  ;;  %v2127_v55 = vld [vmem:[#allocation3 + $0xd8] sm:$0xff] }
 0x2b3   : > { %v3224_v2 = vadd.f32 %v3223_v54, %v3222_v9  ;;  %v2156_v36 = vadd.f32 %v2124_v62, %v2080_v44 }
 0x2b4   : > { %3174 = vst.msk [vmem:[%s4483_s17 + $0x48] sm:$0xf] %vm3155_vm4, %v3141_v57  ;;  %v3325_v23 = vsel %vm297_vm2, %v3276_v58, 0.0  ;;  %v2694_v3 = vld [vmem:[#allocation3 + $0xa8] sm:$0xff]  ;;  %v2936_v63 = vpop.f32.mrf.mxu0 }
 0x2b5   : > { %v3326_v15 = vadd.f32 %v3325_v23, %v3324_v48  ;;  %v2726_v32 = vadd.f32 %v2694_v3, %v2645_v49  ;;  %2473 = vst.msk [vmem:[#allocation3 + $0xb0] sm:$0xff] %vm297_vm2, %v2441_v59  ;;  %v2648_v7 = vpop.f32.mrf.mxu3  ;;  %v2410_v8 = vld [vmem:[#allocation3 + $0xb8] sm:$0xff] }
 0x2b6   : > { %v2979_v0 = vld [vmem:[#allocation3 + $0xa0] sm:$0xff]  ;;  %2188 = vst.msk [vmem:[#allocation3 + $0xc0] sm:$0xff] %vm297_vm2, %v2156_v36 }
 0x2b7   : > { %v3074_v4 = vld [vmem:[#allocation3 + $0x98] sm:$0xff]  ;;  %2758 = vst.msk [vmem:[#allocation3 + $0xa8] sm:$0xff] %vm297_vm2, %v2726_v32  ;;  %v3011_v5 = vadd.f32 %v2979_v0, %v4696_v12  ;;  %v2128_v0 = vld [vmem:[#allocation3 + $0xe0] sm:$0xff] }
 0x2b8   : > { %v3110_v10 = vadd.f32 %v4721_v52, %v3074_v4 }
 0x2b9   : > { %3043 = vst.msk [vmem:[#allocation3 + $0xa0] sm:$0xff] %vm297_vm2, %v3011_v5  ;;  %v2364_v29 = vpop.f32.mrf.mxu2  ;;  %v2082_v11 = vpop.f32.mrf.mxu1 }
 0x2ba   : > { %v3142_v28 = vpack.c.bf16 %v3110_v10, %v3110_v10  ;;  %v3225_v13 = vsel %vm297_vm2, %v3110_v10, 0.0  ;;  %v3277_v35 = vmul.f32 %v3110_v10, %v3110_v10  ;;  %v2442_v17 = vadd.f32 %v2410_v8, %v2364_v29 }
 0x2bb   : > { %v3226_v19 = vadd.f32 %v3225_v13, %v3224_v2  ;;  %v2157_v21 = vadd.f32 %v2125_v18, %v2082_v11 }
 0x2bc   : > { %3175 = vst.msk [vmem:[%s4483_s17 + $0x4c] sm:$0xf] %vm3155_vm4, %v3142_v28  ;;  %v3327_v16 = vsel %vm297_vm2, %v3277_v35, 0.0  ;;  %v2695_v12 = vld [vmem:[#allocation3 + $0xb0] sm:$0xff]  ;;  %v2939_v49 = vpop.f32.mrf.mxu0 }
 0x2bd   : > { %v3328_v43 = vadd.f32 %v3327_v16, %v3326_v15  ;;  %v2727_v56 = vadd.f32 %v2695_v12, %v2648_v7  ;;  %2474 = vst.msk [vmem:[#allocation3 + $0xb8] sm:$0xff] %vm297_vm2, %v2442_v17  ;;  %v2650_v24 = vpop.f32.mrf.mxu3  ;;  %v2411_v61 = vld [vmem:[#allocation3 + $0xc0] sm:$0xff]  ;;  %v2129_v16 = vld [vmem:[#allocation3 + $0xe8] sm:$0xff] }
 0x2be   : > { %v2980_v25 = vld [vmem:[#allocation3 + $0xa8] sm:$0xff]  ;;  %2189 = vst.msk [vmem:[#allocation3 + $0xc8] sm:$0xff] %vm297_vm2, %v2157_v21 }
 0x2bf   : > { %2759 = vst.msk [vmem:[#allocation3 + $0xb0] sm:$0xff] %vm297_vm2, %v2727_v56  ;;  %v3012_v46 = vadd.f32 %v2980_v25, %v4709_v42 }
 0x2c0   : > { %v3075_v26 = vld [vmem:[#allocation3 + $0xa0] sm:$0xff] }
 0x2c1   : > { %v3111_v27 = vadd.f32 %v4721_v52, %v3075_v26  ;;  %3044 = vst.msk [vmem:[#allocation3 + $0xa8] sm:$0xff] %vm297_vm2, %v3012_v46  ;;  %v2367_v31 = vpop.f32.mrf.mxu2  ;;  %v2085_v33 = vpop.f32.mrf.mxu1 }
 0x2c2   : > { %v2443_v37 = vadd.f32 %v2411_v61, %v2367_v31  ;;  %v2158_v60 = vadd.f32 %v2126_v34, %v2085_v33 }
 0x2c3   : > { %v3143_v1 = vpack.c.bf16 %v3111_v27, %v3111_v27  ;;  %v3227_v38 = vsel %vm297_vm2, %v3111_v27, 0.0  ;;  %v3278_v39 = vmul.f32 %v3111_v27, %v3111_v27 }
 0x2c4   : > { %v4746_v6 = vadd.f32 %v3227_v38, %v3226_v19  ;;  %v2696_v40 = vld [vmem:[#allocation3 + $0xb8] sm:$0xff]  ;;  %2475 = vst.msk [vmem:[#allocation3 + $0xc0] sm:$0xff] %vm297_vm2, %v2443_v37  ;;  %v2941_v7 = vpop.f32.mrf.mxu0 }
 0x2c5   : > { %3176 = vst.msk [vmem:[%s4483_s17 + $0x50] sm:$0xf] %vm3155_vm4, %v3143_v1  ;;  %v3329_v42 = vsel %vm297_vm2, %v3278_v39, 0.0  ;;  %v2728_v9 = vadd.f32 %v2696_v40, %v2650_v24  ;;  %v2653_v41 = vpop.f32.mrf.mxu3  ;;  %v2412_v47 = vld [vmem:[#allocation3 + $0xc8] sm:$0xff]  ;;  %v2130_v1 = vld [vmem:[#allocation3 + $0xf0] sm:$0xff] }
 0x2c6   : > { %v4752_v14 = vadd.f32 %v3329_v42, %v3328_v43  ;;  %v2981_v45 = vld [vmem:[#allocation3 + $0xb0] sm:$0xff]  ;;  %2190 = vst.msk [vmem:[#allocation3 + $0xd0] sm:$0xff] %vm297_vm2, %v2158_v60 }
 0x2c7   : > { %2760 = vst.msk [vmem:[#allocation3 + $0xb8] sm:$0xff] %vm297_vm2, %v2728_v9  ;;  %v3013_v48 = vadd.f32 %v2981_v45, %v2934_v20 }
 0x2c8   : > { %v3076_v30 = vld [vmem:[#allocation3 + $0xa8] sm:$0xff] }
 0x2c9   : > { %v4757_v50 = vadd.f32 %v4721_v52, %v3076_v30  ;;  %3045 = vst.msk [vmem:[#allocation3 + $0xb0] sm:$0xff] %vm297_vm2, %v3013_v48  ;;  %v2369_v51 = vpop.f32.mrf.mxu2  ;;  %v2087_v22 = vpop.f32.mrf.mxu1 }
 0x2ca   : > { %v2444_v53 = vadd.f32 %v2412_v47, %v2369_v51  ;;  %v2159_v54 = vadd.f32 %v2127_v55, %v2087_v22  ;;  %v2131_v55 = vld [vmem:[#allocation3 + $0xf8] sm:$0xff] }
 0x2cb   : > { %v3144_v44 = vpack.c.bf16 %v4757_v50, %v4757_v50  ;;  %v2697_v57 = vld [vmem:[#allocation3 + $0xc0] sm:$0xff] }
 0x2cc   : > { %v2729_v58 = vadd.f32 %v2697_v57, %v2653_v41  ;;  %2476 = vst.msk [vmem:[#allocation3 + $0xc8] sm:$0xff] %vm297_vm2, %v2444_v53  ;;  %v2944_v25 = vpop.f32.mrf.mxu0 }
 0x2cd   : > { %3177 = vst.msk [vmem:[%s4483_s17 + $0x54] sm:$0xf] %vm3155_vm4, %v3144_v44  ;;  %v2655_v59 = vpop.f32.mrf.mxu3  ;;  %v2413_v36 = vld [vmem:[#allocation3 + $0xd0] sm:$0xff] }
 0x2ce   : > { %2761 = vst.msk [vmem:[#allocation3 + $0xc0] sm:$0xff] %vm297_vm2, %v2729_v58  ;;  %v2982_v62 = vld [vmem:[#allocation3 + $0xb8] sm:$0xff] }
 0x2cf   : > { %v3014_v2 = vadd.f32 %v2982_v62, %v2936_v63  ;;  %2191 = vst.msk [vmem:[#allocation3 + $0xd8] sm:$0xff] %vm297_vm2, %v2159_v54 }
 0x2d0   : > { %v3077_v23 = vld [vmem:[#allocation3 + $0xb0] sm:$0xff] }
 0x2d1   : > { %v4768_v3 = vadd.f32 %v4721_v52, %v3077_v23  ;;  %3046 = vst.msk [vmem:[#allocation3 + $0xb8] sm:$0xff] %vm297_vm2, %v3014_v2  ;;  %v2372_v20 = vpop.f32.mrf.mxu2  ;;  %v2090_v15 = vpop.f32.mrf.mxu1 }
 0x2d2   : > { %v2445_v32 = vadd.f32 %v2413_v36, %v2372_v20  ;;  %v2160_v8 = vadd.f32 %v2128_v0, %v2090_v15 }
 0x2d3   : > { %v3145_v4 = vpack.c.bf16 %v4768_v3, %v4768_v3  ;;  %v2698_v5 = vld [vmem:[#allocation3 + $0xc8] sm:$0xff] }
 0x2d4   : > { %v2730_v10 = vadd.f32 %v2698_v5, %v2655_v59  ;;  %2477 = vst.msk [vmem:[#allocation3 + $0xd0] sm:$0xff] %vm297_vm2, %v2445_v32  ;;  %v2946_v45 = vpop.f32.mrf.mxu0 }
 0x2d5   : > { %3178 = vst.msk [vmem:[%s4483_s17 + $0x58] sm:$0xf] %vm3155_vm4, %v3145_v4  ;;  %v2983_v29 = vld [vmem:[#allocation3 + $0xc0] sm:$0xff]  ;;  %v2658_v11 = vpop.f32.mrf.mxu3 }
 0x2d6   : > { %2762 = vst.msk [vmem:[#allocation3 + $0xc8] sm:$0xff] %vm297_vm2, %v2730_v10  ;;  %v3015_v28 = vadd.f32 %v2983_v29, %v2939_v49  ;;  %v2414_v13 = vld [vmem:[#allocation3 + $0xd8] sm:$0xff] }
 0x2d7   : > { %2192 = vst.msk [vmem:[#allocation3 + $0xe0] sm:$0xff] %vm297_vm2, %v2160_v8 }
 0x2d8   : > { %v3078_v35 = vld [vmem:[#allocation3 + $0xb8] sm:$0xff]  ;;  %3047 = vst.msk [vmem:[#allocation3 + $0xc0] sm:$0xff] %vm297_vm2, %v3015_v28 }
 0x2d9   : > { %v4780_v17 = vadd.f32 %v4721_v52, %v3078_v35  ;;  %v2374_v18 = vpop.f32.mrf.mxu2  ;;  %v2092_v19 = vpop.f32.mrf.mxu1 }
 0x2da   : > { %v2446_v21 = vadd.f32 %v2414_v13, %v2374_v18  ;;  %v2161_v56 = vadd.f32 %v2129_v16, %v2092_v19 }
 0x2db   : > { %v3146_v12 = vpack.c.bf16 %v4780_v17, %v4780_v17  ;;  %v2699_v43 = vld [vmem:[#allocation3 + $0xd0] sm:$0xff] }
 0x2dc   : > { %v2731_v24 = vadd.f32 %v2699_v43, %v2658_v11  ;;  %2478 = vst.msk [vmem:[#allocation3 + $0xd8] sm:$0xff] %vm297_vm2, %v2446_v21  ;;  %v2949_v20 = vpop.f32.mrf.mxu0 }
 0x2dd   : > { %3179 = vst.msk [vmem:[%s4483_s17 + $0x5c] sm:$0xf] %vm3155_vm4, %v3146_v12  ;;  %v2984_v63 = vld [vmem:[#allocation3 + $0xc8] sm:$0xff]  ;;  %v2660_v46 = vpop.f32.mrf.mxu3 }
 0x2de   : > { %2763 = vst.msk [vmem:[#allocation3 + $0xd0] sm:$0xff] %vm297_vm2, %v2731_v24  ;;  %v3016_v61 = vadd.f32 %v2984_v63, %v2941_v7  ;;  %v2415_v27 = vld [vmem:[#allocation3 + $0xe0] sm:$0xff] }
 0x2df   : > { %v3079_v26 = vld [vmem:[#allocation3 + $0xc0] sm:$0xff]  ;;  %2193 = vst.msk [vmem:[#allocation3 + $0xe8] sm:$0xff] %vm297_vm2, %v2161_v56 }
 0x2e0   : > { %v4790_v31 = vadd.f32 %v4721_v52, %v3079_v26  ;;  %3048 = vst.msk [vmem:[#allocation3 + $0xc8] sm:$0xff] %vm297_vm2, %v3016_v61 }
 0x2e1   : > { %v2377_v33 = vpop.f32.mrf.mxu2  ;;  %v2095_v34 = vpop.f32.mrf.mxu1 }
 0x2e2   : > { %v3147_v37 = vpack.c.bf16 %v4790_v31, %v4790_v31  ;;  %v2447_v60 = vadd.f32 %v2415_v27, %v2377_v33  ;;  %v2162_v39 = vadd.f32 %v2130_v1, %v2095_v34  ;;  %v3229_v27 = vsel %vm297_vm2, %v4757_v50, 0.0 }
 0x2e3   : > { %v2700_v38 = vld [vmem:[#allocation3 + $0xd8] sm:$0xff]  ;;  %v3280_v33 = vmul.f32 %v4768_v3, %v4768_v3  ;;  %v3231_v1 = vsel %vm297_vm2, %v4768_v3, 0.0 }
 0x2e4   : > { %3180 = vst.msk [vmem:[%s4483_s17 + $0x60] sm:$0xf] %vm3155_vm4, %v3147_v37  ;;  %v2732_v40 = vadd.f32 %v2700_v38, %v2660_v46  ;;  %v2951_v19 = vpop.f32.mrf.mxu0  ;;  %v3281_v38 = vmul.f32 %v4780_v17, %v4780_v17 }
 0x2e5   : > { %2479 = vst.msk [vmem:[#allocation3 + $0xe0] sm:$0xff] %vm297_vm2, %v2447_v60  ;;  %v2985_v42 = vld [vmem:[#allocation3 + $0xd0] sm:$0xff]  ;;  %v2663_v41 = vpop.f32.mrf.mxu3 }
 0x2e6   : > { %2764 = vst.msk [vmem:[#allocation3 + $0xd8] sm:$0xff] %vm297_vm2, %v2732_v40  ;;  %v3017_v9 = vadd.f32 %v2985_v42, %v2944_v25  ;;  %v2416_v47 = vld [vmem:[#allocation3 + $0xe8] sm:$0xff]  ;;  %v3279_v25 = vmul.f32 %v4757_v50, %v4757_v50  ;;  %v3230_v50 = vadd.f32 %v3229_v27, %v4746_v6  ;;  %v3333_v42 = vsel %vm297_vm2, %v3280_v33, 0.0 }
 0x2e7   : > { %v3080_v48 = vld [vmem:[#allocation3 + $0xc8] sm:$0xff]  ;;  %2194 = vst.msk [vmem:[#allocation3 + $0xf0] sm:$0xff] %vm297_vm2, %v2162_v39  ;;  %v3235_v6 = vsel %vm297_vm2, %v4790_v31, 0.0 }
 0x2e8   : > { %v4801_v30 = vadd.f32 %v4721_v52, %v3080_v48  ;;  %3049 = vst.msk [vmem:[#allocation3 + $0xd0] sm:$0xff] %vm297_vm2, %v3017_v9  ;;  %v3331_v60 = vsel %vm297_vm2, %v3279_v25, 0.0  ;;  %v3233_v9 = vsel %vm297_vm2, %v4780_v17, 0.0  ;;  %v3232_v48 = vadd.f32 %v3231_v1, %v3230_v50 }
 0x2e9   : > { %v2379_v49 = vpop.f32.mrf.mxu2  ;;  %v2097_v51 = vpop.f32.mrf.mxu1 }
 0x2ea   : > { %v3148_v22 = vpack.c.bf16 %v4801_v30, %v4801_v30  ;;  %v2448_v53 = vadd.f32 %v2416_v47, %v2379_v49  ;;  %v2163_v44 = vadd.f32 %v2131_v55, %v2097_v51  ;;  %v3335_v47 = vsel %vm297_vm2, %v3281_v38, 0.0 }
 0x2eb   : > { %v3283_v49 = vmul.f32 %v4801_v30, %v4801_v30  ;;  %v3237_v55 = vsel %vm297_vm2, %v4801_v30, 0.0 }
 0x2ec   : > { %3181 = vst.msk [vmem:[%s4483_s17 + $0x64] sm:$0xf] %vm3155_vm4, %v3148_v22  ;;  %v2701_v57 = vld [vmem:[#allocation3 + $0xe0] sm:$0xff]  ;;  %v2954_v26 = vpop.f32.mrf.mxu0  ;;  %v3234_v22 = vadd.f32 %v3233_v9, %v3232_v48 }
 0x2ed   : > { %v2733_v54 = vadd.f32 %v2701_v57, %v2663_v41  ;;  %2480 = vst.msk [vmem:[#allocation3 + $0xe8] sm:$0xff] %vm297_vm2, %v2448_v53  ;;  %v2986_v58 = vld [vmem:[#allocation3 + $0xd8] sm:$0xff]  ;;  %v2665_v23 = vpop.f32.mrf.mxu3  ;;  %v3282_v41 = vmul.f32 %v4790_v31, %v4790_v31 }
 0x2ee   : > { %v3018_v59 = vadd.f32 %v2986_v58, %v2946_v45  ;;  %2195 = vst.msk [vmem:[#allocation3 + $0xf8] sm:$0xff] %vm297_vm2, %v2163_v44  ;;  %v2417_v2 = vld [vmem:[#allocation3 + $0xf0] sm:$0xff]  ;;  %v3332_v45 = vadd.f32 %v3331_v60, %v4752_v14  ;;  %v3236_v57 = vadd.f32 %v3235_v6, %v3234_v22  ;;  %v3339_v58 = vsel %vm297_vm2, %v3283_v49, 0.0 }
 0x2ef   : > { %v3081_v62 = vld [vmem:[#allocation3 + $0xd0] sm:$0xff]  ;;  %2765 = vst.msk [vmem:[#allocation3 + $0xe0] sm:$0xff] %vm297_vm2, %v2733_v54  ;;  %v3337_v53 = vsel %vm297_vm2, %v3282_v41, 0.0 }
 0x2f0   : > { %v4812_v36 = vadd.f32 %v4721_v52, %v3081_v62  ;;  %3050 = vst.msk [vmem:[#allocation3 + $0xd8] sm:$0xff] %vm297_vm2, %v3018_v59  ;;  %v3334_v17 = vadd.f32 %v3333_v42, %v3332_v45  ;;  %v3238_v30 = vadd.f32 %v3237_v55, %v3236_v57 }
 0x2f1   : > { %v2382_v15 = vpop.f32.mrf.mxu2 }
 0x2f2   : > { %v3149_v32 = vpack.c.bf16 %v4812_v36, %v4812_v36  ;;  %v2449_v7 = vadd.f32 %v2417_v2, %v2382_v15  ;;  %v3284_v14 = vmul.f32 %v4812_v36, %v4812_v36  ;;  %v3336_v44 = vadd.f32 %v3335_v47, %v3334_v17 }
 0x2f3   : > { %v3239_v59 = vsel %vm297_vm2, %v4812_v36, 0.0 }
 0x2f4   : > { %3182 = vst.msk [vmem:[%s4483_s17 + $0x68] sm:$0xf] %vm3155_vm4, %v3149_v32  ;;  %v2702_v0 = vld [vmem:[#allocation3 + $0xe8] sm:$0xff]  ;;  %v2956_v54 = vpop.f32.mrf.mxu0  ;;  %v3341_v15 = vsel %vm297_vm2, %v3284_v14, 0.0  ;;  %v3240_v36 = vadd.f32 %v3239_v59, %v3238_v30 }
 0x2f5   : > { %v2734_v4 = vadd.f32 %v2702_v0, %v2665_v23  ;;  %2481 = vst.msk [vmem:[#allocation3 + $0xf0] sm:$0xff] %vm297_vm2, %v2449_v7  ;;  %v2418_v29 = vld [vmem:[#allocation3 + $0xf8] sm:$0xff]  ;;  %v2668_v35 = vpop.f32.mrf.mxu3  ;;  %v3338_v23 = vadd.f32 %v3337_v53, %v3336_v44 }
 0x2f6   : > { %v2987_v5 = vld [vmem:[#allocation3 + $0xe0] sm:$0xff] }
 0x2f7   : > { %v3082_v8 = vld [vmem:[#allocation3 + $0xd8] sm:$0xff]  ;;  %2766 = vst.msk [vmem:[#allocation3 + $0xe8] sm:$0xff] %vm297_vm2, %v2734_v4  ;;  %v3019_v10 = vadd.f32 %v2987_v5, %v2949_v20  ;;  %v3340_v4 = vadd.f32 %v3339_v58, %v3338_v23 }
 0x2f8   : > { %v4822_v11 = vadd.f32 %v4721_v52, %v3082_v8 }
 0x2f9   : > { %3051 = vst.msk [vmem:[#allocation3 + $0xe0] sm:$0xff] %vm297_vm2, %v3019_v10  ;;  %v2384_v28 = vpop.f32.mrf.mxu2 }
 0x2fa   : > { %v3150_v13 = vpack.c.bf16 %v4822_v11, %v4822_v11  ;;  %v2450_v18 = vadd.f32 %v2418_v29, %v2384_v28  ;;  %v3285_v62 = vmul.f32 %v4822_v11, %v4822_v11  ;;  %v3241_v32 = vsel %vm297_vm2, %v4822_v11, 0.0 }
 0x2fb   : > { %v3342_v28 = vadd.f32 %v3341_v15, %v3340_v4 }
 0x2fc   : > { %3183 = vst.msk [vmem:[%s4483_s17 + $0x6c] sm:$0xf] %vm3155_vm4, %v3150_v13  ;;  %v2703_v21 = vld [vmem:[#allocation3 + $0xf0] sm:$0xff]  ;;  %v3343_v5 = vsel %vm297_vm2, %v3285_v62, 0.0  ;;  %v3242_v13 = vadd.f32 %v3241_v32, %v3240_v36 }
 0x2fd   : > { %v2735_v16 = vadd.f32 %v2703_v21, %v2668_v35  ;;  %2482 = vst.msk [vmem:[#allocation3 + $0xf8] sm:$0xff] %vm297_vm2, %v2450_v18  ;;  %v2670_v46 = vpop.f32.mrf.mxu3 }
 0x2fe   : > { %v2988_v12 = vld [vmem:[#allocation3 + $0xe8] sm:$0xff] }
 0x2ff   : > { %2767 = vst.msk [vmem:[#allocation3 + $0xf0] sm:$0xff] %vm297_vm2, %v2735_v16  ;;  %v3020_v43 = vadd.f32 %v2988_v12, %v2951_v19  ;;  %v3344_v19 = vadd.f32 %v3343_v5, %v3342_v28 }
 0x300   : > { %v3083_v56 = vld [vmem:[#allocation3 + $0xe0] sm:$0xff] }
 0x301   : > { %v3119_v24 = vadd.f32 %v4721_v52, %v3083_v56  ;;  %3052 = vst.msk [vmem:[#allocation3 + $0xe8] sm:$0xff] %vm297_vm2, %v3020_v43 }
 0x303   : > { %v3151_v63 = vpack.c.bf16 %v3119_v24, %v3119_v24  ;;  %v3286_v7 = vmul.f32 %v3119_v24, %v3119_v24  ;;  %v3243_v8 = vsel %vm297_vm2, %v3119_v24, 0.0 }
 0x304   : > { %v2704_v61 = vld [vmem:[#allocation3 + $0xf8] sm:$0xff]  ;;  %v3244_v21 = vadd.f32 %v3243_v8, %v3242_v13 }
 0x305   : > { %3184 = vst.msk [vmem:[%s4483_s17 + $0x70] sm:$0xf] %vm3155_vm4, %v3151_v63  ;;  %v2736_v34 = vadd.f32 %v2704_v61, %v2670_v46  ;;  %v3345_v35 = vsel %vm297_vm2, %v3286_v7, 0.0 }
 0x306   : > { %v2989_v37 = vld [vmem:[#allocation3 + $0xf0] sm:$0xff]  ;;  %v3346_v43 = vadd.f32 %v3345_v35, %v3344_v19 }
 0x307   : > { %2768 = vst.msk [vmem:[#allocation3 + $0xf8] sm:$0xff] %vm297_vm2, %v2736_v34  ;;  %v3021_v39 = vadd.f32 %v2989_v37, %v2954_v26 }
 0x308   : > { %v3084_v40 = vld [vmem:[#allocation3 + $0xe8] sm:$0xff] }
 0x309   : > { %v3120_v3 = vadd.f32 %v4721_v52, %v3084_v40  ;;  %3053 = vst.msk [vmem:[#allocation3 + $0xf0] sm:$0xff] %vm297_vm2, %v3021_v39 }
 0x30b   : > { %v3152_v51 = vpack.c.bf16 %v3120_v3, %v3120_v3  ;;  %v3287_v10 = vmul.f32 %v3120_v3, %v3120_v3  ;;  %v3245_v18 = vsel %vm297_vm2, %v3120_v3, 0.0 }
 0x30c   : > { %v3246_v56 = vadd.f32 %v3245_v18, %v3244_v21 }
 0x30d   : > { %3185 = vst.msk [vmem:[%s4483_s17 + $0x74] sm:$0xf] %vm3155_vm4, %v3152_v51  ;;  %v3347_v16 = vsel %vm297_vm2, %v3287_v10, 0.0 }
 0x30e   : > { %v2990_v31 = vld [vmem:[#allocation3 + $0xf8] sm:$0xff]  ;;  %v3348_v46 = vadd.f32 %v3347_v16, %v3346_v43 }
 0x30f   : > { %v3022_v2 = vadd.f32 %v2990_v31, %v2956_v54 }
 0x310   : > { %v3085_v20 = vld [vmem:[#allocation3 + $0xf0] sm:$0xff] }
 0x311   : > { %v3121_v0 = vadd.f32 %v4721_v52, %v3085_v20  ;;  %3054 = vst.msk [vmem:[#allocation3 + $0xf8] sm:$0xff] %vm297_vm2, %v3022_v2 }
 0x313   : > { %v3153_v29 = vpack.c.bf16 %v3121_v0, %v3121_v0  ;;  %v3288_v11 = vmul.f32 %v3121_v0, %v3121_v0  ;;  %v3247_v12 = vsel %vm297_vm2, %v3121_v0, 0.0 }
 0x314   : > { %v3248_v61 = vadd.f32 %v3247_v12, %v3246_v56 }
 0x315   : > { %3186 = vst.msk [vmem:[%s4483_s17 + $0x78] sm:$0xf] %vm3155_vm4, %v3153_v29  ;;  %v3349_v25 = vsel %vm297_vm2, %v3288_v11, 0.0 }
 0x316   : > { %v3350_v34 = vadd.f32 %v3349_v25, %v3348_v46 }
 0x318   : > { %v3086_v24 = vld [vmem:[#allocation3 + $0xf8] sm:$0xff] }
 0x319   : > { %v3122_v63 = vadd.f32 %v4721_v52, %v3086_v24 }
 0x31b   : > { %v3154_v26 = vpack.c.bf16 %v3122_v63, %v3122_v63  ;;  %v3249_v27 = vsel %vm297_vm2, %v3122_v63, 0.0  ;;  %v3289_v33 = vmul.f32 %v3122_v63, %v3122_v63 }
 0x31c   : > { %v3250_v37 = vadd.f32 %v3249_v27, %v3248_v61 }
 0x31d   : > { %3187 = vst.msk [vmem:[%s4483_s17 + $0x7c] sm:$0xf] %vm3155_vm4, %v3154_v26  ;;  %v3351_v60 = vsel %vm297_vm2, %v3289_v33, 0.0 }
 0x31e   : > { %v3251_v1 = vrot.slane %v3250_v37, 4  ;;  %v3352_v38 = vadd.f32 %v3351_v60, %v3350_v34 }
 0x320   : > { %v3252_v39 = vadd.f32 %v3251_v1, %v3250_v37  ;;  %v3353_v50 = vrot.slane %v3352_v38, 4 }
 0x322   : > { %v3253_v40 = vrot.slane %v3252_v39, 2  ;;  %v3354_v52 = vadd.f32 %v3353_v50, %v3352_v38 }
 0x324   : > { %v3254_v42 = vadd.f32 %v3253_v40, %v3252_v39  ;;  %v3355_v9 = vrot.slane %v3354_v52, 2 }
 0x326   : > { %v3255_v41 = vrot.slane %v3254_v42, 1  ;;  %v3356_v3 = vadd.f32 %v3355_v9, %v3354_v52 }
 0x328   : > { %v3256_v45 = vadd.f32 %v3255_v41, %v3254_v42  ;;  %v3357_v48 = vrot.slane %v3356_v3, 1 }
 0x32a   : > { %3257 = vst.msk [vmem:[%s292_s21] sm:$0x1] %vm306_vm1, %v3256_v45  ;;  %v3358_v47 = vadd.f32 %v3357_v48, %v3356_v3 }
 0x32c   : > { %3359 = vst.msk [vmem:[%s295_s26] sm:$0x1] %vm306_vm1, %v3358_v47 }
 0x32d PF: > { %s18_s24 = sadd.s32 1, %s3733_s24  }
 0x32e   : > { %p15_p4 = scmp.ge.s32.totalorder %s18_s24, 4  }
 0x330   :  { %17 = sbr.rel (!%p15_p4) target bundleno = 1 (0x1), region = 105 }

// kernel: decoder_block_forward.2
= control target key start
LH: loop header
LB: loop body
LE: loop exit
PB: predicated region body
PF: predicated region fallthrough
CT: control target
= control target key end

     0   :  { %s6814_s27 = smov 0   ;;  %s9315_s0 = inlined_call_operand.vmem [shape: bf16[2,8,8,16], index: 0, kind: input, shape index: {}]   ;;  %s9316_s1 = inlined_call_operand.vmem [shape: bf16[2,16,16,8], index: 1, kind: input, shape index: {}]   ;;  %s9317_s2 = inlined_call_operand.vmem [shape: bf16[4,16,8], index: 2, kind: input, shape index: {}]   ;;  %s9318_s3 = inlined_call_operand.vmem [shape: f32[1,8], index: 3, kind: input, shape index: {}]   ;;  %s9319_s4 = inlined_call_operand.vmem [shape: bf16[18,8,8], index: 4, kind: input, shape index: {}]   ;;  %s9320_s5 = inlined_call_operand.vmem [shape: f32[1,8], index: 5, kind: input, shape index: {}]   ;;  %s9321_s6 = inlined_call_operand.vmem [shape: bf16[2,16,16,8], index: 6, kind: output, shape index: {0}]   ;;  %s9322_s7 = inlined_call_operand.vmem [shape: f32[2,1,8], index: 7, kind: output, shape index: {1}]   ;;  %s9323_s8 = inlined_call_operand.vmem [shape: f32[2,1,8], index: 8, kind: output, shape index: {2}]  }
   0x1 LB: > { %s6216_s28 = sadd.s32 4294967295, %s6766_s27   ;;  %p6220_p0 = scmp.ge.s32.totalorder %s6766_s27, 1  ;;  %s6766_s27 = sphi %s6814_s27, %s19_s27  }
   0x2   : > { %p277_p1 = scmp.lt.s32.totalorder %s6766_s27, 3 }
   0x4   : > { %p278_p2 = pnand %p6220_p0, %p277_p1 }
   0x5   : > { %p322_p3 = scmp.lt.s32.totalorder (!%p278_p2), %s6216_s28, 1 }
   0x6   : > { %281 = sbr.rel (%p278_p2) target bundleno = 1750 (0x6d6), region = 44 }
   0xb   : > { %v6664_v0 = vld [vmem:[%s9317_s2 + $0x8] sm:$0xff]  ;;  %v6663_v1 = vld [vmem:[%s9317_s2] sm:$0xff]  ;;  %s9325_s28 = smov (!%p322_p3, %s6216_s28), 1  ;;  %vm470_vm0 = vcmask 130048   ;;  %v6666_v4 = vld [vmem:[%s9317_s2 + $0x18] sm:$0xff]  ;;  %v661_v8 = vlaneseq  ;;  %vm344_vm1 = vcmask 64512  }
   0xc   : > { %539 = vmatpush.bf16.msra.mxu1 %v6664_v0  ;;  %490 = vmatpush.bf16.msra.mxu0 %v6663_v1  ;;  %s6656_s11 = sshll.u32 %s9325_s28, 5  ;;  %v6665_v5 = vld [vmem:[%s9317_s2 + $0x10] sm:$0xff]  ;;  %v6768_v10 = vmov 0.0   ;;  %v6878_v14 = vld [vmem:[%s9318_s3] ss:$0 sm:$0xff]  ;;  %vm353_vm6 = vcmask 57344   ;;  %s339_s12 = scalar_lea.vmem %s9322_s7, %s9325_s28 }
   0xd   : > { %s326_s14 = scalar_lea.vmem %s9315_s0, %s6656_s11  ;;  %631 = vmatpush.bf16.msra.mxu3 %v6666_v4  ;;  %585 = vmatpush.bf16.msra.mxu2 %v6665_v5  ;;  %v665_v9 = vand.u32 127, %v661_v8  ;;  %345 = vst.msk [vmem:[#allocation2] sm:$0xff] %vm344_vm1, %v6768_v10  ;;  %v662_v12 = vshrl.u32 %v661_v8, 7  ;;  %vm1720_vm7 = vcmask 1043456   ;;  %s6657_s25 = sshll.u32 %s9325_s28, 7  ;;  %vm347_vm8 = vcmask 58368  }
   0xe   : > { %v6659_v2 = vld [vmem:[%s326_s14] sm:$0xff]  ;;  %v6660_v3 = vld [vmem:[%s326_s14 + $0x8] sm:$0xff]  ;;  %v6661_v6 = vld [vmem:[%s326_s14 + $0x10] sm:$0xff]  ;;  %346 = vst.msk [vmem:[#allocation2 + $0x8] sm:$0xff] %vm344_vm1, %v6768_v10  ;;  %s7230_s30 = scalar_lea.vmem %s9316_s1, %s6657_s25  ;;  %s8923_s29 = scalar_lea.vmem %s9321_s6, %s6657_s25  ;;  %vm5894_vm9 = vcmask 60416  }
   0xf   : > { %6257 = vmatmul.msk.bf16.vlgmr.msra.gmra.mxu1 %vm470_vm0, %v6659_v2  ;;  %6247 = vmatmul.msk.bf16.vlgmr.msra.gmra.mxu0 %vm470_vm0, %v6659_v2  ;;  %v6662_v7 = vld [vmem:[%s326_s14 + $0x18] sm:$0xff]  ;;  %v6860_v11 = vmul.u32 2, %v665_v9  ;;  %350 = vst.msk [vmem:[#allocation2 + $0x198] sm:$0xff] %vm344_vm1, %v6768_v10  ;;  %v6884_v19 = vadd.s32 8, %v662_v12 }
  0x10   : > { %6277 = vmatmul.msk.bf16.vlgmr.msra.gmra.mxu3 %vm470_vm0, %v6659_v2  ;;  %6267 = vmatmul.msk.bf16.vlgmr.msra.gmra.mxu2 %vm470_vm0, %v6659_v2  ;;  %351 = vst.msk [vmem:[#allocation2 + $0x1a0] sm:$0xff] %vm344_vm1, %v6768_v10 }
  0x11   : > { %390 = vst.msk [vmem:[#allocation3] sm:$0xff] %vm344_vm1, %v6768_v10  ;;  %v673_v13 = vadd.s32 1, %v6860_v11  ;;  %vm667_vm4 = vcmp.eq.s32.totalorder %v662_v12, %v6860_v11  ;;  %vm668_vm5 = vcmp.eq.s32.totalorder %v6884_v19, %v6860_v11 }
  0x12   : > { %391 = vst.msk [vmem:[#allocation3 + $0x8] sm:$0xff] %vm344_vm1, %v6768_v10  ;;  %v6925_v47 = vsel %vm667_vm4, 1.0, %v6768_v10  ;;  %v6939_v54 = vsel %vm668_vm5, 1.0, %v6768_v10 }
  0x13   : > { %394 = vst.msk [vmem:[#allocation3 + $0x198] sm:$0xff] %vm344_vm1, %v6768_v10  ;;  %vm674_vm2 = vcmp.eq.s32.totalorder %v662_v12, %v673_v13  ;;  %vm675_vm3 = vcmp.eq.s32.totalorder %v6884_v19, %v673_v13 }
  0x14   : > { %395 = vst.msk [vmem:[#allocation3 + $0x1a0] sm:$0xff] %vm344_vm1, %v6768_v10  ;;  %v6882_v18 = vsel %vm674_vm2, 1.0, %v6768_v10  ;;  %v6891_v23 = vsel %vm675_vm3, 1.0, %v6768_v10 }
  0x15   : > { %397 = vst.msk [vmem:[#allocation3] sm:$0x1] %vm353_vm6, %v6768_v10 }
  0x16   : > { %354 = vst.msk [vmem:[#allocation2] sm:$0x1] %vm353_vm6, %v6768_v10 }
  0x17   : > { %355 = vst.msk [vmem:[#allocation2 + $0x18] sm:$0x1] %vm353_vm6, %v6768_v10 }
  0x18   : > { %356 = vst.msk [vmem:[#allocation2 + $0x30] sm:$0x1] %vm353_vm6, %v6768_v10 }
  0x19   : > { %357 = vst.msk [vmem:[#allocation2 + $0x48] sm:$0x1] %vm353_vm6, %v6768_v10 }
  0x1a   : > { %358 = vst.msk [vmem:[#allocation2 + $0x60] sm:$0x1] %vm353_vm6, %v6768_v10 }
  0x1b   : > { %359 = vst.msk [vmem:[#allocation2 + $0x78] sm:$0x1] %vm353_vm6, %v6768_v10 }
  0x1c   : > { %360 = vst.msk [vmem:[#allocation2 + $0x90] sm:$0x1] %vm353_vm6, %v6768_v10 }
  0x1d   : > { %361 = vst.msk [vmem:[#allocation2 + $0xa8] sm:$0x1] %vm353_vm6, %v6768_v10 }
  0x1e   : > { %362 = vst.msk [vmem:[#allocation2 + $0xc0] sm:$0x1] %vm353_vm6, %v6768_v10 }
  0x1f   : > { %6258 = vmatmul.msk.bf16.gmra.mxu1 %vm470_vm0, %v6660_v3  ;;  %6248 = vmatmul.msk.bf16.gmra.mxu0 %vm470_vm0, %v6660_v3  ;;  %363 = vst.msk [vmem:[#allocation2 + $0xd8] sm:$0x1] %vm353_vm6, %v6768_v10 }
  0x20   : > { %6278 = vmatmul.msk.bf16.gmra.mxu3 %vm470_vm0, %v6660_v3  ;;  %6268 = vmatmul.msk.bf16.gmra.mxu2 %vm470_vm0, %v6660_v3  ;;  %364 = vst.msk [vmem:[#allocation2 + $0xf0] sm:$0x1] %vm353_vm6, %v6768_v10 }
  0x21   : > { %365 = vst.msk [vmem:[#allocation2 + $0x108] sm:$0x1] %vm353_vm6, %v6768_v10 }
  0x22   : > { %366 = vst.msk [vmem:[#allocation2 + $0x120] sm:$0x1] %vm353_vm6, %v6768_v10 }
  0x23   : > { %367 = vst.msk [vmem:[#allocation2 + $0x138] sm:$0x1] %vm353_vm6, %v6768_v10 }
  0x24   : > { %368 = vst.msk [vmem:[#allocation2 + $0x150] sm:$0x1] %vm353_vm6, %v6768_v10 }
  0x25   : > { %369 = vst.msk [vmem:[#allocation2 + $0x168] sm:$0x1] %vm353_vm6, %v6768_v10 }
  0x26   : > { %370 = vst.msk [vmem:[#allocation2 + $0x180] sm:$0x1] %vm353_vm6, %v6768_v10 }
  0x27   : > { %371 = vst.msk [vmem:[#allocation2 + $0x198] sm:$0x1] %vm353_vm6, %v6768_v10 }
  0x28   : > { %373 = vst.msk [vmem:[#allocation2 + $0x29] sm:$0x1] %vm353_vm6, %v6768_v10 }
  0x29   : > { %374 = vst.msk [vmem:[#allocation2 + $0x41] sm:$0x1] %vm353_vm6, %v6768_v10 }
  0x2a   : > { %375 = vst.msk [vmem:[#allocation2 + $0x59] sm:$0x1] %vm353_vm6, %v6768_v10 }
  0x2b   : > { %376 = vst.msk [vmem:[#allocation2 + $0x71] sm:$0x1] %vm353_vm6, %v6768_v10 }
  0x2c   : > { %377 = vst.msk [vmem:[#allocation2 + $0x89] sm:$0x1] %vm353_vm6, %v6768_v10 }
  0x2d   : > { %378 = vst.msk [vmem:[#allocation2 + $0xa1] sm:$0x1] %vm353_vm6, %v6768_v10 }
  0x2e   : > { %379 = vst.msk [vmem:[#allocation2 + $0xb9] sm:$0x1] %vm353_vm6, %v6768_v10 }
  0x2f   : > { %6259 = vmatmul.msk.bf16.gmra.mxu1 %vm470_vm0, %v6661_v6  ;;  %6249 = vmatmul.msk.bf16.gmra.mxu0 %vm470_vm0, %v6661_v6  ;;  %380 = vst.msk [vmem:[#allocation2 + $0xd1] sm:$0x1] %vm353_vm6, %v6768_v10 }
  0x30   : > { %6279 = vmatmul.msk.bf16.gmra.mxu3 %vm470_vm0, %v6661_v6  ;;  %6269 = vmatmul.msk.bf16.gmra.mxu2 %vm470_vm0, %v6661_v6  ;;  %381 = vst.msk [vmem:[#allocation2 + $0xe9] sm:$0x1] %vm353_vm6, %v6768_v10 }
  0x31   : > { %382 = vst.msk [vmem:[#allocation2 + $0x101] sm:$0x1] %vm353_vm6, %v6768_v10 }
  0x32   : > { %383 = vst.msk [vmem:[#allocation2 + $0x119] sm:$0x1] %vm353_vm6, %v6768_v10 }
  0x33   : > { %384 = vst.msk [vmem:[#allocation2 + $0x131] sm:$0x1] %vm353_vm6, %v6768_v10 }
  0x34   : > { %385 = vst.msk [vmem:[#allocation2 + $0x149] sm:$0x1] %vm353_vm6, %v6768_v10 }
  0x35   : > { %386 = vst.msk [vmem:[#allocation2 + $0x161] sm:$0x1] %vm353_vm6, %v6768_v10 }
  0x36   : > { %387 = vst.msk [vmem:[#allocation2 + $0x179] sm:$0x1] %vm353_vm6, %v6768_v10 }
  0x37   : > { %388 = vst.msk [vmem:[#allocation2 + $0x191] sm:$0x1] %vm353_vm6, %v6768_v10 }
  0x38   : > { %398 = vst.msk [vmem:[#allocation3 + $0x18] sm:$0x1] %vm353_vm6, %v6768_v10 }
  0x39   : > { %399 = vst.msk [vmem:[#allocation3 + $0x30] sm:$0x1] %vm353_vm6, %v6768_v10 }
  0x3a   : > { %400 = vst.msk [vmem:[#allocation3 + $0x48] sm:$0x1] %vm353_vm6, %v6768_v10 }
  0x3b   : > { %401 = vst.msk [vmem:[#allocation3 + $0x60] sm:$0x1] %vm353_vm6, %v6768_v10 }
  0x3c   : > { %402 = vst.msk [vmem:[#allocation3 + $0x78] sm:$0x1] %vm353_vm6, %v6768_v10 }
  0x3d   : > { %403 = vst.msk [vmem:[#allocation3 + $0x90] sm:$0x1] %vm353_vm6, %v6768_v10 }
  0x3e   : > { %404 = vst.msk [vmem:[#allocation3 + $0xa8] sm:$0x1] %vm353_vm6, %v6768_v10 }
  0x3f   : > { %6260 = vmatmul.msk.bf16.gmra.mxu1 %vm470_vm0, %v6662_v7  ;;  %6250 = vmatmul.msk.bf16.gmra.mxu0 %vm470_vm0, %v6662_v7  ;;  %405 = vst.msk [vmem:[#allocation3 + $0xc0] sm:$0x1] %vm353_vm6, %v6768_v10 }
  0x40   : > { %6280 = vmatmul.msk.bf16.gmra.mxu3 %vm470_vm0, %v6662_v7  ;;  %6270 = vmatmul.msk.bf16.gmra.mxu2 %vm470_vm0, %v6662_v7  ;;  %406 = vst.msk [vmem:[#allocation3 + $0xd8] sm:$0x1] %vm353_vm6, %v6768_v10 }
  0x41   : > { %407 = vst.msk [vmem:[#allocation3 + $0xf0] sm:$0x1] %vm353_vm6, %v6768_v10 }
  0x42   : > { %408 = vst.msk [vmem:[#allocation3 + $0x108] sm:$0x1] %vm353_vm6, %v6768_v10 }
  0x43   : > { %409 = vst.msk [vmem:[#allocation3 + $0x120] sm:$0x1] %vm353_vm6, %v6768_v10 }
  0x44   : > { %410 = vst.msk [vmem:[#allocation3 + $0x138] sm:$0x1] %vm353_vm6, %v6768_v10 }
  0x45   : > { %411 = vst.msk [vmem:[#allocation3 + $0x150] sm:$0x1] %vm353_vm6, %v6768_v10 }
  0x46   : > { %412 = vst.msk [vmem:[#allocation3 + $0x168] sm:$0x1] %vm353_vm6, %v6768_v10 }
  0x47   : > { %413 = vst.msk [vmem:[#allocation3 + $0x180] sm:$0x1] %vm353_vm6, %v6768_v10 }
  0x48   : > { %414 = vst.msk [vmem:[#allocation3 + $0x198] sm:$0x1] %vm353_vm6, %v6768_v10 }
  0x49   : > { %416 = vst.msk [vmem:[#allocation3 + $0x29] sm:$0x1] %vm353_vm6, %v6768_v10 }
  0x4a   : > { %417 = vst.msk [vmem:[#allocation3 + $0x41] sm:$0x1] %vm353_vm6, %v6768_v10 }
  0x4b   : > { %418 = vst.msk [vmem:[#allocation3 + $0x59] sm:$0x1] %vm353_vm6, %v6768_v10 }
  0x4c   : > { %419 = vst.msk [vmem:[#allocation3 + $0x71] sm:$0x1] %vm353_vm6, %v6768_v10 }
  0x4d   : > { %420 = vst.msk [vmem:[#allocation3 + $0x89] sm:$0x1] %vm353_vm6, %v6768_v10 }
  0x4e   : > { %421 = vst.msk [vmem:[#allocation3 + $0xa1] sm:$0x1] %vm353_vm6, %v6768_v10 }
  0x4f   : > { %422 = vst.msk [vmem:[#allocation3 + $0xb9] sm:$0x1] %vm353_vm6, %v6768_v10 }
  0x50   : > { %423 = vst.msk [vmem:[#allocation3 + $0xd1] sm:$0x1] %vm353_vm6, %v6768_v10 }
  0x51   : > { %424 = vst.msk [vmem:[#allocation3 + $0xe9] sm:$0x1] %vm353_vm6, %v6768_v10 }
  0x52   : > { %425 = vst.msk [vmem:[#allocation3 + $0x101] sm:$0x1] %vm353_vm6, %v6768_v10 }
  0x53   : > { %426 = vst.msk [vmem:[#allocation3 + $0x119] sm:$0x1] %vm353_vm6, %v6768_v10 }
  0x54   : > { %427 = vst.msk [vmem:[#allocation3 + $0x131] sm:$0x1] %vm353_vm6, %v6768_v10 }
  0x55   : > { %428 = vst.msk [vmem:[#allocation3 + $0x149] sm:$0x1] %vm353_vm6, %v6768_v10 }
  0x56   : > { %429 = vst.msk [vmem:[#allocation3 + $0x161] sm:$0x1] %vm353_vm6, %v6768_v10 }
  0x57   : > { %430 = vst.msk [vmem:[#allocation3 + $0x179] sm:$0x1] %vm353_vm6, %v6768_v10 }
  0x58   : > { %431 = vst.msk [vmem:[#allocation3 + $0x191] sm:$0x1] %vm353_vm6, %v6768_v10 }
  0x59   : > { %392 = vst.msk [vmem:[#allocation3 + $0x10] sm:$0x3] %vm347_vm8, %v6768_v10 }
  0x5a   : > { %415 = vst.msk [vmem:[#allocation3 + $0x11] sm:$0x1] %vm353_vm6, %v6768_v10 }
  0x5b   : > { %348 = vst.msk [vmem:[#allocation2 + $0x10] sm:$0x3] %vm347_vm8, %v6768_v10 }
  0x5c   : > { %352 = vst.msk [vmem:[#allocation2 + $0x1a8] sm:$0x3] %vm347_vm8, %v6768_v10 }
  0x5d   : > { %396 = vst.msk [vmem:[#allocation3 + $0x1a8] sm:$0x3] %vm347_vm8, %v6768_v10 }
  0x5e   : > { %372 = vst.msk [vmem:[#allocation2 + $0x11] sm:$0x1] %vm353_vm6, %v6768_v10 }
  0x5f   : > { %389 = vst.msk [vmem:[#allocation2 + $0x1a9] sm:$0x1] %vm353_vm6, %v6768_v10 }
  0x60   : > { %432 = vst.msk [vmem:[#allocation3 + $0x1a9] sm:$0x1] %vm353_vm6, %v6768_v10 }
  0x8c   : > { %v541_v15 = vpop.f32.mrf.mxu1  ;;  %v492_v16 = vpop.f32.mrf.mxu0 }
  0x8d   : > { %v561_v17 = vadd.f32 %v6878_v14, %v541_v15  ;;  %v515_v33 = vadd.f32 %v6878_v14, %v492_v16 }
  0x8f   : > { %701 = vmatpush.msrb.mxu0 %v561_v17 }
  0x90   : > { %6285 = vmatmul.msk.f32.vlgmr.msrb.gmra.mxu0 %vm344_vm1, %v6882_v18 }
  0x93   : > { %v633_v30 = vpop.f32.mrf.mxu3  ;;  %v587_v60 = vpop.f32.mrf.mxu2 }
  0x94   : > { %v543_v20 = vpop.f32.mrf.mxu1  ;;  %v494_v21 = vpop.f32.mrf.mxu0  ;;  %v653_v48 = vadd.f32 %v6878_v14, %v633_v30  ;;  %v607_v3 = vadd.f32 %v6878_v14, %v587_v60  ;;  %v1573_v30 = vld [vmem:[#allocation2] sm:$0xff] }
  0x95   : > { %v562_v22 = vadd.f32 %v6878_v14, %v543_v20  ;;  %v516_v41 = vadd.f32 %v6878_v14, %v494_v21 }
  0x97   : > { %724 = vmatpush.msrb.mxu1 %v562_v22 }
  0x98   : > { %6286 = vmatmul.msk.f32.gmra.mxu0 %vm344_vm1, %v6891_v23  ;;  %6287 = vmatmul.msk.f32.vlgmr.msrb.gmra.mxu1 %vm344_vm1, %v6882_v18 }
  0x9b   : > { %v635_v35 = vpop.f32.mrf.mxu3  ;;  %v589_v0 = vpop.f32.mrf.mxu2 }
  0x9c   : > { %v546_v24 = vpop.f32.mrf.mxu1  ;;  %v497_v25 = vpop.f32.mrf.mxu0  ;;  %v654_v56 = vadd.f32 %v6878_v14, %v635_v35  ;;  %v608_v9 = vadd.f32 %v6878_v14, %v589_v0 }
  0x9d   : > { %v563_v26 = vadd.f32 %v6878_v14, %v546_v24  ;;  %v517_v43 = vadd.f32 %v6878_v14, %v497_v25 }
  0x9f   : > { %747 = vmatpush.msrb.mxu2 %v563_v26  ;;  %v1621_v26 = vld [vmem:[#allocation3] sm:$0xff] }
  0xa0   : > { %6288 = vmatmul.msk.f32.gmra.mxu1 %vm344_vm1, %v6891_v23  ;;  %6289 = vmatmul.msk.f32.vlgmr.msrb.gmra.mxu2 %vm344_vm1, %v6882_v18 }
  0xa3   : > { %v638_v40 = vpop.f32.mrf.mxu3  ;;  %v592_v4 = vpop.f32.mrf.mxu2 }
  0xa4   : > { %v548_v27 = vpop.f32.mrf.mxu1  ;;  %v499_v28 = vpop.f32.mrf.mxu0  ;;  %v655_v62 = vadd.f32 %v6878_v14, %v638_v40  ;;  %v609_v12 = vadd.f32 %v6878_v14, %v592_v4 }
  0xa5   : > { %v564_v29 = vadd.f32 %v6878_v14, %v548_v27  ;;  %v518_v58 = vadd.f32 %v6878_v14, %v499_v28  ;;  %v1622_v27 = vld [vmem:[#allocation3 + $0x8] sm:$0xff] }
  0xa6   : > { %v1653_v28 = vpack.c.bf16 %v1622_v27, %v1621_v26 }
  0xa7   : > { %770 = vmatpush.msrb.mxu3 %v564_v29 }
  0xa8   : > { %6291 = vmatmul.msk.f32.vlgmr.msrb.gmra.mxu3 %vm344_vm1, %v6882_v18  ;;  %6290 = vmatmul.msk.f32.gmra.mxu2 %vm344_vm1, %v6891_v23 }
  0xab   : > { %v640_v49 = vpop.f32.mrf.mxu3  ;;  %v594_v8 = vpop.f32.mrf.mxu2 }
  0xac   : > { %v551_v31 = vpop.f32.mrf.mxu1  ;;  %v502_v32 = vpop.f32.mrf.mxu0  ;;  %v656_v63 = vadd.f32 %v6878_v14, %v640_v49  ;;  %v610_v15 = vadd.f32 %v6878_v14, %v594_v8 }
  0xad   : > { %v565_v34 = vadd.f32 %v6878_v14, %v551_v31  ;;  %v519_v36 = vadd.f32 %v6878_v14, %v502_v32  ;;  %v1574_v31 = vld [vmem:[#allocation2 + $0x8] sm:$0xff] }
  0xaf   : > { %793 = vmatpush.msra.mxu0 %v565_v34 }
  0xb0   : > { %6293 = vmatmul.msk.f32.vlgmr.msra.gmra.mxu0 %vm344_vm1, %v6882_v18  ;;  %6292 = vmatmul.msk.f32.gmra.mxu3 %vm344_vm1, %v6891_v23 }
  0xb1   : > { %891 = vmatpush.msrb.mxu0 %v515_v33  ;;  %v1605_v33 = vpack.c.bf16 %v1574_v31, %v1573_v30 }
  0xb3   : > { %983 = vmatpush.msra.mxu0 %v519_v36  ;;  %v643_v55 = vpop.f32.mrf.mxu3  ;;  %v597_v11 = vpop.f32.mrf.mxu2 }
  0xb4   : > { %v553_v37 = vpop.f32.mrf.mxu1  ;;  %v504_v38 = vpop.f32.mrf.mxu0  ;;  %v657_v59 = vadd.f32 %v6878_v14, %v643_v55  ;;  %v611_v13 = vadd.f32 %v6878_v14, %v597_v11 }
  0xb5   : > { %v566_v39 = vadd.f32 %v6878_v14, %v553_v37  ;;  %v520_v42 = vadd.f32 %v6878_v14, %v504_v38 }
  0xb7   : > { %816 = vmatpush.msra.mxu1 %v566_v39 }
  0xb8   : > { %6294 = vmatmul.msk.f32.gmra.mxu0 %vm344_vm1, %v6891_v23  ;;  %6295 = vmatmul.msk.f32.vlgmr.msra.gmra.mxu1 %vm344_vm1, %v6882_v18 }
  0xb9   : > { %914 = vmatpush.msrb.mxu1 %v516_v41 }
  0xbb   : > { %1006 = vmatpush.msra.mxu1 %v520_v42  ;;  %v645_v61 = vpop.f32.mrf.mxu3  ;;  %v599_v16 = vpop.f32.mrf.mxu2 }
  0xbc   : > { %v556_v44 = vpop.f32.mrf.mxu1  ;;  %v507_v45 = vpop.f32.mrf.mxu0  ;;  %v658_v1 = vadd.f32 %v6878_v14, %v645_v61  ;;  %v612_v17 = vadd.f32 %v6878_v14, %v599_v16 }
  0xbd   : > { %v567_v46 = vadd.f32 %v6878_v14, %v556_v44  ;;  %v521_v50 = vadd.f32 %v6878_v14, %v507_v45 }
  0xbf   : > { %839 = vmatpush.msra.mxu2 %v567_v46 }
  0xc0   : > { %6301 = vmatmul.msk.f32.vlgmr.msrb.gmra.mxu0 %vm344_vm1, %v6925_v47  ;;  %6296 = vmatmul.msk.f32.gmra.mxu1 %vm344_vm1, %v6891_v23 }
  0xc1   : > { %937 = vmatpush.msrb.mxu2 %v517_v43  ;;  %1075 = vmatpush.msrb.mxu0 %v653_v48 }
  0xc2   : > { %6297 = vmatmul.msk.f32.vlgmr.msra.gmra.mxu2 %vm344_vm1, %v6882_v18 }
  0xc3   : > { %1029 = vmatpush.msra.mxu2 %v521_v50  ;;  %v648_v2 = vpop.f32.mrf.mxu3  ;;  %v602_v19 = vpop.f32.mrf.mxu2 }
  0xc4   : > { %v558_v51 = vpop.f32.mrf.mxu1  ;;  %v509_v52 = vpop.f32.mrf.mxu0  ;;  %v659_v5 = vadd.f32 %v6878_v14, %v648_v2  ;;  %v613_v20 = vadd.f32 %v6878_v14, %v602_v19 }
  0xc5   : > { %v568_v53 = vadd.f32 %v6878_v14, %v558_v51  ;;  %v522_v57 = vadd.f32 %v6878_v14, %v509_v52 }
  0xc7   : > { %862 = vmatpush.msra.mxu3 %v568_v53 }
  0xc8   : > { %6299 = vmatmul.msk.f32.vlgmr.msra.gmra.mxu3 %vm344_vm1, %v6882_v18  ;;  %6302 = vmatmul.msk.f32.gmra.mxu0 %vm344_vm1, %v6939_v54 }
  0xc9   : > { %960 = vmatpush.msrb.mxu3 %v518_v58  ;;  %6303 = vmatmul.msk.f32.vlgmr.msrb.gmra.mxu1 %vm344_vm1, %v6925_v47 }
  0xca   : > { %1098 = vmatpush.msrb.mxu1 %v654_v56  ;;  %6298 = vmatmul.msk.f32.gmra.mxu2 %vm344_vm1, %v6891_v23 }
  0xcb   : > { %1052 = vmatpush.msra.mxu3 %v522_v57  ;;  %v650_v6 = vpop.f32.mrf.mxu3  ;;  %v604_v21 = vpop.f32.mrf.mxu2 }
  0xcc   : > { %v660_v7 = vadd.f32 %v6878_v14, %v650_v6  ;;  %v614_v22 = vadd.f32 %v6878_v14, %v604_v21 }
  0xd0   : > { %6300 = vmatmul.msk.f32.gmra.mxu3 %vm344_vm1, %v6891_v23  ;;  %6309 = vmatmul.msk.f32.vlgmr.msra.gmra.mxu0 %vm344_vm1, %v6925_v47 }
  0xd1   : > { %6304 = vmatmul.msk.f32.gmra.mxu1 %vm344_vm1, %v6939_v54  ;;  %1167 = vmatpush.msra.mxu0 %v657_v59 }
  0xd2   : > { %6305 = vmatmul.msk.f32.vlgmr.msrb.gmra.mxu2 %vm344_vm1, %v6925_v47 }
  0xd3   : > { %1121 = vmatpush.msrb.mxu2 %v655_v62 }
  0xd8   : > { %6307 = vmatmul.msk.f32.vlgmr.msrb.gmra.mxu3 %vm344_vm1, %v6925_v47  ;;  %6310 = vmatmul.msk.f32.gmra.mxu0 %vm344_vm1, %v6939_v54 }
  0xd9   : > { %6311 = vmatmul.msk.f32.vlgmr.msra.gmra.mxu1 %vm344_vm1, %v6925_v47  ;;  %1144 = vmatpush.msrb.mxu3 %v656_v63 }
  0xda   : > { %1190 = vmatpush.msra.mxu1 %v658_v1  ;;  %6306 = vmatmul.msk.f32.gmra.mxu2 %vm344_vm1, %v6939_v54 }
  0xe0   : > { %6308 = vmatmul.msk.f32.gmra.mxu3 %vm344_vm1, %v6939_v54  ;;  %6317 = vmatmul.msk.f32.vlgmr.msrb.gmra.mxu0 %vm344_vm1, %v6882_v18 }
  0xe1   : > { %6312 = vmatmul.msk.f32.gmra.mxu1 %vm344_vm1, %v6939_v54  ;;  %1259 = vmatpush.msrb.mxu0 %v607_v3 }
  0xe2   : > { %6313 = vmatmul.msk.f32.vlgmr.msra.gmra.mxu2 %vm344_vm1, %v6925_v47 }
  0xe3   : > { %1213 = vmatpush.msra.mxu2 %v659_v5  ;;  %v6668_v5 = vld [vmem:[%s7230_s30] sm:$0xff]  }
  0xe8   : > { %6315 = vmatmul.msk.f32.vlgmr.msra.gmra.mxu3 %vm344_vm1, %v6925_v47  ;;  %6318 = vmatmul.msk.f32.gmra.mxu0 %vm344_vm1, %v6891_v23 }
  0xe9   : > { %6319 = vmatmul.msk.f32.vlgmr.msrb.gmra.mxu1 %vm344_vm1, %v6882_v18  ;;  %1236 = vmatpush.msra.mxu3 %v660_v7 }
  0xea   : > { %1282 = vmatpush.msrb.mxu1 %v608_v9  ;;  %6314 = vmatmul.msk.f32.gmra.mxu2 %vm344_vm1, %v6939_v54 }
  0xf0   : > { %6316 = vmatmul.msk.f32.gmra.mxu3 %vm344_vm1, %v6939_v54  ;;  %6325 = vmatmul.msk.f32.vlgmr.msra.gmra.mxu0 %vm344_vm1, %v6882_v18 }
  0xf1   : > { %6320 = vmatmul.msk.f32.gmra.mxu1 %vm344_vm1, %v6891_v23  ;;  %1351 = vmatpush.msra.mxu0 %v611_v13 }
  0xf2   : > { %6321 = vmatmul.msk.f32.vlgmr.msrb.gmra.mxu2 %vm344_vm1, %v6882_v18 }
  0xf3   : > { %1305 = vmatpush.msrb.mxu2 %v609_v12  ;;  %v6669_v12 = vunpack.c.l.bf16 %v6668_v5 }
  0xf5   : > { %1541 = vst.msk [vmem:[#allocation3 + $0x19] sm:$0xff] %vm344_vm1, %v6669_v12  ;;  %v6738_v12 = vld [vmem:[%s7230_s30 + $0x40] sm:$0xff]  }
  0xf8   : > { %6323 = vmatmul.msk.f32.vlgmr.msrb.gmra.mxu3 %vm344_vm1, %v6882_v18  ;;  %6326 = vmatmul.msk.f32.gmra.mxu0 %vm344_vm1, %v6891_v23 }
  0xf9   : > { %6327 = vmatmul.msk.f32.vlgmr.msra.gmra.mxu1 %vm344_vm1, %v6882_v18  ;;  %1328 = vmatpush.msrb.mxu3 %v610_v15  ;;  %v6670_v15 = vunpack.c.h.bf16 %v6668_v5 }
  0xfa   : > { %1374 = vmatpush.msra.mxu1 %v612_v17  ;;  %6322 = vmatmul.msk.f32.gmra.mxu2 %vm344_vm1, %v6891_v23 }
  0xfb   : > { %1542 = vst.msk [vmem:[#allocation3 + $0x21] sm:$0xff] %vm344_vm1, %v6670_v15  ;;  %v6702_v15 = vunpack.c.h.bf16 %v6738_v12 }
  0xfc   : > { %v1623_v26 = vld [vmem:[#allocation3 + $0x18] sm:$0xff] }
  0xfd   : > { %1558 = vst.msk [vmem:[#allocation3 + $0xe1] sm:$0xff] %vm344_vm1, %v6702_v15 }
 0x100   : > { %6324 = vmatmul.msk.f32.gmra.mxu3 %vm344_vm1, %v6891_v23  ;;  %6333 = vmatmul.msk.f32.vlgmr.msrb.gmra.mxu0 %vm344_vm1, %v6925_v47 }
 0x101   : > { %6328 = vmatmul.msk.f32.gmra.mxu1 %vm344_vm1, %v6891_v23 }
 0x102   : > { %6329 = vmatmul.msk.f32.vlgmr.msra.gmra.mxu2 %vm344_vm1, %v6882_v18  ;;  %v1624_v27 = vld [vmem:[#allocation3 + $0x20] sm:$0xff] }
 0x103   : > { %1397 = vmatpush.msra.mxu2 %v613_v20  ;;  %v6731_v20 = vld [vmem:[%s7230_s30 + $0x8] sm:$0xff]  }
 0x108   : > { %6331 = vmatmul.msk.f32.vlgmr.msra.gmra.mxu3 %vm344_vm1, %v6882_v18  ;;  %6334 = vmatmul.msk.f32.gmra.mxu0 %vm344_vm1, %v6939_v54  ;;  %v6349_v18 = vld [vmem:[%s9319_s4 + $0x4] sm:$0xf] }
 0x109   : > { %6335 = vmatmul.msk.f32.vlgmr.msrb.gmra.mxu1 %vm344_vm1, %v6925_v47  ;;  %1420 = vmatpush.msra.mxu3 %v614_v22  ;;  %v1722_v24 = vsel %vm1720_vm7, %v6349_v18, 0  ;;  %v6673_v22 = vunpack.c.l.bf16 %v6731_v20 }
 0x10a   : > { %6330 = vmatmul.msk.f32.gmra.mxu2 %vm344_vm1, %v6891_v23  ;;  %1731 = vmatpush.bf16.msrb.mxu0 %v1722_v24 }
 0x10b   : > { %1543 = vst.msk [vmem:[#allocation3 + $0x31] sm:$0xff] %vm344_vm1, %v6673_v22 }
 0x10d   : > { %v7042_v14 = vpop.f32.mrf.mxu0 }
 0x110   : > { %6332 = vmatmul.msk.f32.gmra.mxu3 %vm344_vm1, %v6891_v23  ;;  %6341 = vmatmul.msk.f32.vlgmr.msra.gmra.mxu0 %vm344_vm1, %v6925_v47  ;;  %v1669_v23 = vld [vmem:[%s9319_s4] sm:$0xf] }
 0x111   : > { %6336 = vmatmul.msk.f32.gmra.mxu1 %vm344_vm1, %v6939_v54  ;;  %v1862_v25 = vsel %vm1720_vm7, %v1669_v23, 0 }
 0x112   : > { %6337 = vmatmul.msk.f32.vlgmr.msrb.gmra.mxu2 %vm344_vm1, %v6925_v47  ;;  %1871 = vmatpush.bf16.msrb.mxu1 %v1862_v25 }
 0x113   : > { %6746 = vmatpush.bf16.msrb.mxu2 %v1722_v24 }
 0x115   : > { %v7076_v29 = vpop.f32.mrf.mxu1  ;;  %v706_v32 = vpop.f32.mrf.mxu0 }
 0x118   : > { %6339 = vmatmul.msk.f32.vlgmr.msrb.gmra.mxu3 %vm344_vm1, %v6925_v47  ;;  %6342 = vmatmul.msk.f32.gmra.mxu0 %vm344_vm1, %v6939_v54 }
 0x119   : > { %6343 = vmatmul.msk.f32.vlgmr.msra.gmra.mxu1 %vm344_vm1, %v6925_v47  ;;  %6747 = vmatpush.bf16.msrb.mxu3 %v1862_v25 }
 0x11a   : > { %6338 = vmatmul.msk.f32.gmra.mxu2 %vm344_vm1, %v6939_v54 }
 0x11d   : > { %v729_v34 = vpop.f32.mrf.mxu1 }
 0x120   : > { %6340 = vmatmul.msk.f32.gmra.mxu3 %vm344_vm1, %v6939_v54  ;;  %6350 = vmatmul.msk.bf16.vlgmr.msrb.gmra.mxu0 %vm344_vm1, %v1653_v28  ;;  %v1654_v28 = vpack.c.bf16 %v1624_v27, %v1623_v26 }
 0x121   : > { %6344 = vmatmul.msk.f32.gmra.mxu1 %vm344_vm1, %v6939_v54 }
 0x122   : > { %6345 = vmatmul.msk.f32.vlgmr.msra.gmra.mxu2 %vm344_vm1, %v6925_v47 }
 0x123   : > { %v7149_v42 = vpop.f32.mrf.mxu2 }
 0x128   : > { %6347 = vmatmul.msk.f32.vlgmr.msra.gmra.mxu3 %vm344_vm1, %v6925_v47 }
 0x129   : > { %6366 = vmatmul.msk.bf16.vlgmr.msrb.gmra.mxu1 %vm344_vm1, %v1605_v33 }
 0x12a   : > { %6346 = vmatmul.msk.f32.gmra.mxu2 %vm344_vm1, %v6939_v54 }
 0x12b   : > { %v7130_v38 = vpop.f32.mrf.mxu3  ;;  %v7168_v47 = vpop.f32.mrf.mxu2 }
 0x12d   : > { %v795_v35 = vpop.f32.mrf.mxu0 }
 0x130   : > { %6348 = vmatmul.msk.f32.gmra.mxu3 %vm344_vm1, %v6939_v54  ;;  %6351 = vmatmul.msk.bf16.gmra.mxu0 %vm344_vm1, %v1654_v28  ;;  %v6734_v28 = vld [vmem:[%s7230_s30 + $0x20] sm:$0xff]  }
 0x133   : > { %v7156_v43 = vpop.f32.mrf.mxu3 }
 0x135   : > { %v798_v36 = vpop.f32.mrf.mxu0  ;;  %v818_v37 = vpop.f32.mrf.mxu1 }
 0x13d   : > { %v893_v39 = vpop.f32.mrf.mxu0  ;;  %v7147_v41 = vpop.f32.mrf.mxu1 }
 0x13e   : > { %v894_v40 = vadd.f32 %v893_v39, %v7042_v14  ;;  %v6674_v14 = vunpack.c.h.bf16 %v6731_v20 }
 0x140   : > { %1429 = vst.msk [vmem:[#allocation2 + $0x19] sm:$0xff] %vm344_vm1, %v894_v40 }
 0x141   : > { %1544 = vst.msk [vmem:[#allocation3 + $0x39] sm:$0xff] %vm344_vm1, %v6674_v14 }
 0x145   : > { %v896_v44 = vpop.f32.mrf.mxu0  ;;  %v7187_v53 = vpop.f32.mrf.mxu2 }
 0x146   : > { %v897_v45 = vadd.f32 %v896_v44, %v706_v32  ;;  %v916_v46 = vpop.f32.mrf.mxu1 }
 0x147   : > { %v917_v48 = vadd.f32 %v916_v46, %v7076_v29  ;;  %v1575_v55 = vld [vmem:[#allocation2 + $0x18] sm:$0xff] }
 0x148   : > { %1430 = vst.msk [vmem:[#allocation2 + $0x21] sm:$0xff] %vm344_vm1, %v897_v45 }
 0x149   : > { %1435 = vst.msk [vmem:[#allocation2 + $0x49] sm:$0xff] %vm344_vm1, %v917_v48 }
 0x14b   : > { %v7179_v49 = vpop.f32.mrf.mxu3 }
 0x14d   : > { %v985_v50 = vpop.f32.mrf.mxu0  ;;  %v7208_v62 = vpop.f32.mrf.mxu2 }
 0x14e   : > { %v986_v51 = vadd.f32 %v985_v50, %v795_v35  ;;  %v919_v52 = vpop.f32.mrf.mxu1 }
 0x14f   : > { %v920_v54 = vadd.f32 %v919_v52, %v729_v34  ;;  %v1576_v56 = vld [vmem:[#allocation2 + $0x20] sm:$0xff] }
 0x150   : > { %1453 = vst.msk [vmem:[#allocation2 + $0xd9] sm:$0xff] %vm344_vm1, %v986_v51  ;;  %v1606_v57 = vpack.c.bf16 %v1576_v56, %v1575_v55  ;;  %v6737_v51 = vld [vmem:[%s7230_s30 + $0x38] sm:$0xff]  }
 0x151   : > { %1436 = vst.msk [vmem:[#allocation2 + $0x51] sm:$0xff] %vm344_vm1, %v920_v54  ;;  %v6698_v54 = vunpack.c.h.bf16 %v6737_v51 }
 0x152   : > { %6367 = vmatmul.msk.bf16.gmra.mxu1 %vm344_vm1, %v1606_v57 }
 0x153   : > { %v7197_v58 = vpop.f32.mrf.mxu3  ;;  %1556 = vst.msk [vmem:[#allocation3 + $0xc9] sm:$0xff] %vm344_vm1, %v6698_v54 }
 0x155   : > { %v988_v59 = vpop.f32.mrf.mxu0  ;;  %v939_v4 = vpop.f32.mrf.mxu2 }
 0x156   : > { %v989_v60 = vadd.f32 %v988_v59, %v798_v36  ;;  %v1008_v61 = vpop.f32.mrf.mxu1  ;;  %v940_v9 = vadd.f32 %v939_v4, %v7149_v42  ;;  %v6732_v42 = vld [vmem:[%s7230_s30 + $0x10] sm:$0xff]  }
 0x157   : > { %v1009_v63 = vadd.f32 %v1008_v61, %v818_v37  ;;  %v1625_v37 = vld [vmem:[#allocation3 + $0x30] sm:$0xff]  ;;  %v6678_v44 = vunpack.c.h.bf16 %v6732_v42 }
 0x158   : > { %1454 = vst.msk [vmem:[#allocation2 + $0xe1] sm:$0xff] %vm344_vm1, %v989_v60  ;;  %v1580_v20 = vld [vmem:[#allocation2 + $0x50] sm:$0xff] }
 0x159   : > { %1459 = vst.msk [vmem:[#allocation2 + $0x109] sm:$0xff] %vm344_vm1, %v1009_v63 }
 0x15a   : > { %1441 = vst.msk [vmem:[#allocation2 + $0x79] sm:$0xff] %vm344_vm1, %v940_v9 }
 0x15b   : > { %v962_v0 = vpop.f32.mrf.mxu3  ;;  %1546 = vst.msk [vmem:[#allocation3 + $0x51] sm:$0xff] %vm344_vm1, %v6678_v44 }
 0x15c   : > { %v963_v1 = vadd.f32 %v962_v0, %v7130_v38  ;;  %v1626_v38 = vld [vmem:[#allocation3 + $0x38] sm:$0xff] }
 0x15d   : > { %v1077_v2 = vpop.f32.mrf.mxu0  ;;  %v942_v16 = vpop.f32.mrf.mxu2  ;;  %v1655_v45 = vpack.c.bf16 %v1626_v38, %v1625_v37 }
 0x15e   : > { %1447 = vst.msk [vmem:[#allocation2 + $0xa9] sm:$0xff] %vm344_vm1, %v963_v1  ;;  %v1011_v3 = vpop.f32.mrf.mxu1  ;;  %v943_v17 = vadd.f32 %v942_v16, %v7168_v47  ;;  %v6733_v1 = vld [vmem:[%s7230_s30 + $0x18] sm:$0xff]  }
 0x15f   : > { %v1012_v7 = vadd.f32 %v1011_v3, %v7147_v41  ;;  %6352 = vmatmul.msk.bf16.gmra.mxu0 %vm344_vm1, %v1655_v45  ;;  %v6681_v3 = vunpack.c.l.bf16 %v6733_v1  ;;  %v6682_v4 = vunpack.c.h.bf16 %v6733_v1 }
 0x160   : > { %1442 = vst.msk [vmem:[#allocation2 + $0x81] sm:$0xff] %vm344_vm1, %v943_v17 }
 0x161   : > { %1460 = vst.msk [vmem:[#allocation2 + $0x111] sm:$0xff] %vm344_vm1, %v1012_v7 }
 0x162   : > { %1547 = vst.msk [vmem:[#allocation3 + $0x61] sm:$0xff] %vm344_vm1, %v6681_v3 }
 0x163   : > { %v965_v6 = vpop.f32.mrf.mxu3  ;;  %1548 = vst.msk [vmem:[#allocation3 + $0x69] sm:$0xff] %vm344_vm1, %v6682_v4 }
 0x164   : > { %v966_v8 = vadd.f32 %v965_v6, %v7156_v43  ;;  %v6677_v43 = vunpack.c.l.bf16 %v6732_v42 }
 0x165   : > { %v1080_v11 = vpop.f32.mrf.mxu0  ;;  %v1031_v24 = vpop.f32.mrf.mxu2 }
 0x166   : > { %1448 = vst.msk [vmem:[#allocation2 + $0xb1] sm:$0xff] %vm344_vm1, %v966_v8  ;;  %v1100_v13 = vpop.f32.mrf.mxu1  ;;  %v1032_v25 = vadd.f32 %v1031_v24, %v7187_v53  ;;  %v6697_v53 = vunpack.c.l.bf16 %v6737_v51 }
 0x167   : > { %1545 = vst.msk [vmem:[#allocation3 + $0x49] sm:$0xff] %vm344_vm1, %v6677_v43 }
 0x168   : > { %1465 = vst.msk [vmem:[#allocation2 + $0x139] sm:$0xff] %vm344_vm1, %v1032_v25 }
 0x169   : > { %1555 = vst.msk [vmem:[#allocation3 + $0xc1] sm:$0xff] %vm344_vm1, %v6697_v53 }
 0x16a   : > { %v1630_v22 = vld [vmem:[#allocation3 + $0x68] sm:$0xff] }
 0x16b   : > { %v1054_v19 = vpop.f32.mrf.mxu3 }
 0x16c   : > { %v1055_v21 = vadd.f32 %v1054_v19, %v7179_v49  ;;  %v1579_v19 = vld [vmem:[#allocation2 + $0x48] sm:$0xff] }
 0x16d   : > { %v7259_v18 = vpop.f32.mrf.mxu0  ;;  %v1034_v33 = vpop.f32.mrf.mxu2  ;;  %v1608_v25 = vpack.c.bf16 %v1580_v20, %v1579_v19 }
 0x16e   : > { %1471 = vst.msk [vmem:[#allocation2 + $0x169] sm:$0xff] %vm344_vm1, %v1055_v21  ;;  %v1103_v23 = vpop.f32.mrf.mxu1  ;;  %v1035_v34 = vadd.f32 %v1034_v33, %v7208_v62  ;;  %v1627_v57 = vld [vmem:[#allocation3 + $0x48] sm:$0xff]  ;;  %v1629_v21 = vld [vmem:[#allocation3 + $0x60] sm:$0xff]  ;;  %v6686_v33 = vunpack.c.h.bf16 %v6734_v28 }
 0x16f   : > { %v1657_v26 = vpack.c.bf16 %v1630_v22, %v1629_v21 }
 0x170   : > { %1466 = vst.msk [vmem:[#allocation2 + $0x141] sm:$0xff] %vm344_vm1, %v1035_v34  ;;  %v1638_v5 = vld [vmem:[#allocation3 + $0xc8] sm:$0xff] }
 0x171   : > { %1550 = vst.msk [vmem:[#allocation3 + $0x81] sm:$0xff] %vm344_vm1, %v6686_v33 }
 0x173   : > { %v1057_v29 = vpop.f32.mrf.mxu3 }
 0x174   : > { %v1058_v30 = vadd.f32 %v1057_v29, %v7197_v58  ;;  %v1628_v58 = vld [vmem:[#allocation3 + $0x50] sm:$0xff] }
 0x175   : > { %v7268_v31 = vpop.f32.mrf.mxu0  ;;  %v7277_v41 = vpop.f32.mrf.mxu2  ;;  %v1656_v0 = vpack.c.bf16 %v1628_v58, %v1627_v57 }
 0x176   : > { %1472 = vst.msk [vmem:[#allocation2 + $0x171] sm:$0xff] %vm344_vm1, %v1058_v30  ;;  %v7271_v32 = vpop.f32.mrf.mxu1  ;;  %v6685_v30 = vunpack.c.l.bf16 %v6734_v28  ;;  %v6416_v28 = vld [vmem:[%s9319_s4 + $0x10] sm:$0xf] }
 0x177   : > { %6353 = vmatmul.msk.bf16.gmra.mxu0 %vm344_vm1, %v1656_v0  ;;  %v6740_v0 = vld [vmem:[%s7230_s30 + $0x50] sm:$0xff]   ;;  %v2750_v33 = vsel %vm1720_vm7, %v6416_v28, 0  ;;  %v2513_v28 = vld [vmem:[#allocation3 + $0x32] sm:$0xff] }
 0x178   : > { %1549 = vst.msk [vmem:[#allocation3 + $0x79] sm:$0xff] %vm344_vm1, %v6685_v30  ;;  %v6709_v4 = vunpack.c.l.bf16 %v6740_v0  ;;  %2759 = vmatpush.bf16.msra.mxu1 %v2750_v33 }
 0x17a   : > { %1561 = vst.msk [vmem:[#allocation3 + $0x109] sm:$0xff] %vm344_vm1, %v6709_v4 }
 0x17b   : > { %v1146_v35 = vpop.f32.mrf.mxu3 }
 0x17d   : > { %v1261_v36 = vpop.f32.mrf.mxu0  ;;  %v7286_v50 = vpop.f32.mrf.mxu2 }
 0x17e   : > { %v1262_v39 = vadd.f32 %v1261_v36, %v1077_v2  ;;  %v7275_v40 = vpop.f32.mrf.mxu1  ;;  %v1637_v2 = vld [vmem:[#allocation3 + $0xc0] sm:$0xff] }
 0x17f   : > { %v1661_v7 = vpack.c.bf16 %v1638_v5, %v1637_v2 }
 0x180   : > { %1432 = vst.msk [vmem:[#allocation2 + $0x31] sm:$0xff] %vm344_vm1, %v1262_v39 }
 0x181   : > { %6358 = vmatmul.msk.bf16.vlgmr.msrb.gmra.mxu2 %vm344_vm1, %v1661_v7 }
 0x183   : > { %v7283_v46 = vpop.f32.mrf.mxu3 }
 0x185   : > { %v1264_v47 = vpop.f32.mrf.mxu0  ;;  %v7295_v60 = vpop.f32.mrf.mxu2 }
 0x186   : > { %v1265_v48 = vadd.f32 %v1264_v47, %v1080_v11  ;;  %v1284_v49 = vpop.f32.mrf.mxu1 }
 0x187   : > { %v1285_v52 = vadd.f32 %v1284_v49, %v1100_v13  ;;  %v1577_v56 = vld [vmem:[#allocation2 + $0x30] sm:$0xff]  ;;  %v6701_v13 = vunpack.c.l.bf16 %v6738_v12  ;;  %6354 = vmatmul.msk.bf16.gmra.mxu0 %vm344_vm1, %v1657_v26  ;;  %v1584_v12 = vld [vmem:[#allocation2 + $0x80] sm:$0xff] }
 0x188   : > { %1433 = vst.msk [vmem:[#allocation2 + $0x39] sm:$0xff] %vm344_vm1, %v1265_v48  ;;  %v1631_v48 = vld [vmem:[#allocation3 + $0x78] sm:$0xff]  ;;  %v1632_v49 = vld [vmem:[#allocation3 + $0x80] sm:$0xff] }
 0x189   : > { %1438 = vst.msk [vmem:[#allocation2 + $0x61] sm:$0xff] %vm344_vm1, %v1285_v52  ;;  %v1658_v54 = vpack.c.bf16 %v1632_v49, %v1631_v48 }
 0x18a   : > { %1557 = vst.msk [vmem:[#allocation3 + $0xd9] sm:$0xff] %vm344_vm1, %v6701_v13 }
 0x18b   : > { %v7292_v55 = vpop.f32.mrf.mxu3 }
 0x18d   : > { %v1353_v8 = vpop.f32.mrf.mxu0  ;;  %v7306_v9 = vpop.f32.mrf.mxu2 }
 0x18e   : > { %v1287_v59 = vpop.f32.mrf.mxu1  ;;  %v1354_v11 = vadd.f32 %v1353_v8, %v7259_v18  ;;  %v1592_v8 = vld [vmem:[#allocation2 + $0xe0] sm:$0xff] }
 0x18f   : > { %v1578_v61 = vld [vmem:[#allocation2 + $0x38] sm:$0xff]  ;;  %v1288_v62 = vadd.f32 %v1287_v59, %v1103_v23 }
 0x190   : > { %v1607_v63 = vpack.c.bf16 %v1578_v61, %v1577_v56  ;;  %1456 = vst.msk [vmem:[#allocation2 + $0xf1] sm:$0xff] %vm344_vm1, %v1354_v11  ;;  %v1581_v43 = vld [vmem:[#allocation2 + $0x60] sm:$0xff]  ;;  %v6735_v56 = vld [vmem:[%s7230_s30 + $0x28] sm:$0xff]   ;;  %v1583_v11 = vld [vmem:[#allocation2 + $0x78] sm:$0xff] }
 0x191   : > { %1439 = vst.msk [vmem:[#allocation2 + $0x69] sm:$0xff] %vm344_vm1, %v1288_v62  ;;  %v1639_v27 = vld [vmem:[#allocation3 + $0xd8] sm:$0xff]  ;;  %v1640_v29 = vld [vmem:[#allocation3 + $0xe0] sm:$0xff]  ;;  %v6689_v58 = vunpack.c.l.bf16 %v6735_v56  ;;  %v6690_v59 = vunpack.c.h.bf16 %v6735_v56  ;;  %v1610_v21 = vpack.c.bf16 %v1584_v12, %v1583_v11 }
 0x192   : > { %6368 = vmatmul.msk.bf16.gmra.mxu1 %vm344_vm1, %v1607_v63  ;;  %v1662_v34 = vpack.c.bf16 %v1640_v29, %v1639_v27  ;;  %v6383_v62 = vld [vmem:[%s9319_s4 + $0xc] sm:$0xf]  ;;  %v6382_v63 = vld [vmem:[%s9319_s4 + $0x8] sm:$0xf]  ;;  %v6741_v29 = vld [vmem:[%s7230_s30 + $0x58] sm:$0xff]  }
 0x193   : > { %v7300_v6 = vpop.f32.mrf.mxu3  ;;  %1551 = vst.msk [vmem:[#allocation3 + $0x91] sm:$0xff] %vm344_vm1, %v6689_v58  ;;  %v2134_v2 = vsel %vm1720_vm7, %v6383_v62, 0  ;;  %v2274_v3 = vsel %vm1720_vm7, %v6382_v63, 0  ;;  %v1596_v58 = vld [vmem:[#allocation2 + $0x110] sm:$0xff] }
 0x194   : > { %6359 = vmatmul.msk.bf16.gmra.mxu2 %vm344_vm1, %v1662_v34  ;;  %1552 = vst.msk [vmem:[#allocation3 + $0x99] sm:$0xff] %vm344_vm1, %v6690_v59  ;;  %2283 = vmatpush.bf16.msra.mxu3 %v2274_v3  ;;  %v6713_v34 = vunpack.c.l.bf16 %v6741_v29  ;;  %v1588_v59 = vld [vmem:[#allocation2 + $0xb0] sm:$0xff] }
 0x195   : > { %v1356_v14 = vpop.f32.mrf.mxu0  ;;  %v1307_v18 = vpop.f32.mrf.mxu2  ;;  %2143 = vmatpush.bf16.msra.mxu2 %v2134_v2  ;;  %v2512_v11 = vld [vmem:[#allocation3 + $0x22] sm:$0xff] }
 0x196   : > { %v1357_v23 = vadd.f32 %v1356_v14, %v7268_v31  ;;  %v1308_v24 = vadd.f32 %v1307_v18, %v7277_v41  ;;  %v1376_v61 = vpop.f32.mrf.mxu1  ;;  %v6736_v14 = vld [vmem:[%s7230_s30 + $0x30] sm:$0xff]   ;;  %1563 = vst.msk [vmem:[#allocation3 + $0x121] sm:$0xff] %vm344_vm1, %v6713_v34 }
 0x197   : > { %6355 = vmatmul.msk.bf16.gmra.mxu0 %vm344_vm1, %v1658_v54 }
 0x198   : > { %1457 = vst.msk [vmem:[#allocation2 + $0xf9] sm:$0xff] %vm344_vm1, %v1357_v23  ;;  %v1582_v44 = vld [vmem:[#allocation2 + $0x68] sm:$0xff]  ;;  %v6693_v23 = vunpack.c.l.bf16 %v6736_v14 }
 0x199   : > { %1444 = vst.msk [vmem:[#allocation2 + $0x91] sm:$0xff] %vm344_vm1, %v1308_v24  ;;  %v1609_v52 = vpack.c.bf16 %v1582_v44, %v1581_v43  ;;  %v6694_v24 = vunpack.c.h.bf16 %v6736_v14 }
 0x19a   : > { %v1633_v13 = vld [vmem:[#allocation3 + $0x90] sm:$0xff]  ;;  %1553 = vst.msk [vmem:[#allocation3 + $0xa9] sm:$0xff] %vm344_vm1, %v6693_v23  ;;  %v1599_v23 = vld [vmem:[#allocation2 + $0x138] sm:$0xff] }
 0x19b   : > { %v1330_v16 = vpop.f32.mrf.mxu3  ;;  %v1634_v15 = vld [vmem:[#allocation3 + $0x98] sm:$0xff]  ;;  %1554 = vst.msk [vmem:[#allocation3 + $0xb1] sm:$0xff] %vm344_vm1, %v6694_v24  ;;  %v1600_v24 = vld [vmem:[#allocation2 + $0x140] sm:$0xff] }
 0x19c   : > { %v1331_v17 = vadd.f32 %v1330_v16, %v1146_v35  ;;  %v6739_v35 = vld [vmem:[%s7230_s30 + $0x48] sm:$0xff]   ;;  %v1659_v22 = vpack.c.bf16 %v1634_v15, %v1633_v13 }
 0x19d   : > { %v6705_v31 = vunpack.c.l.bf16 %v6739_v35  ;;  %v6706_v37 = vunpack.c.h.bf16 %v6739_v35  ;;  %v1310_v39 = vpop.f32.mrf.mxu2  ;;  %v6714_v35 = vunpack.c.h.bf16 %v6741_v29  ;;  %v1645_v44 = vld [vmem:[#allocation3 + $0x120] sm:$0xff] }
 0x19e   : > { %1450 = vst.msk [vmem:[#allocation2 + $0xc1] sm:$0xff] %vm344_vm1, %v1331_v17  ;;  %v1311_v41 = vadd.f32 %v1310_v39, %v7286_v50  ;;  %v1379_v7 = vpop.f32.mrf.mxu1  ;;  %v1643_v17 = vld [vmem:[#allocation3 + $0x108] sm:$0xff]  ;;  %v2514_v29 = vld [vmem:[#allocation3 + $0x3a] sm:$0xff] }
 0x19f   : > { %1559 = vst.msk [vmem:[#allocation3 + $0xf1] sm:$0xff] %vm344_vm1, %v6705_v31  ;;  %v1380_v19 = vadd.f32 %v1379_v7, %v7275_v40  ;;  %v6417_v40 = vld [vmem:[%s9319_s4 + $0x14] sm:$0xf]  ;;  %v1594_v31 = vld [vmem:[#allocation2 + $0xf8] sm:$0xff]  ;;  %v2462_v7 = vld [vmem:[#allocation2 + $0xa] sm:$0xff] }
 0x1a0   : > { %1560 = vst.msk [vmem:[#allocation3 + $0xf9] sm:$0xff] %vm344_vm1, %v6706_v37  ;;  %v2610_v30 = vsel %vm1720_vm7, %v6417_v40, 0  ;;  %v1585_v37 = vld [vmem:[#allocation2 + $0x90] sm:$0xff] }
 0x1a1   : > { %1445 = vst.msk [vmem:[#allocation2 + $0x99] sm:$0xff] %vm344_vm1, %v1311_v41  ;;  %2619 = vmatpush.bf16.msra.mxu0 %v2610_v30  ;;  %v1635_v39 = vld [vmem:[#allocation3 + $0xa8] sm:$0xff]  ;;  %v1618_v30 = vpack.c.bf16 %v1600_v24, %v1599_v23  ;;  %v2519_v23 = vld [vmem:[#allocation3 + $0x7a] sm:$0xff] }
 0x1a2   : > { %6369 = vmatmul.msk.bf16.gmra.mxu1 %vm344_vm1, %v1608_v25  ;;  %1463 = vst.msk [vmem:[#allocation2 + $0x129] sm:$0xff] %vm344_vm1, %v1380_v19  ;;  %v1733_v25 = vpop.f32.mrf.mxu0  ;;  %v1636_v41 = vld [vmem:[#allocation3 + $0xb0] sm:$0xff]  ;;  %v6743_v19 = vld [vmem:[%s7230_s30 + $0x68] sm:$0xff]   ;;  %v2520_v24 = vld [vmem:[#allocation3 + $0x82] sm:$0xff] }
 0x1a3   : > { %v1333_v36 = vpop.f32.mrf.mxu3  ;;  %1564 = vst.msk [vmem:[#allocation3 + $0x129] sm:$0xff] %vm344_vm1, %v6714_v35  ;;  %v2543_v35 = vpack.c.bf16 %v2514_v29, %v2513_v28 }
 0x1a4   : > { %v1334_v38 = vadd.f32 %v1333_v36, %v7283_v46  ;;  %v1593_v36 = vld [vmem:[#allocation2 + $0xf0] sm:$0xff] }
 0x1a5   : > { %v1589_v45 = vld [vmem:[#allocation2 + $0xc0] sm:$0xff]  ;;  %v1399_v48 = vpop.f32.mrf.mxu2 }
 0x1a6   : > { %1451 = vst.msk [vmem:[#allocation2 + $0xc9] sm:$0xff] %vm344_vm1, %v1334_v38  ;;  %v1641_v50 = vld [vmem:[#allocation3 + $0xf0] sm:$0xff]  ;;  %v1873_v26 = vpop.f32.mrf.mxu1 }
 0x1a7   : > { %v1642_v53 = vld [vmem:[#allocation3 + $0xf8] sm:$0xff]  ;;  %v1874_v27 = vadd.f32 %v1873_v26, %v1733_v25  ;;  %6356 = vmatmul.msk.bf16.gmra.mxu0 %vm344_vm1, %v1659_v22  ;;  %v2463_v25 = vld [vmem:[#allocation2 + $0x1a] sm:$0xff] }
 0x1a8   : > { %v1663_v57 = vpack.c.bf16 %v1642_v53, %v1641_v50  ;;  %v1586_v38 = vld [vmem:[#allocation2 + $0x98] sm:$0xff]  ;;  %v1400_v53 = vadd.f32 %v1399_v48, %v7295_v60  ;;  %v2464_v26 = vld [vmem:[#allocation2 + $0x22] sm:$0xff] }
 0x1a9   : > { %1953 = vst.msk [vmem:[#allocation4] sm:$0xff] %vm344_vm1, %v1874_v27  ;;  %v1611_v43 = vpack.c.bf16 %v1586_v38, %v1585_v37  ;;  %v2509_v60 = vld [vmem:[#allocation3 + $0x2] sm:$0xff]  ;;  %v2494_v34 = vpack.c.bf16 %v2464_v26, %v2463_v25  ;;  %v2516_v48 = vld [vmem:[#allocation3 + $0x52] sm:$0xff] }
 0x1aa   : > { %6360 = vmatmul.msk.bf16.gmra.mxu2 %vm344_vm1, %v1663_v57  ;;  %v1735_v49 = vpop.f32.mrf.mxu0  ;;  %1468 = vst.msk [vmem:[#allocation2 + $0x151] sm:$0xff] %vm344_vm1, %v1400_v53  ;;  %v1595_v57 = vld [vmem:[#allocation2 + $0x108] sm:$0xff] }
 0x1ab   : > { %v1422_v42 = vpop.f32.mrf.mxu3  ;;  %v1616_v62 = vpack.c.bf16 %v1596_v58, %v1595_v57 }
 0x1ac   : > { %v1423_v46 = vadd.f32 %v1422_v42, %v7292_v55  ;;  %v1377_v55 = vadd.f32 %v1376_v61, %v7271_v32  ;;  %v6710_v32 = vunpack.c.h.bf16 %v6740_v0  ;;  %v1615_v42 = vpack.c.bf16 %v1594_v31, %v1593_v36  ;;  %v2510_v61 = vld [vmem:[#allocation3 + $0xa] sm:$0xff]  ;;  %v1587_v0 = vld [vmem:[#allocation2 + $0xa8] sm:$0xff]  ;;  %v6744_v31 = vld [vmem:[%s7230_s30 + $0x70] sm:$0xff]  }
 0x1ad   : > { %v1590_v47 = vld [vmem:[#allocation2 + $0xc8] sm:$0xff]  ;;  %v1612_v10 = vpack.c.bf16 %v1588_v59, %v1587_v0  ;;  %v6725_v37 = vunpack.c.l.bf16 %v6744_v31  ;;  %v6726_v38 = vunpack.c.h.bf16 %v6744_v31 }
 0x1ae   : > { %v1613_v51 = vpack.c.bf16 %v1590_v47, %v1589_v45  ;;  %1474 = vst.msk [vmem:[#allocation2 + $0x181] sm:$0xff] %vm344_vm1, %v1423_v46  ;;  %v1646_v45 = vld [vmem:[#allocation3 + $0x128] sm:$0xff]  ;;  %v1660_v46 = vpack.c.bf16 %v1636_v41, %v1635_v39  ;;  %v2467_v0 = vld [vmem:[#allocation2 + $0x4a] sm:$0xff] }
 0x1af   : > { %1462 = vst.msk [vmem:[#allocation2 + $0x121] sm:$0xff] %vm344_vm1, %v1377_v55  ;;  %v1665_v47 = vpack.c.bf16 %v1646_v45, %v1645_v44  ;;  %v1402_v55 = vpop.f32.mrf.mxu2  ;;  %v2466_v44 = vld [vmem:[#allocation2 + $0x3a] sm:$0xff] }
 0x1b0   : > { %6374 = vmatmul.msk.bf16.vlgmr.msrb.gmra.mxu3 %vm344_vm1, %v1613_v51  ;;  %1562 = vst.msk [vmem:[#allocation3 + $0x111] sm:$0xff] %vm344_vm1, %v6710_v32  ;;  %v1875_v51 = vpop.f32.mrf.mxu1  ;;  %v1403_v63 = vadd.f32 %v1402_v55, %v7306_v9  ;;  %v2461_v9 = vld [vmem:[#allocation2 + $0x2] sm:$0xff]  ;;  %v2034_v55 = vld [vmem:[#allocation3 + $0x9] sm:$0xff] }
 0x1b1   : > { %v1876_v50 = vadd.f32 %v1875_v51, %v1735_v49  ;;  %v2493_v13 = vpack.c.bf16 %v2462_v7, %v2461_v9  ;;  %1569 = vst.msk [vmem:[#allocation3 + $0x169] sm:$0xff] %vm344_vm1, %v6725_v37  ;;  %v1601_v41 = vld [vmem:[#allocation2 + $0x150] sm:$0xff]  ;;  %v2037_v37 = vld [vmem:[#allocation3 + $0x31] sm:$0xff] }
 0x1b2   : > { %6370 = vmatmul.msk.bf16.gmra.mxu1 %vm344_vm1, %v1609_v52  ;;  %v6742_v52 = vld [vmem:[%s7230_s30 + $0x60] sm:$0xff]   ;;  %1469 = vst.msk [vmem:[#allocation2 + $0x159] sm:$0xff] %vm344_vm1, %v1403_v63  ;;  %v1603_v63 = vld [vmem:[#allocation2 + $0x168] sm:$0xff] }
 0x1b3   : > { %v1425_v1 = vpop.f32.mrf.mxu3  ;;  %v6717_v54 = vunpack.c.l.bf16 %v6742_v52  ;;  %v6718_v56 = vunpack.c.h.bf16 %v6742_v52  ;;  %1954 = vst.msk [vmem:[#allocation4 + $0x8] sm:$0xff] %vm344_vm1, %v1876_v50 }
 0x1b4   : > { %v1426_v5 = vadd.f32 %v1425_v1, %v7300_v6  ;;  %v1591_v6 = vld [vmem:[#allocation2 + $0xd8] sm:$0xff]  ;;  %v2541_v1 = vpack.c.bf16 %v2510_v61, %v2509_v60  ;;  %1570 = vst.msk [vmem:[#allocation3 + $0x171] sm:$0xff] %vm344_vm1, %v6726_v38  ;;  %v2038_v38 = vld [vmem:[#allocation3 + $0x39] sm:$0xff] }
 0x1b5   : > { %v1614_v16 = vpack.c.bf16 %v1592_v8, %v1591_v6  ;;  %1565 = vst.msk [vmem:[#allocation3 + $0x139] sm:$0xff] %vm344_vm1, %v6717_v54  ;;  %v2511_v8 = vld [vmem:[#allocation3 + $0x1a] sm:$0xff] }
 0x1b6   : > { %1475 = vst.msk [vmem:[#allocation2 + $0x189] sm:$0xff] %vm344_vm1, %v1426_v5  ;;  %v1597_v5 = vld [vmem:[#allocation2 + $0x120] sm:$0xff]  ;;  %v1598_v32 = vld [vmem:[#allocation2 + $0x128] sm:$0xff]  ;;  %v2542_v15 = vpack.c.bf16 %v2512_v11, %v2511_v8  ;;  %v2033_v61 = vld [vmem:[#allocation3 + $0x1] sm:$0xff] }
 0x1b7   : > { %v1644_v20 = vld [vmem:[#allocation3 + $0x110] sm:$0xff]  ;;  %6357 = vmatmul.msk.bf16.gmra.mxu0 %vm344_vm1, %v1660_v46  ;;  %1566 = vst.msk [vmem:[#allocation3 + $0x141] sm:$0xff] %vm344_vm1, %v6718_v56  ;;  %v1617_v12 = vpack.c.bf16 %v1598_v32, %v1597_v5 }
 0x1b8   : > { %v1664_v18 = vpack.c.bf16 %v1644_v20, %v1643_v17  ;;  %v6721_v20 = vunpack.c.l.bf16 %v6743_v19  ;;  %v1651_v45 = vld [vmem:[#allocation3 + $0x168] sm:$0xff] }
 0x1ba   : > { %6361 = vmatmul.msk.bf16.gmra.mxu2 %vm344_vm1, %v1664_v18  ;;  %1567 = vst.msk [vmem:[#allocation3 + $0x151] sm:$0xff] %vm344_vm1, %v6721_v20  ;;  %v2036_v20 = vld [vmem:[#allocation3 + $0x21] sm:$0xff] }
 0x1bb   : > { %v1652_v46 = vld [vmem:[#allocation3 + $0x170] sm:$0xff] }
 0x1bc   : > { %v1647_v2 = vld [vmem:[#allocation3 + $0x138] sm:$0xff]  ;;  %v1668_v51 = vpack.c.bf16 %v1652_v46, %v1651_v45  ;;  %v7443_v45 = vpack.c.bf16 %v2038_v38, %v2037_v37 }
 0x1bd   : > { %v2472_v46 = vld [vmem:[#allocation2 + $0x82] sm:$0xff]  ;;  %v2475_v37 = vld [vmem:[#allocation2 + $0xaa] sm:$0xff] }
 0x1be   : > { %v1648_v3 = vld [vmem:[#allocation3 + $0x140] sm:$0xff] }
 0x1bf   : > { %v1666_v4 = vpack.c.bf16 %v1648_v3, %v1647_v2  ;;  %v2517_v2 = vld [vmem:[#allocation3 + $0x62] sm:$0xff]  ;;  %v2518_v3 = vld [vmem:[#allocation3 + $0x6a] sm:$0xff] }
 0x1c0   : > { %6375 = vmatmul.msk.bf16.gmra.mxu3 %vm344_vm1, %v1614_v16  ;;  %v1738_v16 = vpop.f32.mrf.mxu0  ;;  %v2545_v7 = vpack.c.bf16 %v2518_v3, %v2517_v2  ;;  %v2040_v2 = vld [vmem:[#allocation3 + $0x51] sm:$0xff] }
 0x1c1   : > { %v1649_v27 = vld [vmem:[#allocation3 + $0x150] sm:$0xff] }
 0x1c2   : > { %6371 = vmatmul.msk.bf16.gmra.mxu1 %vm344_vm1, %v1610_v21  ;;  %v6722_v21 = vunpack.c.h.bf16 %v6743_v19  ;;  %v2035_v19 = vld [vmem:[#allocation3 + $0x19] sm:$0xff] }
 0x1c4   : > { %1568 = vst.msk [vmem:[#allocation3 + $0x159] sm:$0xff] %vm344_vm1, %v6722_v21 }
 0x1c7   : > { %6418 = vmatmul.msk.bf16.vlgmr.msra.gmra.mxu0 %vm344_vm1, %v2541_v1  ;;  %v2468_v1 = vld [vmem:[#allocation2 + $0x52] sm:$0xff] }
 0x1c8   : > { %v1740_v14 = vpop.f32.mrf.mxu0  ;;  %v2496_v9 = vpack.c.bf16 %v2468_v1, %v2467_v0  ;;  %v2039_v1 = vld [vmem:[#allocation3 + $0x49] sm:$0xff] }
 0x1ca   : > { %6362 = vmatmul.msk.bf16.gmra.mxu2 %vm344_vm1, %v1665_v47  ;;  %v2515_v47 = vld [vmem:[#allocation3 + $0x4a] sm:$0xff] }
 0x1cb   : > { %v1650_v40 = vld [vmem:[#allocation3 + $0x158] sm:$0xff]  ;;  %v2544_v54 = vpack.c.bf16 %v2516_v48, %v2515_v47 }
 0x1cc   : > { %v1667_v33 = vpack.c.bf16 %v1650_v40, %v1649_v27  ;;  %v2546_v40 = vpack.c.bf16 %v2520_v24, %v2519_v23  ;;  %v2521_v47 = vld [vmem:[#allocation3 + $0x92] sm:$0xff]  ;;  %v2522_v48 = vld [vmem:[#allocation3 + $0x9a] sm:$0xff] }
 0x1cf   : > { %v1878_v6 = vpop.f32.mrf.mxu1 }
 0x1d0   : > { %6376 = vmatmul.msk.bf16.gmra.mxu3 %vm344_vm1, %v1615_v42  ;;  %v1879_v17 = vadd.f32 %v1878_v6, %v1738_v16  ;;  %v1602_v42 = vld [vmem:[#allocation2 + $0x158] sm:$0xff]  ;;  %v1986_v16 = vld [vmem:[#allocation2 + $0x9] sm:$0xff] }
 0x1d1   : > { %v1619_v49 = vpack.c.bf16 %v1602_v42, %v1601_v41  ;;  %v1987_v41 = vld [vmem:[#allocation2 + $0x19] sm:$0xff]  ;;  %v1988_v42 = vld [vmem:[#allocation2 + $0x21] sm:$0xff] }
 0x1d2   : > { %6372 = vmatmul.msk.bf16.gmra.mxu1 %vm344_vm1, %v1611_v43  ;;  %1955 = vst.msk [vmem:[#allocation4 + $0x10] sm:$0xff] %vm344_vm1, %v1879_v17  ;;  %v2465_v43 = vld [vmem:[#allocation2 + $0x32] sm:$0xff] }
 0x1d3   : > { %v2495_v53 = vpack.c.bf16 %v2466_v44, %v2465_v43  ;;  %v2471_v44 = vld [vmem:[#allocation2 + $0x7a] sm:$0xff] }
 0x1d7   : > { %6419 = vmatmul.msk.bf16.gmra.mxu0 %vm344_vm1, %v2542_v15  ;;  %v1880_v22 = vpop.f32.mrf.mxu1 }
 0x1d8   : > { %v1881_v18 = vadd.f32 %v1880_v22, %v1740_v14  ;;  %v2469_v22 = vld [vmem:[#allocation2 + $0x62] sm:$0xff]  ;;  %v7431_v14 = vpack.c.bf16 %v2036_v20, %v2035_v19 }
 0x1d9   : > { %v6485_v19 = vld [vmem:[%s9319_s4 + $0x24] sm:$0xf]  ;;  %v6484_v20 = vld [vmem:[%s9319_s4 + $0x20] sm:$0xf] }
 0x1da   : > { %6363 = vmatmul.msk.bf16.gmra.mxu2 %vm344_vm1, %v1666_v4  ;;  %1956 = vst.msk [vmem:[#allocation4 + $0x18] sm:$0xff] %vm344_vm1, %v1881_v18  ;;  %v2470_v18 = vld [vmem:[#allocation2 + $0x6a] sm:$0xff]  ;;  %v3702_v23 = vsel %vm1720_vm7, %v6484_v20, 0  ;;  %v1995_v20 = vld [vmem:[#allocation2 + $0x79] sm:$0xff] }
 0x1db   : > { %v2497_v27 = vpack.c.bf16 %v2470_v18, %v2469_v22  ;;  %v3562_v18 = vsel %vm1720_vm7, %v6485_v19, 0  ;;  %3711 = vmatpush.bf16.msrb.mxu1 %v3702_v23 }
 0x1dc   : > { %v1743_v36 = vpop.f32.mrf.mxu0  ;;  %3571 = vmatpush.bf16.msrb.mxu0 %v3562_v18  ;;  %v2479_v18 = vld [vmem:[#allocation2 + $0xda] sm:$0xff] }
 0x1e0   : > { %6377 = vmatmul.msk.bf16.gmra.mxu3 %vm344_vm1, %v1616_v62  ;;  %v1604_v62 = vld [vmem:[#allocation2 + $0x170] sm:$0xff] }
 0x1e1   : > { %v1620_v4 = vpack.c.bf16 %v1604_v62, %v1603_v63 }
 0x1e2   : > { %6373 = vmatmul.msk.bf16.gmra.mxu1 %vm344_vm1, %v1612_v10  ;;  %v2065_v10 = vpack.c.bf16 %v2034_v55, %v2033_v61 }
 0x1e4   : > { %v1745_v39 = vpop.f32.mrf.mxu0 }
 0x1e7   : > { %6420 = vmatmul.msk.bf16.gmra.mxu0 %vm344_vm1, %v2543_v35 }
 0x1ea   : > { %6364 = vmatmul.msk.bf16.gmra.mxu2 %vm344_vm1, %v1667_v33 }
 0x1f0   : > { %6378 = vmatmul.msk.bf16.gmra.mxu3 %vm344_vm1, %v1617_v12 }
 0x1f2   : > { %6434 = vmatmul.msk.bf16.vlgmr.msra.gmra.mxu1 %vm344_vm1, %v2493_v13  ;;  %v1985_v13 = vld [vmem:[#allocation2 + $0x1] sm:$0xff] }
 0x1f3   : > { %v2017_v21 = vpack.c.bf16 %v1986_v16, %v1985_v13 }
 0x1f4   : > { %v1748_v56 = vpop.f32.mrf.mxu0 }
 0x1f7   : > { %6421 = vmatmul.msk.bf16.gmra.mxu0 %vm344_vm1, %v2544_v54 }
 0x1fa   : > { %6365 = vmatmul.msk.bf16.gmra.mxu2 %vm344_vm1, %v1668_v51 }
 0x1fc   : > { %v1750_v60 = vpop.f32.mrf.mxu0 }
 0x200   : > { %6379 = vmatmul.msk.bf16.gmra.mxu3 %vm344_vm1, %v1618_v30 }
 0x202   : > { %6435 = vmatmul.msk.bf16.gmra.mxu1 %vm344_vm1, %v2494_v34 }
 0x204   : > { %v1773_v59 = vpop.f32.mrf.mxu2  ;;  %v1753_v8 = vpop.f32.mrf.mxu0 }
 0x207   : > { %6422 = vmatmul.msk.bf16.gmra.mxu0 %vm344_vm1, %v2545_v7  ;;  %v7467_v7 = vpack.c.bf16 %v2040_v2, %v2039_v1  ;;  %v2528_v1 = vld [vmem:[#allocation3 + $0xe2] sm:$0xff] }
 0x20a   : > { %6384 = vmatmul.msk.bf16.vlgmr.msra.gmra.mxu2 %vm344_vm1, %v2065_v10 }
 0x20c   : > { %v1775_v6 = vpop.f32.mrf.mxu2  ;;  %v1755_v17 = vpop.f32.mrf.mxu0 }
 0x20f   : > { %v1883_v52 = vpop.f32.mrf.mxu1 }
 0x210   : > { %v1884_v50 = vadd.f32 %v1883_v52, %v1743_v36  ;;  %6380 = vmatmul.msk.bf16.gmra.mxu3 %vm344_vm1, %v1619_v49  ;;  %v7446_v49 = vpack.c.bf16 %v1988_v42, %v1987_v41  ;;  %v2526_v41 = vld [vmem:[#allocation3 + $0xca] sm:$0xff] }
 0x212   : > { %1957 = vst.msk [vmem:[#allocation4 + $0x20] sm:$0xff] %vm344_vm1, %v1884_v50  ;;  %6436 = vmatmul.msk.bf16.gmra.mxu1 %vm344_vm1, %v2495_v53  ;;  %v2498_v50 = vpack.c.bf16 %v2472_v46, %v2471_v44  ;;  %v2547_v53 = vpack.c.bf16 %v2522_v48, %v2521_v47 }
 0x214   : > { %v1758_v29 = vpop.f32.mrf.mxu0 }
 0x217   : > { %v1885_v57 = vpop.f32.mrf.mxu1  ;;  %v1778_v15 = vpop.f32.mrf.mxu2  ;;  %6423 = vmatmul.msk.bf16.gmra.mxu0 %vm344_vm1, %v2546_v40 }
 0x218   : > { %v1886_v58 = vadd.f32 %v1885_v57, %v1745_v39  ;;  %v6451_v57 = vld [vmem:[%s9319_s4 + $0x1c] sm:$0xf] }
 0x21a   : > { %1958 = vst.msk [vmem:[#allocation4 + $0x28] sm:$0xff] %vm344_vm1, %v1886_v58  ;;  %6385 = vmatmul.msk.bf16.gmra.mxu2 %vm344_vm1, %v7431_v14  ;;  %v6450_v58 = vld [vmem:[%s9319_s4 + $0x18] sm:$0xf] }
 0x21b   : > { %v3226_v61 = vsel %vm1720_vm7, %v6450_v58, 0  ;;  %v2044_v58 = vld [vmem:[#allocation3 + $0x81] sm:$0xff] }
 0x21c   : > { %v1760_v31 = vpop.f32.mrf.mxu0  ;;  %3235 = vmatpush.bf16.msrb.mxu3 %v3226_v61  ;;  %v1994_v61 = vld [vmem:[#allocation2 + $0x69] sm:$0xff] }
 0x21f   : > { %v1888_v5 = vpop.f32.mrf.mxu1  ;;  %v1780_v28 = vpop.f32.mrf.mxu2 }
 0x220   : > { %v1889_v32 = vadd.f32 %v1888_v5, %v1748_v56  ;;  %6381 = vmatmul.msk.bf16.gmra.mxu3 %vm344_vm1, %v1620_v4  ;;  %v1989_v4 = vld [vmem:[#allocation2 + $0x31] sm:$0xff]  ;;  %v1990_v5 = vld [vmem:[#allocation2 + $0x39] sm:$0xff] }
 0x222   : > { %1959 = vst.msk [vmem:[#allocation4 + $0x30] sm:$0xff] %vm344_vm1, %v1889_v32  ;;  %6437 = vmatmul.msk.bf16.gmra.mxu1 %vm344_vm1, %v2496_v9  ;;  %v2473_v9 = vld [vmem:[#allocation2 + $0x92] sm:$0xff] }
 0x224   : > { %v1763_v56 = vpop.f32.mrf.mxu0 }
 0x227   : > { %v1890_v11 = vpop.f32.mrf.mxu1  ;;  %6424 = vmatmul.msk.bf16.gmra.mxu0 %vm344_vm1, %v2547_v53 }
 0x228   : > { %v1891_v12 = vadd.f32 %v1890_v11, %v1750_v60  ;;  %v3086_v60 = vsel %vm1720_vm7, %v6451_v57, 0  ;;  %v2524_v11 = vld [vmem:[#allocation3 + $0xb2] sm:$0xff] }
 0x229   : > { %3095 = vmatpush.bf16.msrb.mxu2 %v3086_v60  ;;  %v2043_v57 = vld [vmem:[#allocation3 + $0x79] sm:$0xff]  ;;  %v1993_v60 = vld [vmem:[#allocation2 + $0x61] sm:$0xff] }
 0x22a   : > { %1960 = vst.msk [vmem:[#allocation4 + $0x38] sm:$0xff] %vm344_vm1, %v1891_v12  ;;  %6386 = vmatmul.msk.bf16.gmra.mxu2 %vm344_vm1, %v7443_v45  ;;  %v7470_v12 = vpack.c.bf16 %v1990_v5, %v1989_v4  ;;  %v7512_v2 = vpack.c.bf16 %v1994_v61, %v1993_v60 }
 0x22c   : > { %v1765_v10 = vpop.f32.mrf.mxu0 }
 0x22d   : > { %v7440_v36 = vpop.f32.mrf.mxu2 }
 0x22f   : > { %v1893_v25 = vpop.f32.mrf.mxu1 }
 0x230   : > { %v1894_v26 = vadd.f32 %v1893_v25, %v1753_v8  ;;  %6400 = vmatmul.msk.bf16.vlgmr.msra.gmra.mxu3 %vm344_vm1, %v2017_v21  ;;  %v2523_v8 = vld [vmem:[#allocation3 + $0xaa] sm:$0xff] }
 0x232   : > { %1961 = vst.msk [vmem:[#allocation4 + $0x40] sm:$0xff] %vm344_vm1, %v1894_v26  ;;  %6438 = vmatmul.msk.bf16.gmra.mxu1 %vm344_vm1, %v2497_v27 }
 0x233   : > { %v1913_v30 = vpop.f32.mrf.mxu3 }
 0x234   : > { %v1914_v33 = vadd.f32 %v1913_v30, %v1773_v59  ;;  %v1768_v21 = vpop.f32.mrf.mxu0 }
 0x235   : > { %v1785_v54 = vpop.f32.mrf.mxu2 }
 0x236   : > { %1969 = vst.msk [vmem:[#allocation4 + $0x80] sm:$0xff] %vm344_vm1, %v1914_v33  ;;  %v1991_v33 = vld [vmem:[#allocation2 + $0x49] sm:$0xff] }
 0x237   : > { %v1895_v34 = vpop.f32.mrf.mxu1 }
 0x238   : > { %v1896_v35 = vadd.f32 %v1895_v34, %v1755_v17  ;;  %v2548_v17 = vpack.c.bf16 %v2524_v11, %v2523_v8  ;;  %v1992_v34 = vld [vmem:[#allocation2 + $0x51] sm:$0xff] }
 0x239   : > { %v7493_v42 = vpack.c.bf16 %v1992_v34, %v1991_v33 }
 0x23a   : > { %1962 = vst.msk [vmem:[#allocation4 + $0x48] sm:$0xff] %vm344_vm1, %v1896_v35  ;;  %6387 = vmatmul.msk.bf16.gmra.mxu2 %vm344_vm1, %v7467_v7  ;;  %6425 = vmatmul.msk.bf16.gmra.mxu0 %vm344_vm1, %v2548_v17  ;;  %v2046_v17 = vld [vmem:[#allocation3 + $0x99] sm:$0xff] }
 0x23b   : > { %v1915_v39 = vpop.f32.mrf.mxu3 }
 0x23c   : > { %v1916_v43 = vadd.f32 %v1915_v39, %v1775_v6  ;;  %v2474_v6 = vld [vmem:[#allocation2 + $0x9a] sm:$0xff]  ;;  %v1770_v40 = vpop.f32.mrf.mxu0  ;;  %v2525_v39 = vld [vmem:[#allocation3 + $0xc2] sm:$0xff] }
 0x23d   : > { %v7464_v0 = vpop.f32.mrf.mxu2  ;;  %v2499_v16 = vpack.c.bf16 %v2474_v6, %v2473_v9  ;;  %v2549_v47 = vpack.c.bf16 %v2526_v41, %v2525_v39  ;;  %v2048_v39 = vld [vmem:[#allocation3 + $0xb1] sm:$0xff] }
 0x23e   : > { %1970 = vst.msk [vmem:[#allocation4 + $0x88] sm:$0xff] %vm344_vm1, %v1916_v43 }
 0x23f   : > { %v1898_v51 = vpop.f32.mrf.mxu1 }
 0x240   : > { %v1899_v52 = vadd.f32 %v1898_v51, %v1758_v29  ;;  %6401 = vmatmul.msk.bf16.gmra.mxu3 %vm344_vm1, %v7446_v49  ;;  %v2042_v29 = vld [vmem:[#allocation3 + $0x69] sm:$0xff] }
 0x242   : > { %1963 = vst.msk [vmem:[#allocation4 + $0x50] sm:$0xff] %vm344_vm1, %v1899_v52  ;;  %6439 = vmatmul.msk.bf16.gmra.mxu1 %vm344_vm1, %v2498_v50 }
 0x243   : > { %v1918_v59 = vpop.f32.mrf.mxu3 }
 0x244   : > { %v1919_v55 = vadd.f32 %v1918_v59, %v1778_v15  ;;  %v7499_v48 = vpop.f32.mrf.mxu0 }
 0x245   : > { %v1790_v22 = vpop.f32.mrf.mxu2 }
 0x246   : > { %1971 = vst.msk [vmem:[#allocation4 + $0x90] sm:$0xff] %vm344_vm1, %v1919_v55 }
 0x247   : > { %v1900_v62 = vpop.f32.mrf.mxu1 }
 0x248   : > { %v1901_v63 = vadd.f32 %v1900_v62, %v1760_v31  ;;  %v2477_v62 = vld [vmem:[#allocation2 + $0xc2] sm:$0xff] }
 0x24a   : > { %1964 = vst.msk [vmem:[#allocation4 + $0x58] sm:$0xff] %vm344_vm1, %v1901_v63  ;;  %6426 = vmatmul.msk.bf16.gmra.mxu0 %vm344_vm1, %v2549_v47  ;;  %v7509_v63 = vpack.c.bf16 %v2044_v58, %v2043_v57 }
 0x24b   : > { %v1920_v3 = vpop.f32.mrf.mxu3 }
 0x24c   : > { %v1921_v32 = vadd.f32 %v1920_v3, %v1780_v28  ;;  %v2041_v28 = vld [vmem:[#allocation3 + $0x61] sm:$0xff] }
 0x24d   : > { %v1793_v35 = vpop.f32.mrf.mxu2  ;;  %v7490_v38 = vpack.c.bf16 %v2042_v29, %v2041_v28 }
 0x24e   : > { %1972 = vst.msk [vmem:[#allocation4 + $0x98] sm:$0xff] %vm344_vm1, %v1921_v32 }
 0x24f   : > { %v1903_v13 = vpop.f32.mrf.mxu1  ;;  %6388 = vmatmul.msk.bf16.gmra.mxu2 %vm344_vm1, %v7490_v38 }
 0x250   : > { %v1904_v15 = vadd.f32 %v1903_v13, %v1763_v56  ;;  %6402 = vmatmul.msk.bf16.gmra.mxu3 %vm344_vm1, %v7470_v12  ;;  %v7506_v56 = vpop.f32.mrf.mxu0 }
 0x252   : > { %1965 = vst.msk [vmem:[#allocation4 + $0x60] sm:$0xff] %vm344_vm1, %v1904_v15  ;;  %6440 = vmatmul.msk.bf16.gmra.mxu1 %vm344_vm1, %v2499_v16  ;;  %v2045_v16 = vld [vmem:[#allocation3 + $0x91] sm:$0xff] }
 0x253   : > { %v1923_v24 = vpop.f32.mrf.mxu3  ;;  %v7529_v23 = vpack.c.bf16 %v2046_v17, %v2045_v16  ;;  %v1999_v16 = vld [vmem:[#allocation2 + $0xa9] sm:$0xff] }
 0x254   : > { %v1924_v25 = vadd.f32 %v1923_v24, %v7440_v36  ;;  %v2476_v36 = vld [vmem:[#allocation2 + $0xb2] sm:$0xff]  ;;  %v2480_v24 = vld [vmem:[#allocation2 + $0xe2] sm:$0xff]  ;;  %v2483_v17 = vld [vmem:[#allocation2 + $0x10a] sm:$0xff] }
 0x255   : > { %v2500_v46 = vpack.c.bf16 %v2476_v36, %v2475_v37  ;;  %v1795_v50 = vpop.f32.mrf.mxu2  ;;  %v2502_v28 = vpack.c.bf16 %v2480_v24, %v2479_v18  ;;  %v2047_v36 = vld [vmem:[#allocation3 + $0xa9] sm:$0xff] }
 0x256   : > { %1973 = vst.msk [vmem:[#allocation4 + $0xa0] sm:$0xff] %vm344_vm1, %v1924_v25  ;;  %v2529_v25 = vld [vmem:[#allocation3 + $0xf2] sm:$0xff] }
 0x257   : > { %v1905_v26 = vpop.f32.mrf.mxu1 }
 0x258   : > { %v1906_v27 = vadd.f32 %v1905_v26, %v1765_v10  ;;  %v2527_v10 = vld [vmem:[#allocation3 + $0xda] sm:$0xff]  ;;  %v7520_v9 = vpop.f32.mrf.mxu0 }
 0x259   : > { %v2550_v32 = vpack.c.bf16 %v2528_v1, %v2527_v10  ;;  %v2530_v26 = vld [vmem:[#allocation3 + $0xfa] sm:$0xff] }
 0x25a   : > { %1966 = vst.msk [vmem:[#allocation4 + $0x68] sm:$0xff] %vm344_vm1, %v1906_v27  ;;  %v2551_v29 = vpack.c.bf16 %v2530_v26, %v2529_v25 }
 0x25b   : > { %v1925_v30 = vpop.f32.mrf.mxu3  ;;  %6427 = vmatmul.msk.bf16.gmra.mxu0 %vm344_vm1, %v2550_v32 }
 0x25c   : > { %v1926_v31 = vadd.f32 %v1925_v30, %v1785_v54 }
 0x25d   : > { %v1798_v4 = vpop.f32.mrf.mxu2 }
 0x25e   : > { %1974 = vst.msk [vmem:[#allocation4 + $0xa8] sm:$0xff] %vm344_vm1, %v1926_v31 }
 0x25f   : > { %v1908_v43 = vpop.f32.mrf.mxu1  ;;  %6389 = vmatmul.msk.bf16.gmra.mxu2 %vm344_vm1, %v7509_v63 }
 0x260   : > { %v1909_v44 = vadd.f32 %v1908_v43, %v1768_v21  ;;  %6403 = vmatmul.msk.bf16.gmra.mxu3 %vm344_vm1, %v7493_v42  ;;  %v7527_v13 = vpop.f32.mrf.mxu0  ;;  %v1996_v21 = vld [vmem:[#allocation2 + $0x81] sm:$0xff]  ;;  %v1997_v43 = vld [vmem:[#allocation2 + $0x91] sm:$0xff] }
 0x261   : > { %v7532_v27 = vpack.c.bf16 %v1996_v21, %v1995_v20  ;;  %v2484_v20 = vld [vmem:[#allocation2 + $0x112] sm:$0xff] }
 0x262   : > { %1967 = vst.msk [vmem:[#allocation4 + $0x70] sm:$0xff] %vm344_vm1, %v1909_v44  ;;  %6441 = vmatmul.msk.bf16.gmra.mxu1 %vm344_vm1, %v2500_v46  ;;  %v1998_v44 = vld [vmem:[#allocation2 + $0x99] sm:$0xff]  ;;  %v2504_v25 = vpack.c.bf16 %v2484_v20, %v2483_v17 }
 0x263   : > { %v1928_v51 = vpop.f32.mrf.mxu3  ;;  %v7552_v57 = vpack.c.bf16 %v1998_v44, %v1997_v43  ;;  %v2533_v21 = vld [vmem:[#allocation3 + $0x122] sm:$0xff]  ;;  %v2002_v44 = vld [vmem:[#allocation2 + $0xc9] sm:$0xff] }
 0x264   : > { %v1929_v52 = vadd.f32 %v1928_v51, %v7464_v0  ;;  %v2478_v0 = vld [vmem:[#allocation2 + $0xca] sm:$0xff]  ;;  %v2481_v51 = vld [vmem:[#allocation2 + $0xf2] sm:$0xff] }
 0x265   : > { %v2501_v5 = vpack.c.bf16 %v2478_v0, %v2477_v62  ;;  %v1800_v15 = vpop.f32.mrf.mxu2 }
 0x266   : > { %1975 = vst.msk [vmem:[#allocation4 + $0xb0] sm:$0xff] %vm344_vm1, %v1929_v52  ;;  %v7549_v52 = vpack.c.bf16 %v2048_v39, %v2047_v36  ;;  %v2051_v39 = vld [vmem:[#allocation3 + $0xd9] sm:$0xff] }
 0x267   : > { %v1910_v53 = vpop.f32.mrf.mxu1 }
 0x268   : > { %v1911_v54 = vadd.f32 %v1910_v53, %v1770_v40  ;;  %v7540_v30 = vpop.f32.mrf.mxu0  ;;  %v2531_v53 = vld [vmem:[#allocation3 + $0x10a] sm:$0xff] }
 0x26a   : > { %1968 = vst.msk [vmem:[#allocation4 + $0x78] sm:$0xff] %vm344_vm1, %v1911_v54  ;;  %v2532_v54 = vld [vmem:[#allocation3 + $0x112] sm:$0xff] }
 0x26b   : > { %v1930_v59 = vpop.f32.mrf.mxu3  ;;  %6428 = vmatmul.msk.bf16.gmra.mxu0 %vm344_vm1, %v2551_v29  ;;  %v2552_v60 = vpack.c.bf16 %v2532_v54, %v2531_v53  ;;  %v2486_v54 = vld [vmem:[#allocation2 + $0x12a] sm:$0xff] }
 0x26c   : > { %v1931_v55 = vadd.f32 %v1930_v59, %v1790_v22 }
 0x26d   : > { %v1803_v34 = vpop.f32.mrf.mxu2 }
 0x26e   : > { %1976 = vst.msk [vmem:[#allocation4 + $0xb8] sm:$0xff] %vm344_vm1, %v1931_v55 }
 0x26f   : > { %v7514_v3 = vpop.f32.mrf.mxu1  ;;  %6390 = vmatmul.msk.bf16.gmra.mxu2 %vm344_vm1, %v7529_v23 }
 0x270   : > { %6404 = vmatmul.msk.bf16.gmra.mxu3 %vm344_vm1, %v7512_v2  ;;  %v7547_v37 = vpop.f32.mrf.mxu0 }
 0x272   : > { %6442 = vmatmul.msk.bf16.gmra.mxu1 %vm344_vm1, %v2501_v5  ;;  %v2050_v5 = vld [vmem:[#allocation3 + $0xc9] sm:$0xff] }
 0x273   : > { %v1933_v6 = vpop.f32.mrf.mxu3 }
 0x274   : > { %v1934_v8 = vadd.f32 %v1933_v6, %v1793_v35  ;;  %v2000_v6 = vld [vmem:[#allocation2 + $0xb1] sm:$0xff] }
 0x275   : > { %v1805_v46 = vpop.f32.mrf.mxu2  ;;  %v7572_v18 = vpack.c.bf16 %v2000_v6, %v1999_v16 }
 0x276   : > { %1977 = vst.msk [vmem:[#allocation4 + $0xc0] sm:$0xff] %vm344_vm1, %v1934_v8 }
 0x277   : > { %v7525_v11 = vpop.f32.mrf.mxu1 }
 0x278   : > { %v7560_v61 = vpop.f32.mrf.mxu0 }
 0x27b   : > { %v1935_v19 = vpop.f32.mrf.mxu3  ;;  %6429 = vmatmul.msk.bf16.gmra.mxu0 %vm344_vm1, %v2552_v60  ;;  %v2536_v60 = vld [vmem:[#allocation3 + $0x142] sm:$0xff] }
 0x27c   : > { %v1936_v22 = vadd.f32 %v1935_v19, %v1795_v50  ;;  %v2482_v50 = vld [vmem:[#allocation2 + $0xfa] sm:$0xff] }
 0x27d   : > { %v2503_v59 = vpack.c.bf16 %v2482_v50, %v2481_v51  ;;  %v1808_v62 = vpop.f32.mrf.mxu2  ;;  %v2001_v51 = vld [vmem:[#allocation2 + $0xc1] sm:$0xff] }
 0x27e   : > { %1978 = vst.msk [vmem:[#allocation4 + $0xc8] sm:$0xff] %vm344_vm1, %v1936_v22  ;;  %v2534_v22 = vld [vmem:[#allocation3 + $0x12a] sm:$0xff]  ;;  %v2485_v50 = vld [vmem:[#allocation2 + $0x122] sm:$0xff] }
 0x27f   : > { %v7534_v40 = vpop.f32.mrf.mxu1  ;;  %6391 = vmatmul.msk.bf16.gmra.mxu2 %vm344_vm1, %v7549_v52  ;;  %v2553_v26 = vpack.c.bf16 %v2534_v22, %v2533_v21  ;;  %v2053_v21 = vld [vmem:[#allocation3 + $0xf1] sm:$0xff]  ;;  %v2054_v22 = vld [vmem:[#allocation3 + $0xf9] sm:$0xff] }
 0x280   : > { %6405 = vmatmul.msk.bf16.gmra.mxu3 %vm344_vm1, %v7532_v27  ;;  %v7567_v1 = vpop.f32.mrf.mxu0 }
 0x282   : > { %6443 = vmatmul.msk.bf16.gmra.mxu1 %vm344_vm1, %v2502_v28 }
 0x283   : > { %v1938_v33 = vpop.f32.mrf.mxu3 }
 0x284   : > { %v1939_v35 = vadd.f32 %v1938_v33, %v1798_v4  ;;  %v2049_v4 = vld [vmem:[#allocation3 + $0xc1] sm:$0xff] }
 0x285   : > { %v1810_v8 = vpop.f32.mrf.mxu2  ;;  %v7569_v19 = vpack.c.bf16 %v2050_v5, %v2049_v4 }
 0x286   : > { %1979 = vst.msk [vmem:[#allocation4 + $0xd0] sm:$0xff] %vm344_vm1, %v1939_v35 }
 0x287   : > { %v7545_v31 = vpop.f32.mrf.mxu1 }
 0x288   : > { %v7580_v28 = vpop.f32.mrf.mxu0 }
 0x28b   : > { %v1940_v41 = vpop.f32.mrf.mxu3  ;;  %6430 = vmatmul.msk.bf16.gmra.mxu0 %vm344_vm1, %v2553_v26  ;;  %v2003_v26 = vld [vmem:[#allocation2 + $0xd9] sm:$0xff] }
 0x28c   : > { %v1941_v47 = vadd.f32 %v1940_v41, %v1800_v15  ;;  %v2052_v41 = vld [vmem:[#allocation3 + $0xe1] sm:$0xff] }
 0x28d   : > { %v2145_v33 = vpop.f32.mrf.mxu2  ;;  %v7589_v53 = vpack.c.bf16 %v2052_v41, %v2051_v39  ;;  %v2487_v41 = vld [vmem:[#allocation2 + $0x13a] sm:$0xff] }
 0x28e   : > { %1980 = vst.msk [vmem:[#allocation4 + $0xd8] sm:$0xff] %vm344_vm1, %v1941_v47 }
 0x28f   : > { %v7554_v58 = vpop.f32.mrf.mxu1  ;;  %6392 = vmatmul.msk.bf16.gmra.mxu2 %vm344_vm1, %v7569_v19 }
 0x290   : > { %6406 = vmatmul.msk.bf16.gmra.mxu3 %vm344_vm1, %v7552_v57  ;;  %v7587_v36 = vpop.f32.mrf.mxu0 }
 0x292   : > { %6444 = vmatmul.msk.bf16.gmra.mxu1 %vm344_vm1, %v2503_v59  ;;  %v2535_v59 = vld [vmem:[#allocation3 + $0x13a] sm:$0xff] }
 0x293   : > { %v1943_v55 = vpop.f32.mrf.mxu3  ;;  %v2554_v4 = vpack.c.bf16 %v2536_v60, %v2535_v59 }
 0x294   : > { %v1944_v0 = vadd.f32 %v1943_v55, %v1803_v34  ;;  %v7592_v55 = vpack.c.bf16 %v2002_v44, %v2001_v51  ;;  %v2366_v44 = vld [vmem:[#allocation4 + $0x8] sm:$0xff] }
 0x295   : > { %v2538_v51 = vld [vmem:[#allocation3 + $0x15a] sm:$0xff] }
 0x296   : > { %1981 = vst.msk [vmem:[#allocation4 + $0xe0] sm:$0xff] %vm344_vm1, %v1944_v0  ;;  %v2505_v0 = vpack.c.bf16 %v2486_v54, %v2485_v50  ;;  %v2762_v50 = vadd.f32 %v7514_v3, %v7499_v48 }
 0x297   : > { %v7565_v10 = vpop.f32.mrf.mxu1 }
 0x298   : > { %v7600_v5 = vpop.f32.mrf.mxu0 }
 0x29b   : > { %v1945_v32 = vpop.f32.mrf.mxu3  ;;  %6431 = vmatmul.msk.bf16.gmra.mxu0 %vm344_vm1, %v2554_v4 }
 0x29c   : > { %v1946_v15 = vadd.f32 %v1945_v32, %v1805_v46  ;;  %v2147_v46 = vpop.f32.mrf.mxu2 }
 0x29e   : > { %1982 = vst.msk [vmem:[#allocation4 + $0xe8] sm:$0xff] %vm344_vm1, %v1946_v15  ;;  %v2365_v15 = vld [vmem:[#allocation4] sm:$0xff] }
 0x29f   : > { %v7574_v24 = vpop.f32.mrf.mxu1  ;;  %6393 = vmatmul.msk.bf16.gmra.mxu2 %vm344_vm1, %v7589_v53 }
 0x2a0   : > { %6407 = vmatmul.msk.bf16.gmra.mxu3 %vm344_vm1, %v7572_v18  ;;  %v7607_v20 = vpop.f32.mrf.mxu0 }
 0x2a2   : > { %6445 = vmatmul.msk.bf16.gmra.mxu1 %vm344_vm1, %v2504_v25 }
 0x2a3   : > { %v1948_v29 = vpop.f32.mrf.mxu3 }
 0x2a4   : > { %v1949_v34 = vadd.f32 %v1948_v29, %v1808_v62  ;;  %v2150_v6 = vpop.f32.mrf.mxu2  ;;  %v2004_v29 = vld [vmem:[#allocation2 + $0xe1] sm:$0xff] }
 0x2a5   : > { %v7613_v59 = vpack.c.bf16 %v2004_v29, %v2003_v26  ;;  %v2055_v29 = vld [vmem:[#allocation3 + $0x109] sm:$0xff] }
 0x2a6   : > { %1983 = vst.msk [vmem:[#allocation4 + $0xf0] sm:$0xff] %vm344_vm1, %v1949_v34 }
 0x2a7   : > { %v7585_v35 = vpop.f32.mrf.mxu1 }
 0x2a8   : > { %v7622_v4 = vpop.f32.mrf.mxu0 }
 0x2ab   : > { %v1950_v43 = vpop.f32.mrf.mxu3 }
 0x2ac   : > { %v1951_v47 = vadd.f32 %v1950_v43, %v1810_v8  ;;  %v2152_v34 = vpop.f32.mrf.mxu2  ;;  %v2488_v43 = vld [vmem:[#allocation2 + $0x142] sm:$0xff] }
 0x2ae   : > { %1984 = vst.msk [vmem:[#allocation4 + $0xf8] sm:$0xff] %vm344_vm1, %v1951_v47  ;;  %v2537_v47 = vld [vmem:[#allocation3 + $0x152] sm:$0xff] }
 0x2af   : > { %v7594_v62 = vpop.f32.mrf.mxu1 }
 0x2b0   : > { %6408 = vmatmul.msk.bf16.gmra.mxu3 %vm344_vm1, %v7592_v55  ;;  %v7632_v26 = vpop.f32.mrf.mxu0 }
 0x2b2   : > { %6446 = vmatmul.msk.bf16.gmra.mxu1 %vm344_vm1, %v2505_v0  ;;  %v2555_v0 = vpack.c.bf16 %v2538_v51, %v2537_v47  ;;  %v2006_v47 = vld [vmem:[#allocation2 + $0xf9] sm:$0xff] }
 0x2b3   : > { %v2285_v32 = vpop.f32.mrf.mxu3 }
 0x2b4   : > { %v2286_v8 = vadd.f32 %v2285_v32, %v2145_v33  ;;  %v7609_v33 = vpack.c.bf16 %v2054_v22, %v2053_v21  ;;  %6432 = vmatmul.msk.bf16.gmra.mxu0 %vm344_vm1, %v2555_v0 }
 0x2b6   : > { %v2397_v16 = vadd.f32 %v2365_v15, %v2286_v8  ;;  %6394 = vmatmul.msk.bf16.gmra.mxu2 %vm344_vm1, %v7609_v33  ;;  %v2155_v8 = vpop.f32.mrf.mxu2 }
 0x2b7   : > { %v7604_v17 = vpop.f32.mrf.mxu1 }
 0x2b8   : > { %2429 = vst.msk [vmem:[#allocation4] sm:$0xff] %vm344_vm1, %v2397_v16  ;;  %v2367_v16 = vld [vmem:[#allocation4 + $0x10] sm:$0xff] }
 0x2bb   : > { %v2287_v25 = vpop.f32.mrf.mxu3 }
 0x2bc   : > { %v2288_v39 = vadd.f32 %v2287_v25, %v2147_v46  ;;  %v2506_v46 = vpack.c.bf16 %v2488_v43, %v2487_v41  ;;  %v2764_v25 = vadd.f32 %v7525_v11, %v7506_v56  ;;  %v2368_v56 = vld [vmem:[#allocation4 + $0x18] sm:$0xff] }
 0x2bd   : > { %v2539_v11 = vld [vmem:[#allocation3 + $0x16a] sm:$0xff] }
 0x2be   : > { %v2398_v54 = vadd.f32 %v2366_v44, %v2288_v39  ;;  %v2056_v39 = vld [vmem:[#allocation3 + $0x111] sm:$0xff]  ;;  %v2005_v44 = vld [vmem:[#allocation2 + $0xf1] sm:$0xff]  ;;  %v2157_v51 = vpop.f32.mrf.mxu2 }
 0x2bf   : > { %v7615_v60 = vpop.f32.mrf.mxu1  ;;  %v2841_v32 = vld [vmem:[#allocation4] sm:$0xff]  ;;  %v7634_v0 = vpack.c.bf16 %v2056_v39, %v2055_v29 }
 0x2c0   : > { %2430 = vst.msk [vmem:[#allocation4 + $0x8] sm:$0xff] %vm344_vm1, %v2398_v54  ;;  %6409 = vmatmul.msk.bf16.gmra.mxu3 %vm344_vm1, %v7613_v59  ;;  %v2873_v48 = vadd.f32 %v2841_v32, %v2762_v50  ;;  %v2489_v54 = vld [vmem:[#allocation2 + $0x152] sm:$0xff]  ;;  %v2540_v32 = vld [vmem:[#allocation3 + $0x172] sm:$0xff] }
 0x2c2   : > { %6447 = vmatmul.msk.bf16.gmra.mxu1 %vm344_vm1, %v2506_v46  ;;  %2905 = vst.msk [vmem:[#allocation4] sm:$0xff] %vm344_vm1, %v2873_v48  ;;  %v2490_v46 = vld [vmem:[#allocation2 + $0x15a] sm:$0xff] }
 0x2c3   : > { %v2290_v3 = vpop.f32.mrf.mxu3 }
 0x2c4   : > { %v2291_v15 = vadd.f32 %v2290_v3, %v2150_v6  ;;  %v7637_v3 = vpack.c.bf16 %v2006_v47, %v2005_v44  ;;  %v2769_v47 = vadd.f32 %v7545_v31, %v7527_v13  ;;  %v2492_v13 = vld [vmem:[#allocation2 + $0x172] sm:$0xff] }
 0x2c6   : > { %v2399_v21 = vadd.f32 %v2367_v16, %v2291_v15  ;;  %v2767_v16 = vadd.f32 %v7534_v40, %v7520_v9  ;;  %6395 = vmatmul.msk.bf16.gmra.mxu2 %vm344_vm1, %v7634_v0  ;;  %v2369_v9 = vld [vmem:[#allocation4 + $0x20] sm:$0xff] }
 0x2c7   : > { %v7627_v22 = vpop.f32.mrf.mxu1  ;;  %v2842_v41 = vld [vmem:[#allocation4 + $0x8] sm:$0xff] }
 0x2c8   : > { %2431 = vst.msk [vmem:[#allocation4 + $0x10] sm:$0xff] %vm344_vm1, %v2399_v21  ;;  %v2874_v43 = vadd.f32 %v2842_v41, %v2764_v25  ;;  %v2556_v21 = vpack.c.bf16 %v2540_v32, %v2539_v11  ;;  %v7648_v25 = vpop.f32.mrf.mxu0  ;;  %v2007_v32 = vld [vmem:[#allocation2 + $0x109] sm:$0xff] }
 0x2ca   : > { %2906 = vst.msk [vmem:[#allocation4 + $0x8] sm:$0xff] %vm344_vm1, %v2874_v43  ;;  %v2160_v43 = vpop.f32.mrf.mxu2  ;;  %6433 = vmatmul.msk.bf16.gmra.mxu0 %vm344_vm1, %v2556_v21 }
 0x2cb   : > { %v2292_v6 = vpop.f32.mrf.mxu3 }
 0x2cc   : > { %v2293_v50 = vadd.f32 %v2292_v6, %v2152_v34  ;;  %v2507_v34 = vpack.c.bf16 %v2490_v46, %v2489_v54  ;;  %v2057_v54 = vld [vmem:[#allocation3 + $0x121] sm:$0xff]  ;;  %v2058_v46 = vld [vmem:[#allocation3 + $0x129] sm:$0xff] }
 0x2cd   : > { %v7660_v21 = vpack.c.bf16 %v2058_v46, %v2057_v54 }
 0x2ce   : > { %v2400_v48 = vadd.f32 %v2368_v56, %v2293_v50 }
 0x2cf   : > { %v7639_v15 = vpop.f32.mrf.mxu1  ;;  %v2843_v29 = vld [vmem:[#allocation4 + $0x10] sm:$0xff] }
 0x2d0   : > { %2432 = vst.msk [vmem:[#allocation4 + $0x18] sm:$0xff] %vm344_vm1, %v2400_v48  ;;  %6410 = vmatmul.msk.bf16.gmra.mxu3 %vm344_vm1, %v7637_v3  ;;  %v2875_v39 = vadd.f32 %v2843_v29, %v2767_v16  ;;  %v7658_v50 = vpop.f32.mrf.mxu0  ;;  %v2008_v48 = vld [vmem:[#allocation2 + $0x111] sm:$0xff]  ;;  %v2370_v29 = vld [vmem:[#allocation4 + $0x28] sm:$0xff] }
 0x2d2   : > { %6448 = vmatmul.msk.bf16.gmra.mxu1 %vm344_vm1, %v2507_v34  ;;  %2907 = vst.msk [vmem:[#allocation4 + $0x10] sm:$0xff] %vm344_vm1, %v2875_v39  ;;  %v2162_v16 = vpop.f32.mrf.mxu2  ;;  %v2491_v39 = vld [vmem:[#allocation2 + $0x16a] sm:$0xff] }
 0x2d3   : > { %v2295_v41 = vpop.f32.mrf.mxu3 }
 0x2d4   : > { %v2296_v6 = vadd.f32 %v2295_v41, %v2155_v8  ;;  %v7663_v41 = vpack.c.bf16 %v2008_v48, %v2007_v32  ;;  %v2774_v32 = vadd.f32 %v7565_v10, %v7547_v37 }
 0x2d6   : > { %v2401_v40 = vadd.f32 %v2369_v9, %v2296_v6  ;;  %v2772_v9 = vadd.f32 %v7554_v58, %v7540_v30  ;;  %6396 = vmatmul.msk.bf16.gmra.mxu2 %vm344_vm1, %v7660_v21  ;;  %v2371_v30 = vld [vmem:[#allocation4 + $0x30] sm:$0xff] }
 0x2d7   : > { %v7653_v44 = vpop.f32.mrf.mxu1  ;;  %v2844_v56 = vld [vmem:[#allocation4 + $0x18] sm:$0xff] }
 0x2d8   : > { %2433 = vst.msk [vmem:[#allocation4 + $0x20] sm:$0xff] %vm344_vm1, %v2401_v40  ;;  %v2876_v11 = vadd.f32 %v2844_v56, %v2769_v47  ;;  %v7674_v40 = vpop.f32.mrf.mxu0 }
 0x2da   : > { %2908 = vst.msk [vmem:[#allocation4 + $0x18] sm:$0xff] %vm344_vm1, %v2876_v11  ;;  %v2165_v56 = vpop.f32.mrf.mxu2  ;;  %6486 = vmatmul.msk.bf16.vlgmr.msrb.gmra.mxu0 %vm344_vm1, %v7431_v14  ;;  %v2010_v14 = vld [vmem:[#allocation2 + $0x129] sm:$0xff] }
 0x2db   : > { %v2297_v8 = vpop.f32.mrf.mxu3 }
 0x2dc   : > { %v2298_v34 = vadd.f32 %v2297_v8, %v2157_v51  ;;  %v2508_v51 = vpack.c.bf16 %v2492_v13, %v2491_v39 }
 0x2de   : > { %v2402_v31 = vadd.f32 %v2370_v29, %v2298_v34  ;;  %v2059_v34 = vld [vmem:[#allocation3 + $0x139] sm:$0xff]  ;;  %v2060_v29 = vld [vmem:[#allocation3 + $0x141] sm:$0xff] }
 0x2df   : > { %v7665_v6 = vpop.f32.mrf.mxu1  ;;  %v2845_v47 = vld [vmem:[#allocation4 + $0x20] sm:$0xff] }
 0x2e0   : > { %2434 = vst.msk [vmem:[#allocation4 + $0x28] sm:$0xff] %vm344_vm1, %v2402_v31  ;;  %6411 = vmatmul.msk.bf16.gmra.mxu3 %vm344_vm1, %v7663_v41  ;;  %v2877_v54 = vadd.f32 %v2845_v47, %v2772_v9  ;;  %v7685_v48 = vpop.f32.mrf.mxu0  ;;  %v2009_v31 = vld [vmem:[#allocation2 + $0x121] sm:$0xff]  ;;  %v7687_v47 = vpack.c.bf16 %v2060_v29, %v2059_v34 }
 0x2e1   : > { %v7690_v37 = vpack.c.bf16 %v2010_v14, %v2009_v31  ;;  %v2062_v31 = vld [vmem:[#allocation3 + $0x159] sm:$0xff] }
 0x2e2   : > { %6449 = vmatmul.msk.bf16.gmra.mxu1 %vm344_vm1, %v2508_v51  ;;  %2909 = vst.msk [vmem:[#allocation4 + $0x20] sm:$0xff] %vm344_vm1, %v2877_v54  ;;  %v2167_v9 = vpop.f32.mrf.mxu2  ;;  %v2372_v54 = vld [vmem:[#allocation4 + $0x38] sm:$0xff] }
 0x2e3   : > { %v2300_v46 = vpop.f32.mrf.mxu3 }
 0x2e4   : > { %v2301_v11 = vadd.f32 %v2300_v46, %v2160_v43 }
 0x2e6   : > { %v2403_v58 = vadd.f32 %v2371_v30, %v2301_v11  ;;  %v2777_v11 = vadd.f32 %v7574_v24, %v7560_v61  ;;  %6397 = vmatmul.msk.bf16.gmra.mxu2 %vm344_vm1, %v7687_v47  ;;  %v2373_v61 = vld [vmem:[#allocation4 + $0x40] sm:$0xff] }
 0x2e7   : > { %v7680_v8 = vpop.f32.mrf.mxu1  ;;  %v2846_v39 = vld [vmem:[#allocation4 + $0x28] sm:$0xff] }
 0x2e8   : > { %2435 = vst.msk [vmem:[#allocation4 + $0x30] sm:$0xff] %vm344_vm1, %v2403_v58  ;;  %v2878_v43 = vadd.f32 %v2846_v39, %v2774_v32 }
 0x2ea   : > { %2910 = vst.msk [vmem:[#allocation4 + $0x28] sm:$0xff] %vm344_vm1, %v2878_v43  ;;  %v2170_v34 = vpop.f32.mrf.mxu2  ;;  %6487 = vmatmul.msk.bf16.gmra.mxu0 %vm344_vm1, %v7443_v45  ;;  %v2779_v43 = vadd.f32 %v7585_v35, %v7567_v1  ;;  %v2012_v45 = vld [vmem:[#allocation2 + $0x141] sm:$0xff] }
 0x2eb   : > { %v2302_v13 = vpop.f32.mrf.mxu3 }
 0x2ec   : > { %v2303_v51 = vadd.f32 %v2302_v13, %v2162_v16  ;;  %v7701_v16 = vpop.f32.mrf.mxu0 }
 0x2ee   : > { %v2404_v46 = vadd.f32 %v2372_v54, %v2303_v51  ;;  %v2011_v54 = vld [vmem:[#allocation2 + $0x139] sm:$0xff] }
 0x2ef   : > { %v7692_v10 = vpop.f32.mrf.mxu1  ;;  %v2847_v30 = vld [vmem:[#allocation4 + $0x30] sm:$0xff]  ;;  %v7718_v1 = vpack.c.bf16 %v2012_v45, %v2011_v54  ;;  %v2064_v54 = vld [vmem:[#allocation3 + $0x171] sm:$0xff] }
 0x2f0   : > { %2436 = vst.msk [vmem:[#allocation4 + $0x38] sm:$0xff] %vm344_vm1, %v2404_v46  ;;  %6412 = vmatmul.msk.bf16.gmra.mxu3 %vm344_vm1, %v7690_v37  ;;  %v2879_v58 = vadd.f32 %v2847_v30, %v2777_v11 }
 0x2f2   : > { %6502 = vmatmul.msk.bf16.vlgmr.msrb.gmra.mxu1 %vm344_vm1, %v7446_v49  ;;  %2911 = vst.msk [vmem:[#allocation4 + $0x30] sm:$0xff] %vm344_vm1, %v2879_v58  ;;  %v2061_v49 = vld [vmem:[#allocation3 + $0x151] sm:$0xff]  ;;  %v2172_v46 = vpop.f32.mrf.mxu2 }
 0x2f3   : > { %v2305_v32 = vpop.f32.mrf.mxu3  ;;  %v7715_v30 = vpack.c.bf16 %v2062_v31, %v2061_v49  ;;  %v2374_v58 = vld [vmem:[#allocation4 + $0x48] sm:$0xff] }
 0x2f4   : > { %v2306_v29 = vadd.f32 %v2305_v32, %v2165_v56  ;;  %v7713_v13 = vpop.f32.mrf.mxu0 }
 0x2f6   : > { %v2405_v24 = vadd.f32 %v2373_v61, %v2306_v29  ;;  %v2782_v29 = vadd.f32 %v7594_v62, %v7580_v28  ;;  %6398 = vmatmul.msk.bf16.gmra.mxu2 %vm344_vm1, %v7715_v30  ;;  %v2375_v28 = vld [vmem:[#allocation4 + $0x50] sm:$0xff] }
 0x2f7   : > { %v7708_v39 = vpop.f32.mrf.mxu1  ;;  %v2848_v14 = vld [vmem:[#allocation4 + $0x38] sm:$0xff] }
 0x2f8   : > { %2437 = vst.msk [vmem:[#allocation4 + $0x40] sm:$0xff] %vm344_vm1, %v2405_v24  ;;  %v2880_v56 = vadd.f32 %v2848_v14, %v2779_v43 }
 0x2fa   : > { %2912 = vst.msk [vmem:[#allocation4 + $0x38] sm:$0xff] %vm344_vm1, %v2880_v56  ;;  %v2175_v49 = vpop.f32.mrf.mxu2  ;;  %6488 = vmatmul.msk.bf16.gmra.mxu0 %vm344_vm1, %v7467_v7  ;;  %v2784_v56 = vadd.f32 %v7604_v17, %v7587_v36  ;;  %v2014_v7 = vld [vmem:[#allocation2 + $0x159] sm:$0xff] }
 0x2fb   : > { %v2307_v51 = vpop.f32.mrf.mxu3 }
 0x2fc   : > { %v2308_v11 = vadd.f32 %v2307_v51, %v2167_v9  ;;  %v7729_v9 = vpop.f32.mrf.mxu0 }
 0x2fe   : > { %v2406_v32 = vadd.f32 %v2374_v58, %v2308_v11  ;;  %v2013_v58 = vld [vmem:[#allocation2 + $0x151] sm:$0xff] }
 0x2ff   : > { %v7720_v35 = vpop.f32.mrf.mxu1  ;;  %v2849_v61 = vld [vmem:[#allocation4 + $0x40] sm:$0xff]  ;;  %v7746_v36 = vpack.c.bf16 %v2014_v7, %v2013_v58  ;;  %v2986_v58 = vld [vmem:[#allocation3 + $0x20] sm:$0xff] }
 0x300   : > { %2438 = vst.msk [vmem:[#allocation4 + $0x48] sm:$0xff] %vm344_vm1, %v2406_v32  ;;  %6413 = vmatmul.msk.bf16.gmra.mxu3 %vm344_vm1, %v7718_v1  ;;  %v2881_v24 = vadd.f32 %v2849_v61, %v2782_v29 }
 0x302   : > { %6503 = vmatmul.msk.bf16.gmra.mxu1 %vm344_vm1, %v7470_v12  ;;  %2913 = vst.msk [vmem:[#allocation4 + $0x40] sm:$0xff] %vm344_vm1, %v2881_v24  ;;  %v2063_v12 = vld [vmem:[#allocation3 + $0x169] sm:$0xff]  ;;  %v2177_v32 = vpop.f32.mrf.mxu2 }
 0x303   : > { %v2310_v43 = vpop.f32.mrf.mxu3  ;;  %v7743_v61 = vpack.c.bf16 %v2064_v54, %v2063_v12  ;;  %v2376_v24 = vld [vmem:[#allocation4 + $0x58] sm:$0xff] }
 0x304   : > { %v2311_v31 = vadd.f32 %v2310_v43, %v2170_v34  ;;  %v7741_v51 = vpop.f32.mrf.mxu0 }
 0x306   : > { %v2407_v62 = vadd.f32 %v2375_v28, %v2311_v31  ;;  %v2787_v31 = vadd.f32 %v7615_v60, %v7600_v5  ;;  %6399 = vmatmul.msk.bf16.gmra.mxu2 %vm344_vm1, %v7743_v61  ;;  %v2377_v5 = vld [vmem:[#allocation4 + $0x60] sm:$0xff] }
 0x307   : > { %v7736_v14 = vpop.f32.mrf.mxu1  ;;  %v2850_v45 = vld [vmem:[#allocation4 + $0x48] sm:$0xff] }
 0x308   : > { %2439 = vst.msk [vmem:[#allocation4 + $0x50] sm:$0xff] %vm344_vm1, %v2407_v62  ;;  %v2882_v34 = vadd.f32 %v2850_v45, %v2784_v56 }
 0x30a   : > { %2914 = vst.msk [vmem:[#allocation4 + $0x48] sm:$0xff] %vm344_vm1, %v2882_v34  ;;  %v2180_v12 = vpop.f32.mrf.mxu2  ;;  %6489 = vmatmul.msk.bf16.gmra.mxu0 %vm344_vm1, %v7490_v38  ;;  %v2789_v34 = vadd.f32 %v7627_v22, %v7607_v20  ;;  %v2792_v22 = vadd.f32 %v7639_v15, %v7622_v4  ;;  %v2379_v4 = vld [vmem:[#allocation4 + $0x70] sm:$0xff] }
 0x30b   : > { %v2312_v11 = vpop.f32.mrf.mxu3 }
 0x30c   : > { %v2313_v29 = vadd.f32 %v2312_v11, %v2172_v46  ;;  %v7757_v46 = vpop.f32.mrf.mxu0 }
 0x30e   : > { %v2408_v43 = vadd.f32 %v2376_v24, %v2313_v29  ;;  %v2016_v24 = vld [vmem:[#allocation2 + $0x171] sm:$0xff] }
 0x30f   : > { %v7748_v17 = vpop.f32.mrf.mxu1  ;;  %v2851_v28 = vld [vmem:[#allocation4 + $0x50] sm:$0xff] }
 0x310   : > { %2440 = vst.msk [vmem:[#allocation4 + $0x58] sm:$0xff] %vm344_vm1, %v2408_v43  ;;  %6414 = vmatmul.msk.bf16.gmra.mxu3 %vm344_vm1, %v7746_v36  ;;  %v2883_v62 = vadd.f32 %v2851_v28, %v2787_v31  ;;  %v2378_v28 = vld [vmem:[#allocation4 + $0x68] sm:$0xff] }
 0x312   : > { %6504 = vmatmul.msk.bf16.gmra.mxu1 %vm344_vm1, %v7493_v42  ;;  %2915 = vst.msk [vmem:[#allocation4 + $0x50] sm:$0xff] %vm344_vm1, %v2883_v62  ;;  %v2985_v42 = vld [vmem:[#allocation3 + $0x18] sm:$0xff]  ;;  %v2182_v38 = vpop.f32.mrf.mxu2 }
 0x313   : > { %v2315_v56 = vpop.f32.mrf.mxu3  ;;  %v3017_v31 = vpack.c.bf16 %v2986_v58, %v2985_v42  ;;  %v2015_v62 = vld [vmem:[#allocation2 + $0x169] sm:$0xff] }
 0x314   : > { %v2316_v54 = vadd.f32 %v2315_v56, %v2175_v49  ;;  %v7769_v11 = vpop.f32.mrf.mxu0 }
 0x316   : > { %v2409_v60 = vadd.f32 %v2377_v5, %v2316_v54  ;;  %v7772_v54 = vpack.c.bf16 %v2016_v24, %v2015_v62  ;;  %6452 = vmatmul.msk.bf16.vlgmr.msrb.gmra.mxu2 %vm344_vm1, %v3017_v31  ;;  %v2988_v24 = vld [vmem:[#allocation3 + $0x38] sm:$0xff] }
 0x317   : > { %v7764_v45 = vpop.f32.mrf.mxu1  ;;  %v2852_v7 = vld [vmem:[#allocation4 + $0x58] sm:$0xff] }
 0x318   : > { %2441 = vst.msk [vmem:[#allocation4 + $0x60] sm:$0xff] %vm344_vm1, %v2409_v60  ;;  %v2884_v49 = vadd.f32 %v2852_v7, %v2789_v34 }
 0x31a   : > { %2916 = vst.msk [vmem:[#allocation4 + $0x58] sm:$0xff] %vm344_vm1, %v2884_v49  ;;  %v2185_v42 = vpop.f32.mrf.mxu2  ;;  %6490 = vmatmul.msk.bf16.gmra.mxu0 %vm344_vm1, %v7509_v63  ;;  %v2794_v49 = vadd.f32 %v7653_v44, %v7632_v26  ;;  %v2938_v63 = vld [vmem:[#allocation2 + $0x20] sm:$0xff] }
 0x31b   : > { %v2317_v29 = vpop.f32.mrf.mxu3 }
 0x31c   : > { %v2318_v43 = vadd.f32 %v2317_v29, %v2177_v32  ;;  %v7782_v32 = vpop.f32.mrf.mxu0 }
 0x31e   : > { %v2410_v56 = vadd.f32 %v2378_v28, %v2318_v43  ;;  %v2937_v28 = vld [vmem:[#allocation2 + $0x18] sm:$0xff] }
 0x31f   : > { %v7774_v20 = vpop.f32.mrf.mxu1  ;;  %v2853_v5 = vld [vmem:[#allocation4 + $0x60] sm:$0xff]  ;;  %v2969_v26 = vpack.c.bf16 %v2938_v63, %v2937_v28 }
 0x320   : > { %2442 = vst.msk [vmem:[#allocation4 + $0x68] sm:$0xff] %vm344_vm1, %v2410_v56  ;;  %6415 = vmatmul.msk.bf16.gmra.mxu3 %vm344_vm1, %v7772_v54  ;;  %v2885_v60 = vadd.f32 %v2853_v5, %v2792_v22  ;;  %v2380_v5 = vld [vmem:[#allocation4 + $0x78] sm:$0xff] }
 0x322   : > { %6505 = vmatmul.msk.bf16.gmra.mxu1 %vm344_vm1, %v7512_v2  ;;  %2917 = vst.msk [vmem:[#allocation4 + $0x60] sm:$0xff] %vm344_vm1, %v2885_v60  ;;  %v2987_v2 = vld [vmem:[#allocation3 + $0x30] sm:$0xff]  ;;  %v2187_v62 = vpop.f32.mrf.mxu2 }
 0x323   : > { %v2320_v34 = vpop.f32.mrf.mxu3  ;;  %v7796_v22 = vpack.c.bf16 %v2988_v24, %v2987_v2 }
 0x324   : > { %v2321_v58 = vadd.f32 %v2320_v34, %v2180_v12  ;;  %v7794_v29 = vpop.f32.mrf.mxu0  ;;  %v2797_v34 = vadd.f32 %v7665_v6, %v7648_v25  ;;  %v2381_v25 = vld [vmem:[#allocation4 + $0x80] sm:$0xff] }
 0x326   : > { %v2411_v15 = vadd.f32 %v2379_v4, %v2321_v58  ;;  %6453 = vmatmul.msk.bf16.gmra.mxu2 %vm344_vm1, %v7796_v22 }
 0x327   : > { %v7789_v7 = vpop.f32.mrf.mxu1  ;;  %v2854_v43 = vld [vmem:[#allocation4 + $0x68] sm:$0xff] }
 0x328   : > { %2443 = vst.msk [vmem:[#allocation4 + $0x70] sm:$0xff] %vm344_vm1, %v2411_v15  ;;  %v2886_v12 = vadd.f32 %v2854_v43, %v2794_v49  ;;  %v2799_v43 = vadd.f32 %v7680_v8, %v7658_v50 }
 0x32a   : > { %2918 = vst.msk [vmem:[#allocation4 + $0x68] sm:$0xff] %vm344_vm1, %v2886_v12  ;;  %v2190_v49 = vpop.f32.mrf.mxu2  ;;  %6491 = vmatmul.msk.bf16.gmra.mxu0 %vm344_vm1, %v7529_v23  ;;  %v2940_v23 = vld [vmem:[#allocation2 + $0x38] sm:$0xff] }
 0x32b   : > { %v2322_v31 = vpop.f32.mrf.mxu3 }
 0x32c   : > { %v2323_v56 = vadd.f32 %v2322_v31, %v2182_v38  ;;  %v7807_v38 = vpop.f32.mrf.mxu0  ;;  %v2990_v31 = vld [vmem:[#allocation3 + $0x50] sm:$0xff] }
 0x32e   : > { %v2412_v60 = vadd.f32 %v2380_v5, %v2323_v56  ;;  %v2939_v56 = vld [vmem:[#allocation2 + $0x30] sm:$0xff] }
 0x32f   : > { %v7799_v44 = vpop.f32.mrf.mxu1  ;;  %v2855_v58 = vld [vmem:[#allocation4 + $0x70] sm:$0xff]  ;;  %v7824_v50 = vpack.c.bf16 %v2940_v23, %v2939_v56  ;;  %v2804_v56 = vadd.f32 %v7708_v39, %v7685_v48 }
 0x330   : > { %2444 = vst.msk [vmem:[#allocation4 + $0x78] sm:$0xff] %vm344_vm1, %v2412_v60  ;;  %6468 = vmatmul.msk.bf16.vlgmr.msrb.gmra.mxu3 %vm344_vm1, %v2969_v26  ;;  %v2887_v4 = vadd.f32 %v2855_v58, %v2797_v34  ;;  %v2382_v34 = vld [vmem:[#allocation4 + $0x88] sm:$0xff]  ;;  %v2991_v23 = vld [vmem:[#allocation3 + $0x60] sm:$0xff] }
 0x332   : > { %6506 = vmatmul.msk.bf16.gmra.mxu1 %vm344_vm1, %v7532_v27  ;;  %2919 = vst.msk [vmem:[#allocation4 + $0x70] sm:$0xff] %vm344_vm1, %v2887_v4  ;;  %v2989_v27 = vld [vmem:[#allocation3 + $0x48] sm:$0xff]  ;;  %v2192_v5 = vpop.f32.mrf.mxu2  ;;  %v2802_v4 = vadd.f32 %v7692_v10, %v7674_v40 }
 0x333   : > { %v2325_v15 = vpop.f32.mrf.mxu3  ;;  %v7821_v26 = vpack.c.bf16 %v2990_v31, %v2989_v27 }
 0x334   : > { %v2326_v2 = vadd.f32 %v2325_v15, %v2185_v42  ;;  %v7819_v12 = vpop.f32.mrf.mxu0  ;;  %v6518_v15 = vld [vmem:[%s9319_s4 + $0x28] sm:$0xf] }
 0x335   : > { %v4178_v10 = vsel %vm1720_vm7, %v6518_v15, 0 }
 0x336   : > { %v2413_v6 = vadd.f32 %v2381_v25, %v2326_v2  ;;  %6454 = vmatmul.msk.bf16.gmra.mxu2 %vm344_vm1, %v7821_v26  ;;  %4187 = vmatpush.bf16.msra.mxu3 %v4178_v10  ;;  %v2384_v10 = vld [vmem:[#allocation4 + $0x98] sm:$0xff] }
 0x337   : > { %v7814_v24 = vpop.f32.mrf.mxu1  ;;  %v2856_v28 = vld [vmem:[#allocation4 + $0x78] sm:$0xff] }
 0x338   : > { %2445 = vst.msk [vmem:[#allocation4 + $0x80] sm:$0xff] %vm344_vm1, %v2413_v6  ;;  %v2888_v42 = vadd.f32 %v2856_v28, %v2799_v43  ;;  %v2383_v28 = vld [vmem:[#allocation4 + $0x90] sm:$0xff] }
 0x33a   : > { %2920 = vst.msk [vmem:[#allocation4 + $0x78] sm:$0xff] %vm344_vm1, %v2888_v42  ;;  %v2195_v27 = vpop.f32.mrf.mxu2  ;;  %6492 = vmatmul.msk.bf16.gmra.mxu0 %vm344_vm1, %v7549_v52  ;;  %v2942_v52 = vld [vmem:[#allocation2 + $0x50] sm:$0xff] }
 0x33b   : > { %v2327_v63 = vpop.f32.mrf.mxu3 }
 0x33c   : > { %v2328_v60 = vadd.f32 %v2327_v63, %v2187_v62  ;;  %v6519_v62 = vld [vmem:[%s9319_s4 + $0x2c] sm:$0xf]  ;;  %v7841_v2 = vpop.f32.mrf.mxu0 }
 0x33d   : > { %v4038_v40 = vsel %vm1720_vm7, %v6519_v62, 0 }
 0x33e   : > { %v2414_v58 = vadd.f32 %v2382_v34, %v2328_v60  ;;  %4047 = vmatpush.bf16.msra.mxu2 %v4038_v40  ;;  %v2992_v60 = vld [vmem:[#allocation3 + $0x68] sm:$0xff] }
 0x33f   : > { %v7826_v8 = vpop.f32.mrf.mxu1  ;;  %v2857_v25 = vld [vmem:[#allocation4 + $0x80] sm:$0xff]  ;;  %v7857_v40 = vpack.c.bf16 %v2992_v60, %v2991_v23 }
 0x340   : > { %2446 = vst.msk [vmem:[#allocation4 + $0x88] sm:$0xff] %vm344_vm1, %v2414_v58  ;;  %6469 = vmatmul.msk.bf16.gmra.mxu3 %vm344_vm1, %v7824_v50  ;;  %v2889_v6 = vadd.f32 %v2857_v25, %v2802_v4  ;;  %v2941_v4 = vld [vmem:[#allocation2 + $0x48] sm:$0xff] }
 0x341   : > { %v7860_v48 = vpack.c.bf16 %v2942_v52, %v2941_v4  ;;  %v2809_v4 = vadd.f32 %v7736_v14, %v7713_v13  ;;  %v2993_v52 = vld [vmem:[#allocation3 + $0x78] sm:$0xff] }
 0x342   : > { %6507 = vmatmul.msk.bf16.gmra.mxu1 %vm344_vm1, %v7552_v57  ;;  %2921 = vst.msk [vmem:[#allocation4 + $0x80] sm:$0xff] %vm344_vm1, %v2889_v6  ;;  %v2197_v62 = vpop.f32.mrf.mxu2  ;;  %v2807_v6 = vadd.f32 %v7720_v35, %v7701_v16 }
 0x343   : > { %v2330_v43 = vpop.f32.mrf.mxu3 }
 0x344   : > { %v2331_v31 = vadd.f32 %v2330_v43, %v2190_v49  ;;  %v7855_v57 = vpop.f32.mrf.mxu0  ;;  %v6552_v43 = vld [vmem:[%s9319_s4 + $0x30] sm:$0xf] }
 0x345   : > { %v4655_v35 = vsel %vm1720_vm7, %v6552_v43, 0 }
 0x346   : > { %v2415_v42 = vadd.f32 %v2383_v28, %v2331_v31  ;;  %6455 = vmatmul.msk.bf16.gmra.mxu2 %vm344_vm1, %v7857_v40  ;;  %4664 = vmatpush.bf16.msra.mxu1 %v4655_v35  ;;  %v2386_v35 = vld [vmem:[#allocation4 + $0xa8] sm:$0xff] }
 0x347   : > { %v7850_v63 = vpop.f32.mrf.mxu1  ;;  %v2858_v34 = vld [vmem:[#allocation4 + $0x88] sm:$0xff] }
 0x348   : > { %2447 = vst.msk [vmem:[#allocation4 + $0x90] sm:$0xff] %vm344_vm1, %v2415_v42  ;;  %v2890_v49 = vadd.f32 %v2858_v34, %v2804_v56  ;;  %v2385_v34 = vld [vmem:[#allocation4 + $0xa0] sm:$0xff] }
 0x34a   : > { %2922 = vst.msk [vmem:[#allocation4 + $0x88] sm:$0xff] %vm344_vm1, %v2890_v49  ;;  %v2200_v23 = vpop.f32.mrf.mxu2  ;;  %6493 = vmatmul.msk.bf16.gmra.mxu0 %vm344_vm1, %v7569_v19  ;;  %v2944_v19 = vld [vmem:[#allocation2 + $0x68] sm:$0xff] }
 0x34b   : > { %v2332_v58 = vpop.f32.mrf.mxu3 }
 0x34c   : > { %v2333_v15 = vadd.f32 %v2332_v58, %v2192_v5  ;;  %v6553_v5 = vld [vmem:[%s9319_s4 + $0x34] sm:$0xf]  ;;  %v7877_v31 = vpop.f32.mrf.mxu0 }
 0x34d   : > { %v4515_v16 = vsel %vm1720_vm7, %v6553_v5, 0 }
 0x34e   : > { %v2416_v25 = vadd.f32 %v2384_v10, %v2333_v15  ;;  %4524 = vmatpush.bf16.msra.mxu0 %v4515_v16  ;;  %v2994_v15 = vld [vmem:[#allocation3 + $0x80] sm:$0xff] }
 0x34f   : > { %v7862_v39 = vpop.f32.mrf.mxu1  ;;  %v2859_v28 = vld [vmem:[#allocation4 + $0x90] sm:$0xff]  ;;  %v7893_v16 = vpack.c.bf16 %v2994_v15, %v2993_v52  ;;  %v2814_v15 = vadd.f32 %v7764_v45, %v7741_v51 }
 0x350   : > { %2448 = vst.msk [vmem:[#allocation4 + $0x98] sm:$0xff] %vm344_vm1, %v2416_v25  ;;  %6470 = vmatmul.msk.bf16.gmra.mxu3 %vm344_vm1, %v7860_v48  ;;  %v2891_v42 = vadd.f32 %v2859_v28, %v2807_v6  ;;  %v2943_v6 = vld [vmem:[#allocation2 + $0x60] sm:$0xff] }
 0x351   : > { %v7896_v13 = vpack.c.bf16 %v2944_v19, %v2943_v6  ;;  %v2945_v19 = vld [vmem:[#allocation2 + $0x78] sm:$0xff] }
 0x352   : > { %6508 = vmatmul.msk.bf16.gmra.mxu1 %vm344_vm1, %v7572_v18  ;;  %2923 = vst.msk [vmem:[#allocation4 + $0x90] sm:$0xff] %vm344_vm1, %v2891_v42  ;;  %v2202_v5 = vpop.f32.mrf.mxu2  ;;  %v2812_v42 = vadd.f32 %v7748_v17, %v7729_v9  ;;  %v2387_v9 = vld [vmem:[#allocation4 + $0xb0] sm:$0xff] }
 0x353   : > { %v2335_v56 = vpop.f32.mrf.mxu3 }
 0x354   : > { %v2336_v60 = vadd.f32 %v2335_v56, %v2195_v27  ;;  %v7891_v18 = vpop.f32.mrf.mxu0 }
 0x356   : > { %v2417_v49 = vadd.f32 %v2385_v34, %v2336_v60  ;;  %6456 = vmatmul.msk.bf16.gmra.mxu2 %vm344_vm1, %v7893_v16 }
 0x357   : > { %v7886_v58 = vpop.f32.mrf.mxu1  ;;  %v2860_v10 = vld [vmem:[#allocation4 + $0x98] sm:$0xff] }
 0x358   : > { %2449 = vst.msk [vmem:[#allocation4 + $0xa0] sm:$0xff] %vm344_vm1, %v2417_v49  ;;  %v2892_v27 = vadd.f32 %v2860_v10, %v2809_v4 }
 0x35a   : > { %2924 = vst.msk [vmem:[#allocation4 + $0x98] sm:$0xff] %vm344_vm1, %v2892_v27  ;;  %v2205_v49 = vpop.f32.mrf.mxu2  ;;  %6494 = vmatmul.msk.bf16.gmra.mxu0 %vm344_vm1, %v7589_v53  ;;  %v2996_v27 = vld [vmem:[#allocation3 + $0x98] sm:$0xff]  ;;  %v2946_v53 = vld [vmem:[#allocation2 + $0x80] sm:$0xff] }
 0x35b   : > { %v2337_v25 = vpop.f32.mrf.mxu3  ;;  %v7924_v51 = vpack.c.bf16 %v2946_v53, %v2945_v19  ;;  %v2947_v53 = vld [vmem:[#allocation2 + $0x90] sm:$0xff] }
 0x35c   : > { %v2338_v43 = vadd.f32 %v2337_v25, %v2197_v62  ;;  %v7907_v62 = vpop.f32.mrf.mxu0 }
 0x35e   : > { %v2418_v28 = vadd.f32 %v2386_v35, %v2338_v43 }
 0x35f   : > { %v7898_v14 = vpop.f32.mrf.mxu1  ;;  %v2861_v56 = vld [vmem:[#allocation4 + $0xa0] sm:$0xff] }
 0x360   : > { %2450 = vst.msk [vmem:[#allocation4 + $0xa8] sm:$0xff] %vm344_vm1, %v2418_v28  ;;  %6471 = vmatmul.msk.bf16.gmra.mxu3 %vm344_vm1, %v7896_v13  ;;  %v2893_v60 = vadd.f32 %v2861_v56, %v2812_v42  ;;  %v2388_v42 = vld [vmem:[#allocation4 + $0xb8] sm:$0xff] }
 0x362   : > { %6509 = vmatmul.msk.bf16.gmra.mxu1 %vm344_vm1, %v7592_v55  ;;  %2925 = vst.msk [vmem:[#allocation4 + $0xa0] sm:$0xff] %vm344_vm1, %v2893_v60  ;;  %v2995_v55 = vld [vmem:[#allocation3 + $0x90] sm:$0xff]  ;;  %v2207_v43 = vpop.f32.mrf.mxu2  ;;  %v2817_v60 = vadd.f32 %v7774_v20, %v7757_v46 }
 0x363   : > { %v2340_v34 = vpop.f32.mrf.mxu3  ;;  %v7921_v28 = vpack.c.bf16 %v2996_v27, %v2995_v55  ;;  %v2389_v46 = vld [vmem:[#allocation4 + $0xc0] sm:$0xff]  ;;  %v2819_v27 = vadd.f32 %v7789_v7, %v7769_v11 }
 0x364   : > { %v2341_v4 = vadd.f32 %v2340_v34, %v2200_v23  ;;  %v7919_v10 = vpop.f32.mrf.mxu0 }
 0x366   : > { %v2419_v17 = vadd.f32 %v2387_v9, %v2341_v4  ;;  %6457 = vmatmul.msk.bf16.gmra.mxu2 %vm344_vm1, %v7921_v28 }
 0x367   : > { %v7914_v52 = vpop.f32.mrf.mxu1  ;;  %v2862_v25 = vld [vmem:[#allocation4 + $0xa8] sm:$0xff] }
 0x368   : > { %2451 = vst.msk [vmem:[#allocation4 + $0xb0] sm:$0xff] %vm344_vm1, %v2419_v17  ;;  %v2894_v23 = vadd.f32 %v2862_v25, %v2814_v15 }
 0x36a   : > { %2926 = vst.msk [vmem:[#allocation4 + $0xa8] sm:$0xff] %vm344_vm1, %v2894_v23  ;;  %v2210_v17 = vpop.f32.mrf.mxu2  ;;  %6495 = vmatmul.msk.bf16.gmra.mxu0 %vm344_vm1, %v7609_v33  ;;  %v2998_v23 = vld [vmem:[#allocation3 + $0xb0] sm:$0xff]  ;;  %v2948_v33 = vld [vmem:[#allocation2 + $0x98] sm:$0xff] }
 0x36b   : > { %v2342_v6 = vpop.f32.mrf.mxu3  ;;  %v7952_v11 = vpack.c.bf16 %v2948_v33, %v2947_v53  ;;  %v2950_v33 = vld [vmem:[#allocation2 + $0xb0] sm:$0xff] }
 0x36c   : > { %v2343_v35 = vadd.f32 %v2342_v6, %v2202_v5  ;;  %v7935_v5 = vpop.f32.mrf.mxu0 }
 0x36e   : > { %v2420_v56 = vadd.f32 %v2388_v42, %v2343_v35 }
 0x36f   : > { %v7926_v45 = vpop.f32.mrf.mxu1  ;;  %v2863_v34 = vld [vmem:[#allocation4 + $0xb0] sm:$0xff] }
 0x370   : > { %2452 = vst.msk [vmem:[#allocation4 + $0xb8] sm:$0xff] %vm344_vm1, %v2420_v56  ;;  %6472 = vmatmul.msk.bf16.gmra.mxu3 %vm344_vm1, %v7924_v51  ;;  %v2895_v4 = vadd.f32 %v2863_v34, %v2817_v60  ;;  %v2390_v60 = vld [vmem:[#allocation4 + $0xc8] sm:$0xff] }
 0x372   : > { %6510 = vmatmul.msk.bf16.gmra.mxu1 %vm344_vm1, %v7613_v59  ;;  %2927 = vst.msk [vmem:[#allocation4 + $0xb0] sm:$0xff] %vm344_vm1, %v2895_v4  ;;  %v2997_v59 = vld [vmem:[#allocation3 + $0xa8] sm:$0xff]  ;;  %v2212_v35 = vpop.f32.mrf.mxu2  ;;  %v2822_v4 = vadd.f32 %v7799_v44, %v7782_v32  ;;  %v2391_v32 = vld [vmem:[#allocation4 + $0xd0] sm:$0xff] }
 0x373   : > { %v2345_v9 = vpop.f32.mrf.mxu3  ;;  %v7949_v56 = vpack.c.bf16 %v2998_v23, %v2997_v59  ;;  %v2824_v23 = vadd.f32 %v7814_v24, %v7794_v29 }
 0x374   : > { %v2346_v15 = vadd.f32 %v2345_v9, %v2205_v49  ;;  %v7947_v25 = vpop.f32.mrf.mxu0 }
 0x376   : > { %v2421_v20 = vadd.f32 %v2389_v46, %v2346_v15  ;;  %6458 = vmatmul.msk.bf16.gmra.mxu2 %vm344_vm1, %v7949_v56 }
 0x377   : > { %v7942_v55 = vpop.f32.mrf.mxu1  ;;  %v2864_v6 = vld [vmem:[#allocation4 + $0xb8] sm:$0xff] }
 0x378   : > { %2453 = vst.msk [vmem:[#allocation4 + $0xc0] sm:$0xff] %vm344_vm1, %v2421_v20  ;;  %v2896_v49 = vadd.f32 %v2864_v6, %v2819_v27 }
 0x37a   : > { %2928 = vst.msk [vmem:[#allocation4 + $0xb8] sm:$0xff] %vm344_vm1, %v2896_v49  ;;  %v2215_v20 = vpop.f32.mrf.mxu2  ;;  %6496 = vmatmul.msk.bf16.gmra.mxu0 %vm344_vm1, %v7634_v0  ;;  %v3000_v49 = vld [vmem:[#allocation3 + $0xc8] sm:$0xff] }
 0x37b   : > { %v2347_v19 = vpop.f32.mrf.mxu3 }
 0x37c   : > { %v2348_v42 = vadd.f32 %v2347_v19, %v2207_v43  ;;  %v7963_v43 = vpop.f32.mrf.mxu0 }
 0x37e   : > { %v2422_v34 = vadd.f32 %v2390_v60, %v2348_v42 }
 0x37f   : > { %v7954_v7 = vpop.f32.mrf.mxu1  ;;  %v2865_v9 = vld [vmem:[#allocation4 + $0xc0] sm:$0xff] }
 0x380   : > { %2454 = vst.msk [vmem:[#allocation4 + $0xc8] sm:$0xff] %vm344_vm1, %v2422_v34  ;;  %6473 = vmatmul.msk.bf16.gmra.mxu3 %vm344_vm1, %v7952_v11  ;;  %v2897_v15 = vadd.f32 %v2865_v9, %v2822_v4  ;;  %v2392_v34 = vld [vmem:[#allocation4 + $0xd8] sm:$0xff]  ;;  %v2949_v4 = vld [vmem:[#allocation2 + $0xa8] sm:$0xff] }
 0x381   : > { %v7980_v29 = vpack.c.bf16 %v2950_v33, %v2949_v4 }
 0x382   : > { %6511 = vmatmul.msk.bf16.gmra.mxu1 %vm344_vm1, %v7637_v3  ;;  %2929 = vst.msk [vmem:[#allocation4 + $0xc0] sm:$0xff] %vm344_vm1, %v2897_v15  ;;  %v2999_v3 = vld [vmem:[#allocation3 + $0xc0] sm:$0xff]  ;;  %v2217_v0 = vpop.f32.mrf.mxu2  ;;  %v2827_v15 = vadd.f32 %v7826_v8, %v7807_v38  ;;  %v2393_v38 = vld [vmem:[#allocation4 + $0xe0] sm:$0xff] }
 0x383   : > { %v2350_v46 = vpop.f32.mrf.mxu3  ;;  %v7977_v60 = vpack.c.bf16 %v3000_v49, %v2999_v3  ;;  %v2829_v49 = vadd.f32 %v7850_v63, %v7819_v12 }
 0x384   : > { %v2351_v27 = vadd.f32 %v2350_v46, %v2210_v17  ;;  %v7975_v6 = vpop.f32.mrf.mxu0 }
 0x386   : > { %v2423_v44 = vadd.f32 %v2391_v32, %v2351_v27  ;;  %6459 = vmatmul.msk.bf16.gmra.mxu2 %vm344_vm1, %v7977_v60 }
 0x387   : > { %v7970_v59 = vpop.f32.mrf.mxu1  ;;  %v2866_v19 = vld [vmem:[#allocation4 + $0xc8] sm:$0xff] }
 0x388   : > { %2455 = vst.msk [vmem:[#allocation4 + $0xd0] sm:$0xff] %vm344_vm1, %v2423_v44  ;;  %v2898_v17 = vadd.f32 %v2866_v19, %v2824_v23 }
 0x38a   : > { %2930 = vst.msk [vmem:[#allocation4 + $0xc8] sm:$0xff] %vm344_vm1, %v2898_v17  ;;  %v2220_v44 = vpop.f32.mrf.mxu2  ;;  %6497 = vmatmul.msk.bf16.gmra.mxu0 %vm344_vm1, %v7660_v21  ;;  %v3002_v17 = vld [vmem:[#allocation3 + $0xe0] sm:$0xff] }
 0x38b   : > { %v2352_v53 = vpop.f32.mrf.mxu3 }
 0x38c   : > { %v2353_v42 = vadd.f32 %v2352_v53, %v2212_v35  ;;  %v7991_v35 = vpop.f32.mrf.mxu0 }
 0x38e   : > { %v2424_v9 = vadd.f32 %v2392_v34, %v2353_v42  ;;  %v2952_v42 = vld [vmem:[#allocation2 + $0xc8] sm:$0xff] }
 0x38f   : > { %v7982_v24 = vpop.f32.mrf.mxu1  ;;  %v2867_v46 = vld [vmem:[#allocation4 + $0xd0] sm:$0xff] }
 0x390   : > { %2456 = vst.msk [vmem:[#allocation4 + $0xd8] sm:$0xff] %vm344_vm1, %v2424_v9  ;;  %6474 = vmatmul.msk.bf16.gmra.mxu3 %vm344_vm1, %v7980_v29  ;;  %v2899_v27 = vadd.f32 %v2867_v46, %v2827_v15  ;;  %v2394_v9 = vld [vmem:[#allocation4 + $0xe8] sm:$0xff]  ;;  %v2951_v15 = vld [vmem:[#allocation2 + $0xc0] sm:$0xff] }
 0x391   : > { %v8008_v12 = vpack.c.bf16 %v2952_v42, %v2951_v15 }
 0x392   : > { %6512 = vmatmul.msk.bf16.gmra.mxu1 %vm344_vm1, %v7663_v41  ;;  %2931 = vst.msk [vmem:[#allocation4 + $0xd0] sm:$0xff] %vm344_vm1, %v2899_v27  ;;  %v3001_v41 = vld [vmem:[#allocation3 + $0xd8] sm:$0xff]  ;;  %v2222_v21 = vpop.f32.mrf.mxu2  ;;  %v2832_v27 = vadd.f32 %v7862_v39, %v7841_v2  ;;  %v2395_v2 = vld [vmem:[#allocation4 + $0xf0] sm:$0xff] }
 0x393   : > { %v2355_v32 = vpop.f32.mrf.mxu3  ;;  %v8005_v4 = vpack.c.bf16 %v3002_v17, %v3001_v41  ;;  %v2834_v17 = vadd.f32 %v7886_v58, %v7855_v57 }
 0x394   : > { %v2356_v23 = vadd.f32 %v2355_v32, %v2215_v20  ;;  %v8003_v19 = vpop.f32.mrf.mxu0 }
 0x396   : > { %v2425_v8 = vadd.f32 %v2393_v38, %v2356_v23  ;;  %6460 = vmatmul.msk.bf16.gmra.mxu2 %vm344_vm1, %v8005_v4 }
 0x397   : > { %v7998_v3 = vpop.f32.mrf.mxu1  ;;  %v2868_v53 = vld [vmem:[#allocation4 + $0xd8] sm:$0xff] }
 0x398   : > { %2457 = vst.msk [vmem:[#allocation4 + $0xe0] sm:$0xff] %vm344_vm1, %v2425_v8  ;;  %v2900_v20 = vadd.f32 %v2868_v53, %v2829_v49 }
 0x39a   : > { %2932 = vst.msk [vmem:[#allocation4 + $0xd8] sm:$0xff] %vm344_vm1, %v2900_v20  ;;  %v3097_v8 = vpop.f32.mrf.mxu2  ;;  %6498 = vmatmul.msk.bf16.gmra.mxu0 %vm344_vm1, %v7687_v47  ;;  %v3004_v20 = vld [vmem:[#allocation3 + $0xf8] sm:$0xff]  ;;  %v2954_v47 = vld [vmem:[#allocation2 + $0xe0] sm:$0xff] }
 0x39b   : > { %v2357_v33 = vpop.f32.mrf.mxu3 }
 0x39c   : > { %v2358_v34 = vadd.f32 %v2357_v33, %v2217_v0  ;;  %v8019_v0 = vpop.f32.mrf.mxu0 }
 0x39e   : > { %v2426_v46 = vadd.f32 %v2394_v9, %v2358_v34  ;;  %v2953_v34 = vld [vmem:[#allocation2 + $0xd8] sm:$0xff] }
 0x39f   : > { %v8010_v63 = vpop.f32.mrf.mxu1  ;;  %v2869_v32 = vld [vmem:[#allocation4 + $0xe0] sm:$0xff]  ;;  %v8036_v57 = vpack.c.bf16 %v2954_v47, %v2953_v34  ;;  %v2956_v47 = vld [vmem:[#allocation2 + $0xf8] sm:$0xff] }
 0x3a0   : > { %2458 = vst.msk [vmem:[#allocation4 + $0xe8] sm:$0xff] %vm344_vm1, %v2426_v46  ;;  %6475 = vmatmul.msk.bf16.gmra.mxu3 %vm344_vm1, %v8008_v12  ;;  %v2901_v23 = vadd.f32 %v2869_v32, %v2832_v27  ;;  %v2396_v27 = vld [vmem:[#allocation4 + $0xf8] sm:$0xff] }
 0x3a2   : > { %6513 = vmatmul.msk.bf16.gmra.mxu1 %vm344_vm1, %v7690_v37  ;;  %2933 = vst.msk [vmem:[#allocation4 + $0xe0] sm:$0xff] %vm344_vm1, %v2901_v23  ;;  %v3003_v37 = vld [vmem:[#allocation3 + $0xf0] sm:$0xff]  ;;  %v3099_v9 = vpop.f32.mrf.mxu2  ;;  %v2837_v23 = vadd.f32 %v7898_v14, %v7877_v31 }
 0x3a3   : > { %v2360_v38 = vpop.f32.mrf.mxu3  ;;  %v8033_v46 = vpack.c.bf16 %v3004_v20, %v3003_v37  ;;  %v3317_v31 = vld [vmem:[#allocation4] sm:$0xff]  ;;  %v2839_v20 = vadd.f32 %v7914_v52, %v7891_v18 }
 0x3a4   : > { %v2361_v49 = vadd.f32 %v2360_v38, %v2220_v44  ;;  %v8031_v53 = vpop.f32.mrf.mxu0 }
 0x3a6   : > { %v2427_v39 = vadd.f32 %v2395_v2, %v2361_v49  ;;  %6461 = vmatmul.msk.bf16.gmra.mxu2 %vm344_vm1, %v8033_v46 }
 0x3a7   : > { %v8026_v41 = vpop.f32.mrf.mxu1  ;;  %v2870_v33 = vld [vmem:[#allocation4 + $0xe8] sm:$0xff] }
 0x3a8   : > { %2459 = vst.msk [vmem:[#allocation4 + $0xf0] sm:$0xff] %vm344_vm1, %v2427_v39  ;;  %v2902_v44 = vadd.f32 %v2870_v33, %v2834_v17 }
 0x3aa   : > { %2934 = vst.msk [vmem:[#allocation4 + $0xe8] sm:$0xff] %vm344_vm1, %v2902_v44  ;;  %v3102_v39 = vpop.f32.mrf.mxu2  ;;  %6499 = vmatmul.msk.bf16.gmra.mxu0 %vm344_vm1, %v7715_v30  ;;  %v3006_v44 = vld [vmem:[#allocation3 + $0x110] sm:$0xff]  ;;  %v2955_v30 = vld [vmem:[#allocation2 + $0xf0] sm:$0xff] }
 0x3ab   : > { %v2362_v42 = vpop.f32.mrf.mxu3  ;;  %v8064_v52 = vpack.c.bf16 %v2956_v47, %v2955_v30  ;;  %v3007_v30 = vld [vmem:[#allocation3 + $0x120] sm:$0xff] }
 0x3ac   : > { %v2363_v15 = vadd.f32 %v2362_v42, %v2222_v21  ;;  %v8047_v21 = vpop.f32.mrf.mxu0 }
 0x3ae   : > { %v2428_v32 = vadd.f32 %v2396_v27, %v2363_v15 }
 0x3af   : > { %v8038_v58 = vpop.f32.mrf.mxu1  ;;  %v2871_v38 = vld [vmem:[#allocation4 + $0xf0] sm:$0xff] }
 0x3b0   : > { %2460 = vst.msk [vmem:[#allocation4 + $0xf8] sm:$0xff] %vm344_vm1, %v2428_v32  ;;  %6476 = vmatmul.msk.bf16.gmra.mxu3 %vm344_vm1, %v8036_v57  ;;  %v2903_v49 = vadd.f32 %v2871_v38, %v2837_v23  ;;  %v3318_v23 = vld [vmem:[#allocation4 + $0x8] sm:$0xff] }
 0x3b2   : > { %6514 = vmatmul.msk.bf16.gmra.mxu1 %vm344_vm1, %v7718_v1  ;;  %2935 = vst.msk [vmem:[#allocation4 + $0xf0] sm:$0xff] %vm344_vm1, %v2903_v49  ;;  %v3005_v1 = vld [vmem:[#allocation3 + $0x108] sm:$0xff]  ;;  %v3104_v15 = vpop.f32.mrf.mxu2  ;;  %v3714_v49 = vadd.f32 %v7926_v45, %v7907_v62 }
 0x3b3   : > { %v3237_v2 = vpop.f32.mrf.mxu3  ;;  %v8061_v32 = vpack.c.bf16 %v3006_v44, %v3005_v1  ;;  %v3319_v44 = vld [vmem:[#allocation4 + $0x10] sm:$0xff] }
 0x3b4   : > { %v3238_v17 = vadd.f32 %v3237_v2, %v3097_v8  ;;  %v8059_v33 = vpop.f32.mrf.mxu0 }
 0x3b6   : > { %v3349_v14 = vadd.f32 %v3317_v31, %v3238_v17  ;;  %6462 = vmatmul.msk.bf16.gmra.mxu2 %vm344_vm1, %v8061_v32 }
 0x3b7   : > { %v8054_v37 = vpop.f32.mrf.mxu1  ;;  %v2872_v42 = vld [vmem:[#allocation4 + $0xf8] sm:$0xff] }
 0x3b8   : > { %3381 = vst.msk [vmem:[#allocation4] sm:$0xff] %vm344_vm1, %v3349_v14  ;;  %v2904_v8 = vadd.f32 %v2872_v42, %v2839_v20 }
 0x3ba   : > { %2936 = vst.msk [vmem:[#allocation4 + $0xf8] sm:$0xff] %vm344_vm1, %v2904_v8  ;;  %v3107_v62 = vpop.f32.mrf.mxu2  ;;  %6500 = vmatmul.msk.bf16.gmra.mxu0 %vm344_vm1, %v7743_v61 }
 0x3bb   : > { %v3239_v34 = vpop.f32.mrf.mxu3 }
 0x3bc   : > { %v3240_v27 = vadd.f32 %v3239_v34, %v3099_v9  ;;  %v6745_v9 = vld [vmem:[%s7230_s30 + $0x78] sm:$0xff]   ;;  %v8076_v2 = vpop.f32.mrf.mxu0  ;;  %s342_s30 = scalar_lea.vmem %s9323_s8, %s9325_s28 }
 0x3bd   : > { %v6729_v17 = vunpack.c.l.bf16 %v6745_v9  ;;  %v6730_v31 = vunpack.c.h.bf16 %v6745_v9 }
 0x3be   : > { %v3350_v18 = vadd.f32 %v3318_v23, %v3240_v27  ;;  %v2957_v23 = vld [vmem:[#allocation2 + $0x108] sm:$0xff] }
 0x3bf   : > { %v8066_v38 = vpop.f32.mrf.mxu1  ;;  %v3793_v14 = vld [vmem:[#allocation4] sm:$0xff]  ;;  %1571 = vst.msk [vmem:[#allocation3 + $0x181] sm:$0xff] %vm344_vm1, %v6729_v17 }
 0x3c0   : > { %3382 = vst.msk [vmem:[#allocation4 + $0x8] sm:$0xff] %vm344_vm1, %v3350_v18  ;;  %6477 = vmatmul.msk.bf16.gmra.mxu3 %vm344_vm1, %v8064_v52  ;;  %v3825_v20 = vadd.f32 %v3793_v14, %v3714_v49  ;;  %v2958_v18 = vld [vmem:[#allocation2 + $0x110] sm:$0xff] }
 0x3c1   : > { %1572 = vst.msk [vmem:[#allocation3 + $0x189] sm:$0xff] %vm344_vm1, %v6730_v31  ;;  %v3320_v31 = vld [vmem:[#allocation4 + $0x18] sm:$0xff] }
 0x3c2   : > { %6515 = vmatmul.msk.bf16.gmra.mxu1 %vm344_vm1, %v7746_v36  ;;  %3857 = vst.msk [vmem:[#allocation4] sm:$0xff] %vm344_vm1, %v3825_v20  ;;  %v3716_v36 = vadd.f32 %v7942_v55, %v7919_v10  ;;  %v3109_v49 = vpop.f32.mrf.mxu2  ;;  %v8095_v20 = vpack.c.bf16 %v2958_v18, %v2957_v23  ;;  %v3010_v18 = vld [vmem:[#allocation3 + $0x140] sm:$0xff] }
 0x3c3   : > { %v3242_v1 = vpop.f32.mrf.mxu3 }
 0x3c4   : > { %v3243_v45 = vadd.f32 %v3242_v1, %v3102_v39  ;;  %v8090_v34 = vpop.f32.mrf.mxu0  ;;  %v3008_v39 = vld [vmem:[#allocation3 + $0x128] sm:$0xff] }
 0x3c5   : > { %v8092_v17 = vpack.c.bf16 %v3008_v39, %v3007_v30 }
 0x3c6   : > { %v3351_v42 = vadd.f32 %v3319_v44, %v3243_v45  ;;  %v3491_v14 = vld [vmem:[#allocation3 + $0x181] sm:$0xff]  ;;  %v3719_v45 = vadd.f32 %v7954_v7, %v7935_v5  ;;  %v3321_v5 = vld [vmem:[#allocation4 + $0x20] sm:$0xff] }
 0x3c7   : > { %v8085_v8 = vpop.f32.mrf.mxu1  ;;  %v3794_v47 = vld [vmem:[#allocation4 + $0x8] sm:$0xff]  ;;  %6463 = vmatmul.msk.bf16.gmra.mxu2 %vm344_vm1, %v8092_v17 }
 0x3c8   : > { %3383 = vst.msk [vmem:[#allocation4 + $0x10] sm:$0xff] %vm344_vm1, %v3351_v42  ;;  %v3826_v27 = vadd.f32 %v3794_v47, %v3716_v36  ;;  %v3492_v10 = vld [vmem:[#allocation3 + $0x189] sm:$0xff] }
 0x3ca   : > { %3858 = vst.msk [vmem:[#allocation4 + $0x8] sm:$0xff] %vm344_vm1, %v3826_v27  ;;  %v3112_v39 = vpop.f32.mrf.mxu2 }
 0x3cb   : > { %v3244_v61 = vpop.f32.mrf.mxu3 }
 0x3cc   : > { %v3245_v9 = vadd.f32 %v3244_v61, %v3104_v15  ;;  %v3508_v15 = vpack.c.bf16 %v3492_v10, %v3491_v14  ;;  %v8106_v44 = vpop.f32.mrf.mxu0  ;;  %v3721_v61 = vadd.f32 %v7970_v59, %v7947_v25  ;;  %v2959_v14 = vld [vmem:[#allocation2 + $0x120] sm:$0xff]  ;;  %v2960_v10 = vld [vmem:[#allocation2 + $0x128] sm:$0xff] }
 0x3cd   : > { %v8122_v59 = vpack.c.bf16 %v2960_v10, %v2959_v14  ;;  %v3726_v14 = vadd.f32 %v7998_v3, %v7975_v6 }
 0x3ce   : > { %v3352_v55 = vadd.f32 %v3320_v31, %v3245_v9  ;;  %6501 = vmatmul.msk.bf16.gmra.mxu0 %vm344_vm1, %v3508_v15 }
 0x3cf   : > { %v8097_v1 = vpop.f32.mrf.mxu1  ;;  %v3795_v42 = vld [vmem:[#allocation4 + $0x10] sm:$0xff] }
 0x3d0   : > { %3384 = vst.msk [vmem:[#allocation4 + $0x18] sm:$0xff] %vm344_vm1, %v3352_v55  ;;  %6478 = vmatmul.msk.bf16.gmra.mxu3 %vm344_vm1, %v8095_v20  ;;  %v3827_v36 = vadd.f32 %v3795_v42, %v3719_v45  ;;  %v3322_v42 = vld [vmem:[#allocation4 + $0x28] sm:$0xff] }
 0x3d2   : > { %6516 = vmatmul.msk.bf16.gmra.mxu1 %vm344_vm1, %v7772_v54  ;;  %3859 = vst.msk [vmem:[#allocation4 + $0x10] sm:$0xff] %vm344_vm1, %v3827_v36  ;;  %v3009_v54 = vld [vmem:[#allocation3 + $0x138] sm:$0xff]  ;;  %v3114_v55 = vpop.f32.mrf.mxu2 }
 0x3d3   : > { %v3247_v30 = vpop.f32.mrf.mxu3  ;;  %v8119_v15 = vpack.c.bf16 %v3010_v18, %v3009_v54  ;;  %v3444_v36 = vld [vmem:[#allocation2 + $0x189] sm:$0xff] }
 0x3d4   : > { %v3248_v47 = vadd.f32 %v3247_v30, %v3107_v62  ;;  %v8117_v23 = vpop.f32.mrf.mxu0 }
 0x3d6   : > { %v3353_v7 = vadd.f32 %v3321_v5, %v3248_v47  ;;  %v3443_v47 = vld [vmem:[#allocation2 + $0x181] sm:$0xff]  ;;  %v3724_v5 = vadd.f32 %v7982_v24, %v7963_v43  ;;  %v3323_v43 = vld [vmem:[#allocation4 + $0x30] sm:$0xff] }
 0x3d7   : > { %v8112_v27 = vpop.f32.mrf.mxu1  ;;  %v3796_v9 = vld [vmem:[#allocation4 + $0x18] sm:$0xff]  ;;  %6464 = vmatmul.msk.bf16.gmra.mxu2 %vm344_vm1, %v8119_v15 }
 0x3d8   : > { %3385 = vst.msk [vmem:[#allocation4 + $0x20] sm:$0xff] %vm344_vm1, %v3353_v7  ;;  %v3828_v31 = vadd.f32 %v3796_v9, %v3721_v61 }
 0x3da   : > { %3860 = vst.msk [vmem:[#allocation4 + $0x18] sm:$0xff] %vm344_vm1, %v3828_v31  ;;  %v3117_v9 = vpop.f32.mrf.mxu2 }
 0x3db   : > { %v3249_v62 = vpop.f32.mrf.mxu3 }
 0x3dc   : > { %v3250_v45 = vadd.f32 %v3249_v62, %v3109_v49  ;;  %v3460_v49 = vpack.c.bf16 %v3444_v36, %v3443_v47  ;;  %v8133_v7 = vpop.f32.mrf.mxu0  ;;  %v2961_v47 = vld [vmem:[#allocation2 + $0x138] sm:$0xff] }
 0x3de   : > { %v3354_v25 = vadd.f32 %v3322_v42, %v3250_v45  ;;  %6554 = vmatmul.msk.bf16.vlgmr.msra.gmra.mxu0 %vm344_vm1, %v7796_v22  ;;  %v3011_v45 = vld [vmem:[#allocation3 + $0x150] sm:$0xff]  ;;  %v3012_v42 = vld [vmem:[#allocation3 + $0x158] sm:$0xff] }
 0x3df   : > { %v8124_v30 = vpop.f32.mrf.mxu1  ;;  %v3797_v61 = vld [vmem:[#allocation4 + $0x20] sm:$0xff] }
 0x3e0   : > { %3386 = vst.msk [vmem:[#allocation4 + $0x28] sm:$0xff] %vm344_vm1, %v3354_v25  ;;  %6479 = vmatmul.msk.bf16.gmra.mxu3 %vm344_vm1, %v8122_v59  ;;  %v3829_v54 = vadd.f32 %v3797_v61, %v3724_v5  ;;  %v2962_v22 = vld [vmem:[#allocation2 + $0x140] sm:$0xff]  ;;  %v8146_v61 = vpack.c.bf16 %v3012_v42, %v3011_v45 }
 0x3e1   : > { %v8149_v6 = vpack.c.bf16 %v2962_v22, %v2961_v47  ;;  %v3014_v47 = vld [vmem:[#allocation3 + $0x170] sm:$0xff] }
 0x3e2   : > { %6517 = vmatmul.msk.bf16.gmra.mxu1 %vm344_vm1, %v3460_v49  ;;  %3861 = vst.msk [vmem:[#allocation4 + $0x20] sm:$0xff] %vm344_vm1, %v3829_v54  ;;  %v3119_v5 = vpop.f32.mrf.mxu2  ;;  %v3324_v54 = vld [vmem:[#allocation4 + $0x38] sm:$0xff] }
 0x3e3   : > { %v3252_v18 = vpop.f32.mrf.mxu3 }
 0x3e4   : > { %v3253_v31 = vadd.f32 %v3252_v18, %v3112_v39  ;;  %v8144_v10 = vpop.f32.mrf.mxu0 }
 0x3e6   : > { %v3355_v24 = vadd.f32 %v3323_v43, %v3253_v31  ;;  %v3729_v31 = vadd.f32 %v8010_v63, %v7991_v35  ;;  %v3325_v35 = vld [vmem:[#allocation4 + $0x40] sm:$0xff] }
 0x3e7   : > { %v8139_v62 = vpop.f32.mrf.mxu1  ;;  %v3798_v36 = vld [vmem:[#allocation4 + $0x28] sm:$0xff]  ;;  %6465 = vmatmul.msk.bf16.gmra.mxu2 %vm344_vm1, %v8146_v61 }
 0x3e8   : > { %3387 = vst.msk [vmem:[#allocation4 + $0x30] sm:$0xff] %vm344_vm1, %v3355_v24  ;;  %v3830_v39 = vadd.f32 %v3798_v36, %v3726_v14 }
 0x3ea   : > { %3862 = vst.msk [vmem:[#allocation4 + $0x28] sm:$0xff] %vm344_vm1, %v3830_v39  ;;  %v3122_v45 = vpop.f32.mrf.mxu2  ;;  %v3731_v39 = vadd.f32 %v8026_v41, %v8003_v19 }
 0x3eb   : > { %v3254_v25 = vpop.f32.mrf.mxu3 }
 0x3ec   : > { %v3255_v49 = vadd.f32 %v3254_v25, %v3114_v55  ;;  %v8160_v55 = vpop.f32.mrf.mxu0 }
 0x3ee   : > { %v3356_v18 = vadd.f32 %v3324_v54, %v3255_v49  ;;  %6555 = vmatmul.msk.bf16.gmra.mxu0 %vm344_vm1, %v7821_v26  ;;  %v2963_v54 = vld [vmem:[#allocation2 + $0x150] sm:$0xff]  ;;  %v2964_v26 = vld [vmem:[#allocation2 + $0x158] sm:$0xff] }
 0x3ef   : > { %v8151_v3 = vpop.f32.mrf.mxu1  ;;  %v3799_v43 = vld [vmem:[#allocation4 + $0x30] sm:$0xff]  ;;  %v8177_v19 = vpack.c.bf16 %v2964_v26, %v2963_v54  ;;  %v3016_v54 = vld [vmem:[#allocation3 + $0x188] sm:$0xff] }
 0x3f0   : > { %3388 = vst.msk [vmem:[#allocation4 + $0x38] sm:$0xff] %vm344_vm1, %v3356_v18  ;;  %6480 = vmatmul.msk.bf16.gmra.mxu3 %vm344_vm1, %v8149_v6  ;;  %v3831_v24 = vadd.f32 %v3799_v43, %v3729_v31 }
 0x3f2   : > { %6570 = vmatmul.msk.bf16.vlgmr.msra.gmra.mxu1 %vm344_vm1, %v7824_v50  ;;  %3863 = vst.msk [vmem:[#allocation4 + $0x30] sm:$0xff] %vm344_vm1, %v3831_v24  ;;  %v3013_v50 = vld [vmem:[#allocation3 + $0x168] sm:$0xff]  ;;  %v3124_v18 = vpop.f32.mrf.mxu2  ;;  %v3326_v24 = vld [vmem:[#allocation4 + $0x48] sm:$0xff] }
 0x3f3   : > { %v3257_v14 = vpop.f32.mrf.mxu3  ;;  %v8174_v43 = vpack.c.bf16 %v3014_v47, %v3013_v50 }
 0x3f4   : > { %v3258_v42 = vadd.f32 %v3257_v14, %v3117_v9  ;;  %v8172_v25 = vpop.f32.mrf.mxu0 }
 0x3f6   : > { %v3357_v63 = vadd.f32 %v3325_v35, %v3258_v42  ;;  %v3734_v42 = vadd.f32 %v8038_v58, %v8019_v0  ;;  %v3327_v0 = vld [vmem:[#allocation4 + $0x50] sm:$0xff] }
 0x3f7   : > { %v8167_v36 = vpop.f32.mrf.mxu1  ;;  %v3800_v22 = vld [vmem:[#allocation4 + $0x38] sm:$0xff]  ;;  %6466 = vmatmul.msk.bf16.gmra.mxu2 %vm344_vm1, %v8174_v43 }
 0x3f8   : > { %3389 = vst.msk [vmem:[#allocation4 + $0x40] sm:$0xff] %vm344_vm1, %v3357_v63  ;;  %v3832_v9 = vadd.f32 %v3800_v22, %v3731_v39 }
 0x3fa   : > { %3864 = vst.msk [vmem:[#allocation4 + $0x38] sm:$0xff] %vm344_vm1, %v3832_v9  ;;  %v3127_v50 = vpop.f32.mrf.mxu2  ;;  %v3736_v9 = vadd.f32 %v8054_v37, %v8031_v53 }
 0x3fb   : > { %v3259_v49 = vpop.f32.mrf.mxu3 }
 0x3fc   : > { %v3260_v31 = vadd.f32 %v3259_v49, %v3119_v5  ;;  %v8188_v5 = vpop.f32.mrf.mxu0 }
 0x3fe   : > { %v3358_v14 = vadd.f32 %v3326_v24, %v3260_v31  ;;  %6556 = vmatmul.msk.bf16.gmra.mxu0 %vm344_vm1, %v7857_v40  ;;  %v2966_v24 = vld [vmem:[#allocation2 + $0x170] sm:$0xff] }
 0x3ff   : > { %v8179_v41 = vpop.f32.mrf.mxu1  ;;  %v3801_v35 = vld [vmem:[#allocation4 + $0x40] sm:$0xff] }
 0x400   : > { %3390 = vst.msk [vmem:[#allocation4 + $0x48] sm:$0xff] %vm344_vm1, %v3358_v14  ;;  %6481 = vmatmul.msk.bf16.gmra.mxu3 %vm344_vm1, %v8177_v19  ;;  %v3833_v63 = vadd.f32 %v3801_v35, %v3734_v42  ;;  %v3328_v35 = vld [vmem:[#allocation4 + $0x58] sm:$0xff] }
 0x402   : > { %6571 = vmatmul.msk.bf16.gmra.mxu1 %vm344_vm1, %v7860_v48  ;;  %3865 = vst.msk [vmem:[#allocation4 + $0x40] sm:$0xff] %vm344_vm1, %v3833_v63  ;;  %v3015_v48 = vld [vmem:[#allocation3 + $0x180] sm:$0xff]  ;;  %v3129_v40 = vpop.f32.mrf.mxu2  ;;  %v2965_v63 = vld [vmem:[#allocation2 + $0x168] sm:$0xff] }
 0x403   : > { %v3262_v39 = vpop.f32.mrf.mxu3  ;;  %v8202_v42 = vpack.c.bf16 %v3016_v54, %v3015_v48  ;;  %v8205_v53 = vpack.c.bf16 %v2966_v24, %v2965_v63  ;;  %v3938_v24 = vld [vmem:[#allocation3 + $0x22] sm:$0xff]  ;;  %v2968_v63 = vld [vmem:[#allocation2 + $0x188] sm:$0xff] }
 0x404   : > { %v3263_v47 = vadd.f32 %v3262_v39, %v3122_v45  ;;  %v8200_v49 = vpop.f32.mrf.mxu0 }
 0x406   : > { %v3359_v58 = vadd.f32 %v3327_v0, %v3263_v47  ;;  %v3739_v47 = vadd.f32 %v8066_v38, %v8047_v21  ;;  %v3329_v21 = vld [vmem:[#allocation4 + $0x60] sm:$0xff] }
 0x407   : > { %v8195_v22 = vpop.f32.mrf.mxu1  ;;  %v3802_v26 = vld [vmem:[#allocation4 + $0x48] sm:$0xff]  ;;  %6467 = vmatmul.msk.bf16.gmra.mxu2 %vm344_vm1, %v8202_v42 }
 0x408   : > { %3391 = vst.msk [vmem:[#allocation4 + $0x50] sm:$0xff] %vm344_vm1, %v3359_v58  ;;  %v3834_v45 = vadd.f32 %v3802_v26, %v3736_v9 }
 0x40a   : > { %3866 = vst.msk [vmem:[#allocation4 + $0x48] sm:$0xff] %vm344_vm1, %v3834_v45  ;;  %v3132_v48 = vpop.f32.mrf.mxu2  ;;  %v3741_v45 = vadd.f32 %v8085_v8, %v8059_v33  ;;  %v3744_v8 = vadd.f32 %v8097_v1, %v8076_v2  ;;  %v3331_v2 = vld [vmem:[#allocation4 + $0x70] sm:$0xff] }
 0x40b   : > { %v3264_v31 = vpop.f32.mrf.mxu3 }
 0x40c   : > { %v3265_v14 = vadd.f32 %v3264_v31, %v3124_v18  ;;  %v8216_v18 = vpop.f32.mrf.mxu0 }
 0x40e   : > { %v3360_v39 = vadd.f32 %v3328_v35, %v3265_v14  ;;  %6557 = vmatmul.msk.bf16.gmra.mxu0 %vm344_vm1, %v7893_v16 }
 0x40f   : > { %v8207_v37 = vpop.f32.mrf.mxu1  ;;  %v3803_v0 = vld [vmem:[#allocation4 + $0x50] sm:$0xff] }
 0x410   : > { %3392 = vst.msk [vmem:[#allocation4 + $0x58] sm:$0xff] %vm344_vm1, %v3360_v39  ;;  %6482 = vmatmul.msk.bf16.gmra.mxu3 %vm344_vm1, %v8205_v53  ;;  %v3835_v58 = vadd.f32 %v3803_v0, %v3739_v47  ;;  %v3330_v0 = vld [vmem:[#allocation4 + $0x68] sm:$0xff] }
 0x412   : > { %6572 = vmatmul.msk.bf16.gmra.mxu1 %vm344_vm1, %v7896_v13  ;;  %3867 = vst.msk [vmem:[#allocation4 + $0x50] sm:$0xff] %vm344_vm1, %v3835_v58  ;;  %v3937_v13 = vld [vmem:[#allocation3 + $0x1a] sm:$0xff]  ;;  %v3134_v16 = vpop.f32.mrf.mxu2  ;;  %v2967_v58 = vld [vmem:[#allocation2 + $0x180] sm:$0xff] }
 0x413   : > { %v3267_v9 = vpop.f32.mrf.mxu3  ;;  %v3969_v47 = vpack.c.bf16 %v3938_v24, %v3937_v13 }
 0x414   : > { %v3268_v54 = vadd.f32 %v3267_v9, %v3127_v50  ;;  %v8228_v31 = vpop.f32.mrf.mxu0 }
 0x416   : > { %v3361_v38 = vadd.f32 %v3329_v21, %v3268_v54  ;;  %v8231_v54 = vpack.c.bf16 %v2968_v63, %v2967_v58  ;;  %v3940_v63 = vld [vmem:[#allocation3 + $0x3a] sm:$0xff] }
 0x417   : > { %v8223_v26 = vpop.f32.mrf.mxu1  ;;  %v3804_v14 = vld [vmem:[#allocation4 + $0x58] sm:$0xff]  ;;  %6520 = vmatmul.msk.bf16.vlgmr.msra.gmra.mxu2 %vm344_vm1, %v3969_v47 }
 0x418   : > { %3393 = vst.msk [vmem:[#allocation4 + $0x60] sm:$0xff] %vm344_vm1, %v3361_v38  ;;  %v3836_v50 = vadd.f32 %v3804_v14, %v3741_v45 }
 0x41a   : > { %3868 = vst.msk [vmem:[#allocation4 + $0x58] sm:$0xff] %vm344_vm1, %v3836_v50  ;;  %v3137_v13 = vpop.f32.mrf.mxu2  ;;  %v3746_v50 = vadd.f32 %v8112_v27, %v8090_v34 }
 0x41b   : > { %v3269_v35 = vpop.f32.mrf.mxu3 }
 0x41c   : > { %v3270_v39 = vadd.f32 %v3269_v35, %v3129_v40  ;;  %v8241_v40 = vpop.f32.mrf.mxu0 }
 0x41e   : > { %v3362_v9 = vadd.f32 %v3330_v0, %v3270_v39  ;;  %6558 = vmatmul.msk.bf16.gmra.mxu0 %vm344_vm1, %v7921_v28  ;;  %v3889_v0 = vld [vmem:[#allocation2 + $0x1a] sm:$0xff]  ;;  %v3890_v28 = vld [vmem:[#allocation2 + $0x22] sm:$0xff] }
 0x41f   : > { %v8233_v33 = vpop.f32.mrf.mxu1  ;;  %v3805_v21 = vld [vmem:[#allocation4 + $0x60] sm:$0xff]  ;;  %v3921_v34 = vpack.c.bf16 %v3890_v28, %v3889_v0 }
 0x420   : > { %3394 = vst.msk [vmem:[#allocation4 + $0x68] sm:$0xff] %vm344_vm1, %v3362_v9  ;;  %6483 = vmatmul.msk.bf16.gmra.mxu3 %vm344_vm1, %v8231_v54  ;;  %v3837_v38 = vadd.f32 %v3805_v21, %v3744_v8  ;;  %v3332_v21 = vld [vmem:[#allocation4 + $0x78] sm:$0xff] }
 0x422   : > { %6573 = vmatmul.msk.bf16.gmra.mxu1 %vm344_vm1, %v7924_v51  ;;  %3869 = vst.msk [vmem:[#allocation4 + $0x60] sm:$0xff] %vm344_vm1, %v3837_v38  ;;  %v3939_v51 = vld [vmem:[#allocation3 + $0x32] sm:$0xff]  ;;  %v3139_v58 = vpop.f32.mrf.mxu2 }
 0x423   : > { %v3272_v45 = vpop.f32.mrf.mxu3  ;;  %v8255_v8 = vpack.c.bf16 %v3940_v63, %v3939_v51 }
 0x424   : > { %v3273_v24 = vadd.f32 %v3272_v45, %v3132_v48  ;;  %v8253_v35 = vpop.f32.mrf.mxu0  ;;  %v3749_v45 = vadd.f32 %v8124_v30, %v8106_v44  ;;  %v3333_v44 = vld [vmem:[#allocation4 + $0x80] sm:$0xff] }
 0x426   : > { %v3363_v1 = vadd.f32 %v3331_v2, %v3273_v24 }
 0x427   : > { %v8248_v14 = vpop.f32.mrf.mxu1  ;;  %v3806_v39 = vld [vmem:[#allocation4 + $0x68] sm:$0xff]  ;;  %6521 = vmatmul.msk.bf16.gmra.mxu2 %vm344_vm1, %v8255_v8 }
 0x428   : > { %3395 = vst.msk [vmem:[#allocation4 + $0x70] sm:$0xff] %vm344_vm1, %v3363_v1  ;;  %v3838_v48 = vadd.f32 %v3806_v39, %v3746_v50  ;;  %v3751_v39 = vadd.f32 %v8139_v62, %v8117_v23 }
 0x42a   : > { %3870 = vst.msk [vmem:[#allocation4 + $0x68] sm:$0xff] %vm344_vm1, %v3838_v48  ;;  %v3142_v50 = vpop.f32.mrf.mxu2 }
 0x42b   : > { %v3274_v47 = vpop.f32.mrf.mxu3 }
 0x42c   : > { %v3275_v9 = vadd.f32 %v3274_v47, %v3134_v16  ;;  %v8266_v16 = vpop.f32.mrf.mxu0  ;;  %v3942_v47 = vld [vmem:[#allocation3 + $0x52] sm:$0xff] }
 0x42e   : > { %v3364_v38 = vadd.f32 %v3332_v21, %v3275_v9  ;;  %6559 = vmatmul.msk.bf16.gmra.mxu0 %vm344_vm1, %v7949_v56  ;;  %v3891_v9 = vld [vmem:[#allocation2 + $0x32] sm:$0xff]  ;;  %v3892_v56 = vld [vmem:[#allocation2 + $0x3a] sm:$0xff] }
 0x42f   : > { %v8258_v27 = vpop.f32.mrf.mxu1  ;;  %v3807_v24 = vld [vmem:[#allocation4 + $0x70] sm:$0xff]  ;;  %v8283_v23 = vpack.c.bf16 %v3892_v56, %v3891_v9  ;;  %v3756_v9 = vadd.f32 %v8167_v36, %v8144_v10 }
 0x430   : > { %3396 = vst.msk [vmem:[#allocation4 + $0x78] sm:$0xff] %vm344_vm1, %v3364_v38  ;;  %6536 = vmatmul.msk.bf16.vlgmr.msra.gmra.mxu3 %vm344_vm1, %v3921_v34  ;;  %v3839_v2 = vadd.f32 %v3807_v24, %v3749_v45  ;;  %v3334_v45 = vld [vmem:[#allocation4 + $0x88] sm:$0xff]  ;;  %v3943_v56 = vld [vmem:[#allocation3 + $0x62] sm:$0xff] }
 0x432   : > { %6574 = vmatmul.msk.bf16.gmra.mxu1 %vm344_vm1, %v7952_v11  ;;  %3871 = vst.msk [vmem:[#allocation4 + $0x70] sm:$0xff] %vm344_vm1, %v3839_v2  ;;  %v3941_v11 = vld [vmem:[#allocation3 + $0x4a] sm:$0xff]  ;;  %v3144_v21 = vpop.f32.mrf.mxu2  ;;  %v3754_v2 = vadd.f32 %v8151_v3, %v8133_v7 }
 0x433   : > { %v3277_v1 = vpop.f32.mrf.mxu3  ;;  %v8280_v34 = vpack.c.bf16 %v3942_v47, %v3941_v11 }
 0x434   : > { %v3278_v51 = vadd.f32 %v3277_v1, %v3137_v13  ;;  %v8278_v48 = vpop.f32.mrf.mxu0  ;;  %v6586_v1 = vld [vmem:[%s9319_s4 + $0x38] sm:$0xf] }
 0x435   : > { %v5131_v3 = vsel %vm1720_vm7, %v6586_v1, 0 }
 0x436   : > { %v3365_v30 = vadd.f32 %v3333_v44, %v3278_v51  ;;  %5140 = vmatpush.bf16.msrb.mxu3 %v5131_v3  ;;  %v3336_v3 = vld [vmem:[#allocation4 + $0x98] sm:$0xff] }
 0x437   : > { %v8273_v63 = vpop.f32.mrf.mxu1  ;;  %v3808_v0 = vld [vmem:[#allocation4 + $0x78] sm:$0xff]  ;;  %6522 = vmatmul.msk.bf16.gmra.mxu2 %vm344_vm1, %v8280_v34 }
 0x438   : > { %3397 = vst.msk [vmem:[#allocation4 + $0x80] sm:$0xff] %vm344_vm1, %v3365_v30  ;;  %v3840_v13 = vadd.f32 %v3808_v0, %v3751_v39  ;;  %v3335_v0 = vld [vmem:[#allocation4 + $0x90] sm:$0xff] }
 0x43a   : > { %3872 = vst.msk [vmem:[#allocation4 + $0x78] sm:$0xff] %vm344_vm1, %v3840_v13  ;;  %v3147_v11 = vpop.f32.mrf.mxu2 }
 0x43b   : > { %v3279_v28 = vpop.f32.mrf.mxu3 }
 0x43c   : > { %v3280_v38 = vadd.f32 %v3279_v28, %v3139_v58  ;;  %v6587_v58 = vld [vmem:[%s9319_s4 + $0x3c] sm:$0xf]  ;;  %v8300_v51 = vpop.f32.mrf.mxu0 }
 0x43d   : > { %v4991_v7 = vsel %vm1720_vm7, %v6587_v58, 0 }
 0x43e   : > { %v3366_v24 = vadd.f32 %v3334_v45, %v3280_v38  ;;  %5000 = vmatpush.bf16.msrb.mxu2 %v4991_v7  ;;  %6560 = vmatmul.msk.bf16.gmra.mxu0 %vm344_vm1, %v7977_v60  ;;  %v3944_v38 = vld [vmem:[#allocation3 + $0x6a] sm:$0xff]  ;;  %v3894_v60 = vld [vmem:[#allocation2 + $0x52] sm:$0xff] }
 0x43f   : > { %v8285_v62 = vpop.f32.mrf.mxu1  ;;  %v3809_v44 = vld [vmem:[#allocation4 + $0x80] sm:$0xff]  ;;  %v8316_v7 = vpack.c.bf16 %v3944_v38, %v3943_v56 }
 0x440   : > { %3398 = vst.msk [vmem:[#allocation4 + $0x88] sm:$0xff] %vm344_vm1, %v3366_v24  ;;  %6537 = vmatmul.msk.bf16.gmra.mxu3 %vm344_vm1, %v8283_v23  ;;  %v3841_v30 = vadd.f32 %v3809_v44, %v3754_v2  ;;  %v3893_v2 = vld [vmem:[#allocation2 + $0x4a] sm:$0xff] }
 0x441   : > { %v8319_v10 = vpack.c.bf16 %v3894_v60, %v3893_v2  ;;  %v3761_v2 = vadd.f32 %v8195_v22, %v8172_v25  ;;  %v3945_v60 = vld [vmem:[#allocation3 + $0x7a] sm:$0xff] }
 0x442   : > { %6575 = vmatmul.msk.bf16.gmra.mxu1 %vm344_vm1, %v7980_v29  ;;  %3873 = vst.msk [vmem:[#allocation4 + $0x80] sm:$0xff] %vm344_vm1, %v3841_v30  ;;  %v3149_v58 = vpop.f32.mrf.mxu2  ;;  %v3759_v30 = vadd.f32 %v8179_v41, %v8160_v55 }
 0x443   : > { %v3282_v39 = vpop.f32.mrf.mxu3 }
 0x444   : > { %v3283_v47 = vadd.f32 %v3282_v39, %v3142_v50  ;;  %v8314_v29 = vpop.f32.mrf.mxu0  ;;  %v6620_v39 = vld [vmem:[%s9319_s4 + $0x40] sm:$0xf] }
 0x445   : > { %v5607_v41 = vsel %vm1720_vm7, %v6620_v39, 0 }
 0x446   : > { %v3367_v13 = vadd.f32 %v3335_v0, %v3283_v47  ;;  %5616 = vmatpush.bf16.msrb.mxu1 %v5607_v41  ;;  %v3338_v41 = vld [vmem:[#allocation4 + $0xa8] sm:$0xff] }
 0x447   : > { %v8309_v28 = vpop.f32.mrf.mxu1  ;;  %v3810_v45 = vld [vmem:[#allocation4 + $0x88] sm:$0xff]  ;;  %6523 = vmatmul.msk.bf16.gmra.mxu2 %vm344_vm1, %v8316_v7 }
 0x448   : > { %3399 = vst.msk [vmem:[#allocation4 + $0x90] sm:$0xff] %vm344_vm1, %v3367_v13  ;;  %v3842_v50 = vadd.f32 %v3810_v45, %v3756_v9  ;;  %v3337_v45 = vld [vmem:[#allocation4 + $0xa0] sm:$0xff] }
 0x44a   : > { %3874 = vst.msk [vmem:[#allocation4 + $0x88] sm:$0xff] %vm344_vm1, %v3842_v50  ;;  %v3152_v56 = vpop.f32.mrf.mxu2 }
 0x44b   : > { %v3284_v24 = vpop.f32.mrf.mxu3 }
 0x44c   : > { %v3285_v1 = vadd.f32 %v3284_v24, %v3144_v21  ;;  %v6621_v21 = vld [vmem:[%s9319_s4 + $0x44] sm:$0xf]  ;;  %v8336_v47 = vpop.f32.mrf.mxu0 }
 0x44d   : > { %v5467_v55 = vsel %vm1720_vm7, %v6621_v21, 0 }
 0x44e   : > { %v3368_v44 = vadd.f32 %v3336_v3, %v3285_v1  ;;  %5476 = vmatpush.bf16.msrb.mxu0 %v5467_v55  ;;  %v3946_v1 = vld [vmem:[#allocation3 + $0x82] sm:$0xff] }
 0x44f   : > { %v8321_v36 = vpop.f32.mrf.mxu1  ;;  %v3811_v0 = vld [vmem:[#allocation4 + $0x90] sm:$0xff]  ;;  %6561 = vmatmul.msk.bf16.gmra.mxu0 %vm344_vm1, %v8005_v4  ;;  %v8352_v55 = vpack.c.bf16 %v3946_v1, %v3945_v60  ;;  %v3766_v1 = vadd.f32 %v8223_v26, %v8200_v49 }
 0x450   : > { %3400 = vst.msk [vmem:[#allocation4 + $0x98] sm:$0xff] %vm344_vm1, %v3368_v44  ;;  %6538 = vmatmul.msk.bf16.gmra.mxu3 %vm344_vm1, %v8319_v10  ;;  %v3843_v13 = vadd.f32 %v3811_v0, %v3759_v30  ;;  %v3895_v30 = vld [vmem:[#allocation2 + $0x62] sm:$0xff]  ;;  %v3896_v4 = vld [vmem:[#allocation2 + $0x6a] sm:$0xff] }
 0x451   : > { %v8355_v25 = vpack.c.bf16 %v3896_v4, %v3895_v30  ;;  %v3897_v4 = vld [vmem:[#allocation2 + $0x7a] sm:$0xff] }
 0x452   : > { %6576 = vmatmul.msk.bf16.gmra.mxu1 %vm344_vm1, %v8008_v12  ;;  %3875 = vst.msk [vmem:[#allocation4 + $0x90] sm:$0xff] %vm344_vm1, %v3843_v13  ;;  %v3154_v21 = vpop.f32.mrf.mxu2  ;;  %v3764_v13 = vadd.f32 %v8207_v37, %v8188_v5  ;;  %v3339_v5 = vld [vmem:[#allocation4 + $0xb0] sm:$0xff] }
 0x453   : > { %v3287_v9 = vpop.f32.mrf.mxu3 }
 0x454   : > { %v3288_v38 = vadd.f32 %v3287_v9, %v3147_v11  ;;  %v8350_v12 = vpop.f32.mrf.mxu0 }
 0x456   : > { %v3369_v50 = vadd.f32 %v3337_v45, %v3288_v38 }
 0x457   : > { %v8345_v24 = vpop.f32.mrf.mxu1  ;;  %v3812_v3 = vld [vmem:[#allocation4 + $0x98] sm:$0xff]  ;;  %6524 = vmatmul.msk.bf16.gmra.mxu2 %vm344_vm1, %v8352_v55 }
 0x458   : > { %3401 = vst.msk [vmem:[#allocation4 + $0xa0] sm:$0xff] %vm344_vm1, %v3369_v50  ;;  %v3844_v11 = vadd.f32 %v3812_v3, %v3761_v2 }
 0x45a   : > { %3876 = vst.msk [vmem:[#allocation4 + $0x98] sm:$0xff] %vm344_vm1, %v3844_v11  ;;  %v3157_v50 = vpop.f32.mrf.mxu2  ;;  %v3948_v11 = vld [vmem:[#allocation3 + $0x9a] sm:$0xff] }
 0x45b   : > { %v3289_v44 = vpop.f32.mrf.mxu3 }
 0x45c   : > { %v3290_v39 = vadd.f32 %v3289_v44, %v3149_v58  ;;  %v8366_v58 = vpop.f32.mrf.mxu0 }
 0x45e   : > { %v3370_v0 = vadd.f32 %v3338_v41, %v3290_v39 }
 0x45f   : > { %v8357_v22 = vpop.f32.mrf.mxu1  ;;  %v3813_v9 = vld [vmem:[#allocation4 + $0xa0] sm:$0xff]  ;;  %6562 = vmatmul.msk.bf16.gmra.mxu0 %vm344_vm1, %v8033_v46 }
 0x460   : > { %3402 = vst.msk [vmem:[#allocation4 + $0xa8] sm:$0xff] %vm344_vm1, %v3370_v0  ;;  %6539 = vmatmul.msk.bf16.gmra.mxu3 %vm344_vm1, %v8355_v25  ;;  %v3845_v38 = vadd.f32 %v3813_v9, %v3764_v13  ;;  %v3898_v46 = vld [vmem:[#allocation2 + $0x82] sm:$0xff]  ;;  %v3340_v13 = vld [vmem:[#allocation4 + $0xb8] sm:$0xff] }
 0x461   : > { %v8383_v49 = vpack.c.bf16 %v3898_v46, %v3897_v4  ;;  %v3899_v46 = vld [vmem:[#allocation2 + $0x92] sm:$0xff] }
 0x462   : > { %6577 = vmatmul.msk.bf16.gmra.mxu1 %vm344_vm1, %v8036_v57  ;;  %3877 = vst.msk [vmem:[#allocation4 + $0xa0] sm:$0xff] %vm344_vm1, %v3845_v38  ;;  %v3947_v57 = vld [vmem:[#allocation3 + $0x92] sm:$0xff]  ;;  %v3159_v39 = vpop.f32.mrf.mxu2  ;;  %v3769_v38 = vadd.f32 %v8233_v33, %v8216_v18 }
 0x463   : > { %v3292_v45 = vpop.f32.mrf.mxu3  ;;  %v8380_v0 = vpack.c.bf16 %v3948_v11, %v3947_v57  ;;  %v3341_v18 = vld [vmem:[#allocation4 + $0xc0] sm:$0xff]  ;;  %v3771_v11 = vadd.f32 %v8248_v14, %v8228_v31 }
 0x464   : > { %v3293_v2 = vadd.f32 %v3292_v45, %v3152_v56  ;;  %v8378_v3 = vpop.f32.mrf.mxu0 }
 0x466   : > { %v3371_v37 = vadd.f32 %v3339_v5, %v3293_v2 }
 0x467   : > { %v8373_v60 = vpop.f32.mrf.mxu1  ;;  %v3814_v44 = vld [vmem:[#allocation4 + $0xa8] sm:$0xff]  ;;  %6525 = vmatmul.msk.bf16.gmra.mxu2 %vm344_vm1, %v8380_v0 }
 0x468   : > { %3403 = vst.msk [vmem:[#allocation4 + $0xb0] sm:$0xff] %vm344_vm1, %v3371_v37  ;;  %v3846_v56 = vadd.f32 %v3814_v44, %v3766_v1 }
 0x46a   : > { %3878 = vst.msk [vmem:[#allocation4 + $0xa8] sm:$0xff] %vm344_vm1, %v3846_v56  ;;  %v3162_v37 = vpop.f32.mrf.mxu2  ;;  %v3950_v56 = vld [vmem:[#allocation3 + $0xb2] sm:$0xff] }
 0x46b   : > { %v3294_v30 = vpop.f32.mrf.mxu3 }
 0x46c   : > { %v3295_v41 = vadd.f32 %v3294_v30, %v3154_v21  ;;  %v8394_v21 = vpop.f32.mrf.mxu0 }
 0x46e   : > { %v3372_v9 = vadd.f32 %v3340_v13, %v3295_v41 }
 0x46f   : > { %v8385_v26 = vpop.f32.mrf.mxu1  ;;  %v3815_v45 = vld [vmem:[#allocation4 + $0xb0] sm:$0xff]  ;;  %6563 = vmatmul.msk.bf16.gmra.mxu0 %vm344_vm1, %v8061_v32  ;;  %v3900_v32 = vld [vmem:[#allocation2 + $0x9a] sm:$0xff] }
 0x470   : > { %3404 = vst.msk [vmem:[#allocation4 + $0xb8] sm:$0xff] %vm344_vm1, %v3372_v9  ;;  %6540 = vmatmul.msk.bf16.gmra.mxu3 %vm344_vm1, %v8383_v49  ;;  %v3847_v2 = vadd.f32 %v3815_v45, %v3769_v38  ;;  %v3342_v38 = vld [vmem:[#allocation4 + $0xc8] sm:$0xff]  ;;  %v8411_v31 = vpack.c.bf16 %v3900_v32, %v3899_v46 }
 0x471   : > { %v3901_v32 = vld [vmem:[#allocation2 + $0xaa] sm:$0xff] }
 0x472   : > { %6578 = vmatmul.msk.bf16.gmra.mxu1 %vm344_vm1, %v8064_v52  ;;  %3879 = vst.msk [vmem:[#allocation4 + $0xb0] sm:$0xff] %vm344_vm1, %v3847_v2  ;;  %v3949_v52 = vld [vmem:[#allocation3 + $0xaa] sm:$0xff]  ;;  %v3164_v41 = vpop.f32.mrf.mxu2  ;;  %v3774_v2 = vadd.f32 %v8258_v27, %v8241_v40  ;;  %v3343_v40 = vld [vmem:[#allocation4 + $0xd0] sm:$0xff] }
 0x473   : > { %v3297_v5 = vpop.f32.mrf.mxu3  ;;  %v8408_v9 = vpack.c.bf16 %v3950_v56, %v3949_v52  ;;  %v3776_v56 = vadd.f32 %v8273_v63, %v8253_v35 }
 0x474   : > { %v3298_v1 = vadd.f32 %v3297_v5, %v3157_v50  ;;  %v8406_v44 = vpop.f32.mrf.mxu0 }
 0x476   : > { %v3373_v33 = vadd.f32 %v3341_v18, %v3298_v1 }
 0x477   : > { %v8401_v57 = vpop.f32.mrf.mxu1  ;;  %v3816_v30 = vld [vmem:[#allocation4 + $0xb8] sm:$0xff]  ;;  %6526 = vmatmul.msk.bf16.gmra.mxu2 %vm344_vm1, %v8408_v9 }
 0x478   : > { %3405 = vst.msk [vmem:[#allocation4 + $0xc0] sm:$0xff] %vm344_vm1, %v3373_v33  ;;  %v3848_v50 = vadd.f32 %v3816_v30, %v3771_v11 }
 0x47a   : > { %3880 = vst.msk [vmem:[#allocation4 + $0xb8] sm:$0xff] %vm344_vm1, %v3848_v50  ;;  %v3167_v33 = vpop.f32.mrf.mxu2  ;;  %v3952_v50 = vld [vmem:[#allocation3 + $0xca] sm:$0xff] }
 0x47b   : > { %v3299_v4 = vpop.f32.mrf.mxu3 }
 0x47c   : > { %v3300_v13 = vadd.f32 %v3299_v4, %v3159_v39  ;;  %v8422_v39 = vpop.f32.mrf.mxu0 }
 0x47e   : > { %v3374_v45 = vadd.f32 %v3342_v38, %v3300_v13 }
 0x47f   : > { %v8413_v14 = vpop.f32.mrf.mxu1  ;;  %v3817_v5 = vld [vmem:[#allocation4 + $0xc0] sm:$0xff]  ;;  %6564 = vmatmul.msk.bf16.gmra.mxu0 %vm344_vm1, %v8092_v17  ;;  %v3902_v17 = vld [vmem:[#allocation2 + $0xb2] sm:$0xff] }
 0x480   : > { %3406 = vst.msk [vmem:[#allocation4 + $0xc8] sm:$0xff] %vm344_vm1, %v3374_v45  ;;  %6541 = vmatmul.msk.bf16.gmra.mxu3 %vm344_vm1, %v8411_v31  ;;  %v3849_v1 = vadd.f32 %v3817_v5, %v3774_v2  ;;  %v3344_v2 = vld [vmem:[#allocation4 + $0xd8] sm:$0xff]  ;;  %v8439_v35 = vpack.c.bf16 %v3902_v17, %v3901_v32  ;;  %v3903_v17 = vld [vmem:[#allocation2 + $0xc2] sm:$0xff] }
 0x482   : > { %6579 = vmatmul.msk.bf16.gmra.mxu1 %vm344_vm1, %v8095_v20  ;;  %3881 = vst.msk [vmem:[#allocation4 + $0xc0] sm:$0xff] %vm344_vm1, %v3849_v1  ;;  %v3951_v20 = vld [vmem:[#allocation3 + $0xc2] sm:$0xff]  ;;  %v3169_v13 = vpop.f32.mrf.mxu2  ;;  %v3779_v1 = vadd.f32 %v8285_v62, %v8266_v16  ;;  %v3345_v16 = vld [vmem:[#allocation4 + $0xe0] sm:$0xff] }
 0x483   : > { %v3302_v18 = vpop.f32.mrf.mxu3  ;;  %v8436_v45 = vpack.c.bf16 %v3952_v50, %v3951_v20  ;;  %v3781_v50 = vadd.f32 %v8309_v28, %v8278_v48 }
 0x484   : > { %v3303_v11 = vadd.f32 %v3302_v18, %v3162_v37  ;;  %v8434_v30 = vpop.f32.mrf.mxu0 }
 0x486   : > { %v3375_v27 = vadd.f32 %v3343_v40, %v3303_v11 }
 0x487   : > { %v8429_v52 = vpop.f32.mrf.mxu1  ;;  %v3818_v4 = vld [vmem:[#allocation4 + $0xc8] sm:$0xff]  ;;  %6527 = vmatmul.msk.bf16.gmra.mxu2 %vm344_vm1, %v8436_v45 }
 0x488   : > { %3407 = vst.msk [vmem:[#allocation4 + $0xd0] sm:$0xff] %vm344_vm1, %v3375_v27  ;;  %v3850_v37 = vadd.f32 %v3818_v4, %v3776_v56 }
 0x48a   : > { %3882 = vst.msk [vmem:[#allocation4 + $0xc8] sm:$0xff] %vm344_vm1, %v3850_v37  ;;  %v3172_v27 = vpop.f32.mrf.mxu2  ;;  %v3954_v37 = vld [vmem:[#allocation3 + $0xe2] sm:$0xff] }
 0x48b   : > { %v3304_v46 = vpop.f32.mrf.mxu3 }
 0x48c   : > { %v3305_v38 = vadd.f32 %v3304_v46, %v3164_v41  ;;  %v8450_v41 = vpop.f32.mrf.mxu0 }
 0x48e   : > { %v3376_v5 = vadd.f32 %v3344_v2, %v3305_v38 }
 0x48f   : > { %v8441_v63 = vpop.f32.mrf.mxu1  ;;  %v3819_v18 = vld [vmem:[#allocation4 + $0xd0] sm:$0xff]  ;;  %6565 = vmatmul.msk.bf16.gmra.mxu0 %vm344_vm1, %v8119_v15 }
 0x490   : > { %3408 = vst.msk [vmem:[#allocation4 + $0xd8] sm:$0xff] %vm344_vm1, %v3376_v5  ;;  %6542 = vmatmul.msk.bf16.gmra.mxu3 %vm344_vm1, %v8439_v35  ;;  %v3851_v11 = vadd.f32 %v3819_v18, %v3779_v1  ;;  %v3904_v15 = vld [vmem:[#allocation2 + $0xca] sm:$0xff] }
 0x491   : > { %v3346_v1 = vld [vmem:[#allocation4 + $0xe8] sm:$0xff]  ;;  %v8467_v48 = vpack.c.bf16 %v3904_v15, %v3903_v17  ;;  %v3905_v15 = vld [vmem:[#allocation2 + $0xda] sm:$0xff] }
 0x492   : > { %6580 = vmatmul.msk.bf16.gmra.mxu1 %vm344_vm1, %v8122_v59  ;;  %3883 = vst.msk [vmem:[#allocation4 + $0xd0] sm:$0xff] %vm344_vm1, %v3851_v11  ;;  %v3953_v59 = vld [vmem:[#allocation3 + $0xda] sm:$0xff]  ;;  %v3174_v38 = vpop.f32.mrf.mxu2  ;;  %v3784_v11 = vadd.f32 %v8321_v36, %v8300_v51 }
 0x493   : > { %v3307_v40 = vpop.f32.mrf.mxu3  ;;  %v8464_v5 = vpack.c.bf16 %v3954_v37, %v3953_v59  ;;  %v3347_v51 = vld [vmem:[#allocation4 + $0xf0] sm:$0xff]  ;;  %v3786_v37 = vadd.f32 %v8345_v24, %v8314_v29 }
 0x494   : > { %v3308_v56 = vadd.f32 %v3307_v40, %v3167_v33  ;;  %v8462_v4 = vpop.f32.mrf.mxu0 }
 0x496   : > { %v3377_v62 = vadd.f32 %v3345_v16, %v3308_v56 }
 0x497   : > { %v8457_v20 = vpop.f32.mrf.mxu1  ;;  %v3820_v46 = vld [vmem:[#allocation4 + $0xd8] sm:$0xff]  ;;  %6528 = vmatmul.msk.bf16.gmra.mxu2 %vm344_vm1, %v8464_v5 }
 0x498   : > { %3409 = vst.msk [vmem:[#allocation4 + $0xe0] sm:$0xff] %vm344_vm1, %v3377_v62  ;;  %v3852_v33 = vadd.f32 %v3820_v46, %v3781_v50 }
 0x49a   : > { %3884 = vst.msk [vmem:[#allocation4 + $0xd8] sm:$0xff] %vm344_vm1, %v3852_v33  ;;  %v4049_v62 = vpop.f32.mrf.mxu2  ;;  %v3956_v33 = vld [vmem:[#allocation3 + $0xfa] sm:$0xff] }
 0x49b   : > { %v3309_v32 = vpop.f32.mrf.mxu3 }
 0x49c   : > { %v3310_v2 = vadd.f32 %v3309_v32, %v3169_v13  ;;  %v8478_v13 = vpop.f32.mrf.mxu0 }
 0x49e   : > { %v3378_v18 = vadd.f32 %v3346_v1, %v3310_v2 }
 0x49f   : > { %v8469_v28 = vpop.f32.mrf.mxu1  ;;  %v3821_v40 = vld [vmem:[#allocation4 + $0xe0] sm:$0xff]  ;;  %6566 = vmatmul.msk.bf16.gmra.mxu0 %vm344_vm1, %v8146_v61 }
 0x4a0   : > { %3410 = vst.msk [vmem:[#allocation4 + $0xe8] sm:$0xff] %vm344_vm1, %v3378_v18  ;;  %6543 = vmatmul.msk.bf16.gmra.mxu3 %vm344_vm1, %v8467_v48  ;;  %v3853_v56 = vadd.f32 %v3821_v40, %v3784_v11  ;;  %v3906_v61 = vld [vmem:[#allocation2 + $0xe2] sm:$0xff]  ;;  %v3348_v11 = vld [vmem:[#allocation4 + $0xf8] sm:$0xff] }
 0x4a1   : > { %v8495_v29 = vpack.c.bf16 %v3906_v61, %v3905_v15  ;;  %v3907_v61 = vld [vmem:[#allocation2 + $0xf2] sm:$0xff] }
 0x4a2   : > { %6581 = vmatmul.msk.bf16.gmra.mxu1 %vm344_vm1, %v8149_v6  ;;  %3885 = vst.msk [vmem:[#allocation4 + $0xe0] sm:$0xff] %vm344_vm1, %v3853_v56  ;;  %v3955_v6 = vld [vmem:[#allocation3 + $0xf2] sm:$0xff]  ;;  %v4051_v2 = vpop.f32.mrf.mxu2  ;;  %v3789_v56 = vadd.f32 %v8357_v22, %v8336_v47 }
 0x4a3   : > { %v3312_v16 = vpop.f32.mrf.mxu3  ;;  %v8492_v18 = vpack.c.bf16 %v3956_v33, %v3955_v6  ;;  %v4269_v47 = vld [vmem:[#allocation4] sm:$0xff]  ;;  %v3791_v33 = vadd.f32 %v8373_v60, %v8350_v12 }
 0x4a4   : > { %v3313_v50 = vadd.f32 %v3312_v16, %v3172_v27  ;;  %v8490_v46 = vpop.f32.mrf.mxu0 }
 0x4a6   : > { %v3379_v36 = vadd.f32 %v3347_v51, %v3313_v50 }
 0x4a7   : > { %v8485_v59 = vpop.f32.mrf.mxu1  ;;  %v3822_v32 = vld [vmem:[#allocation4 + $0xe8] sm:$0xff]  ;;  %6529 = vmatmul.msk.bf16.gmra.mxu2 %vm344_vm1, %v8492_v18 }
 0x4a8   : > { %3411 = vst.msk [vmem:[#allocation4 + $0xf0] sm:$0xff] %vm344_vm1, %v3379_v36  ;;  %v3854_v27 = vadd.f32 %v3822_v32, %v3786_v37 }
 0x4aa   : > { %3886 = vst.msk [vmem:[#allocation4 + $0xe8] sm:$0xff] %vm344_vm1, %v3854_v27  ;;  %v4054_v36 = vpop.f32.mrf.mxu2  ;;  %v3958_v27 = vld [vmem:[#allocation3 + $0x112] sm:$0xff] }
 0x4ab   : > { %v3314_v17 = vpop.f32.mrf.mxu3 }
 0x4ac   : > { %v3315_v1 = vadd.f32 %v3314_v17, %v3174_v38  ;;  %v8506_v38 = vpop.f32.mrf.mxu0 }
 0x4ae   : > { %v3380_v40 = vadd.f32 %v3348_v11, %v3315_v1 }
 0x4af   : > { %v8497_v24 = vpop.f32.mrf.mxu1  ;;  %v3823_v16 = vld [vmem:[#allocation4 + $0xf0] sm:$0xff]  ;;  %6567 = vmatmul.msk.bf16.gmra.mxu0 %vm344_vm1, %v8174_v43  ;;  %v3908_v43 = vld [vmem:[#allocation2 + $0xfa] sm:$0xff] }
 0x4b0   : > { %3412 = vst.msk [vmem:[#allocation4 + $0xf8] sm:$0xff] %vm344_vm1, %v3380_v40  ;;  %6544 = vmatmul.msk.bf16.gmra.mxu3 %vm344_vm1, %v8495_v29  ;;  %v3855_v50 = vadd.f32 %v3823_v16, %v3789_v56  ;;  %v4270_v56 = vld [vmem:[#allocation4 + $0x8] sm:$0xff]  ;;  %v8523_v12 = vpack.c.bf16 %v3908_v43, %v3907_v61 }
 0x4b1   : > { %v3909_v43 = vld [vmem:[#allocation2 + $0x10a] sm:$0xff] }
 0x4b2   : > { %6582 = vmatmul.msk.bf16.gmra.mxu1 %vm344_vm1, %v8177_v19  ;;  %3887 = vst.msk [vmem:[#allocation4 + $0xf0] sm:$0xff] %vm344_vm1, %v3855_v50  ;;  %v3957_v19 = vld [vmem:[#allocation3 + $0x10a] sm:$0xff]  ;;  %v4056_v1 = vpop.f32.mrf.mxu2 }
 0x4b3   : > { %v4189_v51 = vpop.f32.mrf.mxu3  ;;  %v8520_v40 = vpack.c.bf16 %v3958_v27, %v3957_v19  ;;  %v4271_v19 = vld [vmem:[#allocation4 + $0x10] sm:$0xff] }
 0x4b4   : > { %v4190_v37 = vadd.f32 %v4189_v51, %v4049_v62  ;;  %v8518_v32 = vpop.f32.mrf.mxu0 }
 0x4b6   : > { %v4301_v22 = vadd.f32 %v4269_v47, %v4190_v37 }
 0x4b7   : > { %v8513_v6 = vpop.f32.mrf.mxu1  ;;  %v3824_v17 = vld [vmem:[#allocation4 + $0xf8] sm:$0xff]  ;;  %6530 = vmatmul.msk.bf16.gmra.mxu2 %vm344_vm1, %v8520_v40 }
 0x4b8   : > { %4333 = vst.msk [vmem:[#allocation4] sm:$0xff] %vm344_vm1, %v4301_v22  ;;  %v3856_v62 = vadd.f32 %v3824_v17, %v3791_v33 }
 0x4ba   : > { %3888 = vst.msk [vmem:[#allocation4 + $0xf8] sm:$0xff] %vm344_vm1, %v3856_v62  ;;  %v4059_v47 = vpop.f32.mrf.mxu2  ;;  %v3960_v62 = vld [vmem:[#allocation3 + $0x12a] sm:$0xff] }
 0x4bb   : > { %v4191_v15 = vpop.f32.mrf.mxu3 }
 0x4bc   : > { %v4192_v11 = vadd.f32 %v4191_v15, %v4051_v2  ;;  %v4667_v2 = vadd.f32 %v8385_v26, %v8366_v58  ;;  %v8534_v50 = vpop.f32.mrf.mxu0  ;;  %v4669_v58 = vadd.f32 %v8401_v57, %v8378_v3  ;;  %v3959_v26 = vld [vmem:[#allocation3 + $0x122] sm:$0xff] }
 0x4bd   : > { %v4445_v3 = vld [vmem:[#allocation3 + $0x1a0] sm:$0xff] }
 0x4be   : > { %v4302_v16 = vadd.f32 %v4270_v56, %v4192_v11 }
 0x4bf   : > { %v8525_v60 = vpop.f32.mrf.mxu1  ;;  %v4746_v51 = vld [vmem:[#allocation4] sm:$0xff]  ;;  %6568 = vmatmul.msk.bf16.gmra.mxu0 %vm344_vm1, %v8202_v42  ;;  %v3910_v42 = vld [vmem:[#allocation2 + $0x112] sm:$0xff] }
 0x4c0   : > { %4334 = vst.msk [vmem:[#allocation4 + $0x8] sm:$0xff] %vm344_vm1, %v4302_v16  ;;  %6545 = vmatmul.msk.bf16.gmra.mxu3 %vm344_vm1, %v8523_v12  ;;  %v4778_v22 = vadd.f32 %v4746_v51, %v4667_v2  ;;  %v8548_v16 = vpack.c.bf16 %v3960_v62, %v3959_v26  ;;  %v4272_v2 = vld [vmem:[#allocation4 + $0x18] sm:$0xff]  ;;  %v4444_v51 = vld [vmem:[#allocation3 + $0x198] sm:$0xff] }
 0x4c2   : > { %6583 = vmatmul.msk.bf16.gmra.mxu1 %vm344_vm1, %v8205_v53  ;;  %4810 = vst.msk [vmem:[#allocation4] sm:$0xff] %vm344_vm1, %v4778_v22  ;;  %v4061_v11 = vpop.f32.mrf.mxu2 }
 0x4c3   : > { %v4194_v37 = vpop.f32.mrf.mxu3 }
 0x4c4   : > { %v4195_v33 = vadd.f32 %v4194_v37, %v4054_v36  ;;  %v8546_v53 = vpop.f32.mrf.mxu0  ;;  %v8551_v37 = vpack.c.bf16 %v3910_v42, %v3909_v43  ;;  %v3962_v42 = vld [vmem:[#allocation3 + $0x142] sm:$0xff] }
 0x4c6   : > { %v4303_v27 = vadd.f32 %v4271_v19, %v4195_v33  ;;  %v4672_v33 = vadd.f32 %v8413_v14, %v8394_v21  ;;  %v4273_v21 = vld [vmem:[#allocation4 + $0x20] sm:$0xff] }
 0x4c7   : > { %v8541_v17 = vpop.f32.mrf.mxu1  ;;  %v4747_v15 = vld [vmem:[#allocation4 + $0x8] sm:$0xff]  ;;  %6531 = vmatmul.msk.bf16.gmra.mxu2 %vm344_vm1, %v8548_v16 }
 0x4c8   : > { %4335 = vst.msk [vmem:[#allocation4 + $0x10] sm:$0xff] %vm344_vm1, %v4303_v27  ;;  %v4779_v36 = vadd.f32 %v4747_v15, %v4669_v58 }
 0x4ca   : > { %4811 = vst.msk [vmem:[#allocation4 + $0x8] sm:$0xff] %vm344_vm1, %v4779_v36  ;;  %v4064_v62 = vpop.f32.mrf.mxu2 }
 0x4cb   : > { %v4196_v61 = vpop.f32.mrf.mxu3 }
 0x4cc   : > { %v4197_v56 = vadd.f32 %v4196_v61, %v4056_v1  ;;  %v4461_v1 = vpack.c.bf16 %v4445_v3, %v4444_v51  ;;  %v8562_v19 = vpop.f32.mrf.mxu0  ;;  %v4674_v61 = vadd.f32 %v8429_v52, %v8406_v44  ;;  %v3912_v3 = vld [vmem:[#allocation2 + $0x12a] sm:$0xff] }
 0x4cd   : > { %v4274_v44 = vld [vmem:[#allocation4 + $0x28] sm:$0xff] }
 0x4ce   : > { %v4304_v57 = vadd.f32 %v4272_v2, %v4197_v56  ;;  %v3911_v2 = vld [vmem:[#allocation2 + $0x122] sm:$0xff] }
 0x4cf   : > { %v8553_v22 = vpop.f32.mrf.mxu1  ;;  %v4748_v27 = vld [vmem:[#allocation4 + $0x10] sm:$0xff]  ;;  %6569 = vmatmul.msk.bf16.gmra.mxu0 %vm344_vm1, %v4461_v1 }
 0x4d0   : > { %4336 = vst.msk [vmem:[#allocation4 + $0x18] sm:$0xff] %vm344_vm1, %v4304_v57  ;;  %6546 = vmatmul.msk.bf16.gmra.mxu3 %vm344_vm1, %v8551_v37  ;;  %v4780_v58 = vadd.f32 %v4748_v27, %v4672_v33  ;;  %v4395_v57 = vld [vmem:[#allocation2 + $0x198] sm:$0xff]  ;;  %v4396_v33 = vld [vmem:[#allocation2 + $0x1a0] sm:$0xff] }
 0x4d2   : > { %6584 = vmatmul.msk.bf16.gmra.mxu1 %vm344_vm1, %v8231_v54  ;;  %4812 = vst.msk [vmem:[#allocation4 + $0x10] sm:$0xff] %vm344_vm1, %v4780_v58  ;;  %v3961_v54 = vld [vmem:[#allocation3 + $0x13a] sm:$0xff]  ;;  %v4066_v1 = vpop.f32.mrf.mxu2 }
 0x4d3   : > { %v4199_v26 = vpop.f32.mrf.mxu3  ;;  %v8575_v58 = vpack.c.bf16 %v3962_v42, %v3961_v54 }
 0x4d4   : > { %v4200_v15 = vadd.f32 %v4199_v26, %v4059_v47  ;;  %v8573_v43 = vpop.f32.mrf.mxu0  ;;  %v8578_v26 = vpack.c.bf16 %v3912_v3, %v3911_v2 }
 0x4d6   : > { %v4305_v14 = vadd.f32 %v4273_v21, %v4200_v15  ;;  %v4412_v15 = vpack.c.bf16 %v4396_v33, %v4395_v57  ;;  %v3963_v57 = vld [vmem:[#allocation3 + $0x152] sm:$0xff]  ;;  %v3964_v33 = vld [vmem:[#allocation3 + $0x15a] sm:$0xff] }
 0x4d7   : > { %v8568_v36 = vpop.f32.mrf.mxu1  ;;  %v4749_v56 = vld [vmem:[#allocation4 + $0x18] sm:$0xff]  ;;  %6532 = vmatmul.msk.bf16.gmra.mxu2 %vm344_vm1, %v8575_v58 }
 0x4d8   : > { %4337 = vst.msk [vmem:[#allocation4 + $0x20] sm:$0xff] %vm344_vm1, %v4305_v14  ;;  %v4781_v47 = vadd.f32 %v4749_v56, %v4674_v61  ;;  %v4677_v14 = vadd.f32 %v8441_v63, %v8422_v39  ;;  %v4275_v39 = vld [vmem:[#allocation4 + $0x30] sm:$0xff] }
 0x4da   : > { %4813 = vst.msk [vmem:[#allocation4 + $0x18] sm:$0xff] %vm344_vm1, %v4781_v47  ;;  %v4069_v56 = vpop.f32.mrf.mxu2 }
 0x4db   : > { %v4201_v51 = vpop.f32.mrf.mxu3 }
 0x4dc   : > { %v4202_v27 = vadd.f32 %v4201_v51, %v4061_v11  ;;  %v8589_v11 = vpop.f32.mrf.mxu0  ;;  %v4679_v51 = vadd.f32 %v8457_v20, %v8434_v30 }
 0x4de   : > { %v4306_v52 = vadd.f32 %v4274_v44, %v4202_v27 }
 0x4df   : > { %v8580_v21 = vpop.f32.mrf.mxu1  ;;  %v4750_v61 = vld [vmem:[#allocation4 + $0x20] sm:$0xff]  ;;  %6622 = vmatmul.msk.bf16.vlgmr.msrb.gmra.mxu0 %vm344_vm1, %v8255_v8 }
 0x4e0   : > { %4338 = vst.msk [vmem:[#allocation4 + $0x28] sm:$0xff] %vm344_vm1, %v4306_v52  ;;  %6547 = vmatmul.msk.bf16.gmra.mxu3 %vm344_vm1, %v8578_v26  ;;  %v4782_v54 = vadd.f32 %v4750_v61, %v4677_v14  ;;  %v3913_v52 = vld [vmem:[#allocation2 + $0x13a] sm:$0xff]  ;;  %v3914_v8 = vld [vmem:[#allocation2 + $0x142] sm:$0xff]  ;;  %v8602_v61 = vpack.c.bf16 %v3964_v33, %v3963_v57 }
 0x4e1   : > { %v8605_v30 = vpack.c.bf16 %v3914_v8, %v3913_v52 }
 0x4e2   : > { %6585 = vmatmul.msk.bf16.gmra.mxu1 %vm344_vm1, %v4412_v15  ;;  %4814 = vst.msk [vmem:[#allocation4 + $0x20] sm:$0xff] %vm344_vm1, %v4782_v54  ;;  %v4071_v15 = vpop.f32.mrf.mxu2  ;;  %v4276_v54 = vld [vmem:[#allocation4 + $0x38] sm:$0xff] }
 0x4e3   : > { %v4204_v42 = vpop.f32.mrf.mxu3 }
 0x4e4   : > { %v4205_v2 = vadd.f32 %v4204_v42, %v4064_v62  ;;  %v8600_v3 = vpop.f32.mrf.mxu0 }
 0x4e6   : > { %v4307_v63 = vadd.f32 %v4275_v39, %v4205_v2  ;;  %v4682_v2 = vadd.f32 %v8469_v28, %v8450_v41  ;;  %v4277_v41 = vld [vmem:[#allocation4 + $0x40] sm:$0xff] }
 0x4e7   : > { %v8595_v47 = vpop.f32.mrf.mxu1  ;;  %v4751_v27 = vld [vmem:[#allocation4 + $0x28] sm:$0xff]  ;;  %6533 = vmatmul.msk.bf16.gmra.mxu2 %vm344_vm1, %v8602_v61 }
 0x4e8   : > { %4339 = vst.msk [vmem:[#allocation4 + $0x30] sm:$0xff] %vm344_vm1, %v4307_v63  ;;  %v4783_v62 = vadd.f32 %v4751_v27, %v4679_v51 }
 0x4ea   : > { %4815 = vst.msk [vmem:[#allocation4 + $0x28] sm:$0xff] %vm344_vm1, %v4783_v62  ;;  %v4074_v57 = vpop.f32.mrf.mxu2  ;;  %v4684_v62 = vadd.f32 %v8485_v59, %v8462_v4 }
 0x4eb   : > { %v4206_v44 = vpop.f32.mrf.mxu3 }
 0x4ec   : > { %v4207_v14 = vadd.f32 %v4206_v44, %v4066_v1  ;;  %v8616_v1 = vpop.f32.mrf.mxu0  ;;  %v3965_v44 = vld [vmem:[#allocation3 + $0x16a] sm:$0xff] }
 0x4ee   : > { %v4308_v42 = vadd.f32 %v4276_v54, %v4207_v14  ;;  %v3915_v54 = vld [vmem:[#allocation2 + $0x152] sm:$0xff] }
 0x4ef   : > { %v8607_v20 = vpop.f32.mrf.mxu1  ;;  %v4752_v39 = vld [vmem:[#allocation4 + $0x30] sm:$0xff]  ;;  %6623 = vmatmul.msk.bf16.gmra.mxu0 %vm344_vm1, %v8280_v34  ;;  %v3916_v34 = vld [vmem:[#allocation2 + $0x15a] sm:$0xff] }
 0x4f0   : > { %4340 = vst.msk [vmem:[#allocation4 + $0x38] sm:$0xff] %vm344_vm1, %v4308_v42  ;;  %6548 = vmatmul.msk.bf16.gmra.mxu3 %vm344_vm1, %v8605_v30  ;;  %v4784_v63 = vadd.f32 %v4752_v39, %v4682_v2  ;;  %v8633_v4 = vpack.c.bf16 %v3916_v34, %v3915_v54 }
 0x4f2   : > { %6638 = vmatmul.msk.bf16.vlgmr.msrb.gmra.mxu1 %vm344_vm1, %v8283_v23  ;;  %4816 = vst.msk [vmem:[#allocation4 + $0x30] sm:$0xff] %vm344_vm1, %v4784_v63  ;;  %v3966_v23 = vld [vmem:[#allocation3 + $0x172] sm:$0xff]  ;;  %v4076_v42 = vpop.f32.mrf.mxu2 }
 0x4f3   : > { %v4209_v51 = vpop.f32.mrf.mxu3  ;;  %v8630_v39 = vpack.c.bf16 %v3966_v23, %v3965_v44  ;;  %v4278_v63 = vld [vmem:[#allocation4 + $0x48] sm:$0xff] }
 0x4f4   : > { %v4210_v33 = vadd.f32 %v4209_v51, %v4069_v56  ;;  %v8628_v8 = vpop.f32.mrf.mxu0 }
 0x4f6   : > { %v4309_v28 = vadd.f32 %v4277_v41, %v4210_v33  ;;  %v4687_v33 = vadd.f32 %v8497_v24, %v8478_v13  ;;  %v4279_v13 = vld [vmem:[#allocation4 + $0x50] sm:$0xff] }
 0x4f7   : > { %v8623_v27 = vpop.f32.mrf.mxu1  ;;  %v4753_v52 = vld [vmem:[#allocation4 + $0x38] sm:$0xff]  ;;  %6534 = vmatmul.msk.bf16.gmra.mxu2 %vm344_vm1, %v8630_v39 }
 0x4f8   : > { %4341 = vst.msk [vmem:[#allocation4 + $0x40] sm:$0xff] %vm344_vm1, %v4309_v28  ;;  %v4785_v56 = vadd.f32 %v4753_v52, %v4684_v62 }
 0x4fa   : > { %4817 = vst.msk [vmem:[#allocation4 + $0x38] sm:$0xff] %vm344_vm1, %v4785_v56  ;;  %v4079_v62 = vpop.f32.mrf.mxu2  ;;  %v4689_v56 = vadd.f32 %v8513_v6, %v8490_v46 }
 0x4fb   : > { %v4211_v14 = vpop.f32.mrf.mxu3 }
 0x4fc   : > { %v4212_v2 = vadd.f32 %v4211_v14, %v4071_v15  ;;  %v8646_v23 = vpop.f32.mrf.mxu0  ;;  %v3968_v14 = vld [vmem:[#allocation3 + $0x18a] sm:$0xff] }
 0x4fe   : > { %v4310_v51 = vadd.f32 %v4278_v63, %v4212_v2  ;;  %v3917_v2 = vld [vmem:[#allocation2 + $0x16a] sm:$0xff]  ;;  %v3918_v63 = vld [vmem:[#allocation2 + $0x172] sm:$0xff] }
 0x4ff   : > { %v8635_v59 = vpop.f32.mrf.mxu1  ;;  %v4754_v15 = vld [vmem:[#allocation4 + $0x40] sm:$0xff]  ;;  %6624 = vmatmul.msk.bf16.gmra.mxu0 %vm344_vm1, %v8316_v7 }
 0x500   : > { %4342 = vst.msk [vmem:[#allocation4 + $0x48] sm:$0xff] %vm344_vm1, %v4310_v51  ;;  %6549 = vmatmul.msk.bf16.gmra.mxu3 %vm344_vm1, %v8633_v4  ;;  %v4786_v41 = vadd.f32 %v4754_v15, %v4687_v33  ;;  %v4280_v15 = vld [vmem:[#allocation4 + $0x58] sm:$0xff] }
 0x502   : > { %6639 = vmatmul.msk.bf16.gmra.mxu1 %vm344_vm1, %v8319_v10  ;;  %4818 = vst.msk [vmem:[#allocation4 + $0x40] sm:$0xff] %vm344_vm1, %v4786_v41  ;;  %v3967_v10 = vld [vmem:[#allocation3 + $0x182] sm:$0xff]  ;;  %v4081_v51 = vpop.f32.mrf.mxu2 }
 0x503   : > { %v4214_v28 = vpop.f32.mrf.mxu3  ;;  %v8656_v33 = vpack.c.bf16 %v3968_v14, %v3967_v10 }
 0x504   : > { %v4215_v44 = vadd.f32 %v4214_v28, %v4074_v57  ;;  %v8659_v28 = vpack.c.bf16 %v3918_v63, %v3917_v2  ;;  %v8661_v46 = vpop.f32.mrf.mxu0 }
 0x506   : > { %v4311_v24 = vadd.f32 %v4279_v13, %v4215_v44  ;;  %v4692_v44 = vadd.f32 %v8525_v60, %v8506_v38  ;;  %v4281_v38 = vld [vmem:[#allocation4 + $0x60] sm:$0xff] }
 0x507   : > { %v8651_v52 = vpop.f32.mrf.mxu1  ;;  %v4755_v54 = vld [vmem:[#allocation4 + $0x48] sm:$0xff]  ;;  %6535 = vmatmul.msk.bf16.gmra.mxu2 %vm344_vm1, %v8656_v33 }
 0x508   : > { %4343 = vst.msk [vmem:[#allocation4 + $0x50] sm:$0xff] %vm344_vm1, %v4311_v24  ;;  %v4787_v57 = vadd.f32 %v4755_v54, %v4689_v56  ;;  %v4694_v54 = vadd.f32 %v8541_v17, %v8518_v32  ;;  %v4697_v17 = vadd.f32 %v8553_v22, %v8534_v50  ;;  %v4283_v50 = vld [vmem:[#allocation4 + $0x70] sm:$0xff] }
 0x50a   : > { %4819 = vst.msk [vmem:[#allocation4 + $0x48] sm:$0xff] %vm344_vm1, %v4787_v57  ;;  %v4084_v56 = vpop.f32.mrf.mxu2 }
 0x50b   : > { %v4216_v34 = vpop.f32.mrf.mxu3 }
 0x50c   : > { %v4217_v7 = vadd.f32 %v4216_v34, %v4076_v42  ;;  %v8682_v57 = vpop.f32.mrf.mxu0  ;;  %v4891_v34 = vld [vmem:[#allocation3 + $0x39] sm:$0xff] }
 0x50e   : > { %v4312_v41 = vadd.f32 %v4280_v15, %v4217_v7  ;;  %v3919_v7 = vld [vmem:[#allocation2 + $0x182] sm:$0xff] }
 0x50f   : > { %v8663_v6 = vpop.f32.mrf.mxu1  ;;  %v4756_v42 = vld [vmem:[#allocation4 + $0x50] sm:$0xff]  ;;  %6625 = vmatmul.msk.bf16.gmra.mxu0 %vm344_vm1, %v8352_v55 }
 0x510   : > { %4344 = vst.msk [vmem:[#allocation4 + $0x58] sm:$0xff] %vm344_vm1, %v4312_v41  ;;  %6550 = vmatmul.msk.bf16.gmra.mxu3 %vm344_vm1, %v8659_v28  ;;  %v4788_v13 = vadd.f32 %v4756_v42, %v4692_v44  ;;  %v3920_v55 = vld [vmem:[#allocation2 + $0x18a] sm:$0xff] }
 0x511   : > { %v4282_v42 = vld [vmem:[#allocation4 + $0x68] sm:$0xff] }
 0x512   : > { %6640 = vmatmul.msk.bf16.gmra.mxu1 %vm344_vm1, %v8355_v25  ;;  %4820 = vst.msk [vmem:[#allocation4 + $0x50] sm:$0xff] %vm344_vm1, %v4788_v13  ;;  %v4890_v25 = vld [vmem:[#allocation3 + $0x31] sm:$0xff]  ;;  %v4086_v15 = vpop.f32.mrf.mxu2 }
 0x513   : > { %v4219_v24 = vpop.f32.mrf.mxu3  ;;  %v4922_v44 = vpack.c.bf16 %v4891_v34, %v4890_v25 }
 0x514   : > { %v4220_v10 = vadd.f32 %v4219_v24, %v4079_v62  ;;  %v8685_v24 = vpack.c.bf16 %v3920_v55, %v3919_v7 }
 0x516   : > { %v4313_v60 = vadd.f32 %v4281_v38, %v4220_v10  ;;  %v8697_v10 = vpop.f32.mrf.mxu0 }
 0x517   : > { %v8677_v14 = vpop.f32.mrf.mxu1  ;;  %v4757_v2 = vld [vmem:[#allocation4 + $0x58] sm:$0xff]  ;;  %6588 = vmatmul.msk.bf16.vlgmr.msrb.gmra.mxu2 %vm344_vm1, %v4922_v44 }
 0x518   : > { %4345 = vst.msk [vmem:[#allocation4 + $0x60] sm:$0xff] %vm344_vm1, %v4313_v60  ;;  %v4789_v62 = vadd.f32 %v4757_v2, %v4694_v54  ;;  %v4699_v2 = vadd.f32 %v8568_v36, %v8546_v53  ;;  %v4702_v36 = vadd.f32 %v8580_v21, %v8562_v19  ;;  %v4285_v19 = vld [vmem:[#allocation4 + $0x80] sm:$0xff] }
 0x51a   : > { %4821 = vst.msk [vmem:[#allocation4 + $0x58] sm:$0xff] %vm344_vm1, %v4789_v62  ;;  %v4089_v54 = vpop.f32.mrf.mxu2  ;;  %v4893_v62 = vld [vmem:[#allocation3 + $0x51] sm:$0xff] }
 0x51b   : > { %v4221_v63 = vpop.f32.mrf.mxu3 }
 0x51c   : > { %v4222_v41 = vadd.f32 %v4221_v63, %v4081_v51 }
 0x51e   : > { %v4314_v13 = vadd.f32 %v4282_v42, %v4222_v41  ;;  %v4843_v41 = vld [vmem:[#allocation2 + $0x39] sm:$0xff]  ;;  %v8707_v42 = vpop.f32.mrf.mxu0 }
 0x51f   : > { %v8687_v32 = vpop.f32.mrf.mxu1  ;;  %v4758_v51 = vld [vmem:[#allocation4 + $0x60] sm:$0xff]  ;;  %6626 = vmatmul.msk.bf16.gmra.mxu0 %vm344_vm1, %v8380_v0 }
 0x520   : > { %4346 = vst.msk [vmem:[#allocation4 + $0x68] sm:$0xff] %vm344_vm1, %v4314_v13  ;;  %6551 = vmatmul.msk.bf16.gmra.mxu3 %vm344_vm1, %v8685_v24  ;;  %v4790_v38 = vadd.f32 %v4758_v51, %v4697_v17  ;;  %v4284_v17 = vld [vmem:[#allocation4 + $0x78] sm:$0xff] }
 0x522   : > { %6641 = vmatmul.msk.bf16.gmra.mxu1 %vm344_vm1, %v8383_v49  ;;  %4822 = vst.msk [vmem:[#allocation4 + $0x60] sm:$0xff] %vm344_vm1, %v4790_v38  ;;  %v4892_v49 = vld [vmem:[#allocation3 + $0x49] sm:$0xff]  ;;  %v4091_v44 = vpop.f32.mrf.mxu2 }
 0x523   : > { %v4224_v60 = vpop.f32.mrf.mxu3  ;;  %v4923_v13 = vpack.c.bf16 %v4893_v62, %v4892_v49  ;;  %v4704_v49 = vadd.f32 %v8595_v47, %v8573_v43  ;;  %v4707_v43 = vadd.f32 %v8607_v20, %v8589_v11  ;;  %v4287_v11 = vld [vmem:[#allocation4 + $0x90] sm:$0xff] }
 0x524   : > { %v4225_v25 = vadd.f32 %v4224_v60, %v4084_v56  ;;  %v4842_v56 = vld [vmem:[#allocation2 + $0x31] sm:$0xff] }
 0x525   : > { %v4874_v38 = vpack.c.bf16 %v4843_v41, %v4842_v56  ;;  %v4844_v56 = vld [vmem:[#allocation2 + $0x49] sm:$0xff] }
 0x526   : > { %v4315_v22 = vadd.f32 %v4283_v50, %v4225_v25 }
 0x527   : > { %v8702_v34 = vpop.f32.mrf.mxu1  ;;  %v4759_v63 = vld [vmem:[#allocation4 + $0x68] sm:$0xff]  ;;  %6589 = vmatmul.msk.bf16.gmra.mxu2 %vm344_vm1, %v4923_v13 }
 0x528   : > { %4347 = vst.msk [vmem:[#allocation4 + $0x70] sm:$0xff] %vm344_vm1, %v4315_v22  ;;  %v4791_v7 = vadd.f32 %v4759_v63, %v4699_v2  ;;  %v8722_v2 = vpop.f32.mrf.mxu0  ;;  %v4895_v63 = vld [vmem:[#allocation3 + $0x69] sm:$0xff] }
 0x52a   : > { %4823 = vst.msk [vmem:[#allocation4 + $0x68] sm:$0xff] %vm344_vm1, %v4791_v7  ;;  %v4094_v50 = vpop.f32.mrf.mxu2 }
 0x52b   : > { %v4226_v55 = vpop.f32.mrf.mxu3 }
 0x52c   : > { %v4227_v0 = vadd.f32 %v4226_v55, %v4086_v15 }
 0x52e   : > { %v4316_v51 = vadd.f32 %v4284_v17, %v4227_v0  ;;  %v4286_v17 = vld [vmem:[#allocation4 + $0x88] sm:$0xff] }
 0x52f   : > { %v8710_v53 = vpop.f32.mrf.mxu1  ;;  %v4760_v15 = vld [vmem:[#allocation4 + $0x70] sm:$0xff]  ;;  %6627 = vmatmul.msk.bf16.gmra.mxu0 %vm344_vm1, %v8408_v9 }
 0x530   : > { %4348 = vst.msk [vmem:[#allocation4 + $0x78] sm:$0xff] %vm344_vm1, %v4316_v51  ;;  %6604 = vmatmul.msk.bf16.vlgmr.msrb.gmra.mxu3 %vm344_vm1, %v4874_v38  ;;  %v4792_v60 = vadd.f32 %v4760_v15, %v4702_v36  ;;  %v4845_v9 = vld [vmem:[#allocation2 + $0x51] sm:$0xff]  ;;  %v8733_v47 = vpop.f32.mrf.mxu0 }
 0x531   : > { %v4875_v38 = vpack.c.bf16 %v4845_v9, %v4844_v56 }
 0x532   : > { %6642 = vmatmul.msk.bf16.gmra.mxu1 %vm344_vm1, %v8411_v31  ;;  %4824 = vst.msk [vmem:[#allocation4 + $0x70] sm:$0xff] %vm344_vm1, %v4792_v60  ;;  %v4894_v31 = vld [vmem:[#allocation3 + $0x61] sm:$0xff]  ;;  %v4096_v41 = vpop.f32.mrf.mxu2 }
 0x533   : > { %v4229_v25 = vpop.f32.mrf.mxu3  ;;  %v4924_v13 = vpack.c.bf16 %v4895_v63, %v4894_v31 }
 0x534   : > { %v4230_v22 = vadd.f32 %v4229_v25, %v4089_v54 }
 0x536   : > { %v4317_v21 = vadd.f32 %v4285_v19, %v4230_v22  ;;  %v4709_v19 = vadd.f32 %v8623_v27, %v8600_v3 }
 0x537   : > { %v8727_v62 = vpop.f32.mrf.mxu1  ;;  %v4761_v7 = vld [vmem:[#allocation4 + $0x78] sm:$0xff]  ;;  %6590 = vmatmul.msk.bf16.gmra.mxu2 %vm344_vm1, %v4924_v13  ;;  %v4712_v13 = vadd.f32 %v8635_v59, %v8616_v1  ;;  %v4289_v1 = vld [vmem:[#allocation4 + $0xa0] sm:$0xff] }
 0x538   : > { %4349 = vst.msk [vmem:[#allocation4 + $0x80] sm:$0xff] %vm344_vm1, %v4317_v21  ;;  %v4793_v54 = vadd.f32 %v4761_v7, %v4704_v49  ;;  %v4896_v21 = vld [vmem:[#allocation3 + $0x79] sm:$0xff]  ;;  %v4897_v49 = vld [vmem:[#allocation3 + $0x81] sm:$0xff] }
 0x539   : > { %v4925_v9 = vpack.c.bf16 %v4897_v49, %v4896_v21  ;;  %v4849_v21 = vld [vmem:[#allocation2 + $0x81] sm:$0xff] }
 0x53a   : > { %4825 = vst.msk [vmem:[#allocation4 + $0x78] sm:$0xff] %vm344_vm1, %v4793_v54  ;;  %v4099_v25 = vpop.f32.mrf.mxu2  ;;  %v4847_v54 = vld [vmem:[#allocation2 + $0x69] sm:$0xff] }
 0x53b   : > { %v4231_v55 = vpop.f32.mrf.mxu3 }
 0x53c   : > { %v4232_v0 = vadd.f32 %v4231_v55, %v4091_v44 }
 0x53e   : > { %v4318_v51 = vadd.f32 %v4286_v17, %v4232_v0  ;;  %v4288_v0 = vld [vmem:[#allocation4 + $0x98] sm:$0xff] }
 0x53f   : > { %v4762_v36 = vld [vmem:[#allocation4 + $0x80] sm:$0xff]  ;;  %v8737_v15 = vpop.f32.mrf.mxu1  ;;  %6628 = vmatmul.msk.bf16.gmra.mxu0 %vm344_vm1, %v8436_v45 }
 0x540   : > { %4350 = vst.msk [vmem:[#allocation4 + $0x88] sm:$0xff] %vm344_vm1, %v4318_v51  ;;  %6605 = vmatmul.msk.bf16.gmra.mxu3 %vm344_vm1, %v4875_v38  ;;  %v4794_v44 = vadd.f32 %v4762_v36, %v4707_v43 }
 0x542   : > { %6643 = vmatmul.msk.bf16.gmra.mxu1 %vm344_vm1, %v8439_v35  ;;  %4826 = vst.msk [vmem:[#allocation4 + $0x80] sm:$0xff] %vm344_vm1, %v4794_v44  ;;  %v8747_v35 = vpop.f32.mrf.mxu0  ;;  %v4101_v55 = vpop.f32.mrf.mxu2 }
 0x543   : > { %v4234_v60 = vpop.f32.mrf.mxu3 }
 0x544   : > { %v4235_v22 = vadd.f32 %v4234_v60, %v4094_v50  ;;  %v4846_v50 = vld [vmem:[#allocation2 + $0x61] sm:$0xff]  ;;  %v4714_v60 = vadd.f32 %v8651_v52, %v8628_v8  ;;  %v4717_v8 = vadd.f32 %v8663_v6, %v8646_v23  ;;  %v4291_v23 = vld [vmem:[#allocation4 + $0xb0] sm:$0xff] }
 0x545   : > { %v4876_v27 = vpack.c.bf16 %v4847_v54, %v4846_v50 }
 0x546   : > { %v4319_v20 = vadd.f32 %v4287_v11, %v4235_v22  ;;  %v4899_v22 = vld [vmem:[#allocation3 + $0x99] sm:$0xff] }
 0x547   : > { %v4763_v31 = vld [vmem:[#allocation4 + $0x88] sm:$0xff]  ;;  %v8749_v45 = vpop.f32.mrf.mxu1  ;;  %6591 = vmatmul.msk.bf16.gmra.mxu2 %vm344_vm1, %v4925_v9 }
 0x548   : > { %4351 = vst.msk [vmem:[#allocation4 + $0x90] sm:$0xff] %vm344_vm1, %v4319_v20  ;;  %v4795_v63 = vadd.f32 %v4763_v31, %v4709_v19 }
 0x54a   : > { %4827 = vst.msk [vmem:[#allocation4 + $0x88] sm:$0xff] %vm344_vm1, %v4795_v63  ;;  %v4104_v38 = vpop.f32.mrf.mxu2  ;;  %v8759_v43 = vpop.f32.mrf.mxu0  ;;  %v4290_v63 = vld [vmem:[#allocation4 + $0xa8] sm:$0xff] }
 0x54b   : > { %v4236_v7 = vpop.f32.mrf.mxu3 }
 0x54c   : > { %v4237_v56 = vadd.f32 %v4236_v7, %v4096_v41 }
 0x54e   : > { %v4320_v3 = vadd.f32 %v4288_v0, %v4237_v56 }
 0x54f   : > { %v4764_v17 = vld [vmem:[#allocation4 + $0x90] sm:$0xff]  ;;  %6629 = vmatmul.msk.bf16.gmra.mxu0 %vm344_vm1, %v8464_v5  ;;  %v8764_v59 = vpop.f32.mrf.mxu1 }
 0x550   : > { %4352 = vst.msk [vmem:[#allocation4 + $0x98] sm:$0xff] %vm344_vm1, %v4320_v3  ;;  %6606 = vmatmul.msk.bf16.gmra.mxu3 %vm344_vm1, %v4876_v27  ;;  %v4796_v41 = vadd.f32 %v4764_v17, %v4712_v13  ;;  %v4719_v27 = vadd.f32 %v8677_v14, %v8661_v46  ;;  %v4900_v17 = vld [vmem:[#allocation3 + $0xa9] sm:$0xff] }
 0x552   : > { %6644 = vmatmul.msk.bf16.gmra.mxu1 %vm344_vm1, %v8467_v48  ;;  %4828 = vst.msk [vmem:[#allocation4 + $0x90] sm:$0xff] %vm344_vm1, %v4796_v41  ;;  %v4898_v48 = vld [vmem:[#allocation3 + $0x91] sm:$0xff]  ;;  %v4106_v49 = vpop.f32.mrf.mxu2  ;;  %v8770_v7 = vpop.f32.mrf.mxu0 }
 0x553   : > { %v4239_v51 = vpop.f32.mrf.mxu3  ;;  %v4926_v31 = vpack.c.bf16 %v4899_v22, %v4898_v48  ;;  %v4292_v22 = vld [vmem:[#allocation4 + $0xb8] sm:$0xff] }
 0x554   : > { %v4240_v36 = vadd.f32 %v4239_v51, %v4099_v25  ;;  %v4848_v25 = vld [vmem:[#allocation2 + $0x79] sm:$0xff] }
 0x555   : > { %v4877_v54 = vpack.c.bf16 %v4849_v21, %v4848_v25 }
 0x556   : > { %v4321_v44 = vadd.f32 %v4289_v1, %v4240_v36  ;;  %v4850_v1 = vld [vmem:[#allocation2 + $0x91] sm:$0xff] }
 0x557   : > { %v4765_v11 = vld [vmem:[#allocation4 + $0x98] sm:$0xff]  ;;  %v8774_v52 = vpop.f32.mrf.mxu1  ;;  %6592 = vmatmul.msk.bf16.gmra.mxu2 %vm344_vm1, %v4926_v31 }
 0x558   : > { %4353 = vst.msk [vmem:[#allocation4 + $0xa0] sm:$0xff] %vm344_vm1, %v4321_v44  ;;  %v4797_v20 = vadd.f32 %v4765_v11, %v4714_v60  ;;  %v4722_v11 = vadd.f32 %v8687_v32, %v8682_v57  ;;  %v4293_v57 = vld [vmem:[#allocation4 + $0xc0] sm:$0xff] }
 0x55a   : > { %4829 = vst.msk [vmem:[#allocation4 + $0x98] sm:$0xff] %vm344_vm1, %v4797_v20  ;;  %v4109_v0 = vpop.f32.mrf.mxu2  ;;  %v8786_v13 = vpop.f32.mrf.mxu0 }
 0x55b   : > { %v4241_v19 = vpop.f32.mrf.mxu3 }
 0x55c   : > { %v4242_v5 = vadd.f32 %v4241_v19, %v4101_v55 }
 0x55e   : > { %v4322_v50 = vadd.f32 %v4290_v63, %v4242_v5  ;;  %v4724_v63 = vadd.f32 %v8702_v34, %v8697_v10 }
 0x55f   : > { %v4766_v55 = vld [vmem:[#allocation4 + $0xa0] sm:$0xff]  ;;  %6630 = vmatmul.msk.bf16.gmra.mxu0 %vm344_vm1, %v8492_v18  ;;  %v8789_v51 = vpop.f32.mrf.mxu1 }
 0x560   : > { %4354 = vst.msk [vmem:[#allocation4 + $0xa8] sm:$0xff] %vm344_vm1, %v4322_v50  ;;  %6607 = vmatmul.msk.bf16.gmra.mxu3 %vm344_vm1, %v4877_v54  ;;  %v4798_v56 = vadd.f32 %v4766_v55, %v4717_v8  ;;  %v4851_v18 = vld [vmem:[#allocation2 + $0x99] sm:$0xff]  ;;  %v4902_v50 = vld [vmem:[#allocation3 + $0xc1] sm:$0xff] }
 0x561   : > { %v4878_v14 = vpack.c.bf16 %v4851_v18, %v4850_v1 }
 0x562   : > { %6645 = vmatmul.msk.bf16.gmra.mxu1 %vm344_vm1, %v8495_v29  ;;  %4830 = vst.msk [vmem:[#allocation4 + $0xa0] sm:$0xff] %vm344_vm1, %v4798_v56  ;;  %v4901_v29 = vld [vmem:[#allocation3 + $0xb1] sm:$0xff]  ;;  %v4111_v44 = vpop.f32.mrf.mxu2  ;;  %v8797_v19 = vpop.f32.mrf.mxu0  ;;  %v4853_v56 = vld [vmem:[#allocation2 + $0xb1] sm:$0xff] }
 0x563   : > { %v4244_v9 = vpop.f32.mrf.mxu3  ;;  %v4927_v48 = vpack.c.bf16 %v4901_v29, %v4900_v17  ;;  %v4727_v17 = vadd.f32 %v8710_v53, %v8707_v42  ;;  %v4295_v42 = vld [vmem:[#allocation4 + $0xd0] sm:$0xff] }
 0x564   : > { %v4245_v3 = vadd.f32 %v4244_v9, %v4104_v38 }
 0x566   : > { %v4323_v6 = vadd.f32 %v4291_v23, %v4245_v3  ;;  %v4294_v23 = vld [vmem:[#allocation4 + $0xc8] sm:$0xff] }
 0x567   : > { %v4767_v41 = vld [vmem:[#allocation4 + $0xa8] sm:$0xff]  ;;  %6593 = vmatmul.msk.bf16.gmra.mxu2 %vm344_vm1, %v4927_v48  ;;  %v8801_v5 = vpop.f32.mrf.mxu1  ;;  %v4905_v48 = vld [vmem:[#allocation3 + $0xe1] sm:$0xff] }
 0x568   : > { %4355 = vst.msk [vmem:[#allocation4 + $0xb0] sm:$0xff] %vm344_vm1, %v4323_v6  ;;  %v4799_v38 = vadd.f32 %v4767_v41, %v4719_v27  ;;  %v4852_v6 = vld [vmem:[#allocation2 + $0xa9] sm:$0xff] }
 0x569   : > { %v4879_v34 = vpack.c.bf16 %v4853_v56, %v4852_v6  ;;  %v4906_v56 = vld [vmem:[#allocation3 + $0xf1] sm:$0xff]  ;;  %v4856_v6 = vld [vmem:[#allocation2 + $0xd9] sm:$0xff] }
 0x56a   : > { %4831 = vst.msk [vmem:[#allocation4 + $0xa8] sm:$0xff] %vm344_vm1, %v4799_v38 }
 0x56b   : > { %v4246_v36 = vpop.f32.mrf.mxu3 }
 0x56c   : > { %v4247_v60 = vadd.f32 %v4246_v36, %v4106_v49  ;;  %v4114_v49 = vpop.f32.mrf.mxu2 }
 0x56e   : > { %v4324_v46 = vadd.f32 %v4292_v22, %v4247_v60 }
 0x56f   : > { %v4768_v20 = vld [vmem:[#allocation4 + $0xb0] sm:$0xff]  ;;  %6631 = vmatmul.msk.bf16.gmra.mxu0 %vm344_vm1, %v8520_v40  ;;  %v8812_v27 = vpop.f32.mrf.mxu1 }
 0x570   : > { %4356 = vst.msk [vmem:[#allocation4 + $0xb8] sm:$0xff] %vm344_vm1, %v4324_v46  ;;  %6608 = vmatmul.msk.bf16.gmra.mxu3 %vm344_vm1, %v4878_v14  ;;  %v4800_v25 = vadd.f32 %v4768_v20, %v4722_v11  ;;  %v4855_v11 = vld [vmem:[#allocation2 + $0xc9] sm:$0xff] }
 0x572   : > { %6646 = vmatmul.msk.bf16.gmra.mxu1 %vm344_vm1, %v8523_v12  ;;  %4832 = vst.msk [vmem:[#allocation4 + $0xb0] sm:$0xff] %vm344_vm1, %v4800_v25  ;;  %v4903_v12 = vld [vmem:[#allocation3 + $0xc9] sm:$0xff] }
 0x573   : > { %v4249_v21 = vpop.f32.mrf.mxu3  ;;  %v4928_v40 = vpack.c.bf16 %v4903_v12, %v4902_v50 }
 0x574   : > { %v4250_v31 = vadd.f32 %v4249_v21, %v4109_v0  ;;  %v4116_v9 = vpop.f32.mrf.mxu2  ;;  %v8809_v0 = vpop.f32.mrf.mxu0  ;;  %v4296_v21 = vld [vmem:[#allocation4 + $0xd8] sm:$0xff] }
 0x576   : > { %v4325_v32 = vadd.f32 %v4293_v57, %v4250_v31 }
 0x577   : > { %v4769_v54 = vld [vmem:[#allocation4 + $0xb8] sm:$0xff]  ;;  %6594 = vmatmul.msk.bf16.gmra.mxu2 %vm344_vm1, %v4928_v40  ;;  %v8828_v60 = vpop.f32.mrf.mxu1 }
 0x578   : > { %4357 = vst.msk [vmem:[#allocation4 + $0xc0] sm:$0xff] %vm344_vm1, %v4325_v32  ;;  %v4801_v8 = vadd.f32 %v4769_v54, %v4724_v63 }
 0x57a   : > { %4833 = vst.msk [vmem:[#allocation4 + $0xb8] sm:$0xff] %vm344_vm1, %v4801_v8 }
 0x57b   : > { %v4251_v55 = vpop.f32.mrf.mxu3 }
 0x57c   : > { %v4252_v3 = vadd.f32 %v4251_v55, %v4111_v44  ;;  %v4119_v36 = vpop.f32.mrf.mxu2  ;;  %v8824_v53 = vpop.f32.mrf.mxu0  ;;  %v4729_v44 = vadd.f32 %v8727_v62, %v8722_v2  ;;  %v4732_v2 = vadd.f32 %v8737_v15, %v8733_v47  ;;  %v4297_v47 = vld [vmem:[#allocation4 + $0xe0] sm:$0xff]  ;;  %v4734_v55 = vadd.f32 %v8749_v45, %v8747_v35 }
 0x57e   : > { %v4326_v10 = vadd.f32 %v4294_v23, %v4252_v3 }
 0x57f   : > { %v4770_v29 = vld [vmem:[#allocation4 + $0xc0] sm:$0xff]  ;;  %6632 = vmatmul.msk.bf16.gmra.mxu0 %vm344_vm1, %v8548_v16  ;;  %v8839_v63 = vpop.f32.mrf.mxu1 }
 0x580   : > { %4358 = vst.msk [vmem:[#allocation4 + $0xc8] sm:$0xff] %vm344_vm1, %v4326_v10  ;;  %6609 = vmatmul.msk.bf16.gmra.mxu3 %vm344_vm1, %v4879_v34  ;;  %v4802_v41 = vadd.f32 %v4770_v29, %v4727_v17  ;;  %v4857_v10 = vld [vmem:[#allocation2 + $0xe1] sm:$0xff] }
 0x581   : > { %v4881_v45 = vpack.c.bf16 %v4857_v10, %v4856_v6  ;;  %v5223_v6 = vld [vmem:[#allocation4 + $0x8] sm:$0xff] }
 0x582   : > { %6647 = vmatmul.msk.bf16.gmra.mxu1 %vm344_vm1, %v8551_v37  ;;  %4834 = vst.msk [vmem:[#allocation4 + $0xc0] sm:$0xff] %vm344_vm1, %v4802_v41  ;;  %v4904_v37 = vld [vmem:[#allocation3 + $0xd9] sm:$0xff] }
 0x583   : > { %v4254_v38 = vpop.f32.mrf.mxu3  ;;  %v4929_v25 = vpack.c.bf16 %v4905_v48, %v4904_v37  ;;  %v4298_v41 = vld [vmem:[#allocation4 + $0xe8] sm:$0xff] }
 0x584   : > { %v4255_v1 = vadd.f32 %v4254_v38, %v4114_v49  ;;  %v4121_v16 = vpop.f32.mrf.mxu2  ;;  %v4854_v49 = vld [vmem:[#allocation2 + $0xc1] sm:$0xff]  ;;  %v8834_v62 = vpop.f32.mrf.mxu0  ;;  %v4737_v38 = vadd.f32 %v8764_v59, %v8759_v43  ;;  %v4299_v59 = vld [vmem:[#allocation4 + $0xf0] sm:$0xff] }
 0x585   : > { %v4880_v57 = vpack.c.bf16 %v4855_v11, %v4854_v49  ;;  %v4858_v11 = vld [vmem:[#allocation2 + $0xf1] sm:$0xff] }
 0x586   : > { %v4327_v18 = vadd.f32 %v4295_v42, %v4255_v1 }
 0x587   : > { %v4771_v22 = vld [vmem:[#allocation4 + $0xc8] sm:$0xff]  ;;  %6595 = vmatmul.msk.bf16.gmra.mxu2 %vm344_vm1, %v4929_v25  ;;  %v4742_v25 = vadd.f32 %v8789_v51, %v8786_v13  ;;  %v5222_v13 = vld [vmem:[#allocation4] sm:$0xff] }
 0x588   : > { %4359 = vst.msk [vmem:[#allocation4 + $0xd0] sm:$0xff] %vm344_vm1, %v4327_v18  ;;  %v4803_v46 = vadd.f32 %v4771_v22, %v4729_v44  ;;  %v4739_v22 = vadd.f32 %v8774_v52, %v8770_v7 }
 0x58a   : > { %4835 = vst.msk [vmem:[#allocation4 + $0xc8] sm:$0xff] %vm344_vm1, %v4803_v46 }
 0x58b   : > { %v4256_v14 = vpop.f32.mrf.mxu3 }
 0x58c   : > { %v4257_v20 = vadd.f32 %v4256_v14, %v4116_v9  ;;  %v4124_v54 = vpop.f32.mrf.mxu2  ;;  %v4907_v9 = vld [vmem:[#allocation3 + $0xf9] sm:$0xff] }
 0x58d   : > { %v4930_v29 = vpack.c.bf16 %v4907_v9, %v4906_v56 }
 0x58e   : > { %v4328_v31 = vadd.f32 %v4296_v21, %v4257_v20  ;;  %v4300_v20 = vld [vmem:[#allocation4 + $0xf8] sm:$0xff] }
 0x58f   : > { %v4772_v32 = vld [vmem:[#allocation4 + $0xd0] sm:$0xff]  ;;  %6633 = vmatmul.msk.bf16.gmra.mxu0 %vm344_vm1, %v8575_v58  ;;  %v8851_v58 = vpop.f32.mrf.mxu1 }
 0x590   : > { %4360 = vst.msk [vmem:[#allocation4 + $0xd8] sm:$0xff] %vm344_vm1, %v4328_v31  ;;  %6610 = vmatmul.msk.bf16.gmra.mxu3 %vm344_vm1, %v4880_v57  ;;  %v4804_v50 = vadd.f32 %v4772_v32, %v4732_v2 }
 0x592   : > { %6648 = vmatmul.msk.bf16.gmra.mxu1 %vm344_vm1, %v8578_v26  ;;  %4836 = vst.msk [vmem:[#allocation4 + $0xd0] sm:$0xff] %vm344_vm1, %v4804_v50  ;;  %v8849_v26 = vpop.f32.mrf.mxu0 }
 0x593   : > { %v4259_v12 = vpop.f32.mrf.mxu3 }
 0x594   : > { %v4260_v8 = vadd.f32 %v4259_v12, %v4119_v36  ;;  %v4126_v34 = vpop.f32.mrf.mxu2  ;;  %v4908_v12 = vld [vmem:[#allocation3 + $0x109] sm:$0xff] }
 0x596   : > { %v4329_v15 = vadd.f32 %v4297_v47, %v4260_v8  ;;  %v4744_v8 = vadd.f32 %v8801_v5, %v8797_v19  ;;  %v5619_v19 = vadd.f32 %v8812_v27, %v8809_v0  ;;  %v5224_v27 = vld [vmem:[#allocation4 + $0x10] sm:$0xff] }
 0x597   : > { %v4773_v3 = vld [vmem:[#allocation4 + $0xd8] sm:$0xff]  ;;  %6596 = vmatmul.msk.bf16.gmra.mxu2 %vm344_vm1, %v4930_v29  ;;  %v8866_v37 = vpop.f32.mrf.mxu1 }
 0x598   : > { %4361 = vst.msk [vmem:[#allocation4 + $0xe0] sm:$0xff] %vm344_vm1, %v4329_v15  ;;  %v4805_v40 = vadd.f32 %v4773_v3, %v4734_v55  ;;  %v4860_v3 = vld [vmem:[#allocation2 + $0x109] sm:$0xff] }
 0x59a   : > { %4837 = vst.msk [vmem:[#allocation4 + $0xd8] sm:$0xff] %vm344_vm1, %v4805_v40  ;;  %v8864_v43 = vpop.f32.mrf.mxu0  ;;  %v4861_v40 = vld [vmem:[#allocation2 + $0x111] sm:$0xff] }
 0x59b   : > { %v4261_v23 = vpop.f32.mrf.mxu3  ;;  %v4883_v10 = vpack.c.bf16 %v4861_v40, %v4860_v3 }
 0x59c   : > { %v4262_v17 = vadd.f32 %v4261_v23, %v4121_v16  ;;  %v5002_v44 = vpop.f32.mrf.mxu2  ;;  %v4859_v16 = vld [vmem:[#allocation2 + $0xf9] sm:$0xff] }
 0x59d   : > { %v4882_v49 = vpack.c.bf16 %v4859_v16, %v4858_v11  ;;  %v5225_v16 = vld [vmem:[#allocation4 + $0x18] sm:$0xff] }
 0x59e   : > { %v4330_v35 = vadd.f32 %v4298_v41, %v4262_v17 }
 0x59f   : > { %v4774_v36 = vld [vmem:[#allocation4 + $0xe0] sm:$0xff]  ;;  %6634 = vmatmul.msk.bf16.gmra.mxu0 %vm344_vm1, %v8602_v61  ;;  %v8876_v7 = vpop.f32.mrf.mxu1 }
 0x5a0   : > { %4362 = vst.msk [vmem:[#allocation4 + $0xe8] sm:$0xff] %vm344_vm1, %v4330_v35  ;;  %6611 = vmatmul.msk.bf16.gmra.mxu3 %vm344_vm1, %v4881_v45  ;;  %v4806_v1 = vadd.f32 %v4774_v36, %v4737_v38  ;;  %v5621_v38 = vadd.f32 %v8828_v60, %v8824_v53  ;;  %v8912_v36 = vld [vmem:[%s9320_s5] ss:$0 sm:$0xff]  ;;  %v4862_v60 = vld [vmem:[#allocation2 + $0x121] sm:$0xff] }
 0x5a2   : > { %6649 = vmatmul.msk.bf16.gmra.mxu1 %vm344_vm1, %v8605_v30  ;;  %4838 = vst.msk [vmem:[#allocation4 + $0xe0] sm:$0xff] %vm344_vm1, %v4806_v1  ;;  %v8874_v57 = vpop.f32.mrf.mxu0 }
 0x5a3   : > { %v4264_v42 = vpop.f32.mrf.mxu3 }
 0x5a4   : > { %v4265_v18 = vadd.f32 %v4264_v42, %v4124_v54  ;;  %v5004_v31 = vpop.f32.mrf.mxu2  ;;  %v4909_v54 = vld [vmem:[#allocation3 + $0x111] sm:$0xff]  ;;  %v4910_v42 = vld [vmem:[#allocation3 + $0x121] sm:$0xff] }
 0x5a5   : > { %v4931_v47 = vpack.c.bf16 %v4909_v54, %v4908_v12 }
 0x5a6   : > { %v4331_v48 = vadd.f32 %v4299_v59, %v4265_v18  ;;  %v4911_v18 = vld [vmem:[#allocation3 + $0x129] sm:$0xff] }
 0x5a7   : > { %v4775_v30 = vld [vmem:[#allocation4 + $0xe8] sm:$0xff]  ;;  %v8890_v56 = vpop.f32.mrf.mxu1  ;;  %6597 = vmatmul.msk.bf16.gmra.mxu2 %vm344_vm1, %v4931_v47  ;;  %v4932_v59 = vpack.c.bf16 %v4911_v18, %v4910_v42  ;;  %v5226_v47 = vld [vmem:[#allocation4 + $0x20] sm:$0xff]  ;;  %v5629_v18 = vadd.f32 %v8866_v37, %v8864_v43 }
 0x5a8   : > { %4363 = vst.msk [vmem:[#allocation4 + $0xf0] sm:$0xff] %vm344_vm1, %v4331_v48  ;;  %v4807_v46 = vadd.f32 %v4775_v30, %v4739_v22  ;;  %v4863_v30 = vld [vmem:[#allocation2 + $0x129] sm:$0xff] }
 0x5a9   : > { %v5227_v42 = vld [vmem:[#allocation4 + $0x28] sm:$0xff] }
 0x5aa   : > { %4839 = vst.msk [vmem:[#allocation4 + $0xe8] sm:$0xff] %vm344_vm1, %v4807_v46 }
 0x5ab   : > { %v4266_v14 = vpop.f32.mrf.mxu3 }
 0x5ac   : > { %v4267_v61 = vadd.f32 %v4266_v14, %v4126_v34  ;;  %v5007_v15 = vpop.f32.mrf.mxu2 }
 0x5ae   : > { %v4332_v21 = vadd.f32 %v4300_v20, %v4267_v61  ;;  %v5624_v61 = vadd.f32 %v8839_v63, %v8834_v62 }
 0x5af   : > { %v4776_v52 = vld [vmem:[#allocation4 + $0xf0] sm:$0xff]  ;;  %6635 = vmatmul.msk.bf16.gmra.mxu0 %vm344_vm1, %v8630_v39  ;;  %v8903_v45 = vpop.f32.mrf.mxu1 }
 0x5b0   : > { %4364 = vst.msk [vmem:[#allocation4 + $0xf8] sm:$0xff] %vm344_vm1, %v4332_v21  ;;  %6612 = vmatmul.msk.bf16.gmra.mxu3 %vm344_vm1, %v4882_v49  ;;  %v4808_v2 = vadd.f32 %v4776_v52, %v4742_v25  ;;  %v4884_v21 = vpack.c.bf16 %v4863_v30, %v4862_v60 }
 0x5b2   : > { %6650 = vmatmul.msk.bf16.gmra.mxu1 %vm344_vm1, %v8633_v4  ;;  %4840 = vst.msk [vmem:[#allocation4 + $0xf0] sm:$0xff] %vm344_vm1, %v4808_v2  ;;  %v8888_v4 = vpop.f32.mrf.mxu0 }
 0x5b3   : > { %v5142_v32 = vpop.f32.mrf.mxu3 }
 0x5b4   : > { %v5143_v50 = vadd.f32 %v5142_v32, %v5002_v44  ;;  %v5009_v29 = vpop.f32.mrf.mxu2 }
 0x5b6   : > { %v5254_v51 = vadd.f32 %v5222_v13, %v5143_v50 }
 0x5b7   : > { %v4777_v55 = vld [vmem:[#allocation4 + $0xf8] sm:$0xff]  ;;  %6598 = vmatmul.msk.bf16.gmra.mxu2 %vm344_vm1, %v4932_v59  ;;  %v8929_v20 = vpop.f32.mrf.mxu1 }
 0x5b8   : > { %5286 = vst.msk [vmem:[#allocation4] sm:$0xff] %vm344_vm1, %v5254_v51  ;;  %v4809_v39 = vadd.f32 %v4777_v55, %v4744_v8 }
 0x5ba   : > { %4841 = vst.msk [vmem:[#allocation4 + $0xf8] sm:$0xff] %vm344_vm1, %v4809_v39  ;;  %v8901_v41 = vpop.f32.mrf.mxu0 }
 0x5bb   : > { %v5144_v9 = vpop.f32.mrf.mxu3 }
 0x5bc   : > { %v5145_v23 = vadd.f32 %v5144_v9, %v5004_v31  ;;  %v5012_v48 = vpop.f32.mrf.mxu2 }
 0x5be   : > { %v5255_v5 = vadd.f32 %v5223_v6, %v5145_v23  ;;  %v4912_v23 = vld [vmem:[#allocation3 + $0x139] sm:$0xff]  ;;  %v4913_v6 = vld [vmem:[#allocation3 + $0x141] sm:$0xff] }
 0x5bf   : > { %v5698_v34 = vld [vmem:[#allocation4] sm:$0xff]  ;;  %6636 = vmatmul.msk.bf16.gmra.mxu0 %vm344_vm1, %v8656_v33 }
 0x5c0   : > { %v5730_v17 = vadd.f32 %v5698_v34, %v5619_v19  ;;  %5287 = vst.msk [vmem:[#allocation4 + $0x8] sm:$0xff] %vm344_vm1, %v5255_v5  ;;  %6613 = vmatmul.msk.bf16.gmra.mxu3 %vm344_vm1, %v4883_v10  ;;  %v8949_v19 = vpop.f32.mrf.mxu1  ;;  %v4933_v10 = vpack.c.bf16 %v4913_v6, %v4912_v23 }
 0x5c2   : > { %5762 = vst.msk [vmem:[#allocation4] sm:$0xff] %vm344_vm1, %v5730_v17  ;;  %6651 = vmatmul.msk.bf16.gmra.mxu1 %vm344_vm1, %v8659_v28  ;;  %v8925_v11 = vpop.f32.mrf.mxu0 }
 0x5c3   : > { %v5147_v35 = vpop.f32.mrf.mxu3 }
 0x5c4   : > { %v5148_v0 = vadd.f32 %v5147_v35, %v5007_v15  ;;  %v5014_v52 = vpop.f32.mrf.mxu2  ;;  %v5626_v15 = vadd.f32 %v8851_v58, %v8849_v26  ;;  %v4865_v35 = vld [vmem:[#allocation2 + $0x141] sm:$0xff] }
 0x5c6   : > { %v5256_v28 = vadd.f32 %v5224_v27, %v5148_v0 }
 0x5c7   : > { %v5699_v1 = vld [vmem:[#allocation4 + $0x8] sm:$0xff]  ;;  %6599 = vmatmul.msk.bf16.gmra.mxu2 %vm344_vm1, %v4933_v10  ;;  %v5634_v10 = vadd.f32 %v8890_v56, %v8888_v4 }
 0x5c8   : > { %v5731_v44 = vadd.f32 %v5699_v1, %v5621_v38  ;;  %5288 = vst.msk [vmem:[#allocation4 + $0x10] sm:$0xff] %vm344_vm1, %v5256_v28 }
 0x5c9   : > { %v5794_v33 = vld [vmem:[#allocation4] sm:$0xff] }
 0x5ca   : > { %v5830_v22 = vadd.f32 %v8912_v36, %v5794_v33  ;;  %5763 = vst.msk [vmem:[#allocation4 + $0x8] sm:$0xff] %vm344_vm1, %v5731_v44  ;;  %v8947_v9 = vpop.f32.mrf.mxu0 }
 0x5cb   : > { %v5149_v53 = vpop.f32.mrf.mxu3 }
 0x5cc   : > { %v5862_v46 = vpack.c.bf16 %v5830_v22, %v5830_v22  ;;  %v5150_v14 = vadd.f32 %v5149_v53, %v5009_v29  ;;  %v5997_v32 = vmul.f32 %v5830_v22, %v5830_v22  ;;  %v5927_v62 = vsel %vm344_vm1, %v5830_v22, 0.0  ;;  %v5017_v26 = vpop.f32.mrf.mxu2  ;;  %v4864_v29 = vld [vmem:[#allocation2 + $0x139] sm:$0xff] }
 0x5ce   : > { %5895 = vst.msk [vmem:[%s8923_s29] sm:$0xf] %vm5894_vm9, %v5862_v46  ;;  %v5257_v25 = vadd.f32 %v5225_v16, %v5150_v14  ;;  %v6029_v55 = vsel %vm344_vm1, %v5997_v32, 0.0  ;;  %v8965_v14 = vpop.f32.mrf.mxu1 }
 0x5cf   : > { %v5700_v49 = vld [vmem:[#allocation4 + $0x10] sm:$0xff] }
 0x5d0   : > { %v5732_v31 = vadd.f32 %v5700_v49, %v5624_v61  ;;  %5289 = vst.msk [vmem:[#allocation4 + $0x18] sm:$0xff] %vm344_vm1, %v5257_v25  ;;  %6614 = vmatmul.msk.bf16.gmra.mxu3 %vm344_vm1, %v4884_v21 }
 0x5d1   : > { %v5795_v2 = vld [vmem:[#allocation4 + $0x8] sm:$0xff] }
 0x5d2   : > { %v5831_v50 = vadd.f32 %v8912_v36, %v5795_v2  ;;  %5764 = vst.msk [vmem:[#allocation4 + $0x10] sm:$0xff] %vm344_vm1, %v5732_v31  ;;  %6652 = vmatmul.msk.bf16.gmra.mxu1 %vm344_vm1, %v8685_v24  ;;  %v8963_v30 = vpop.f32.mrf.mxu0  ;;  %v5228_v31 = vld [vmem:[#allocation4 + $0x30] sm:$0xff] }
 0x5d3   : > { %v5152_v63 = vpop.f32.mrf.mxu3 }
 0x5d4   : > { %v5863_v13 = vpack.c.bf16 %v5831_v50, %v5831_v50  ;;  %v5928_v51 = vsel %vm344_vm1, %v5831_v50, 0.0  ;;  %v5998_v12 = vmul.f32 %v5831_v50, %v5831_v50  ;;  %v5153_v54 = vadd.f32 %v5152_v63, %v5012_v48  ;;  %v5019_v60 = vpop.f32.mrf.mxu2  ;;  %v4914_v63 = vld [vmem:[#allocation3 + $0x151] sm:$0xff] }
 0x5d5   : > { %v5929_v8 = vadd.f32 %v5928_v51, %v5927_v62  ;;  %v4885_v48 = vpack.c.bf16 %v4865_v35, %v4864_v29 }
 0x5d6   : > { %5896 = vst.msk [vmem:[%s8923_s29 + $0x4] sm:$0xf] %vm5894_vm9, %v5863_v13  ;;  %v6030_v39 = vsel %vm344_vm1, %v5998_v12, 0.0  ;;  %v5258_v24 = vadd.f32 %v5226_v47, %v5153_v54  ;;  %v4915_v13 = vld [vmem:[#allocation3 + $0x159] sm:$0xff] }
 0x5d7   : > { %v6031_v3 = vadd.f32 %v6030_v39, %v6029_v55  ;;  %v5701_v40 = vld [vmem:[#allocation4 + $0x18] sm:$0xff]  ;;  %v4934_v12 = vpack.c.bf16 %v4915_v13, %v4914_v63  ;;  %v8981_v39 = vpop.f32.mrf.mxu1  ;;  %v4868_v63 = vld [vmem:[#allocation2 + $0x169] sm:$0xff]  ;;  %v5639_v13 = vadd.f32 %v8929_v20, %v8925_v11 }
 0x5d8   : > { %v5733_v5 = vadd.f32 %v5701_v40, %v5626_v15  ;;  %5290 = vst.msk [vmem:[#allocation4 + $0x20] sm:$0xff] %vm344_vm1, %v5258_v24  ;;  %v4866_v15 = vld [vmem:[#allocation2 + $0x151] sm:$0xff]  ;;  %v4867_v55 = vld [vmem:[#allocation2 + $0x159] sm:$0xff] }
 0x5d9   : > { %v5796_v58 = vld [vmem:[#allocation4 + $0x10] sm:$0xff]  ;;  %6600 = vmatmul.msk.bf16.gmra.mxu2 %vm344_vm1, %v4934_v12 }
 0x5da   : > { %v5832_v34 = vadd.f32 %v8912_v36, %v5796_v58  ;;  %5765 = vst.msk [vmem:[#allocation4 + $0x18] sm:$0xff] %vm344_vm1, %v5733_v5  ;;  %v5229_v5 = vld [vmem:[#allocation4 + $0x38] sm:$0xff] }
 0x5db   : > { %v5154_v17 = vpop.f32.mrf.mxu3 }
 0x5dc   : > { %v5864_v0 = vpack.c.bf16 %v5832_v34, %v5832_v34  ;;  %v5930_v27 = vsel %vm344_vm1, %v5832_v34, 0.0  ;;  %v5999_v38 = vmul.f32 %v5832_v34, %v5832_v34  ;;  %v5155_v28 = vadd.f32 %v5154_v17, %v5014_v52  ;;  %v5022_v54 = vpop.f32.mrf.mxu2 }
 0x5dd   : > { %v5931_v1 = vadd.f32 %v5930_v27, %v5929_v8  ;;  %v5631_v52 = vadd.f32 %v8876_v7, %v8874_v57  ;;  %v8979_v57 = vpop.f32.mrf.mxu0  ;;  %v4886_v34 = vpack.c.bf16 %v4867_v55, %v4866_v15 }
 0x5de   : > { %5897 = vst.msk [vmem:[%s8923_s29 + $0x8] sm:$0xf] %vm5894_vm9, %v5864_v0  ;;  %v6032_v44 = vsel %vm344_vm1, %v5999_v38, 0.0  ;;  %v5259_v59 = vadd.f32 %v5227_v42, %v5155_v28 }
 0x5df   : > { %v6033_v33 = vadd.f32 %v6032_v44, %v6031_v3  ;;  %v5702_v22 = vld [vmem:[#allocation4 + $0x20] sm:$0xff] }
 0x5e0   : > { %v5734_v53 = vadd.f32 %v5702_v22, %v5629_v18  ;;  %5291 = vst.msk [vmem:[#allocation4 + $0x28] sm:$0xff] %vm344_vm1, %v5259_v59  ;;  %6615 = vmatmul.msk.bf16.gmra.mxu3 %vm344_vm1, %v4885_v48  ;;  %v5230_v59 = vld [vmem:[#allocation4 + $0x40] sm:$0xff]  ;;  %v5636_v48 = vadd.f32 %v8903_v45, %v8901_v41 }
 0x5e1   : > { %v5797_v46 = vld [vmem:[#allocation4 + $0x18] sm:$0xff] }
 0x5e2   : > { %v5833_v43 = vadd.f32 %v8912_v36, %v5797_v46  ;;  %5766 = vst.msk [vmem:[#allocation4 + $0x20] sm:$0xff] %vm344_vm1, %v5734_v53 }
 0x5e3   : > { %v5157_v37 = vpop.f32.mrf.mxu3 }
 0x5e4   : > { %v5865_v16 = vpack.c.bf16 %v5833_v43, %v5833_v43  ;;  %v5932_v61 = vsel %vm344_vm1, %v5833_v43, 0.0  ;;  %v6000_v25 = vmul.f32 %v5833_v43, %v5833_v43  ;;  %v5158_v21 = vadd.f32 %v5157_v37, %v5017_v26  ;;  %v5024_v0 = vpop.f32.mrf.mxu2  ;;  %v4916_v43 = vld [vmem:[#allocation3 + $0x169] sm:$0xff]  ;;  %v4917_v37 = vld [vmem:[#allocation3 + $0x171] sm:$0xff] }
 0x5e5   : > { %v5933_v49 = vadd.f32 %v5932_v61, %v5931_v1  ;;  %v8994_v18 = vpop.f32.mrf.mxu0  ;;  %v4935_v61 = vpack.c.bf16 %v4917_v37, %v4916_v43  ;;  %v4870_v43 = vld [vmem:[#allocation2 + $0x181] sm:$0xff]  ;;  %v5644_v37 = vadd.f32 %v8965_v14, %v8963_v30 }
 0x5e6   : > { %5898 = vst.msk [vmem:[%s8923_s29 + $0xc] sm:$0xf] %vm5894_vm9, %v5865_v16  ;;  %v6034_v2 = vsel %vm344_vm1, %v6000_v25, 0.0  ;;  %v5260_v32 = vadd.f32 %v5228_v31, %v5158_v21 }
 0x5e7   : > { %v6035_v50 = vadd.f32 %v6034_v2, %v6033_v33  ;;  %v5703_v62 = vld [vmem:[#allocation4 + $0x28] sm:$0xff]  ;;  %v8998_v33 = vpop.f32.mrf.mxu1 }
 0x5e8   : > { %v5735_v51 = vadd.f32 %v5703_v62, %v5631_v52  ;;  %5292 = vst.msk [vmem:[#allocation4 + $0x30] sm:$0xff] %vm344_vm1, %v5260_v32  ;;  %v5231_v62 = vld [vmem:[#allocation4 + $0x48] sm:$0xff] }
 0x5e9   : > { %v5798_v8 = vld [vmem:[#allocation4 + $0x20] sm:$0xff]  ;;  %6601 = vmatmul.msk.bf16.gmra.mxu2 %vm344_vm1, %v4935_v61 }
 0x5ea   : > { %v5834_v47 = vadd.f32 %v8912_v36, %v5798_v8  ;;  %5767 = vst.msk [vmem:[#allocation4 + $0x28] sm:$0xff] %vm344_vm1, %v5735_v51 }
 0x5eb   : > { %v5159_v7 = vpop.f32.mrf.mxu3 }
 0x5ec   : > { %v5866_v24 = vpack.c.bf16 %v5834_v47, %v5834_v47  ;;  %v5934_v3 = vsel %vm344_vm1, %v5834_v47, 0.0  ;;  %v6001_v40 = vmul.f32 %v5834_v47, %v5834_v47  ;;  %v5160_v23 = vadd.f32 %v5159_v7, %v5019_v60  ;;  %v5027_v25 = vpop.f32.mrf.mxu2 }
 0x5ed   : > { %v5935_v6 = vadd.f32 %v5934_v3, %v5933_v49  ;;  %v4869_v49 = vld [vmem:[#allocation2 + $0x171] sm:$0xff]  ;;  %v9013_v8 = vpop.f32.mrf.mxu0 }
 0x5ee   : > { %5899 = vst.msk [vmem:[%s8923_s29 + $0x10] sm:$0xf] %vm5894_vm9, %v5866_v24  ;;  %v6036_v26 = vsel %vm344_vm1, %v6001_v40, 0.0  ;;  %v5261_v58 = vadd.f32 %v5229_v5, %v5160_v23 }
 0x5ef   : > { %v6037_v17 = vadd.f32 %v6036_v26, %v6035_v50  ;;  %v5704_v29 = vld [vmem:[#allocation4 + $0x30] sm:$0xff]  ;;  %v9015_v15 = vpop.f32.mrf.mxu1 }
 0x5f0   : > { %v5736_v35 = vadd.f32 %v5704_v29, %v5634_v10  ;;  %5293 = vst.msk [vmem:[#allocation4 + $0x38] sm:$0xff] %vm344_vm1, %v5261_v58  ;;  %6616 = vmatmul.msk.bf16.gmra.mxu3 %vm344_vm1, %v4886_v34  ;;  %v5232_v26 = vld [vmem:[#allocation4 + $0x50] sm:$0xff]  ;;  %v5641_v58 = vadd.f32 %v8949_v19, %v8947_v9 }
 0x5f1   : > { %v5799_v27 = vld [vmem:[#allocation4 + $0x28] sm:$0xff] }
 0x5f2   : > { %v5835_v38 = vadd.f32 %v8912_v36, %v5799_v27  ;;  %5768 = vst.msk [vmem:[#allocation4 + $0x30] sm:$0xff] %vm344_vm1, %v5736_v35  ;;  %v4919_v27 = vld [vmem:[#allocation3 + $0x189] sm:$0xff] }
 0x5f3   : > { %v5162_v4 = vpop.f32.mrf.mxu3 }
 0x5f4   : > { %v5867_v56 = vpack.c.bf16 %v5835_v38, %v5835_v38  ;;  %v5936_v28 = vsel %vm344_vm1, %v5835_v38, 0.0  ;;  %v6002_v1 = vmul.f32 %v5835_v38, %v5835_v38  ;;  %v5163_v42 = vadd.f32 %v5162_v4, %v5022_v54  ;;  %v5029_v24 = vpop.f32.mrf.mxu2 }
 0x5f5   : > { %v5937_v44 = vadd.f32 %v5936_v28, %v5935_v6  ;;  %v4887_v54 = vpack.c.bf16 %v4869_v49, %v4868_v63 }
 0x5f6   : > { %5900 = vst.msk [vmem:[%s8923_s29 + $0x14] sm:$0xf] %vm5894_vm9, %v5867_v56  ;;  %v6038_v22 = vsel %vm344_vm1, %v6002_v1, 0.0  ;;  %v5262_v53 = vadd.f32 %v5230_v59, %v5163_v42  ;;  %v9028_v1 = vpop.f32.mrf.mxu0 }
 0x5f7   : > { %v6039_v60 = vadd.f32 %v6038_v22, %v6037_v17  ;;  %v5705_v46 = vld [vmem:[#allocation4 + $0x38] sm:$0xff]  ;;  %v9030_v42 = vpop.f32.mrf.mxu1 }
 0x5f8   : > { %v5737_v16 = vadd.f32 %v5705_v46, %v5636_v48  ;;  %5294 = vst.msk [vmem:[#allocation4 + $0x40] sm:$0xff] %vm344_vm1, %v5262_v53  ;;  %v5233_v46 = vld [vmem:[#allocation4 + $0x58] sm:$0xff] }
 0x5f9   : > { %v5800_v21 = vld [vmem:[#allocation4 + $0x30] sm:$0xff] }
 0x5fa   : > { %v5836_v41 = vadd.f32 %v8912_v36, %v5800_v21  ;;  %5769 = vst.msk [vmem:[#allocation4 + $0x38] sm:$0xff] %vm344_vm1, %v5737_v16 }
 0x5fb   : > { %v5164_v45 = vpop.f32.mrf.mxu3 }
 0x5fc   : > { %v5868_v31 = vpack.c.bf16 %v5836_v41, %v5836_v41  ;;  %v5938_v52 = vsel %vm344_vm1, %v5836_v41, 0.0  ;;  %v6003_v2 = vmul.f32 %v5836_v41, %v5836_v41  ;;  %v5165_v32 = vadd.f32 %v5164_v45, %v5024_v0  ;;  %v4918_v0 = vld [vmem:[#allocation3 + $0x181] sm:$0xff]  ;;  %v5032_v56 = vpop.f32.mrf.mxu2 }
 0x5fd   : > { %v5939_v50 = vadd.f32 %v5938_v52, %v5937_v44  ;;  %v4936_v4 = vpack.c.bf16 %v4919_v27, %v4918_v0  ;;  %v4871_v44 = vld [vmem:[#allocation2 + $0x189] sm:$0xff]  ;;  %v5649_v0 = vadd.f32 %v8998_v33, %v8994_v18 }
 0x5fe   : > { %5901 = vst.msk [vmem:[%s8923_s29 + $0x18] sm:$0xf] %vm5894_vm9, %v5868_v31  ;;  %v6040_v51 = vsel %vm344_vm1, %v6003_v2, 0.0  ;;  %v5263_v12 = vadd.f32 %v5231_v62, %v5165_v32  ;;  %v9045_v14 = vpop.f32.mrf.mxu0 }
 0x5ff   : > { %v6041_v47 = vadd.f32 %v6040_v51, %v6039_v60  ;;  %v5706_v7 = vld [vmem:[#allocation4 + $0x40] sm:$0xff]  ;;  %6602 = vmatmul.msk.bf16.gmra.mxu2 %vm344_vm1, %v4936_v4  ;;  %v9047_v2 = vpop.f32.mrf.mxu1 }
 0x600   : > { %v5738_v55 = vadd.f32 %v5706_v7, %v5639_v13  ;;  %5295 = vst.msk [vmem:[#allocation4 + $0x48] sm:$0xff] %vm344_vm1, %v5263_v12  ;;  %6617 = vmatmul.msk.bf16.gmra.mxu3 %vm344_vm1, %v4887_v54  ;;  %v5234_v51 = vld [vmem:[#allocation4 + $0x60] sm:$0xff]  ;;  %v5646_v12 = vadd.f32 %v8981_v39, %v8979_v57 }
 0x601   : > { %v5801_v11 = vld [vmem:[#allocation4 + $0x38] sm:$0xff] }
 0x602   : > { %v5837_v20 = vadd.f32 %v8912_v36, %v5801_v11  ;;  %5770 = vst.msk [vmem:[#allocation4 + $0x40] sm:$0xff] %vm344_vm1, %v5738_v55  ;;  %v4921_v11 = vld [vmem:[#allocation3 + $0x1a1] sm:$0xff] }
 0x603   : > { %v5167_v3 = vpop.f32.mrf.mxu3 }
 0x604   : > { %v5869_v40 = vpack.c.bf16 %v5837_v20, %v5837_v20  ;;  %v5940_v23 = vsel %vm344_vm1, %v5837_v20, 0.0  ;;  %v6004_v6 = vmul.f32 %v5837_v20, %v5837_v20  ;;  %v5168_v5 = vadd.f32 %v5167_v3, %v5027_v25  ;;  %v5034_v49 = vpop.f32.mrf.mxu2 }
 0x605   : > { %v5941_v10 = vadd.f32 %v5940_v23, %v5939_v50  ;;  %v4888_v25 = vpack.c.bf16 %v4871_v44, %v4870_v43  ;;  %v4873_v23 = vld [vmem:[#allocation2 + $0x1a1] sm:$0xff]  ;;  %v5236_v43 = vld [vmem:[#allocation4 + $0x70] sm:$0xff] }
 0x606   : > { %5902 = vst.msk [vmem:[%s8923_s29 + $0x1c] sm:$0xf] %vm5894_vm9, %v5869_v40  ;;  %v6042_v34 = vsel %vm344_vm1, %v6004_v6, 0.0  ;;  %v5264_v17 = vadd.f32 %v5232_v26, %v5168_v5  ;;  %v4872_v40 = vld [vmem:[#allocation2 + $0x199] sm:$0xff]  ;;  %v9062_v27 = vpop.f32.mrf.mxu0 }
 0x607   : > { %v6043_v29 = vadd.f32 %v6042_v34, %v6041_v47  ;;  %v5707_v35 = vld [vmem:[#allocation4 + $0x48] sm:$0xff] }
 0x608   : > { %v5739_v38 = vadd.f32 %v5707_v35, %v5641_v58  ;;  %5296 = vst.msk [vmem:[#allocation4 + $0x50] sm:$0xff] %vm344_vm1, %v5264_v17  ;;  %v5235_v35 = vld [vmem:[#allocation4 + $0x68] sm:$0xff] }
 0x609   : > { %v5802_v28 = vld [vmem:[#allocation4 + $0x40] sm:$0xff] }
 0x60a   : > { %v5838_v9 = vadd.f32 %v8912_v36, %v5802_v28  ;;  %5771 = vst.msk [vmem:[#allocation4 + $0x48] sm:$0xff] %vm344_vm1, %v5739_v38  ;;  %v9064_v38 = vpop.f32.mrf.mxu1 }
 0x60b   : > { %v5169_v19 = vpop.f32.mrf.mxu3 }
 0x60c   : > { %v5870_v59 = vpack.c.bf16 %v5838_v9, %v5838_v9  ;;  %v5942_v48 = vsel %vm344_vm1, %v5838_v9, 0.0  ;;  %v6005_v22 = vmul.f32 %v5838_v9, %v5838_v9  ;;  %v5170_v53 = vadd.f32 %v5169_v19, %v5029_v24  ;;  %v4920_v24 = vld [vmem:[#allocation3 + $0x199] sm:$0xff]  ;;  %v5037_v6 = vpop.f32.mrf.mxu2 }
 0x60d   : > { %v5943_v60 = vadd.f32 %v5942_v48, %v5941_v10  ;;  %v4937_v3 = vpack.c.bf16 %v4921_v11, %v4920_v24  ;;  %v4889_v10 = vpack.c.bf16 %v4873_v23, %v4872_v40  ;;  %v5654_v24 = vadd.f32 %v9030_v42, %v9028_v1 }
 0x60e   : > { %5903 = vst.msk [vmem:[%s8923_s29 + $0x20] sm:$0xf] %vm5894_vm9, %v5870_v59  ;;  %v6044_v16 = vsel %vm344_vm1, %v6005_v22, 0.0  ;;  %v5265_v61 = vadd.f32 %v5233_v46, %v5170_v53 }
 0x60f   : > { %v6045_v21 = vadd.f32 %v6044_v16, %v6043_v29  ;;  %v5708_v41 = vld [vmem:[#allocation4 + $0x50] sm:$0xff]  ;;  %6603 = vmatmul.msk.bf16.gmra.mxu2 %vm344_vm1, %v4937_v3 }
 0x610   : > { %v5740_v45 = vadd.f32 %v5708_v41, %v5644_v37  ;;  %5297 = vst.msk [vmem:[#allocation4 + $0x58] sm:$0xff] %vm344_vm1, %v5265_v61  ;;  %6618 = vmatmul.msk.bf16.gmra.mxu3 %vm344_vm1, %v4888_v25  ;;  %v5651_v37 = vadd.f32 %v9015_v15, %v9013_v8  ;;  %v5396_v41 = vld [vmem:[#allocation3 + $0x19a] sm:$0xff] }
 0x611   : > { %v5803_v31 = vld [vmem:[#allocation4 + $0x48] sm:$0xff] }
 0x612   : > { %v5839_v52 = vadd.f32 %v8912_v36, %v5803_v31  ;;  %5772 = vst.msk [vmem:[#allocation4 + $0x50] sm:$0xff] %vm344_vm1, %v5740_v45  ;;  %v5397_v45 = vld [vmem:[#allocation3 + $0x1a2] sm:$0xff]  ;;  %v9081_v31 = vpop.f32.mrf.mxu1 }
 0x613   : > { %v5172_v30 = vpop.f32.mrf.mxu3 }
 0x614   : > { %v5871_v32 = vpack.c.bf16 %v5839_v52, %v5839_v52  ;;  %v5944_v50 = vsel %vm344_vm1, %v5839_v52, 0.0  ;;  %v6006_v62 = vmul.f32 %v5839_v52, %v5839_v52  ;;  %v5173_v63 = vadd.f32 %v5172_v30, %v5032_v56  ;;  %v5039_v44 = vpop.f32.mrf.mxu2 }
 0x615   : > { %v5945_v13 = vadd.f32 %v5944_v50, %v5943_v60  ;;  %v5413_v30 = vpack.c.bf16 %v5397_v45, %v5396_v41  ;;  %v5349_v50 = vld [vmem:[#allocation2 + $0x1a2] sm:$0xff] }
 0x616   : > { %5904 = vst.msk [vmem:[%s8923_s29 + $0x24] sm:$0xf] %vm5894_vm9, %v5871_v32  ;;  %v6046_v54 = vsel %vm344_vm1, %v6006_v62, 0.0  ;;  %v5266_v47 = vadd.f32 %v5234_v51, %v5173_v63  ;;  %v5348_v32 = vld [vmem:[#allocation2 + $0x19a] sm:$0xff] }
 0x617   : > { %v6047_v7 = vadd.f32 %v6046_v54, %v6045_v21  ;;  %v5709_v55 = vld [vmem:[#allocation4 + $0x58] sm:$0xff]  ;;  %v5365_v15 = vpack.c.bf16 %v5349_v50, %v5348_v32  ;;  %6637 = vmatmul.msk.bf16.gmra.mxu0 %vm344_vm1, %v5413_v30 }
 0x618   : > { %v5741_v20 = vadd.f32 %v5709_v55, %v5646_v12  ;;  %5298 = vst.msk [vmem:[#allocation4 + $0x60] sm:$0xff] %vm344_vm1, %v5266_v47  ;;  %v5237_v55 = vld [vmem:[#allocation4 + $0x78] sm:$0xff] }
 0x619   : > { %v5804_v5 = vld [vmem:[#allocation4 + $0x50] sm:$0xff]  ;;  %6653 = vmatmul.msk.bf16.gmra.mxu1 %vm344_vm1, %v5365_v15 }
 0x61a   : > { %v5840_v57 = vadd.f32 %v8912_v36, %v5804_v5  ;;  %5773 = vst.msk [vmem:[#allocation4 + $0x58] sm:$0xff] %vm344_vm1, %v5741_v20 }
 0x61b   : > { %v5174_v39 = vpop.f32.mrf.mxu3 }
 0x61c   : > { %v5872_v26 = vpack.c.bf16 %v5840_v57, %v5840_v57  ;;  %v5946_v58 = vsel %vm344_vm1, %v5840_v57, 0.0  ;;  %v6007_v34 = vmul.f32 %v5840_v57, %v5840_v57  ;;  %v5175_v17 = vadd.f32 %v5174_v39, %v5034_v49  ;;  %v9079_v49 = vpop.f32.mrf.mxu0  ;;  %v5042_v62 = vpop.f32.mrf.mxu2 }
 0x61d   : > { %v5947_v29 = vadd.f32 %v5946_v58, %v5945_v13  ;;  %v9097_v57 = vpop.f32.mrf.mxu1 }
 0x61e   : > { %5905 = vst.msk [vmem:[%s8923_s29 + $0x28] sm:$0xf] %vm5894_vm9, %v5872_v26  ;;  %v6048_v4 = vsel %vm344_vm1, %v6007_v34, 0.0  ;;  %v5267_v56 = vadd.f32 %v5235_v35, %v5175_v17  ;;  %v5656_v35 = vadd.f32 %v9047_v2, %v9045_v14 }
 0x61f   : > { %v6049_v28 = vadd.f32 %v6048_v4, %v6047_v7  ;;  %v5710_v9 = vld [vmem:[#allocation4 + $0x60] sm:$0xff] }
 0x620   : > { %v5742_v19 = vadd.f32 %v5710_v9, %v5649_v0  ;;  %5299 = vst.msk [vmem:[#allocation4 + $0x68] sm:$0xff] %vm344_vm1, %v5267_v56  ;;  %6619 = vmatmul.msk.bf16.gmra.mxu3 %vm344_vm1, %v4889_v10 }
 0x621   : > { %v5805_v59 = vld [vmem:[#allocation4 + $0x58] sm:$0xff] }
 0x622   : > { %v5841_v18 = vadd.f32 %v8912_v36, %v5805_v59  ;;  %5774 = vst.msk [vmem:[#allocation4 + $0x60] sm:$0xff] %vm344_vm1, %v5742_v19 }
 0x623   : > { %v5177_v33 = vpop.f32.mrf.mxu3 }
 0x624   : > { %v5873_v48 = vpack.c.bf16 %v5841_v18, %v5841_v18  ;;  %v5948_v22 = vsel %vm344_vm1, %v5841_v18, 0.0  ;;  %v6008_v53 = vmul.f32 %v5841_v18, %v5841_v18  ;;  %v5178_v60 = vadd.f32 %v5177_v33, %v5037_v6  ;;  %v9095_v5 = vpop.f32.mrf.mxu0  ;;  %v5044_v42 = vpop.f32.mrf.mxu2 }
 0x625   : > { %v5949_v46 = vadd.f32 %v5948_v22, %v5947_v29  ;;  %v5238_v29 = vld [vmem:[#allocation4 + $0x80] sm:$0xff]  ;;  %v9113_v22 = vpop.f32.mrf.mxu1 }
 0x626   : > { %5906 = vst.msk [vmem:[%s8923_s29 + $0x2c] sm:$0xf] %vm5894_vm9, %v5873_v48  ;;  %v6050_v16 = vsel %vm344_vm1, %v6008_v53, 0.0  ;;  %v5268_v61 = vadd.f32 %v5236_v43, %v5178_v60  ;;  %v5239_v60 = vld [vmem:[#allocation4 + $0x88] sm:$0xff]  ;;  %v5659_v43 = vadd.f32 %v9064_v38, %v9062_v27 }
 0x627   : > { %v6051_v25 = vadd.f32 %v6050_v16, %v6049_v28  ;;  %v5711_v21 = vld [vmem:[#allocation4 + $0x68] sm:$0xff] }
 0x628   : > { %v5743_v52 = vadd.f32 %v5711_v21, %v5651_v37  ;;  %5300 = vst.msk [vmem:[#allocation4 + $0x70] sm:$0xff] %vm344_vm1, %v5268_v61 }
 0x629   : > { %v5806_v8 = vld [vmem:[#allocation4 + $0x60] sm:$0xff] }
 0x62a   : > { %v5842_v63 = vadd.f32 %v8912_v36, %v5806_v8  ;;  %5775 = vst.msk [vmem:[#allocation4 + $0x68] sm:$0xff] %vm344_vm1, %v5743_v52  ;;  %v5240_v8 = vld [vmem:[#allocation4 + $0x90] sm:$0xff] }
 0x62b   : > { %v5179_v13 = vpop.f32.mrf.mxu3 }
 0x62c   : > { %v5874_v51 = vpack.c.bf16 %v5842_v63, %v5842_v63  ;;  %v5950_v12 = vsel %vm344_vm1, %v5842_v63, 0.0  ;;  %v6009_v54 = vmul.f32 %v5842_v63, %v5842_v63  ;;  %v5180_v47 = vadd.f32 %v5179_v13, %v5039_v44  ;;  %v9110_v18 = vpop.f32.mrf.mxu0 }
 0x62d   : > { %v5951_v7 = vadd.f32 %v5950_v12, %v5949_v46  ;;  %v5047_v46 = vpop.f32.mrf.mxu2  ;;  %v5668_v12 = vpop.f32.mrf.mxu1 }
 0x62e   : > { %5907 = vst.msk [vmem:[%s8923_s29 + $0x30] sm:$0xf] %vm5894_vm9, %v5874_v51  ;;  %v6052_v11 = vsel %vm344_vm1, %v6009_v54, 0.0  ;;  %v5269_v20 = vadd.f32 %v5237_v55, %v5180_v47 }
 0x62f   : > { %v6053_v3 = vadd.f32 %v6052_v11, %v6051_v25  ;;  %v5712_v40 = vld [vmem:[#allocation4 + $0x70] sm:$0xff] }
 0x630   : > { %v5744_v23 = vadd.f32 %v5712_v40, %v5654_v24  ;;  %5301 = vst.msk [vmem:[#allocation4 + $0x78] sm:$0xff] %vm344_vm1, %v5269_v20 }
 0x631   : > { %v5807_v6 = vld [vmem:[#allocation4 + $0x68] sm:$0xff] }
 0x632   : > { %v5843_v39 = vadd.f32 %v8912_v36, %v5807_v6  ;;  %5776 = vst.msk [vmem:[#allocation4 + $0x70] sm:$0xff] %vm344_vm1, %v5744_v23  ;;  %v5241_v23 = vld [vmem:[#allocation4 + $0x98] sm:$0xff] }
 0x633   : > { %v5182_v1 = vpop.f32.mrf.mxu3 }
 0x634   : > { %v5875_v10 = vpack.c.bf16 %v5843_v39, %v5843_v39  ;;  %v5952_v26 = vsel %vm344_vm1, %v5843_v39, 0.0  ;;  %v6010_v58 = vmul.f32 %v5843_v39, %v5843_v39  ;;  %v5183_v34 = vadd.f32 %v5182_v1, %v5042_v62  ;;  %v5528_v63 = vpop.f32.mrf.mxu0 }
 0x635   : > { %v5953_v17 = vadd.f32 %v5952_v26, %v5951_v7  ;;  %v5049_v15 = vpop.f32.mrf.mxu2  ;;  %v5661_v62 = vadd.f32 %v9081_v31, %v9079_v49  ;;  %v5664_v39 = vadd.f32 %v9097_v57, %v9095_v5 }
 0x636   : > { %5908 = vst.msk [vmem:[%s8923_s29 + $0x34] sm:$0xf] %vm5894_vm9, %v5875_v10  ;;  %v6054_v0 = vsel %vm344_vm1, %v6010_v58, 0.0  ;;  %v5270_v4 = vadd.f32 %v5238_v29, %v5183_v34 }
 0x637   : > { %v6055_v56 = vadd.f32 %v6054_v0, %v6053_v3  ;;  %v5713_v28 = vld [vmem:[#allocation4 + $0x78] sm:$0xff] }
 0x638   : > { %v5745_v9 = vadd.f32 %v5713_v28, %v5656_v35  ;;  %5302 = vst.msk [vmem:[#allocation4 + $0x80] sm:$0xff] %vm344_vm1, %v5270_v4 }
 0x639   : > { %v5808_v19 = vld [vmem:[#allocation4 + $0x70] sm:$0xff] }
 0x63a   : > { %v5844_v44 = vadd.f32 %v8912_v36, %v5808_v19  ;;  %5777 = vst.msk [vmem:[#allocation4 + $0x78] sm:$0xff] %vm344_vm1, %v5745_v9  ;;  %v5242_v9 = vld [vmem:[#allocation4 + $0xa0] sm:$0xff] }
 0x63b   : > { %v5184_v59 = vpop.f32.mrf.mxu3 }
 0x63c   : > { %v5876_v14 = vpack.c.bf16 %v5844_v44, %v5844_v44  ;;  %v5954_v2 = vsel %vm344_vm1, %v5844_v44, 0.0  ;;  %v6011_v33 = vmul.f32 %v5844_v44, %v5844_v44  ;;  %v5185_v48 = vadd.f32 %v5184_v59, %v5044_v42  ;;  %v5530_v58 = vpop.f32.mrf.mxu0 }
 0x63d   : > { %v5955_v53 = vadd.f32 %v5954_v2, %v5953_v17  ;;  %v5052_v6 = vpop.f32.mrf.mxu2  ;;  %v5670_v17 = vpop.f32.mrf.mxu1  ;;  %v5666_v44 = vadd.f32 %v9113_v22, %v9110_v18 }
 0x63e   : > { %5909 = vst.msk [vmem:[%s8923_s29 + $0x38] sm:$0xf] %vm5894_vm9, %v5876_v14  ;;  %v6056_v37 = vsel %vm344_vm1, %v6011_v33, 0.0  ;;  %v5271_v16 = vadd.f32 %v5239_v60, %v5185_v48 }
 0x63f   : > { %v6057_v61 = vadd.f32 %v6056_v37, %v6055_v56  ;;  %v5714_v25 = vld [vmem:[#allocation4 + $0x80] sm:$0xff] }
 0x640   : > { %v5746_v21 = vadd.f32 %v5714_v25, %v5659_v43  ;;  %5303 = vst.msk [vmem:[#allocation4 + $0x88] sm:$0xff] %vm344_vm1, %v5271_v16 }
 0x641   : > { %v5809_v41 = vld [vmem:[#allocation4 + $0x78] sm:$0xff] }
 0x642   : > { %v5845_v45 = vadd.f32 %v8912_v36, %v5809_v41  ;;  %5778 = vst.msk [vmem:[#allocation4 + $0x80] sm:$0xff] %vm344_vm1, %v5746_v21  ;;  %v5243_v21 = vld [vmem:[#allocation4 + $0xa8] sm:$0xff] }
 0x643   : > { %v5187_v52 = vpop.f32.mrf.mxu3 }
 0x644   : > { %v5877_v30 = vpack.c.bf16 %v5845_v45, %v5845_v45  ;;  %v5956_v27 = vsel %vm344_vm1, %v5845_v45, 0.0  ;;  %v6012_v38 = vmul.f32 %v5845_v45, %v5845_v45  ;;  %v5188_v32 = vadd.f32 %v5187_v52, %v5047_v46  ;;  %v5533_v60 = vpop.f32.mrf.mxu0 }
 0x645   : > { %v5957_v50 = vadd.f32 %v5956_v27, %v5955_v53  ;;  %v5054_v19 = vpop.f32.mrf.mxu2  ;;  %v5673_v43 = vpop.f32.mrf.mxu1  ;;  %v5669_v45 = vadd.f32 %v5668_v12, %v5528_v63 }
 0x646   : > { %5910 = vst.msk [vmem:[%s8923_s29 + $0x3c] sm:$0xf] %vm5894_vm9, %v5877_v30  ;;  %v6058_v13 = vsel %vm344_vm1, %v6012_v38, 0.0  ;;  %v5272_v51 = vadd.f32 %v5240_v8, %v5188_v32 }
 0x647   : > { %v6059_v54 = vadd.f32 %v6058_v13, %v6057_v61  ;;  %v5715_v47 = vld [vmem:[#allocation4 + $0x88] sm:$0xff] }
 0x648   : > { %v5747_v7 = vadd.f32 %v5715_v47, %v5661_v62  ;;  %5304 = vst.msk [vmem:[#allocation4 + $0x90] sm:$0xff] %vm344_vm1, %v5272_v51 }
 0x649   : > { %v5810_v55 = vld [vmem:[#allocation4 + $0x80] sm:$0xff] }
 0x64a   : > { %v5846_v24 = vadd.f32 %v8912_v36, %v5810_v55  ;;  %5779 = vst.msk [vmem:[#allocation4 + $0x88] sm:$0xff] %vm344_vm1, %v5747_v7  ;;  %v5244_v7 = vld [vmem:[#allocation4 + $0xb0] sm:$0xff] }
 0x64b   : > { %v5189_v11 = vpop.f32.mrf.mxu3 }
 0x64c   : > { %v5878_v49 = vpack.c.bf16 %v5846_v24, %v5846_v24  ;;  %v5958_v31 = vsel %vm344_vm1, %v5846_v24, 0.0  ;;  %v6013_v20 = vmul.f32 %v5846_v24, %v5846_v24  ;;  %v5190_v3 = vadd.f32 %v5189_v11, %v5049_v15  ;;  %v5535_v62 = vpop.f32.mrf.mxu0 }
 0x64d   : > { %v5959_v40 = vadd.f32 %v5958_v31, %v5957_v50  ;;  %v5057_v41 = vpop.f32.mrf.mxu2  ;;  %v5671_v24 = vadd.f32 %v5670_v17, %v5530_v58  ;;  %v5245_v58 = vld [vmem:[#allocation4 + $0xb8] sm:$0xff]  ;;  %v5674_v17 = vadd.f32 %v5673_v43, %v5533_v60 }
 0x64e   : > { %5911 = vst.msk [vmem:[%s8923_s29 + $0x40] sm:$0xf] %vm5894_vm9, %v5878_v49  ;;  %v6060_v1 = vsel %vm344_vm1, %v6013_v20, 0.0  ;;  %v5273_v42 = vadd.f32 %v5241_v23, %v5190_v3 }
 0x64f   : > { %v6061_v10 = vadd.f32 %v6060_v1, %v6059_v54  ;;  %v5716_v26 = vld [vmem:[#allocation4 + $0x90] sm:$0xff]  ;;  %v5675_v54 = vpop.f32.mrf.mxu1 }
 0x650   : > { %v5748_v34 = vadd.f32 %v5716_v26, %v5664_v39  ;;  %5305 = vst.msk [vmem:[#allocation4 + $0x98] sm:$0xff] %vm344_vm1, %v5273_v42 }
 0x651   : > { %v5811_v29 = vld [vmem:[#allocation4 + $0x88] sm:$0xff] }
 0x652   : > { %v5847_v35 = vadd.f32 %v8912_v36, %v5811_v29  ;;  %5780 = vst.msk [vmem:[#allocation4 + $0x90] sm:$0xff] %vm344_vm1, %v5748_v34 }
 0x653   : > { %v5192_v0 = vpop.f32.mrf.mxu3 }
 0x654   : > { %v5879_v5 = vpack.c.bf16 %v5847_v35, %v5847_v35  ;;  %v5960_v57 = vsel %vm344_vm1, %v5847_v35, 0.0  ;;  %v6014_v4 = vmul.f32 %v5847_v35, %v5847_v35  ;;  %v5193_v56 = vadd.f32 %v5192_v0, %v5052_v6  ;;  %v5538_v29 = vpop.f32.mrf.mxu0 }
 0x655   : > { %v5961_v28 = vadd.f32 %v5960_v57, %v5959_v40  ;;  %v5059_v55 = vpop.f32.mrf.mxu2 }
 0x656   : > { %5912 = vst.msk [vmem:[%s8923_s29 + $0x44] sm:$0xf] %vm5894_vm9, %v5879_v5  ;;  %v6062_v59 = vsel %vm344_vm1, %v6014_v4, 0.0  ;;  %v5274_v14 = vadd.f32 %v5242_v9, %v5193_v56 }
 0x657   : > { %v6063_v2 = vadd.f32 %v6062_v59, %v6061_v10  ;;  %v5717_v33 = vld [vmem:[#allocation4 + $0x98] sm:$0xff]  ;;  %v5678_v5 = vpop.f32.mrf.mxu1 }
 0x658   : > { %v5749_v48 = vadd.f32 %v5717_v33, %v5666_v44  ;;  %5306 = vst.msk [vmem:[#allocation4 + $0xa0] sm:$0xff] %vm344_vm1, %v5274_v14  ;;  %v5246_v14 = vld [vmem:[#allocation4 + $0xc0] sm:$0xff]  ;;  %v5676_v33 = vadd.f32 %v5675_v54, %v5535_v62 }
 0x659   : > { %v5812_v53 = vld [vmem:[#allocation4 + $0x90] sm:$0xff] }
 0x65a   : > { %v5848_v46 = vadd.f32 %v8912_v36, %v5812_v53  ;;  %5781 = vst.msk [vmem:[#allocation4 + $0x98] sm:$0xff] %vm344_vm1, %v5749_v48 }
 0x65b   : > { %v5194_v37 = vpop.f32.mrf.mxu3 }
 0x65c   : > { %v5880_v18 = vpack.c.bf16 %v5848_v46, %v5848_v46  ;;  %v5962_v22 = vsel %vm344_vm1, %v5848_v46, 0.0  ;;  %v6015_v16 = vmul.f32 %v5848_v46, %v5848_v46  ;;  %v5195_v61 = vadd.f32 %v5194_v37, %v5054_v19  ;;  %v5540_v60 = vpop.f32.mrf.mxu0  ;;  %v9185_v37 = vld [vmem:[%s9320_s5] ss:$0 sm:$0xff] }
 0x65d   : > { %v5963_v25 = vadd.f32 %v5962_v22, %v5961_v28  ;;  %v5062_v34 = vpop.f32.mrf.mxu2 }
 0x65e   : > { %5913 = vst.msk [vmem:[%s8923_s29 + $0x48] sm:$0xf] %vm5894_vm9, %v5880_v18  ;;  %v6064_v52 = vsel %vm344_vm1, %v6015_v16, 0.0  ;;  %v5275_v30 = vadd.f32 %v5243_v21, %v5195_v61 }
 0x65f   : > { %v6065_v27 = vadd.f32 %v6064_v52, %v6063_v2  ;;  %v5718_v38 = vld [vmem:[#allocation4 + $0xa0] sm:$0xff] }
 0x660   : > { %v5750_v32 = vadd.f32 %v5718_v38, %v5669_v45  ;;  %5307 = vst.msk [vmem:[#allocation4 + $0xa8] sm:$0xff] %vm344_vm1, %v5275_v30 }
 0x661   : > { %v5813_v50 = vld [vmem:[#allocation4 + $0x98] sm:$0xff] }
 0x662   : > { %v5849_v8 = vadd.f32 %v8912_v36, %v5813_v50  ;;  %5782 = vst.msk [vmem:[#allocation4 + $0xa0] sm:$0xff] %vm344_vm1, %v5750_v32 }
 0x663   : > { %v5197_v15 = vpop.f32.mrf.mxu3 }
 0x664   : > { %v5881_v13 = vpack.c.bf16 %v5849_v8, %v5849_v8  ;;  %v5964_v63 = vsel %vm344_vm1, %v5849_v8, 0.0  ;;  %v6016_v51 = vmul.f32 %v5849_v8, %v5849_v8  ;;  %v5198_v12 = vadd.f32 %v5197_v15, %v5057_v41  ;;  %v5543_v38 = vpop.f32.mrf.mxu0 }
 0x665   : > { %v5965_v47 = vadd.f32 %v5964_v63, %v5963_v25  ;;  %v5064_v2 = vpop.f32.mrf.mxu2  ;;  %v5247_v25 = vld [vmem:[#allocation4 + $0xc8] sm:$0xff]  ;;  %v5679_v41 = vadd.f32 %v5678_v5, %v5538_v29  ;;  %v5250_v29 = vld [vmem:[#allocation4 + $0xe0] sm:$0xff] }
 0x666   : > { %5914 = vst.msk [vmem:[%s8923_s29 + $0x4c] sm:$0xf] %vm5894_vm9, %v5881_v13  ;;  %v6066_v11 = vsel %vm344_vm1, %v6016_v51, 0.0  ;;  %v5276_v49 = vadd.f32 %v5244_v7, %v5198_v12  ;;  %v5248_v13 = vld [vmem:[#allocation4 + $0xd0] sm:$0xff] }
 0x667   : > { %v6067_v31 = vadd.f32 %v6066_v11, %v6065_v27  ;;  %v5719_v20 = vld [vmem:[#allocation4 + $0xa8] sm:$0xff] }
 0x668   : > { %v5751_v3 = vadd.f32 %v5719_v20, %v5671_v24  ;;  %5308 = vst.msk [vmem:[#allocation4 + $0xb0] sm:$0xff] %vm344_vm1, %v5276_v49 }
 0x669   : > { %v5814_v40 = vld [vmem:[#allocation4 + $0xa0] sm:$0xff] }
 0x66a   : > { %v5850_v23 = vadd.f32 %v8912_v36, %v5814_v40  ;;  %5783 = vst.msk [vmem:[#allocation4 + $0xa8] sm:$0xff] %vm344_vm1, %v5751_v3  ;;  %v5249_v3 = vld [vmem:[#allocation4 + $0xd8] sm:$0xff] }
 0x66b   : > { %v5199_v6 = vpop.f32.mrf.mxu3 }
 0x66c   : > { %v5882_v39 = vpack.c.bf16 %v5850_v23, %v5850_v23  ;;  %v5966_v1 = vsel %vm344_vm1, %v5850_v23, 0.0  ;;  %v6017_v42 = vmul.f32 %v5850_v23, %v5850_v23  ;;  %v5200_v10 = vadd.f32 %v5199_v6, %v5059_v55  ;;  %v5545_v11 = vpop.f32.mrf.mxu0 }
 0x66d   : > { %v9165_v26 = vadd.f32 %v5966_v1, %v5965_v47  ;;  %v5067_v21 = vpop.f32.mrf.mxu2 }
 0x66e   : > { %5915 = vst.msk [vmem:[%s8923_s29 + $0x50] sm:$0xf] %vm5894_vm9, %v5882_v39  ;;  %v6068_v35 = vsel %vm344_vm1, %v6017_v42, 0.0  ;;  %v5277_v0 = vadd.f32 %v5245_v58, %v5200_v10 }
 0x66f   : > { %v9170_v57 = vadd.f32 %v6068_v35, %v6067_v31  ;;  %v5720_v4 = vld [vmem:[#allocation4 + $0xb0] sm:$0xff] }
 0x670   : > { %v5752_v56 = vadd.f32 %v5720_v4, %v5674_v17  ;;  %5309 = vst.msk [vmem:[#allocation4 + $0xb8] sm:$0xff] %vm344_vm1, %v5277_v0 }
 0x671   : > { %v5815_v28 = vld [vmem:[#allocation4 + $0xa8] sm:$0xff] }
 0x672   : > { %v9174_v9 = vadd.f32 %v8912_v36, %v5815_v28  ;;  %5784 = vst.msk [vmem:[#allocation4 + $0xb0] sm:$0xff] %vm344_vm1, %v5752_v56  ;;  %v5680_v36 = vpop.f32.mrf.mxu1 }
 0x673   : > { %v5202_v19 = vpop.f32.mrf.mxu3  ;;  %v5681_v51 = vadd.f32 %v5680_v36, %v5540_v60 }
 0x674   : > { %v5883_v44 = vpack.c.bf16 %v9174_v9, %v9174_v9  ;;  %v5203_v59 = vadd.f32 %v5202_v19, %v5062_v34  ;;  %v5548_v0 = vpop.f32.mrf.mxu0 }
 0x675   : > { %v5069_v63 = vpop.f32.mrf.mxu2 }
 0x676   : > { %5916 = vst.msk [vmem:[%s8923_s29 + $0x54] sm:$0xf] %vm5894_vm9, %v5883_v44  ;;  %v5278_v48 = vadd.f32 %v5246_v14, %v5203_v59 }
 0x677   : > { %v5721_v53 = vld [vmem:[#allocation4 + $0xb8] sm:$0xff] }
 0x678   : > { %v5753_v46 = vadd.f32 %v5721_v53, %v5676_v33  ;;  %5310 = vst.msk [vmem:[#allocation4 + $0xc0] sm:$0xff] %vm344_vm1, %v5278_v48  ;;  %v5251_v48 = vld [vmem:[#allocation4 + $0xe8] sm:$0xff] }
 0x679   : > { %v5816_v43 = vld [vmem:[#allocation4 + $0xb0] sm:$0xff] }
 0x67a   : > { %v9188_v18 = vadd.f32 %v9185_v37, %v5816_v43  ;;  %5785 = vst.msk [vmem:[#allocation4 + $0xb8] sm:$0xff] %vm344_vm1, %v5753_v46  ;;  %v5683_v50 = vpop.f32.mrf.mxu1 }
 0x67b   : > { %v5204_v22 = vpop.f32.mrf.mxu3  ;;  %v5684_v23 = vadd.f32 %v5683_v50, %v5543_v38 }
 0x67c   : > { %v5884_v16 = vpack.c.bf16 %v9188_v18, %v9188_v18  ;;  %v5205_v61 = vadd.f32 %v5204_v22, %v5064_v2  ;;  %v5550_v36 = vpop.f32.mrf.mxu0 }
 0x67e   : > { %5917 = vst.msk [vmem:[%s8923_s29 + $0x58] sm:$0xf] %vm5894_vm9, %v5884_v16  ;;  %v5279_v45 = vadd.f32 %v5247_v25, %v5205_v61 }
 0x67f   : > { %v5722_v52 = vld [vmem:[#allocation4 + $0xc0] sm:$0xff] }
 0x680   : > { %v5754_v30 = vadd.f32 %v5722_v52, %v5679_v41  ;;  %5311 = vst.msk [vmem:[#allocation4 + $0xc8] sm:$0xff] %vm344_vm1, %v5279_v45  ;;  %v5252_v52 = vld [vmem:[#allocation4 + $0xf0] sm:$0xff] }
 0x681   : > { %v5817_v27 = vld [vmem:[#allocation4 + $0xb8] sm:$0xff] }
 0x682   : > { %v9197_v32 = vadd.f32 %v9185_v37, %v5817_v27  ;;  %5786 = vst.msk [vmem:[#allocation4 + $0xc0] sm:$0xff] %vm344_vm1, %v5754_v30  ;;  %v5685_v20 = vpop.f32.mrf.mxu1  ;;  %v5072_v40 = vpop.f32.mrf.mxu2 }
 0x683   : > { %v5207_v8 = vpop.f32.mrf.mxu3  ;;  %v5686_v35 = vadd.f32 %v5685_v20, %v5545_v11  ;;  %v5968_v11 = vsel %vm344_vm1, %v9174_v9, 0.0 }
 0x684   : > { %v5885_v15 = vpack.c.bf16 %v9197_v32, %v9197_v32  ;;  %v5208_v62 = vadd.f32 %v5207_v8, %v5067_v21 }
 0x686   : > { %5918 = vst.msk [vmem:[%s8923_s29 + $0x5c] sm:$0xf] %vm5894_vm9, %v5885_v15  ;;  %v5280_v12 = vadd.f32 %v5248_v13, %v5208_v62 }
 0x687   : > { %v5723_v54 = vld [vmem:[#allocation4 + $0xc8] sm:$0xff] }
 0x688   : > { %v5755_v47 = vadd.f32 %v5723_v54, %v5681_v51  ;;  %5312 = vst.msk [vmem:[#allocation4 + $0xd0] sm:$0xff] %vm344_vm1, %v5280_v12  ;;  %v6018_v12 = vmul.f32 %v9174_v9, %v9174_v9  ;;  %v5969_v9 = vadd.f32 %v5968_v11, %v9165_v26 }
 0x689   : > { %v5818_v7 = vld [vmem:[#allocation4 + $0xc0] sm:$0xff] }
 0x68a   : > { %v9206_v55 = vadd.f32 %v9185_v37, %v5818_v7  ;;  %5787 = vst.msk [vmem:[#allocation4 + $0xc8] sm:$0xff] %vm344_vm1, %v5755_v47  ;;  %v5688_v4 = vpop.f32.mrf.mxu1  ;;  %v5074_v28 = vpop.f32.mrf.mxu2 }
 0x68b   : > { %v5209_v24 = vpop.f32.mrf.mxu3  ;;  %v5689_v53 = vadd.f32 %v5688_v4, %v5548_v0 }
 0x68c   : > { %v5886_v49 = vpack.c.bf16 %v9206_v55, %v9206_v55  ;;  %v5210_v31 = vadd.f32 %v5209_v24, %v5069_v63  ;;  %v5253_v24 = vld [vmem:[#allocation4 + $0xf8] sm:$0xff]  ;;  %v5974_v0 = vsel %vm344_vm1, %v9206_v55, 0.0 }
 0x68e   : > { %5919 = vst.msk [vmem:[%s8923_s29 + $0x60] sm:$0xf] %vm5894_vm9, %v5886_v49  ;;  %v5281_v6 = vadd.f32 %v5249_v3, %v5210_v31  ;;  %v6019_v49 = vmul.f32 %v9188_v18, %v9188_v18  ;;  %v6070_v3 = vsel %vm344_vm1, %v6018_v12, 0.0 }
 0x68f   : > { %v5724_v39 = vld [vmem:[#allocation4 + $0xd0] sm:$0xff] }
 0x690   : > { %v5756_v1 = vadd.f32 %v5724_v39, %v5684_v23  ;;  %5313 = vst.msk [vmem:[#allocation4 + $0xd8] sm:$0xff] %vm344_vm1, %v5281_v6  ;;  %v6020_v23 = vmul.f32 %v9197_v32, %v9197_v32 }
 0x691   : > { %v5819_v42 = vld [vmem:[#allocation4 + $0xc8] sm:$0xff] }
 0x692   : > { %v9215_v10 = vadd.f32 %v9185_v37, %v5819_v42  ;;  %5788 = vst.msk [vmem:[#allocation4 + $0xd0] sm:$0xff] %vm344_vm1, %v5756_v1  ;;  %v5690_v22 = vpop.f32.mrf.mxu1  ;;  %v5077_v61 = vpop.f32.mrf.mxu2  ;;  %v6072_v1 = vsel %vm344_vm1, %v6019_v49, 0.0  ;;  %v5972_v42 = vsel %vm344_vm1, %v9197_v32, 0.0  ;;  %v6074_v26 = vsel %vm344_vm1, %v6020_v23, 0.0 }
 0x693   : > { %v5212_v58 = vpop.f32.mrf.mxu3  ;;  %v5691_v30 = vadd.f32 %v5690_v22, %v5550_v36 }
 0x694   : > { %v5887_v34 = vpack.c.bf16 %v9215_v10, %v9215_v10  ;;  %v5213_v17 = vadd.f32 %v5212_v58, %v5072_v40  ;;  %v5553_v15 = vpop.f32.mrf.mxu0  ;;  %v5970_v40 = vsel %vm344_vm1, %v9188_v18, 0.0  ;;  %v6021_v58 = vmul.f32 %v9206_v55, %v9206_v55 }
 0x695   : > { %v6022_v32 = vmul.f32 %v9215_v10, %v9215_v10 }
 0x696   : > { %5920 = vst.msk [vmem:[%s8923_s29 + $0x64] sm:$0xf] %vm5894_vm9, %v5887_v34  ;;  %v5282_v5 = vadd.f32 %v5250_v29, %v5213_v17  ;;  %v6071_v34 = vadd.f32 %v6070_v3, %v9170_v57  ;;  %v5971_v17 = vadd.f32 %v5970_v40, %v5969_v9 }
 0x697   : > { %v5725_v56 = vld [vmem:[#allocation4 + $0xd8] sm:$0xff] }
 0x698   : > { %v5757_v19 = vadd.f32 %v5725_v56, %v5686_v35  ;;  %5314 = vst.msk [vmem:[#allocation4 + $0xe0] sm:$0xff] %vm344_vm1, %v5282_v5  ;;  %v6073_v4 = vadd.f32 %v6072_v1, %v6071_v34  ;;  %v5973_v56 = vadd.f32 %v5972_v42, %v5971_v17 }
 0x699   : > { %v5820_v44 = vld [vmem:[#allocation4 + $0xd0] sm:$0xff] }
 0x69a   : > { %v9224_v59 = vadd.f32 %v9185_v37, %v5820_v44  ;;  %5789 = vst.msk [vmem:[#allocation4 + $0xd8] sm:$0xff] %vm344_vm1, %v5757_v19  ;;  %v5693_v62 = vpop.f32.mrf.mxu1  ;;  %v5079_v63 = vpop.f32.mrf.mxu2  ;;  %v5976_v19 = vsel %vm344_vm1, %v9215_v10, 0.0 }
 0x69b   : > { %v5214_v14 = vpop.f32.mrf.mxu3  ;;  %v5694_v7 = vadd.f32 %v5693_v62, %v5553_v15 }
 0x69c   : > { %v5888_v2 = vpack.c.bf16 %v9224_v59, %v9224_v59  ;;  %v5215_v33 = vadd.f32 %v5214_v14, %v5074_v28  ;;  %v5555_v29 = vpop.f32.mrf.mxu0  ;;  %v6076_v28 = vsel %vm344_vm1, %v6021_v58, 0.0  ;;  %v6023_v57 = vmul.f32 %v9224_v59, %v9224_v59 }
 0x69d   : > { %v6075_v14 = vadd.f32 %v6074_v26, %v6073_v4 }
 0x69e   : > { %5921 = vst.msk [vmem:[%s8923_s29 + $0x68] sm:$0xf] %vm5894_vm9, %v5888_v2  ;;  %v5283_v60 = vadd.f32 %v5251_v48, %v5215_v33  ;;  %v5975_v2 = vadd.f32 %v5974_v0, %v5973_v56  ;;  %v6078_v33 = vsel %vm344_vm1, %v6022_v32, 0.0  ;;  %v5978_v48 = vsel %vm344_vm1, %v9224_v59, 0.0 }
 0x69f   : > { %v5726_v46 = vld [vmem:[#allocation4 + $0xe0] sm:$0xff] }
 0x6a0   : > { %v5758_v43 = vadd.f32 %v5726_v46, %v5689_v53  ;;  %5315 = vst.msk [vmem:[#allocation4 + $0xe8] sm:$0xff] %vm344_vm1, %v5283_v60  ;;  %v6077_v46 = vadd.f32 %v6076_v28, %v6075_v14  ;;  %v5977_v10 = vadd.f32 %v5976_v19, %v5975_v2 }
 0x6a1   : > { %v5821_v16 = vld [vmem:[#allocation4 + $0xd8] sm:$0xff] }
 0x6a2   : > { %v9233_v25 = vadd.f32 %v9185_v37, %v5821_v16  ;;  %5790 = vst.msk [vmem:[#allocation4 + $0xe0] sm:$0xff] %vm344_vm1, %v5758_v43  ;;  %v5695_v35 = vpop.f32.mrf.mxu1  ;;  %v6080_v43 = vsel %vm344_vm1, %v6023_v57, 0.0  ;;  %v5979_v59 = vadd.f32 %v5978_v48, %v5977_v10 }
 0x6a3   : > { %v5217_v21 = vpop.f32.mrf.mxu3  ;;  %v5696_v44 = vadd.f32 %v5695_v35, %v5555_v29 }
 0x6a4   : > { %v5889_v41 = vpack.c.bf16 %v9233_v25, %v9233_v25  ;;  %v5218_v45 = vadd.f32 %v5217_v21, %v5077_v61  ;;  %v6024_v53 = vmul.f32 %v9233_v25, %v9233_v25  ;;  %v5980_v22 = vsel %vm344_vm1, %v9233_v25, 0.0 }
 0x6a5   : > { %v6079_v21 = vadd.f32 %v6078_v33, %v6077_v46 }
 0x6a6   : > { %5922 = vst.msk [vmem:[%s8923_s29 + $0x6c] sm:$0xf] %vm5894_vm9, %v5889_v41  ;;  %v5284_v27 = vadd.f32 %v5252_v52, %v5218_v45  ;;  %v6082_v41 = vsel %vm344_vm1, %v6024_v53, 0.0 }
 0x6a7   : > { %v5727_v38 = vld [vmem:[#allocation4 + $0xe8] sm:$0xff] }
 0x6a8   : > { %v5759_v50 = vadd.f32 %v5727_v38, %v5691_v30  ;;  %5316 = vst.msk [vmem:[#allocation4 + $0xf0] sm:$0xff] %vm344_vm1, %v5284_v27  ;;  %v6081_v27 = vadd.f32 %v6080_v43, %v6079_v21  ;;  %v5981_v38 = vadd.f32 %v5980_v22, %v5979_v59 }
 0x6a9   : > { %v5822_v8 = vld [vmem:[#allocation4 + $0xe0] sm:$0xff] }
 0x6aa   : > { %v5858_v13 = vadd.f32 %v9185_v37, %v5822_v8  ;;  %5791 = vst.msk [vmem:[#allocation4 + $0xe8] sm:$0xff] %vm344_vm1, %v5759_v50  ;;  %v6083_v15 = vadd.f32 %v6082_v41, %v6081_v27 }
 0x6ab   : > { %v5219_v51 = vpop.f32.mrf.mxu3 }
 0x6ac   : > { %v5890_v54 = vpack.c.bf16 %v5858_v13, %v5858_v13  ;;  %v5220_v47 = vadd.f32 %v5219_v51, %v5079_v63  ;;  %v6025_v16 = vmul.f32 %v5858_v13, %v5858_v13  ;;  %v5982_v45 = vsel %vm344_vm1, %v5858_v13, 0.0 }
 0x6ad   : > { %v5983_v62 = vadd.f32 %v5982_v45, %v5981_v38 }
 0x6ae   : > { %5923 = vst.msk [vmem:[%s8923_s29 + $0x70] sm:$0xf] %vm5894_vm9, %v5890_v54  ;;  %v5285_v31 = vadd.f32 %v5253_v24, %v5220_v47  ;;  %v6084_v50 = vsel %vm344_vm1, %v6025_v16, 0.0 }
 0x6af   : > { %v5728_v20 = vld [vmem:[#allocation4 + $0xf0] sm:$0xff]  ;;  %v6085_v13 = vadd.f32 %v6084_v50, %v6083_v15 }
 0x6b0   : > { %5317 = vst.msk [vmem:[#allocation4 + $0xf8] sm:$0xff] %vm344_vm1, %v5285_v31  ;;  %v5760_v6 = vadd.f32 %v5728_v20, %v5694_v7 }
 0x6b1   : > { %v5823_v39 = vld [vmem:[#allocation4 + $0xe8] sm:$0xff] }
 0x6b2   : > { %v5859_v18 = vadd.f32 %v9185_v37, %v5823_v39  ;;  %5792 = vst.msk [vmem:[#allocation4 + $0xf0] sm:$0xff] %vm344_vm1, %v5760_v6 }
 0x6b4   : > { %v5891_v5 = vpack.c.bf16 %v5859_v18, %v5859_v18  ;;  %v6026_v52 = vmul.f32 %v5859_v18, %v5859_v18  ;;  %v5984_v25 = vsel %vm344_vm1, %v5859_v18, 0.0 }
 0x6b5   : > { %v5985_v12 = vadd.f32 %v5984_v25, %v5983_v62 }
 0x6b6   : > { %5924 = vst.msk [vmem:[%s8923_s29 + $0x74] sm:$0xf] %vm5894_vm9, %v5891_v5  ;;  %v6086_v51 = vsel %vm344_vm1, %v6026_v52, 0.0 }
 0x6b7   : > { %v5729_v55 = vld [vmem:[#allocation4 + $0xf8] sm:$0xff]  ;;  %v6087_v11 = vadd.f32 %v6086_v51, %v6085_v13 }
 0x6b8   : > { %v5761_v60 = vadd.f32 %v5729_v55, %v5696_v44 }
 0x6b9   : > { %v5824_v36 = vld [vmem:[#allocation4 + $0xf0] sm:$0xff] }
 0x6ba   : > { %v5860_v61 = vadd.f32 %v9185_v37, %v5824_v36  ;;  %5793 = vst.msk [vmem:[#allocation4 + $0xf8] sm:$0xff] %vm344_vm1, %v5761_v60 }
 0x6bc   : > { %v5892_v30 = vpack.c.bf16 %v5860_v61, %v5860_v61  ;;  %v6027_v8 = vmul.f32 %v5860_v61, %v5860_v61  ;;  %v5986_v63 = vsel %vm344_vm1, %v5860_v61, 0.0 }
 0x6bd   : > { %v5987_v24 = vadd.f32 %v5986_v63, %v5985_v12 }
 0x6be   : > { %5925 = vst.msk [vmem:[%s8923_s29 + $0x78] sm:$0xf] %vm5894_vm9, %v5892_v30  ;;  %v6088_v47 = vsel %vm344_vm1, %v6027_v8, 0.0 }
 0x6bf   : > { %v6089_v3 = vadd.f32 %v6088_v47, %v6087_v11 }
 0x6c1   : > { %v5825_v54 = vld [vmem:[#allocation4 + $0xf8] sm:$0xff] }
 0x6c2   : > { %v5861_v7 = vadd.f32 %v9185_v37, %v5825_v54 }
 0x6c4   : > { %v5893_v49 = vpack.c.bf16 %v5861_v7, %v5861_v7  ;;  %v5988_v31 = vsel %vm344_vm1, %v5861_v7, 0.0  ;;  %v6028_v20 = vmul.f32 %v5861_v7, %v5861_v7 }
 0x6c5   : > { %v5989_v40 = vadd.f32 %v5988_v31, %v5987_v24 }
 0x6c6   : > { %5926 = vst.msk [vmem:[%s8923_s29 + $0x7c] sm:$0xf] %vm5894_vm9, %v5893_v49  ;;  %v6090_v23 = vsel %vm344_vm1, %v6028_v20, 0.0 }
 0x6c7   : > { %v5990_v6 = vrot.slane %v5989_v40, 4  ;;  %v6091_v9 = vadd.f32 %v6090_v23, %v6089_v3 }
 0x6c9   : > { %v5991_v39 = vadd.f32 %v5990_v6, %v5989_v40  ;;  %v6092_v1 = vrot.slane %v6091_v9, 4 }
 0x6cb   : > { %v5992_v42 = vrot.slane %v5991_v39, 2  ;;  %v6093_v37 = vadd.f32 %v6092_v1, %v6091_v9 }
 0x6cd   : > { %v5993_v58 = vadd.f32 %v5992_v42, %v5991_v39  ;;  %v6094_v18 = vrot.slane %v6093_v37, 2 }
 0x6cf   : > { %v5994_v34 = vrot.slane %v5993_v58, 1  ;;  %v6095_v17 = vadd.f32 %v6094_v18, %v6093_v37 }
 0x6d1   : > { %v5995_v29 = vadd.f32 %v5994_v34, %v5993_v58  ;;  %v6096_v35 = vrot.slane %v6095_v17, 1 }
 0x6d3   : > { %5996 = vst.msk [vmem:[%s339_s12] sm:$0x1] %vm353_vm6, %v5995_v29  ;;  %v6097_v26 = vadd.f32 %v6096_v35, %v6095_v17 }
 0x6d5   : > { %6098 = vst.msk [vmem:[%s342_s30] sm:$0x1] %vm353_vm6, %v6097_v26 }
 0x6d6 PF: > { %s19_s27 = sadd.s32 1, %s6766_s27  }
 0x6d7   : > { %p16_p4 = scmp.ge.s32.totalorder %s19_s27, 4  }
 0x6d9   :  { %18 = sbr.rel (!%p16_p4) target bundleno = 1 (0x1), region = 141 }

</bundles_post_ra>
